<compile_context>
chip_gen: v7x
topology: tpu7x:2x2x1
jax: 0.10.0
libtpu: 0.0.40
codegen_flags: <defaults>
</compile_context>

<pallas_src>
import numpy as np
import jax
import jax.numpy as jnp
from jax.experimental import pallas as pl
from jax.experimental.pallas import tpu as pltpu

# Keep kernel (Mosaic fp32 contract precision) and XLA reference numerically aligned so
# the correctness check can be tight (1e-4) instead of the previous 1e-2.
jax.config.update("jax_default_matmul_precision", "highest")

VMEM_SPEC = pl.BlockSpec(memory_space=pltpu.MemorySpace.VMEM)

ROW_ALIGN = 8     # every parameter starts on an 8-row (sublane) boundary in the slab
SLAB_W = 128      # lane width of the packed parameter slab


def _round_up(x, m):
    return -(-x // m) * m


def _elu(x):
    # ELU(alpha=1).  exp(min(x,0)) - 1 (instead of expm1) keeps the Mosaic lowering
    # dependency-free; the reference uses the identical formula.
    return jnp.where(x > 0, x, jnp.exp(jnp.minimum(x, 0.0)) - 1.0)


# ------------------------------ param packing ----------------------------------
def pack_params(params, B, T):
    """One-time host-side packing of all parameters (plus batch<->time permutation
    matrices) into a single (rows, 128) f32 slab -> one parameter DMA per call."""
    enc, g, fc, pr = params["encoder"], params["gru"], params["dyn_fc"], params["pred"]
    BP = _round_up(max(B, 1), ROW_ALIGN)
    N = B * T

    entries = []

    def add(name, arr):
        a = np.asarray(jax.device_get(arr), np.float32)
        assert a.ndim == 2 and a.shape[1] <= SLAB_W, name
        entries.append((name, a))

    for i, (w, b) in enumerate(zip(enc["w"], enc["b"])):
        add(f"enc_w{i}", w); add(f"enc_b{i}", b)
    add("w_mulv", enc["w_mulv"]); add("b_mulv", enc["b_mulv"])
    for gi in range(3):                      # PyTorch gate order: r, z(update), n
        add(f"wihz{gi}", g["w_ih_z"][gi])
        add(f"wiha{gi}", g["w_ih_a"][gi])
        add(f"bih{gi}",  g["b_ih"][gi])
        add(f"whh{gi}",  g["w_hh"][gi])
        add(f"bhh{gi}",  g["b_hh"][gi])
    for i, (w, b) in enumerate(zip(fc["w"], fc["b"])):
        add(f"fc_w{i}", w); add(f"fc_b{i}", b)
    for i, (w, b) in enumerate(zip(pr["w"], pr["b"])):
        add(f"pr_w{i}", w); add(f"pr_b{i}", b)

    # Row-permutation matrices: batch-major (b*T+t) <-> time-major padded (t*BP+b).
    P = np.zeros((T * BP, N), np.float32)
    Q = np.zeros((N, T * BP), np.float32)
    for b in range(B):
        for t in range(T):
            P[t * BP + b, b * T + t] = 1.0
            Q[b * T + t, t * BP + b] = 1.0
    entries.append(("perm_bt2tm", P))
    entries.append(("perm_tm2bt", Q))

    offsets, row = {}, 0
    for name, a in entries:
        offsets[name] = row
        row += _round_up(a.shape[0], ROW_ALIGN)
    slab = np.zeros((_round_up(row, ROW_ALIGN), SLAB_W), np.float32)
    for name, a in entries:
        r0 = offsets[name]
        slab[r0:r0 + a.shape[0], :a.shape[1]] = a
    return jnp.asarray(slab), offsets


# --------------------------- fused forward kernel ------------------------------
def _make_fused_kernel(meta):
    T, BP, N = meta["T"], meta["BP"], meta["N"]
    L, H, Da = meta["L"], meta["H"], meta["Da"]
    Dn, Pd, OUT_W = meta["Dn"], meta["Pd"], meta["OUT_W"]
    off = meta["offsets"]
    enc_specs, fc_specs, pr_specs = meta["enc_specs"], meta["fc_specs"], meta["pr_specs"]
    NT = T * BP
    f32 = jnp.float32

    def kernel(x_ref, eps_ref, act_ref, p_ref, out_ref, xr_sc, xu_sc, xn_sc, h_sc):
        def w(name, din, dout):                       # static slab view, load at use
            r0 = off[name]
            return p_ref[r0:r0 + din, 0:dout]

        def mlp(h, specs):                            # weights loaded at point of use
            for name_w, din, dout, name_b, act in specs:
                h = (jnp.dot(h, w(name_w, din, dout), preferred_element_type=f32)
                     + w(name_b, 1, dout))
                if act:
                    h = _elu(h)
            return h

        # ---- VAE encoder over all B*T rows (batch-major) ----
        henc = mlp(x_ref[...], enc_specs)
        ml = (jnp.dot(henc, w("w_mulv", L, 2 * L), preferred_element_type=f32)
              + w("b_mulv", 1, 2 * L))                                # [mu | logvar]
        mu = ml[:, 0:L]
        logvar = ml[:, L:2 * L]
        z = mu + jnp.exp(0.5 * logvar) * eps_ref[...]

        # ---- GRU ----
        # batch-major -> (time-major, batch padded to BP) via permutation matmuls on
        # the otherwise-idle MXU; padded rows come out as zeros automatically.
        perm = w("perm_bt2tm", NT, N)
        z_tm = jnp.dot(perm, z, preferred_element_type=f32)           # (T*BP, L)
        a_tm = jnp.dot(perm, act_ref[...], preferred_element_type=f32)  # (T*BP, Da)

        # Per-gate input projections, hoisted out of the recurrence; parked in VMEM
        # scratch so they are not live in vregs across the unrolled loop.
        for gi, sc in ((0, xr_sc), (1, xu_sc), (2, xn_sc)):
            sc[...] = (jnp.dot(z_tm, w(f"wihz{gi}", L, H), preferred_element_type=f32)
                       + jnp.dot(a_tm, w(f"wiha{gi}", Da, H), preferred_element_type=f32)
                       + w(f"bih{gi}", 1, H))

        # Only values kept live across the loop: recurrent weights + hoisted biases.
        whh_r, whh_u, whh_n = (w(f"whh{gi}", H, H) for gi in range(3))
        bhh_r, bhh_u, bhh_n = (jnp.broadcast_to(w(f"bhh{gi}", 1, H), (BP, H))
                               for gi in range(3))

        h_t = jnp.zeros((BP, H), f32)
        for t in range(T):                            # fully unrolled serial chain
            r0 = t * BP                               # 8-row aligned -> free views
            gh_r = jnp.dot(h_t, whh_r, preferred_element_type=f32) + bhh_r
            gh_u = jnp.dot(h_t, whh_u, preferred_element_type=f32) + bhh_u
            gh_n = jnp.dot(h_t, whh_n, preferred_element_type=f32) + bhh_n
            r = jax.nn.sigmoid(xr_sc[r0:r0 + BP, :] + gh_r)
            u = jax.nn.sigmoid(xu_sc[r0:r0 + BP, :] + gh_u)
            n = jnp.tanh(xn_sc[r0:r0 + BP, :] + r * gh_n)
            h_t = (1.0 - u) * n + u * h_t
            h_sc[r0:r0 + BP, :] = h_t                 # aligned full-sublane store

        # ---- dynamics FC hoisted out of the recurrence: one batched MLP ----
        nxt_tm = mlp(h_sc[...], fc_specs)                              # (T*BP, Dn)
        nxt = jnp.dot(w("perm_tm2bt", N, NT), nxt_tm,
                      preferred_element_type=f32)                      # batch-major

        # ---- predictor (batched) ----
        pred = mlp(z, pr_specs)

        # ---- single lane-dense output slab: [mu|logvar | z | nxt | pred | pad] ----
        used = 2 * L + L + Dn + Pd
        pieces = [ml, z, nxt, pred]
        if OUT_W > used:
            pieces.append(jnp.zeros((N, OUT_W - used), f32))
        out_ref[...] = jnp.concatenate(pieces, axis=-1).astype(out_ref.dtype)

    return kernel


# ------------------------------ wrapper ----------------------------------------
def build_forward(params, slab, offsets, B, T):
    enc, g, fc, pr = params["encoder"], params["gru"], params["dyn_fc"], params["pred"]
    Dobs = enc["w"][0].shape[0]
    L = enc["w_mulv"].shape[0]
    H = g["w_hh"][0].shape[0]
    Da = g["w_ih_a"][0].shape[0]
    Dn = fc["w"][-1].shape[1]
    Pd = pr["w"][-1].shape[1]
    BP = _round_up(max(B, 1), ROW_ALIGN)
    N = B * T
    NT = T * BP
    OUT_W = _round_up(2 * L + L + Dn + Pd, 128)

    def specs(prefix, ws, bs, acts):
        return tuple((f"{prefix}_w{i}", wv.shape[0], wv.shape[1],
                      f"{prefix}_b{i}", bool(a))
                     for i, (wv, bv, a) in enumerate(zip(ws, bs, acts)))

    meta = dict(T=T, BP=BP, N=N, L=L, H=H, Da=Da, Dn=Dn, Pd=Pd, OUT_W=OUT_W,
                offsets=offsets,
                enc_specs=specs("enc", enc["w"], enc["b"], enc["act"]),
                fc_specs=specs("fc", fc["w"], fc["b"], fc["act"]),
                pr_specs=specs("pr", pr["w"], pr["b"], pr["act"]))

    call = pl.pallas_call(
        _make_fused_kernel(meta),
        out_shape=jax.ShapeDtypeStruct((N, OUT_W), jnp.float32),
        in_specs=[VMEM_SPEC] * 4,
        out_specs=VMEM_SPEC,
        scratch_shapes=[pltpu.VMEM((NT, H), jnp.float32) for _ in range(4)],
    )

    @jax.jit
    def forward(obs, actions, eps):
        # Batch-major row order (b*T + t): pure reshapes, no wrapper transposes.
        x = obs.reshape(N, Dobs)
        a = actions.reshape(N, Da)
        e = eps.reshape(N, L)
        out = call(x, e, a, slab)
        c = 0
        mu = out[:, c:c + L]; c += L
        logvar = out[:, c:c + L]; c += L
        z = out[:, c:c + L]; c += L
        nxt = out[:, c:c + Dn]; c += Dn
        pred = out[:, c:c + Pd]
        return {"mu": mu.reshape(B, T, L),
                "logvar": logvar.reshape(B, T, L),
                "latent": z.reshape(B, T, L),
                "next_latent_pred": nxt.reshape(B, T, Dn),
                "prediction": pred.reshape(B, T, Pd)}

    return forward


# ---------------------------- pure-JAX reference --------------------------------
def _mlp_ref(x, ws, bs, acts):
    h = x
    for wv, bv, a in zip(ws, bs, acts):
        h = h @ wv + bv
        if a:
            h = jnp.where(h > 0, h, jnp.exp(jnp.minimum(h, 0.0)) - 1.0)
    return h


def _forward_ref(params, obs, actions, eps):
    B, T, Dobs = obs.shape
    enc, g, fc, pr = params["encoder"], params["gru"], params["dyn_fc"], params["pred"]
    L = enc["w_mulv"].shape[0]
    H = g["w_hh"][0].shape[0]

    x = obs.reshape(B * T, Dobs)
    h = _mlp_ref(x, enc["w"], enc["b"], enc["act"])
    ml = h @ enc["w_mulv"] + enc["b_mulv"]
    mu, logvar = ml[:, :L], ml[:, L:]
    z = mu + jnp.exp(0.5 * logvar) * eps.reshape(B * T, L)
    zb = z.reshape(B, T, L)

    def step(hprev, inputs):
        z_t, a_t = inputs
        def gate(i):
            return (z_t @ g["w_ih_z"][i] + a_t @ g["w_ih_a"][i] + g["b_ih"][i],
                    hprev @ g["w_hh"][i] + g["b_hh"][i])
        xr, hr = gate(0); xu, hu = gate(1); xn, hn = gate(2)
        r = jax.nn.sigmoid(xr + hr)
        u = jax.nn.sigmoid(xu + hu)
        n = jnp.tanh(xn + r * hn)
        hnew = (1.0 - u) * n + u * hprev
        return hnew, hnew

    _, hs = jax.lax.scan(step, jnp.zeros((B, H), jnp.float32),
                         (jnp.transpose(zb, (1, 0, 2)),
                          jnp.transpose(actions, (1, 0, 2))))
    hiddens = jnp.transpose(hs, (1, 0, 2)).reshape(B * T, H)

    nxt = _mlp_ref(hiddens, fc["w"], fc["b"], fc["act"]).reshape(B, T, -1)
    pred = _mlp_ref(z, pr["w"], pr["b"], pr["act"]).reshape(B, T, -1)
    return {"mu": mu.reshape(B, T, L), "logvar": logvar.reshape(B, T, L),
            "latent": z.reshape(B, T, L), "next_latent_pred": nxt,
            "prediction": pred}


# ------------------------------- param init ------------------------------------
def init_params(key, obs_dim, act_dim, latent_dim, gru_hidden, pred_dim):
    keys = iter(jax.random.split(key, 64))

    def mat(shape, scale=0.1):
        return scale * jax.random.normal(next(keys), shape, jnp.float32)

    def lin(din, dout):
        return mat((din, dout)), mat((1, dout))

    # VAE encoder MLP: obs -> [64, 64] -> latent (ELU on hidden layers), then
    # fused [fc_mu | fc_logvar] head.
    enc_dims = [obs_dim, 64, 64, latent_dim]
    enc_w, enc_b = [], []
    for i in range(len(enc_dims) - 1):
        w, b = lin(enc_dims[i], enc_dims[i + 1]); enc_w.append(w); enc_b.append(b)
    w_mulv, b_mulv = lin(latent_dim, 2 * latent_dim)
    encoder = {"w": enc_w, "b": enc_b, "act": [True, True, False],
               "w_mulv": w_mulv, "b_mulv": b_mulv}

    # GRU (PyTorch gate order r|z|n), per-gate, pre-transposed, input weights split
    # into latent / action column blocks (so [z|a] concat is never materialized).
    gru = {"w_ih_z": [mat((latent_dim, gru_hidden)) for _ in range(3)],
           "w_ih_a": [mat((act_dim, gru_hidden)) for _ in range(3)],
           "b_ih":   [mat((1, gru_hidden)) for _ in range(3)],
           "w_hh":   [mat((gru_hidden, gru_hidden)) for _ in range(3)],
           "b_hh":   [mat((1, gru_hidden)) for _ in range(3)]}

    # dynamics fc: gru_hidden -> [32] -> latent_dim
    fc_dims = [gru_hidden, 32, latent_dim]
    fc_w, fc_b = [], []
    for i in range(len(fc_dims) - 1):
        w, b = lin(fc_dims[i], fc_dims[i + 1]); fc_w.append(w); fc_b.append(b)
    dyn_fc = {"w": fc_w, "b": fc_b, "act": [True, False]}

    # predictor: latent_dim -> [64] -> pred_dim
    pr_dims = [latent_dim, 64, pred_dim]
    pr_w, pr_b = [], []
    for i in range(len(pr_dims) - 1):
        w, b = lin(pr_dims[i], pr_dims[i + 1]); pr_w.append(w); pr_b.append(b)
    pred = {"w": pr_w, "b": pr_b, "act": [True, False]}

    return {"encoder": encoder, "gru": gru, "dyn_fc": dyn_fc, "pred": pred}


if __name__ == "__main__":
    B, T = 2, 8
    obs_dim, act_dim, latent_dim, gru_hidden, pred_dim = 32, 8, 16, 32, 32

    key = jax.random.PRNGKey(0)
    k_p, k_obs, k_act, k_eps = jax.random.split(key, 4)
    params = init_params(k_p, obs_dim, act_dim, latent_dim, gru_hidden, pred_dim)
    slab, offsets = pack_params(params, B, T)

    obs = jax.random.normal(k_obs, (B, T, obs_dim), jnp.float32)
    actions = jax.random.normal(k_act, (B, T, act_dim), jnp.float32)
    eps = jax.random.normal(k_eps, (B, T, latent_dim), jnp.float32)  # ~ randn_like(std)

    forward = build_forward(params, slab, offsets, B, T)
    out = jax.block_until_ready(forward(obs, actions, eps))

    ref = _forward_ref(params, obs, actions, eps)
    for name in ("mu", "logvar", "latent", "next_latent_pred", "prediction"):
        assert out[name].shape == ref[name].shape, name
        assert jnp.allclose(out[name], ref[name], rtol=1e-4, atol=1e-4), name

    print("KERNEL_OK")
</pallas_src>

<mosaic_0001>
module attributes {stable_mosaic.version = 11 : i64} {
  func.func @kernel(%arg0: memref<16x32xf32, #tpu.memory_space<vmem>>, %arg1: memref<16x16xf32, #tpu.memory_space<vmem>>, %arg2: memref<16x8xf32, #tpu.memory_space<vmem>>, %arg3: memref<680x128xf32, #tpu.memory_space<vmem>>, %arg4: memref<16x128xf32, #tpu.memory_space<vmem>>, %arg5: memref<64x32xf32, #tpu.memory_space<vmem>>, %arg6: memref<64x32xf32, #tpu.memory_space<vmem>>, %arg7: memref<64x32xf32, #tpu.memory_space<vmem>>, %arg8: memref<64x32xf32, #tpu.memory_space<vmem>>) attributes {dimension_semantics = [], scalar_prefetch = 0 : i64, scratch_operands = 4 : i64, tpu.core_type = #tpu.core_type<tc>} {
    %c0 = arith.constant 0 : index
    %c0_0 = arith.constant 0 : index
    %0 = vector.load %arg0[%c0, %c0_0] : memref<16x32xf32, #tpu.memory_space<vmem>>, vector<16x32xf32>
    %c0_1 = arith.constant 0 : index
    %c0_2 = arith.constant 0 : index
    %1 = vector.load %arg3[%c0_1, %c0_2] : memref<680x128xf32, #tpu.memory_space<vmem>>, vector<32x64xf32>
    %cst = arith.constant dense<0.000000e+00> : vector<16x64xf32>
    %2 = tpu.matmul %0, %1, %cst {dimension_numbers = #tpu.dot_dimension_numbers<[1], [0], [0], [1], [0, 0, 1, 1], [], []>, precision = #tpu.contract_precision<fp32>} : vector<16x32xf32>, vector<32x64xf32>, vector<16x64xf32> -> vector<16x64xf32>
    %c32 = arith.constant 32 : index
    %c0_3 = arith.constant 0 : index
    %3 = vector.load %arg3[%c32, %c0_3] : memref<680x128xf32, #tpu.memory_space<vmem>>, vector<1x64xf32>
    %4 = vector.broadcast %3 : vector<1x64xf32> to vector<16x64xf32>
    %5 = arith.addf %2, %4 : vector<16x64xf32>
    %cst_4 = arith.constant 0.000000e+00 : f32
    %6 = vector.broadcast %cst_4 : f32 to vector<16x64xf32>
    %7 = arith.cmpf ogt, %5, %6 : vector<16x64xf32>
    %cst_5 = arith.constant 0.000000e+00 : f32
    %8 = vector.broadcast %cst_5 : f32 to vector<16x64xf32>
    %9 = arith.minimumf %5, %8 : vector<16x64xf32>
    %10 = math.exp %9 : vector<16x64xf32>
    %cst_6 = arith.constant 1.000000e+00 : f32
    %11 = vector.broadcast %cst_6 : f32 to vector<16x64xf32>
    %12 = arith.subf %10, %11 : vector<16x64xf32>
    %13 = arith.select %7, %5, %12 : vector<16x64xi1>, vector<16x64xf32>
    %c40 = arith.constant 40 : index
    %c0_7 = arith.constant 0 : index
    %14 = vector.load %arg3[%c40, %c0_7] : memref<680x128xf32, #tpu.memory_space<vmem>>, vector<64x64xf32>
    %cst_8 = arith.constant dense<0.000000e+00> : vector<16x64xf32>
    %15 = tpu.matmul %13, %14, %cst_8 {dimension_numbers = #tpu.dot_dimension_numbers<[1], [0], [0], [1], [0, 0, 1, 1], [], []>, precision = #tpu.contract_precision<fp32>} : vector<16x64xf32>, vector<64x64xf32>, vector<16x64xf32> -> vector<16x64xf32>
    %c104 = arith.constant 104 : index
    %c0_9 = arith.constant 0 : index
    %16 = vector.load %arg3[%c104, %c0_9] : memref<680x128xf32, #tpu.memory_space<vmem>>, vector<1x64xf32>
    %17 = vector.broadcast %16 : vector<1x64xf32> to vector<16x64xf32>
    %18 = arith.addf %15, %17 : vector<16x64xf32>
    %cst_10 = arith.constant 0.000000e+00 : f32
    %19 = vector.broadcast %cst_10 : f32 to vector<16x64xf32>
    %20 = arith.cmpf ogt, %18, %19 : vector<16x64xf32>
    %cst_11 = arith.constant 0.000000e+00 : f32
    %21 = vector.broadcast %cst_11 : f32 to vector<16x64xf32>
    %22 = arith.minimumf %18, %21 : vector<16x64xf32>
    %23 = math.exp %22 : vector<16x64xf32>
    %cst_12 = arith.constant 1.000000e+00 : f32
    %24 = vector.broadcast %cst_12 : f32 to vector<16x64xf32>
    %25 = arith.subf %23, %24 : vector<16x64xf32>
    %26 = arith.select %20, %18, %25 : vector<16x64xi1>, vector<16x64xf32>
    %c112 = arith.constant 112 : index
    %c0_13 = arith.constant 0 : index
    %27 = vector.load %arg3[%c112, %c0_13] : memref<680x128xf32, #tpu.memory_space<vmem>>, vector<64x16xf32>
    %cst_14 = arith.constant dense<0.000000e+00> : vector<16x16xf32>
    %28 = tpu.matmul %26, %27, %cst_14 {dimension_numbers = #tpu.dot_dimension_numbers<[1], [0], [0], [1], [0, 0, 1, 1], [], []>, precision = #tpu.contract_precision<fp32>} : vector<16x64xf32>, vector<64x16xf32>, vector<16x16xf32> -> vector<16x16xf32>
    %c176 = arith.constant 176 : index
    %c0_15 = arith.constant 0 : index
    %29 = vector.load %arg3[%c176, %c0_15] : memref<680x128xf32, #tpu.memory_space<vmem>>, vector<1x16xf32>
    %30 = vector.broadcast %29 : vector<1x16xf32> to vector<16x16xf32>
    %31 = arith.addf %28, %30 : vector<16x16xf32>
    %c184 = arith.constant 184 : index
    %c0_16 = arith.constant 0 : index
    %32 = vector.load %arg3[%c184, %c0_16] : memref<680x128xf32, #tpu.memory_space<vmem>>, vector<16x32xf32>
    %cst_17 = arith.constant dense<0.000000e+00> : vector<16x32xf32>
    %33 = tpu.matmul %31, %32, %cst_17 {dimension_numbers = #tpu.dot_dimension_numbers<[1], [0], [0], [1], [0, 0, 1, 1], [], []>, precision = #tpu.contract_precision<fp32>} : vector<16x16xf32>, vector<16x32xf32>, vector<16x32xf32> -> vector<16x32xf32>
    %c200 = arith.constant 200 : index
    %c0_18 = arith.constant 0 : index
    %34 = vector.load %arg3[%c200, %c0_18] : memref<680x128xf32, #tpu.memory_space<vmem>>, vector<1x32xf32>
    %35 = vector.broadcast %34 : vector<1x32xf32> to vector<16x32xf32>
    %36 = arith.addf %33, %35 : vector<16x32xf32>
    %37 = vector.extract_strided_slice %36 {offsets = [0, 0], sizes = [16, 16], strides = [1, 1]} : vector<16x32xf32> to vector<16x16xf32>
    %38 = vector.extract_strided_slice %36 {offsets = [0, 16], sizes = [16, 16], strides = [1, 1]} : vector<16x32xf32> to vector<16x16xf32>
    %cst_19 = arith.constant 5.000000e-01 : f32
    %39 = vector.broadcast %cst_19 : f32 to vector<16x16xf32>
    %40 = arith.mulf %39, %38 : vector<16x16xf32>
    %41 = math.exp %40 : vector<16x16xf32>
    %c0_20 = arith.constant 0 : index
    %c0_21 = arith.constant 0 : index
    %42 = vector.load %arg1[%c0_20, %c0_21] : memref<16x16xf32, #tpu.memory_space<vmem>>, vector<16x16xf32>
    %43 = arith.mulf %41, %42 : vector<16x16xf32>
    %44 = arith.addf %37, %43 : vector<16x16xf32>
    %c600 = arith.constant 600 : index
    %c0_22 = arith.constant 0 : index
    %45 = vector.load %arg3[%c600, %c0_22] : memref<680x128xf32, #tpu.memory_space<vmem>>, vector<64x16xf32>
    %cst_23 = arith.constant dense<0.000000e+00> : vector<64x16xf32>
    %46 = tpu.matmul %45, %44, %cst_23 {dimension_numbers = #tpu.dot_dimension_numbers<[1], [0], [0], [1], [0, 0, 1, 1], [], []>, precision = #tpu.contract_precision<fp32>} : vector<64x16xf32>, vector<16x16xf32>, vector<64x16xf32> -> vector<64x16xf32>
    %c0_24 = arith.constant 0 : index
    %c0_25 = arith.constant 0 : index
    %47 = vector.load %arg2[%c0_24, %c0_25] : memref<16x8xf32, #tpu.memory_space<vmem>>, vector<16x8xf32>
    %cst_26 = arith.constant dense<0.000000e+00> : vector<64x8xf32>
    %48 = tpu.matmul %45, %47, %cst_26 {dimension_numbers = #tpu.dot_dimension_numbers<[1], [0], [0], [1], [0, 0, 1, 1], [], []>, precision = #tpu.contract_precision<fp32>} : vector<64x16xf32>, vector<16x8xf32>, vector<64x8xf32> -> vector<64x8xf32>
    %c208 = arith.constant 208 : index
    %c0_27 = arith.constant 0 : index
    %49 = vector.load %arg3[%c208, %c0_27] : memref<680x128xf32, #tpu.memory_space<vmem>>, vector<16x32xf32>
    %cst_28 = arith.constant dense<0.000000e+00> : vector<64x32xf32>
    %50 = tpu.matmul %46, %49, %cst_28 {dimension_numbers = #tpu.dot_dimension_numbers<[1], [0], [0], [1], [0, 0, 1, 1], [], []>, precision = #tpu.contract_precision<fp32>} : vector<64x16xf32>, vector<16x32xf32>, vector<64x32xf32> -> vector<64x32xf32>
    %c224 = arith.constant 224 : index
    %c0_29 = arith.constant 0 : index
    %51 = vector.load %arg3[%c224, %c0_29] : memref<680x128xf32, #tpu.memory_space<vmem>>, vector<8x32xf32>
    %cst_30 = arith.constant dense<0.000000e+00> : vector<64x32xf32>
    %52 = tpu.matmul %48, %51, %cst_30 {dimension_numbers = #tpu.dot_dimension_numbers<[1], [0], [0], [1], [0, 0, 1, 1], [], []>, precision = #tpu.contract_precision<fp32>} : vector<64x8xf32>, vector<8x32xf32>, vector<64x32xf32> -> vector<64x32xf32>
    %53 = arith.addf %50, %52 : vector<64x32xf32>
    %c232 = arith.constant 232 : index
    %c0_31 = arith.constant 0 : index
    %54 = vector.load %arg3[%c232, %c0_31] : memref<680x128xf32, #tpu.memory_space<vmem>>, vector<1x32xf32>
    %55 = vector.broadcast %54 : vector<1x32xf32> to vector<64x32xf32>
    %56 = arith.addf %53, %55 : vector<64x32xf32>
    %c0_32 = arith.constant 0 : index
    %c0_33 = arith.constant 0 : index
    %57 = vector.load %arg5[%c0_32, %c0_33] : memref<64x32xf32, #tpu.memory_space<vmem>>, vector<64x32xf32>
    tpu.vector_store %arg5[%c0_32, %c0_33], %56 {strides = array<i32>} : memref<64x32xf32, #tpu.memory_space<vmem>>, vector<64x32xf32>,
    %c280 = arith.constant 280 : index
    %c0_34 = arith.constant 0 : index
    %58 = vector.load %arg3[%c280, %c0_34] : memref<680x128xf32, #tpu.memory_space<vmem>>, vector<16x32xf32>
    %cst_35 = arith.constant dense<0.000000e+00> : vector<64x32xf32>
    %59 = tpu.matmul %46, %58, %cst_35 {dimension_numbers = #tpu.dot_dimension_numbers<[1], [0], [0], [1], [0, 0, 1, 1], [], []>, precision = #tpu.contract_precision<fp32>} : vector<64x16xf32>, vector<16x32xf32>, vector<64x32xf32> -> vector<64x32xf32>
    %c296 = arith.constant 296 : index
    %c0_36 = arith.constant 0 : index
    %60 = vector.load %arg3[%c296, %c0_36] : memref<680x128xf32, #tpu.memory_space<vmem>>, vector<8x32xf32>
    %cst_37 = arith.constant dense<0.000000e+00> : vector<64x32xf32>
    %61 = tpu.matmul %48, %60, %cst_37 {dimension_numbers = #tpu.dot_dimension_numbers<[1], [0], [0], [1], [0, 0, 1, 1], [], []>, precision = #tpu.contract_precision<fp32>} : vector<64x8xf32>, vector<8x32xf32>, vector<64x32xf32> -> vector<64x32xf32>
    %62 = arith.addf %59, %61 : vector<64x32xf32>
    %c304 = arith.constant 304 : index
    %c0_38 = arith.constant 0 : index
    %63 = vector.load %arg3[%c304, %c0_38] : memref<680x128xf32, #tpu.memory_space<vmem>>, vector<1x32xf32>
    %64 = vector.broadcast %63 : vector<1x32xf32> to vector<64x32xf32>
    %65 = arith.addf %62, %64 : vector<64x32xf32>
    %c0_39 = arith.constant 0 : index
    %c0_40 = arith.constant 0 : index
    %66 = vector.load %arg6[%c0_39, %c0_40] : memref<64x32xf32, #tpu.memory_space<vmem>>, vector<64x32xf32>
    tpu.vector_store %arg6[%c0_39, %c0_40], %65 {strides = array<i32>} : memref<64x32xf32, #tpu.memory_space<vmem>>, vector<64x32xf32>,
    %c352 = arith.constant 352 : index
    %c0_41 = arith.constant 0 : index
    %67 = vector.load %arg3[%c352, %c0_41] : memref<680x128xf32, #tpu.memory_space<vmem>>, vector<16x32xf32>
    %cst_42 = arith.constant dense<0.000000e+00> : vector<64x32xf32>
    %68 = tpu.matmul %46, %67, %cst_42 {dimension_numbers = #tpu.dot_dimension_numbers<[1], [0], [0], [1], [0, 0, 1, 1], [], []>, precision = #tpu.contract_precision<fp32>} : vector<64x16xf32>, vector<16x32xf32>, vector<64x32xf32> -> vector<64x32xf32>
    %c368 = arith.constant 368 : index
    %c0_43 = arith.constant 0 : index
    %69 = vector.load %arg3[%c368, %c0_43] : memref<680x128xf32, #tpu.memory_space<vmem>>, vector<8x32xf32>
    %cst_44 = arith.constant dense<0.000000e+00> : vector<64x32xf32>
    %70 = tpu.matmul %48, %69, %cst_44 {dimension_numbers = #tpu.dot_dimension_numbers<[1], [0], [0], [1], [0, 0, 1, 1], [], []>, precision = #tpu.contract_precision<fp32>} : vector<64x8xf32>, vector<8x32xf32>, vector<64x32xf32> -> vector<64x32xf32>
    %71 = arith.addf %68, %70 : vector<64x32xf32>
    %c376 = arith.constant 376 : index
    %c0_45 = arith.constant 0 : index
    %72 = vector.load %arg3[%c376, %c0_45] : memref<680x128xf32, #tpu.memory_space<vmem>>, vector<1x32xf32>
    %73 = vector.broadcast %72 : vector<1x32xf32> to vector<64x32xf32>
    %74 = arith.addf %71, %73 : vector<64x32xf32>
    %c0_46 = arith.constant 0 : index
    %c0_47 = arith.constant 0 : index
    %75 = vector.load %arg7[%c0_46, %c0_47] : memref<64x32xf32, #tpu.memory_space<vmem>>, vector<64x32xf32>
    tpu.vector_store %arg7[%c0_46, %c0_47], %74 {strides = array<i32>} : memref<64x32xf32, #tpu.memory_space<vmem>>, vector<64x32xf32>,
    %c240 = arith.constant 240 : index
    %c0_48 = arith.constant 0 : index
    %76 = vector.load %arg3[%c240, %c0_48] : memref<680x128xf32, #tpu.memory_space<vmem>>, vector<32x32xf32>
    %c312 = arith.constant 312 : index
    %c0_49 = arith.constant 0 : index
    %77 = vector.load %arg3[%c312, %c0_49] : memref<680x128xf32, #tpu.memory_space<vmem>>, vector<32x32xf32>
    %c384 = arith.constant 384 : index
    %c0_50 = arith.constant 0 : index
    %78 = vector.load %arg3[%c384, %c0_50] : memref<680x128xf32, #tpu.memory_space<vmem>>, vector<32x32xf32>
    %c272 = arith.constant 272 : index
    %c0_51 = arith.constant 0 : index
    %79 = vector.load %arg3[%c272, %c0_51] : memref<680x128xf32, #tpu.memory_space<vmem>>, vector<1x32xf32>
    %80 = vector.shape_cast %79 : vector<1x32xf32> to vector<1x32xf32>
    %81 = vector.broadcast %80 : vector<1x32xf32> to vector<8x32xf32>
    %c344 = arith.constant 344 : index
    %c0_52 = arith.constant 0 : index
    %82 = vector.load %arg3[%c344, %c0_52] : memref<680x128xf32, #tpu.memory_space<vmem>>, vector<1x32xf32>
    %83 = vector.shape_cast %82 : vector<1x32xf32> to vector<1x32xf32>
    %84 = vector.broadcast %83 : vector<1x32xf32> to vector<8x32xf32>
    %c416 = arith.constant 416 : index
    %c0_53 = arith.constant 0 : index
    %85 = vector.load %arg3[%c416, %c0_53] : memref<680x128xf32, #tpu.memory_space<vmem>>, vector<1x32xf32>
    %86 = vector.shape_cast %85 : vector<1x32xf32> to vector<1x32xf32>
    %87 = vector.broadcast %86 : vector<1x32xf32> to vector<8x32xf32>
    %cst_54 = arith.constant 0.000000e+00 : f32
    %88 = vector.broadcast %cst_54 : f32 to vector<8x32xf32>
    %cst_55 = arith.constant dense<0.000000e+00> : vector<8x32xf32>
    %89 = tpu.matmul %88, %76, %cst_55 {dimension_numbers = #tpu.dot_dimension_numbers<[1], [0], [0], [1], [0, 0, 1, 1], [], []>, precision = #tpu.contract_precision<fp32>} : vector<8x32xf32>, vector<32x32xf32>, vector<8x32xf32> -> vector<8x32xf32>
    %90 = arith.addf %89, %81 : vector<8x32xf32>
    %cst_56 = arith.constant dense<0.000000e+00> : vector<8x32xf32>
    %91 = tpu.matmul %88, %77, %cst_56 {dimension_numbers = #tpu.dot_dimension_numbers<[1], [0], [0], [1], [0, 0, 1, 1], [], []>, precision = #tpu.contract_precision<fp32>} : vector<8x32xf32>, vector<32x32xf32>, vector<8x32xf32> -> vector<8x32xf32>
    %92 = arith.addf %91, %84 : vector<8x32xf32>
    %cst_57 = arith.constant dense<0.000000e+00> : vector<8x32xf32>
    %93 = tpu.matmul %88, %78, %cst_57 {dimension_numbers = #tpu.dot_dimension_numbers<[1], [0], [0], [1], [0, 0, 1, 1], [], []>, precision = #tpu.contract_precision<fp32>} : vector<8x32xf32>, vector<32x32xf32>, vector<8x32xf32> -> vector<8x32xf32>
    %94 = arith.addf %93, %87 : vector<8x32xf32>
    %c0_58 = arith.constant 0 : index
    %c0_59 = arith.constant 0 : index
    %95 = vector.load %arg5[%c0_58, %c0_59] : memref<64x32xf32, #tpu.memory_space<vmem>>, vector<8x32xf32>
    %96 = arith.addf %95, %90 : vector<8x32xf32>
    %97 = arith.negf %96 : vector<8x32xf32>
    %98 = math.exp %97 : vector<8x32xf32>
    %cst_60 = arith.constant 1.000000e+00 : f32
    %99 = vector.broadcast %cst_60 : f32 to vector<8x32xf32>
    %100 = arith.addf %99, %98 : vector<8x32xf32>
    %101 = arith.divf %99, %100 : vector<8x32xf32>
    %c0_61 = arith.constant 0 : index
    %c0_62 = arith.constant 0 : index
    %102 = vector.load %arg6[%c0_61, %c0_62] : memref<64x32xf32, #tpu.memory_space<vmem>>, vector<8x32xf32>
    %103 = arith.addf %102, %92 : vector<8x32xf32>
    %104 = arith.negf %103 : vector<8x32xf32>
    %105 = math.exp %104 : vector<8x32xf32>
    %cst_63 = arith.constant 1.000000e+00 : f32
    %106 = vector.broadcast %cst_63 : f32 to vector<8x32xf32>
    %107 = arith.addf %106, %105 : vector<8x32xf32>
    %108 = arith.divf %106, %107 : vector<8x32xf32>
    %c0_64 = arith.constant 0 : index
    %c0_65 = arith.constant 0 : index
    %109 = vector.load %arg7[%c0_64, %c0_65] : memref<64x32xf32, #tpu.memory_space<vmem>>, vector<8x32xf32>
    %110 = arith.mulf %101, %94 : vector<8x32xf32>
    %111 = arith.addf %109, %110 : vector<8x32xf32>
    %112 = math.tanh %111 : vector<8x32xf32>
    %cst_66 = arith.constant 1.000000e+00 : f32
    %113 = vector.broadcast %cst_66 : f32 to vector<8x32xf32>
    %114 = arith.subf %113, %108 : vector<8x32xf32>
    %115 = arith.mulf %114, %112 : vector<8x32xf32>
    %116 = arith.mulf %108, %88 : vector<8x32xf32>
    %117 = arith.addf %115, %116 : vector<8x32xf32>
    %c0_67 = arith.constant 0 : index
    %c0_68 = arith.constant 0 : index
    %118 = vector.load %arg8[%c0_67, %c0_68] : memref<64x32xf32, #tpu.memory_space<vmem>>, vector<8x32xf32>
    tpu.vector_store %arg8[%c0_67, %c0_68], %117 {strides = array<i32>} : memref<64x32xf32, #tpu.memory_space<vmem>>, vector<8x32xf32>,
    %cst_69 = arith.constant dense<0.000000e+00> : vector<8x32xf32>
    %119 = tpu.matmul %117, %76, %cst_69 {dimension_numbers = #tpu.dot_dimension_numbers<[1], [0], [0], [1], [0, 0, 1, 1], [], []>, precision = #tpu.contract_precision<fp32>} : vector<8x32xf32>, vector<32x32xf32>, vector<8x32xf32> -> vector<8x32xf32>
    %120 = arith.addf %119, %81 : vector<8x32xf32>
    %cst_70 = arith.constant dense<0.000000e+00> : vector<8x32xf32>
    %121 = tpu.matmul %117, %77, %cst_70 {dimension_numbers = #tpu.dot_dimension_numbers<[1], [0], [0], [1], [0, 0, 1, 1], [], []>, precision = #tpu.contract_precision<fp32>} : vector<8x32xf32>, vector<32x32xf32>, vector<8x32xf32> -> vector<8x32xf32>
    %122 = arith.addf %121, %84 : vector<8x32xf32>
    %cst_71 = arith.constant dense<0.000000e+00> : vector<8x32xf32>
    %123 = tpu.matmul %117, %78, %cst_71 {dimension_numbers = #tpu.dot_dimension_numbers<[1], [0], [0], [1], [0, 0, 1, 1], [], []>, precision = #tpu.contract_precision<fp32>} : vector<8x32xf32>, vector<32x32xf32>, vector<8x32xf32> -> vector<8x32xf32>
    %124 = arith.addf %123, %87 : vector<8x32xf32>
    %c8 = arith.constant 8 : index
    %c0_72 = arith.constant 0 : index
    %125 = vector.load %arg5[%c8, %c0_72] : memref<64x32xf32, #tpu.memory_space<vmem>>, vector<8x32xf32>
    %126 = arith.addf %125, %120 : vector<8x32xf32>
    %127 = arith.negf %126 : vector<8x32xf32>
    %128 = math.exp %127 : vector<8x32xf32>
    %cst_73 = arith.constant 1.000000e+00 : f32
    %129 = vector.broadcast %cst_73 : f32 to vector<8x32xf32>
    %130 = arith.addf %129, %128 : vector<8x32xf32>
    %131 = arith.divf %129, %130 : vector<8x32xf32>
    %c8_74 = arith.constant 8 : index
    %c0_75 = arith.constant 0 : index
    %132 = vector.load %arg6[%c8_74, %c0_75] : memref<64x32xf32, #tpu.memory_space<vmem>>, vector<8x32xf32>
    %133 = arith.addf %132, %122 : vector<8x32xf32>
    %134 = arith.negf %133 : vector<8x32xf32>
    %135 = math.exp %134 : vector<8x32xf32>
    %cst_76 = arith.constant 1.000000e+00 : f32
    %136 = vector.broadcast %cst_76 : f32 to vector<8x32xf32>
    %137 = arith.addf %136, %135 : vector<8x32xf32>
    %138 = arith.divf %136, %137 : vector<8x32xf32>
    %c8_77 = arith.constant 8 : index
    %c0_78 = arith.constant 0 : index
    %139 = vector.load %arg7[%c8_77, %c0_78] : memref<64x32xf32, #tpu.memory_space<vmem>>, vector<8x32xf32>
    %140 = arith.mulf %131, %124 : vector<8x32xf32>
    %141 = arith.addf %139, %140 : vector<8x32xf32>
    %142 = math.tanh %141 : vector<8x32xf32>
    %cst_79 = arith.constant 1.000000e+00 : f32
    %143 = vector.broadcast %cst_79 : f32 to vector<8x32xf32>
    %144 = arith.subf %143, %138 : vector<8x32xf32>
    %145 = arith.mulf %144, %142 : vector<8x32xf32>
    %146 = arith.mulf %138, %117 : vector<8x32xf32>
    %147 = arith.addf %145, %146 : vector<8x32xf32>
    %c8_80 = arith.constant 8 : index
    %c0_81 = arith.constant 0 : index
    %148 = vector.load %arg8[%c8_80, %c0_81] : memref<64x32xf32, #tpu.memory_space<vmem>>, vector<8x32xf32>
    tpu.vector_store %arg8[%c8_80, %c0_81], %147 {strides = array<i32>} : memref<64x32xf32, #tpu.memory_space<vmem>>, vector<8x32xf32>,
    %cst_82 = arith.constant dense<0.000000e+00> : vector<8x32xf32>
    %149 = tpu.matmul %147, %76, %cst_82 {dimension_numbers = #tpu.dot_dimension_numbers<[1], [0], [0], [1], [0, 0, 1, 1], [], []>, precision = #tpu.contract_precision<fp32>} : vector<8x32xf32>, vector<32x32xf32>, vector<8x32xf32> -> vector<8x32xf32>
    %150 = arith.addf %149, %81 : vector<8x32xf32>
    %cst_83 = arith.constant dense<0.000000e+00> : vector<8x32xf32>
    %151 = tpu.matmul %147, %77, %cst_83 {dimension_numbers = #tpu.dot_dimension_numbers<[1], [0], [0], [1], [0, 0, 1, 1], [], []>, precision = #tpu.contract_precision<fp32>} : vector<8x32xf32>, vector<32x32xf32>, vector<8x32xf32> -> vector<8x32xf32>
    %152 = arith.addf %151, %84 : vector<8x32xf32>
    %cst_84 = arith.constant dense<0.000000e+00> : vector<8x32xf32>
    %153 = tpu.matmul %147, %78, %cst_84 {dimension_numbers = #tpu.dot_dimension_numbers<[1], [0], [0], [1], [0, 0, 1, 1], [], []>, precision = #tpu.contract_precision<fp32>} : vector<8x32xf32>, vector<32x32xf32>, vector<8x32xf32> -> vector<8x32xf32>
    %154 = arith.addf %153, %87 : vector<8x32xf32>
    %c16 = arith.constant 16 : index
    %c0_85 = arith.constant 0 : index
    %155 = vector.load %arg5[%c16, %c0_85] : memref<64x32xf32, #tpu.memory_space<vmem>>, vector<8x32xf32>
    %156 = arith.addf %155, %150 : vector<8x32xf32>
    %157 = arith.negf %156 : vector<8x32xf32>
    %158 = math.exp %157 : vector<8x32xf32>
    %cst_86 = arith.constant 1.000000e+00 : f32
    %159 = vector.broadcast %cst_86 : f32 to vector<8x32xf32>
    %160 = arith.addf %159, %158 : vector<8x32xf32>
    %161 = arith.divf %159, %160 : vector<8x32xf32>
    %c16_87 = arith.constant 16 : index
    %c0_88 = arith.constant 0 : index
    %162 = vector.load %arg6[%c16_87, %c0_88] : memref<64x32xf32, #tpu.memory_space<vmem>>, vector<8x32xf32>
    %163 = arith.addf %162, %152 : vector<8x32xf32>
    %164 = arith.negf %163 : vector<8x32xf32>
    %165 = math.exp %164 : vector<8x32xf32>
    %cst_89 = arith.constant 1.000000e+00 : f32
    %166 = vector.broadcast %cst_89 : f32 to vector<8x32xf32>
    %167 = arith.addf %166, %165 : vector<8x32xf32>
    %168 = arith.divf %166, %167 : vector<8x32xf32>
    %c16_90 = arith.constant 16 : index
    %c0_91 = arith.constant 0 : index
    %169 = vector.load %arg7[%c16_90, %c0_91] : memref<64x32xf32, #tpu.memory_space<vmem>>, vector<8x32xf32>
    %170 = arith.mulf %161, %154 : vector<8x32xf32>
    %171 = arith.addf %169, %170 : vector<8x32xf32>
    %172 = math.tanh %171 : vector<8x32xf32>
    %cst_92 = arith.constant 1.000000e+00 : f32
    %173 = vector.broadcast %cst_92 : f32 to vector<8x32xf32>
    %174 = arith.subf %173, %168 : vector<8x32xf32>
    %175 = arith.mulf %174, %172 : vector<8x32xf32>
    %176 = arith.mulf %168, %147 : vector<8x32xf32>
    %177 = arith.addf %175, %176 : vector<8x32xf32>
    %c16_93 = arith.constant 16 : index
    %c0_94 = arith.constant 0 : index
    %178 = vector.load %arg8[%c16_93, %c0_94] : memref<64x32xf32, #tpu.memory_space<vmem>>, vector<8x32xf32>
    tpu.vector_store %arg8[%c16_93, %c0_94], %177 {strides = array<i32>} : memref<64x32xf32, #tpu.memory_space<vmem>>, vector<8x32xf32>,
    %cst_95 = arith.constant dense<0.000000e+00> : vector<8x32xf32>
    %179 = tpu.matmul %177, %76, %cst_95 {dimension_numbers = #tpu.dot_dimension_numbers<[1], [0], [0], [1], [0, 0, 1, 1], [], []>, precision = #tpu.contract_precision<fp32>} : vector<8x32xf32>, vector<32x32xf32>, vector<8x32xf32> -> vector<8x32xf32>
    %180 = arith.addf %179, %81 : vector<8x32xf32>
    %cst_96 = arith.constant dense<0.000000e+00> : vector<8x32xf32>
    %181 = tpu.matmul %177, %77, %cst_96 {dimension_numbers = #tpu.dot_dimension_numbers<[1], [0], [0], [1], [0, 0, 1, 1], [], []>, precision = #tpu.contract_precision<fp32>} : vector<8x32xf32>, vector<32x32xf32>, vector<8x32xf32> -> vector<8x32xf32>
    %182 = arith.addf %181, %84 : vector<8x32xf32>
    %cst_97 = arith.constant dense<0.000000e+00> : vector<8x32xf32>
    %183 = tpu.matmul %177, %78, %cst_97 {dimension_numbers = #tpu.dot_dimension_numbers<[1], [0], [0], [1], [0, 0, 1, 1], [], []>, precision = #tpu.contract_precision<fp32>} : vector<8x32xf32>, vector<32x32xf32>, vector<8x32xf32> -> vector<8x32xf32>
    %184 = arith.addf %183, %87 : vector<8x32xf32>
    %c24 = arith.constant 24 : index
    %c0_98 = arith.constant 0 : index
    %185 = vector.load %arg5[%c24, %c0_98] : memref<64x32xf32, #tpu.memory_space<vmem>>, vector<8x32xf32>
    %186 = arith.addf %185, %180 : vector<8x32xf32>
    %187 = arith.negf %186 : vector<8x32xf32>
    %188 = math.exp %187 : vector<8x32xf32>
    %cst_99 = arith.constant 1.000000e+00 : f32
    %189 = vector.broadcast %cst_99 : f32 to vector<8x32xf32>
    %190 = arith.addf %189, %188 : vector<8x32xf32>
    %191 = arith.divf %189, %190 : vector<8x32xf32>
    %c24_100 = arith.constant 24 : index
    %c0_101 = arith.constant 0 : index
    %192 = vector.load %arg6[%c24_100, %c0_101] : memref<64x32xf32, #tpu.memory_space<vmem>>, vector<8x32xf32>
    %193 = arith.addf %192, %182 : vector<8x32xf32>
    %194 = arith.negf %193 : vector<8x32xf32>
    %195 = math.exp %194 : vector<8x32xf32>
    %cst_102 = arith.constant 1.000000e+00 : f32
    %196 = vector.broadcast %cst_102 : f32 to vector<8x32xf32>
    %197 = arith.addf %196, %195 : vector<8x32xf32>
    %198 = arith.divf %196, %197 : vector<8x32xf32>
    %c24_103 = arith.constant 24 : index
    %c0_104 = arith.constant 0 : index
    %199 = vector.load %arg7[%c24_103, %c0_104] : memref<64x32xf32, #tpu.memory_space<vmem>>, vector<8x32xf32>
    %200 = arith.mulf %191, %184 : vector<8x32xf32>
    %201 = arith.addf %199, %200 : vector<8x32xf32>
    %202 = math.tanh %201 : vector<8x32xf32>
    %cst_105 = arith.constant 1.000000e+00 : f32
    %203 = vector.broadcast %cst_105 : f32 to vector<8x32xf32>
    %204 = arith.subf %203, %198 : vector<8x32xf32>
    %205 = arith.mulf %204, %202 : vector<8x32xf32>
    %206 = arith.mulf %198, %177 : vector<8x32xf32>
    %207 = arith.addf %205, %206 : vector<8x32xf32>
    %c24_106 = arith.constant 24 : index
    %c0_107 = arith.constant 0 : index
    %208 = vector.load %arg8[%c24_106, %c0_107] : memref<64x32xf32, #tpu.memory_space<vmem>>, vector<8x32xf32>
    tpu.vector_store %arg8[%c24_106, %c0_107], %207 {strides = array<i32>} : memref<64x32xf32, #tpu.memory_space<vmem>>, vector<8x32xf32>,
    %cst_108 = arith.constant dense<0.000000e+00> : vector<8x32xf32>
    %209 = tpu.matmul %207, %76, %cst_108 {dimension_numbers = #tpu.dot_dimension_numbers<[1], [0], [0], [1], [0, 0, 1, 1], [], []>, precision = #tpu.contract_precision<fp32>} : vector<8x32xf32>, vector<32x32xf32>, vector<8x32xf32> -> vector<8x32xf32>
    %210 = arith.addf %209, %81 : vector<8x32xf32>
    %cst_109 = arith.constant dense<0.000000e+00> : vector<8x32xf32>
    %211 = tpu.matmul %207, %77, %cst_109 {dimension_numbers = #tpu.dot_dimension_numbers<[1], [0], [0], [1], [0, 0, 1, 1], [], []>, precision = #tpu.contract_precision<fp32>} : vector<8x32xf32>, vector<32x32xf32>, vector<8x32xf32> -> vector<8x32xf32>
    %212 = arith.addf %211, %84 : vector<8x32xf32>
    %cst_110 = arith.constant dense<0.000000e+00> : vector<8x32xf32>
    %213 = tpu.matmul %207, %78, %cst_110 {dimension_numbers = #tpu.dot_dimension_numbers<[1], [0], [0], [1], [0, 0, 1, 1], [], []>, precision = #tpu.contract_precision<fp32>} : vector<8x32xf32>, vector<32x32xf32>, vector<8x32xf32> -> vector<8x32xf32>
    %214 = arith.addf %213, %87 : vector<8x32xf32>
    %c32_111 = arith.constant 32 : index
    %c0_112 = arith.constant 0 : index
    %215 = vector.load %arg5[%c32_111, %c0_112] : memref<64x32xf32, #tpu.memory_space<vmem>>, vector<8x32xf32>
    %216 = arith.addf %215, %210 : vector<8x32xf32>
    %217 = arith.negf %216 : vector<8x32xf32>
    %218 = math.exp %217 : vector<8x32xf32>
    %cst_113 = arith.constant 1.000000e+00 : f32
    %219 = vector.broadcast %cst_113 : f32 to vector<8x32xf32>
    %220 = arith.addf %219, %218 : vector<8x32xf32>
    %221 = arith.divf %219, %220 : vector<8x32xf32>
    %c32_114 = arith.constant 32 : index
    %c0_115 = arith.constant 0 : index
    %222 = vector.load %arg6[%c32_114, %c0_115] : memref<64x32xf32, #tpu.memory_space<vmem>>, vector<8x32xf32>
    %223 = arith.addf %222, %212 : vector<8x32xf32>
    %224 = arith.negf %223 : vector<8x32xf32>
    %225 = math.exp %224 : vector<8x32xf32>
    %cst_116 = arith.constant 1.000000e+00 : f32
    %226 = vector.broadcast %cst_116 : f32 to vector<8x32xf32>
    %227 = arith.addf %226, %225 : vector<8x32xf32>
    %228 = arith.divf %226, %227 : vector<8x32xf32>
    %c32_117 = arith.constant 32 : index
    %c0_118 = arith.constant 0 : index
    %229 = vector.load %arg7[%c32_117, %c0_118] : memref<64x32xf32, #tpu.memory_space<vmem>>, vector<8x32xf32>
    %230 = arith.mulf %221, %214 : vector<8x32xf32>
    %231 = arith.addf %229, %230 : vector<8x32xf32>
    %232 = math.tanh %231 : vector<8x32xf32>
    %cst_119 = arith.constant 1.000000e+00 : f32
    %233 = vector.broadcast %cst_119 : f32 to vector<8x32xf32>
    %234 = arith.subf %233, %228 : vector<8x32xf32>
    %235 = arith.mulf %234, %232 : vector<8x32xf32>
    %236 = arith.mulf %228, %207 : vector<8x32xf32>
    %237 = arith.addf %235, %236 : vector<8x32xf32>
    %c32_120 = arith.constant 32 : index
    %c0_121 = arith.constant 0 : index
    %238 = vector.load %arg8[%c32_120, %c0_121] : memref<64x32xf32, #tpu.memory_space<vmem>>, vector<8x32xf32>
    tpu.vector_store %arg8[%c32_120, %c0_121], %237 {strides = array<i32>} : memref<64x32xf32, #tpu.memory_space<vmem>>, vector<8x32xf32>,
    %cst_122 = arith.constant dense<0.000000e+00> : vector<8x32xf32>
    %239 = tpu.matmul %237, %76, %cst_122 {dimension_numbers = #tpu.dot_dimension_numbers<[1], [0], [0], [1], [0, 0, 1, 1], [], []>, precision = #tpu.contract_precision<fp32>} : vector<8x32xf32>, vector<32x32xf32>, vector<8x32xf32> -> vector<8x32xf32>
    %240 = arith.addf %239, %81 : vector<8x32xf32>
    %cst_123 = arith.constant dense<0.000000e+00> : vector<8x32xf32>
    %241 = tpu.matmul %237, %77, %cst_123 {dimension_numbers = #tpu.dot_dimension_numbers<[1], [0], [0], [1], [0, 0, 1, 1], [], []>, precision = #tpu.contract_precision<fp32>} : vector<8x32xf32>, vector<32x32xf32>, vector<8x32xf32> -> vector<8x32xf32>
    %242 = arith.addf %241, %84 : vector<8x32xf32>
    %cst_124 = arith.constant dense<0.000000e+00> : vector<8x32xf32>
    %243 = tpu.matmul %237, %78, %cst_124 {dimension_numbers = #tpu.dot_dimension_numbers<[1], [0], [0], [1], [0, 0, 1, 1], [], []>, precision = #tpu.contract_precision<fp32>} : vector<8x32xf32>, vector<32x32xf32>, vector<8x32xf32> -> vector<8x32xf32>
    %244 = arith.addf %243, %87 : vector<8x32xf32>
    %c40_125 = arith.constant 40 : index
    %c0_126 = arith.constant 0 : index
    %245 = vector.load %arg5[%c40_125, %c0_126] : memref<64x32xf32, #tpu.memory_space<vmem>>, vector<8x32xf32>
    %246 = arith.addf %245, %240 : vector<8x32xf32>
    %247 = arith.negf %246 : vector<8x32xf32>
    %248 = math.exp %247 : vector<8x32xf32>
    %cst_127 = arith.constant 1.000000e+00 : f32
    %249 = vector.broadcast %cst_127 : f32 to vector<8x32xf32>
    %250 = arith.addf %249, %248 : vector<8x32xf32>
    %251 = arith.divf %249, %250 : vector<8x32xf32>
    %c40_128 = arith.constant 40 : index
    %c0_129 = arith.constant 0 : index
    %252 = vector.load %arg6[%c40_128, %c0_129] : memref<64x32xf32, #tpu.memory_space<vmem>>, vector<8x32xf32>
    %253 = arith.addf %252, %242 : vector<8x32xf32>
    %254 = arith.negf %253 : vector<8x32xf32>
    %255 = math.exp %254 : vector<8x32xf32>
    %cst_130 = arith.constant 1.000000e+00 : f32
    %256 = vector.broadcast %cst_130 : f32 to vector<8x32xf32>
    %257 = arith.addf %256, %255 : vector<8x32xf32>
    %258 = arith.divf %256, %257 : vector<8x32xf32>
    %c40_131 = arith.constant 40 : index
    %c0_132 = arith.constant 0 : index
    %259 = vector.load %arg7[%c40_131, %c0_132] : memref<64x32xf32, #tpu.memory_space<vmem>>, vector<8x32xf32>
    %260 = arith.mulf %251, %244 : vector<8x32xf32>
    %261 = arith.addf %259, %260 : vector<8x32xf32>
    %262 = math.tanh %261 : vector<8x32xf32>
    %cst_133 = arith.constant 1.000000e+00 : f32
    %263 = vector.broadcast %cst_133 : f32 to vector<8x32xf32>
    %264 = arith.subf %263, %258 : vector<8x32xf32>
    %265 = arith.mulf %264, %262 : vector<8x32xf32>
    %266 = arith.mulf %258, %237 : vector<8x32xf32>
    %267 = arith.addf %265, %266 : vector<8x32xf32>
    %c40_134 = arith.constant 40 : index
    %c0_135 = arith.constant 0 : index
    %268 = vector.load %arg8[%c40_134, %c0_135] : memref<64x32xf32, #tpu.memory_space<vmem>>, vector<8x32xf32>
    tpu.vector_store %arg8[%c40_134, %c0_135], %267 {strides = array<i32>} : memref<64x32xf32, #tpu.memory_space<vmem>>, vector<8x32xf32>,
    %cst_136 = arith.constant dense<0.000000e+00> : vector<8x32xf32>
    %269 = tpu.matmul %267, %76, %cst_136 {dimension_numbers = #tpu.dot_dimension_numbers<[1], [0], [0], [1], [0, 0, 1, 1], [], []>, precision = #tpu.contract_precision<fp32>} : vector<8x32xf32>, vector<32x32xf32>, vector<8x32xf32> -> vector<8x32xf32>
    %270 = arith.addf %269, %81 : vector<8x32xf32>
    %cst_137 = arith.constant dense<0.000000e+00> : vector<8x32xf32>
    %271 = tpu.matmul %267, %77, %cst_137 {dimension_numbers = #tpu.dot_dimension_numbers<[1], [0], [0], [1], [0, 0, 1, 1], [], []>, precision = #tpu.contract_precision<fp32>} : vector<8x32xf32>, vector<32x32xf32>, vector<8x32xf32> -> vector<8x32xf32>
    %272 = arith.addf %271, %84 : vector<8x32xf32>
    %cst_138 = arith.constant dense<0.000000e+00> : vector<8x32xf32>
    %273 = tpu.matmul %267, %78, %cst_138 {dimension_numbers = #tpu.dot_dimension_numbers<[1], [0], [0], [1], [0, 0, 1, 1], [], []>, precision = #tpu.contract_precision<fp32>} : vector<8x32xf32>, vector<32x32xf32>, vector<8x32xf32> -> vector<8x32xf32>
    %274 = arith.addf %273, %87 : vector<8x32xf32>
    %c48 = arith.constant 48 : index
    %c0_139 = arith.constant 0 : index
    %275 = vector.load %arg5[%c48, %c0_139] : memref<64x32xf32, #tpu.memory_space<vmem>>, vector<8x32xf32>
    %276 = arith.addf %275, %270 : vector<8x32xf32>
    %277 = arith.negf %276 : vector<8x32xf32>
    %278 = math.exp %277 : vector<8x32xf32>
    %cst_140 = arith.constant 1.000000e+00 : f32
    %279 = vector.broadcast %cst_140 : f32 to vector<8x32xf32>
    %280 = arith.addf %279, %278 : vector<8x32xf32>
    %281 = arith.divf %279, %280 : vector<8x32xf32>
    %c48_141 = arith.constant 48 : index
    %c0_142 = arith.constant 0 : index
    %282 = vector.load %arg6[%c48_141, %c0_142] : memref<64x32xf32, #tpu.memory_space<vmem>>, vector<8x32xf32>
    %283 = arith.addf %282, %272 : vector<8x32xf32>
    %284 = arith.negf %283 : vector<8x32xf32>
    %285 = math.exp %284 : vector<8x32xf32>
    %cst_143 = arith.constant 1.000000e+00 : f32
    %286 = vector.broadcast %cst_143 : f32 to vector<8x32xf32>
    %287 = arith.addf %286, %285 : vector<8x32xf32>
    %288 = arith.divf %286, %287 : vector<8x32xf32>
    %c48_144 = arith.constant 48 : index
    %c0_145 = arith.constant 0 : index
    %289 = vector.load %arg7[%c48_144, %c0_145] : memref<64x32xf32, #tpu.memory_space<vmem>>, vector<8x32xf32>
    %290 = arith.mulf %281, %274 : vector<8x32xf32>
    %291 = arith.addf %289, %290 : vector<8x32xf32>
    %292 = math.tanh %291 : vector<8x32xf32>
    %cst_146 = arith.constant 1.000000e+00 : f32
    %293 = vector.broadcast %cst_146 : f32 to vector<8x32xf32>
    %294 = arith.subf %293, %288 : vector<8x32xf32>
    %295 = arith.mulf %294, %292 : vector<8x32xf32>
    %296 = arith.mulf %288, %267 : vector<8x32xf32>
    %297 = arith.addf %295, %296 : vector<8x32xf32>
    %c48_147 = arith.constant 48 : index
    %c0_148 = arith.constant 0 : index
    %298 = vector.load %arg8[%c48_147, %c0_148] : memref<64x32xf32, #tpu.memory_space<vmem>>, vector<8x32xf32>
    tpu.vector_store %arg8[%c48_147, %c0_148], %297 {strides = array<i32>} : memref<64x32xf32, #tpu.memory_space<vmem>>, vector<8x32xf32>,
    %cst_149 = arith.constant dense<0.000000e+00> : vector<8x32xf32>
    %299 = tpu.matmul %297, %76, %cst_149 {dimension_numbers = #tpu.dot_dimension_numbers<[1], [0], [0], [1], [0, 0, 1, 1], [], []>, precision = #tpu.contract_precision<fp32>} : vector<8x32xf32>, vector<32x32xf32>, vector<8x32xf32> -> vector<8x32xf32>
    %300 = arith.addf %299, %81 : vector<8x32xf32>
    %cst_150 = arith.constant dense<0.000000e+00> : vector<8x32xf32>
    %301 = tpu.matmul %297, %77, %cst_150 {dimension_numbers = #tpu.dot_dimension_numbers<[1], [0], [0], [1], [0, 0, 1, 1], [], []>, precision = #tpu.contract_precision<fp32>} : vector<8x32xf32>, vector<32x32xf32>, vector<8x32xf32> -> vector<8x32xf32>
    %302 = arith.addf %301, %84 : vector<8x32xf32>
    %cst_151 = arith.constant dense<0.000000e+00> : vector<8x32xf32>
    %303 = tpu.matmul %297, %78, %cst_151 {dimension_numbers = #tpu.dot_dimension_numbers<[1], [0], [0], [1], [0, 0, 1, 1], [], []>, precision = #tpu.contract_precision<fp32>} : vector<8x32xf32>, vector<32x32xf32>, vector<8x32xf32> -> vector<8x32xf32>
    %304 = arith.addf %303, %87 : vector<8x32xf32>
    %c56 = arith.constant 56 : index
    %c0_152 = arith.constant 0 : index
    %305 = vector.load %arg5[%c56, %c0_152] : memref<64x32xf32, #tpu.memory_space<vmem>>, vector<8x32xf32>
    %306 = arith.addf %305, %300 : vector<8x32xf32>
    %307 = arith.negf %306 : vector<8x32xf32>
    %308 = math.exp %307 : vector<8x32xf32>
    %cst_153 = arith.constant 1.000000e+00 : f32
    %309 = vector.broadcast %cst_153 : f32 to vector<8x32xf32>
    %310 = arith.addf %309, %308 : vector<8x32xf32>
    %311 = arith.divf %309, %310 : vector<8x32xf32>
    %c56_154 = arith.constant 56 : index
    %c0_155 = arith.constant 0 : index
    %312 = vector.load %arg6[%c56_154, %c0_155] : memref<64x32xf32, #tpu.memory_space<vmem>>, vector<8x32xf32>
    %313 = arith.addf %312, %302 : vector<8x32xf32>
    %314 = arith.negf %313 : vector<8x32xf32>
    %315 = math.exp %314 : vector<8x32xf32>
    %cst_156 = arith.constant 1.000000e+00 : f32
    %316 = vector.broadcast %cst_156 : f32 to vector<8x32xf32>
    %317 = arith.addf %316, %315 : vector<8x32xf32>
    %318 = arith.divf %316, %317 : vector<8x32xf32>
    %c56_157 = arith.constant 56 : index
    %c0_158 = arith.constant 0 : index
    %319 = vector.load %arg7[%c56_157, %c0_158] : memref<64x32xf32, #tpu.memory_space<vmem>>, vector<8x32xf32>
    %320 = arith.mulf %311, %304 : vector<8x32xf32>
    %321 = arith.addf %319, %320 : vector<8x32xf32>
    %322 = math.tanh %321 : vector<8x32xf32>
    %cst_159 = arith.constant 1.000000e+00 : f32
    %323 = vector.broadcast %cst_159 : f32 to vector<8x32xf32>
    %324 = arith.subf %323, %318 : vector<8x32xf32>
    %325 = arith.mulf %324, %322 : vector<8x32xf32>
    %326 = arith.mulf %318, %297 : vector<8x32xf32>
    %327 = arith.addf %325, %326 : vector<8x32xf32>
    %c56_160 = arith.constant 56 : index
    %c0_161 = arith.constant 0 : index
    %328 = vector.load %arg8[%c56_160, %c0_161] : memref<64x32xf32, #tpu.memory_space<vmem>>, vector<8x32xf32>
    tpu.vector_store %arg8[%c56_160, %c0_161], %327 {strides = array<i32>} : memref<64x32xf32, #tpu.memory_space<vmem>>, vector<8x32xf32>,
    %c0_162 = arith.constant 0 : index
    %c0_163 = arith.constant 0 : index
    %329 = vector.load %arg8[%c0_162, %c0_163] : memref<64x32xf32, #tpu.memory_space<vmem>>, vector<64x32xf32>
    %c424 = arith.constant 424 : index
    %c0_164 = arith.constant 0 : index
    %330 = vector.load %arg3[%c424, %c0_164] : memref<680x128xf32, #tpu.memory_space<vmem>>, vector<32x32xf32>
    %cst_165 = arith.constant dense<0.000000e+00> : vector<64x32xf32>
    %331 = tpu.matmul %329, %330, %cst_165 {dimension_numbers = #tpu.dot_dimension_numbers<[1], [0], [0], [1], [0, 0, 1, 1], [], []>, precision = #tpu.contract_precision<fp32>} : vector<64x32xf32>, vector<32x32xf32>, vector<64x32xf32> -> vector<64x32xf32>
    %c456 = arith.constant 456 : index
    %c0_166 = arith.constant 0 : index
    %332 = vector.load %arg3[%c456, %c0_166] : memref<680x128xf32, #tpu.memory_space<vmem>>, vector<1x32xf32>
    %333 = vector.broadcast %332 : vector<1x32xf32> to vector<64x32xf32>
    %334 = arith.addf %331, %333 : vector<64x32xf32>
    %cst_167 = arith.constant 0.000000e+00 : f32
    %335 = vector.broadcast %cst_167 : f32 to vector<64x32xf32>
    %336 = arith.cmpf ogt, %334, %335 : vector<64x32xf32>
    %cst_168 = arith.constant 0.000000e+00 : f32
    %337 = vector.broadcast %cst_168 : f32 to vector<64x32xf32>
    %338 = arith.minimumf %334, %337 : vector<64x32xf32>
    %339 = math.exp %338 : vector<64x32xf32>
    %cst_169 = arith.constant 1.000000e+00 : f32
    %340 = vector.broadcast %cst_169 : f32 to vector<64x32xf32>
    %341 = arith.subf %339, %340 : vector<64x32xf32>
    %342 = arith.select %336, %334, %341 : vector<64x32xi1>, vector<64x32xf32>
    %c464 = arith.constant 464 : index
    %c0_170 = arith.constant 0 : index
    %343 = vector.load %arg3[%c464, %c0_170] : memref<680x128xf32, #tpu.memory_space<vmem>>, vector<32x16xf32>
    %cst_171 = arith.constant dense<0.000000e+00> : vector<64x16xf32>
    %344 = tpu.matmul %342, %343, %cst_171 {dimension_numbers = #tpu.dot_dimension_numbers<[1], [0], [0], [1], [0, 0, 1, 1], [], []>, precision = #tpu.contract_precision<fp32>} : vector<64x32xf32>, vector<32x16xf32>, vector<64x16xf32> -> vector<64x16xf32>
    %c496 = arith.constant 496 : index
    %c0_172 = arith.constant 0 : index
    %345 = vector.load %arg3[%c496, %c0_172] : memref<680x128xf32, #tpu.memory_space<vmem>>, vector<1x16xf32>
    %346 = vector.broadcast %345 : vector<1x16xf32> to vector<64x16xf32>
    %347 = arith.addf %344, %346 : vector<64x16xf32>
    %c664 = arith.constant 664 : index
    %c0_173 = arith.constant 0 : index
    %348 = vector.load %arg3[%c664, %c0_173] : memref<680x128xf32, #tpu.memory_space<vmem>>, vector<16x64xf32>
    %cst_174 = arith.constant dense<0.000000e+00> : vector<16x16xf32>
    %349 = tpu.matmul %348, %347, %cst_174 {dimension_numbers = #tpu.dot_dimension_numbers<[1], [0], [0], [1], [0, 0, 1, 1], [], []>, precision = #tpu.contract_precision<fp32>} : vector<16x64xf32>, vector<64x16xf32>, vector<16x16xf32> -> vector<16x16xf32>
    %c504 = arith.constant 504 : index
    %c0_175 = arith.constant 0 : index
    %350 = vector.load %arg3[%c504, %c0_175] : memref<680x128xf32, #tpu.memory_space<vmem>>, vector<16x64xf32>
    %cst_176 = arith.constant dense<0.000000e+00> : vector<16x64xf32>
    %351 = tpu.matmul %44, %350, %cst_176 {dimension_numbers = #tpu.dot_dimension_numbers<[1], [0], [0], [1], [0, 0, 1, 1], [], []>, precision = #tpu.contract_precision<fp32>} : vector<16x16xf32>, vector<16x64xf32>, vector<16x64xf32> -> vector<16x64xf32>
    %c520 = arith.constant 520 : index
    %c0_177 = arith.constant 0 : index
    %352 = vector.load %arg3[%c520, %c0_177] : memref<680x128xf32, #tpu.memory_space<vmem>>, vector<1x64xf32>
    %353 = vector.broadcast %352 : vector<1x64xf32> to vector<16x64xf32>
    %354 = arith.addf %351, %353 : vector<16x64xf32>
    %cst_178 = arith.constant 0.000000e+00 : f32
    %355 = vector.broadcast %cst_178 : f32 to vector<16x64xf32>
    %356 = arith.cmpf ogt, %354, %355 : vector<16x64xf32>
    %cst_179 = arith.constant 0.000000e+00 : f32
    %357 = vector.broadcast %cst_179 : f32 to vector<16x64xf32>
    %358 = arith.minimumf %354, %357 : vector<16x64xf32>
    %359 = math.exp %358 : vector<16x64xf32>
    %cst_180 = arith.constant 1.000000e+00 : f32
    %360 = vector.broadcast %cst_180 : f32 to vector<16x64xf32>
    %361 = arith.subf %359, %360 : vector<16x64xf32>
    %362 = arith.select %356, %354, %361 : vector<16x64xi1>, vector<16x64xf32>
    %c528 = arith.constant 528 : index
    %c0_181 = arith.constant 0 : index
    %363 = vector.load %arg3[%c528, %c0_181] : memref<680x128xf32, #tpu.memory_space<vmem>>, vector<64x32xf32>
    %cst_182 = arith.constant dense<0.000000e+00> : vector<16x32xf32>
    %364 = tpu.matmul %362, %363, %cst_182 {dimension_numbers = #tpu.dot_dimension_numbers<[1], [0], [0], [1], [0, 0, 1, 1], [], []>, precision = #tpu.contract_precision<fp32>} : vector<16x64xf32>, vector<64x32xf32>, vector<16x32xf32> -> vector<16x32xf32>
    %c592 = arith.constant 592 : index
    %c0_183 = arith.constant 0 : index
    %365 = vector.load %arg3[%c592, %c0_183] : memref<680x128xf32, #tpu.memory_space<vmem>>, vector<1x32xf32>
    %366 = vector.broadcast %365 : vector<1x32xf32> to vector<16x32xf32>
    %367 = arith.addf %364, %366 : vector<16x32xf32>
    %cst_184 = arith.constant 0.000000e+00 : f32
    %368 = vector.broadcast %cst_184 : f32 to vector<16x32xf32>
    %369 = tpu.concatenate %36, %44, %349, %367, %368 in 1 : vector<16x32xf32>, vector<16x16xf32>, vector<16x16xf32>, vector<16x32xf32>, vector<16x32xf32> -> vector<16x128xf32>
    %c0_185 = arith.constant 0 : index
    %c0_186 = arith.constant 0 : index
    %370 = vector.load %arg4[%c0_185, %c0_186] : memref<16x128xf32, #tpu.memory_space<vmem>>, vector<16x128xf32>
    tpu.vector_store %arg4[%c0_185, %c0_186], %369 {strides = array<i32>} : memref<16x128xf32, #tpu.memory_space<vmem>>, vector<16x128xf32>,
    return
  }
}

</mosaic_0001>

<bundles_post_ra>
// kernel: forward.1
= control target key start
LH: loop header
LB: loop body
LE: loop exit
PB: predicated region body
PF: predicated region fallthrough
CT: control target
= control target key end

     0   :  { %9 = vsyncpa [#allocation7], 0  ;;  %s34161_s0 = inlined_call_operand.vmem [shape: f32[16,32], index: 0, kind: input, shape index: {}]   ;;  %s34162_s1 = inlined_call_operand.hbm [shape: f32[16,16], index: 1, kind: input, shape index: {}]   ;;  %s34163_s2 = inlined_call_operand.hbm [shape: f32[16,8], index: 2, kind: input, shape index: {}]   ;;  %s34164_s3 = inlined_call_operand.hbm [shape: f32[680,128], index: 3, kind: input, shape index: {}]   ;;  %s34165_s4 = inlined_call_operand.vmem [shape: f32[16,128], index: 4, kind: output, shape index: {}]  }
   0x1   :  { %10 = vsyncpa [#allocation9], 0  ;;  %s31133_s15 = smov [#allocation8]   ;;  %s31134_s17 = smov [#allocation6]  }
   0x2   :  { %s30_s16 = sshll.u32 %s31133_s15, 4  ;;  %s18_s18 = sshll.u32 %s31134_s17, 4  ;;  %s31_s16 = int_to_ptr.vmem [resolvable:$true] %s30_s16  ;;  %s31171_s18 = int_to_ptr.vmem [resolvable:$true] %s18_s18 }
   0x3   :  { %s31063_s21 = scalar_lea.hbm %s34163_s2, 256 }
   0x4   :  { %p31064_p0 = scmp.ne.s32.totalorder %s34163_s2, %s31063_s21  ;;  %p31067_p1 = scmp.lt.u32.totalorder %s31063_s21, %s34163_s2 }
   0x6   :  { %p31069_p2 = pnand %p31067_p1, %p31064_p0 }
   0x8   :  { %31072 = shalt.err (!%p31069_p2)
}
   0x9   :  { %s31073_s26 = scalar_lea.vmem %s31_s16, 256  ;;  %p31078_p4 = scmp.lt.s32.totalorder %s31_s16, %s31_s16 }
   0xa   :  { %p31074_p3 = scmp.ne.s32.totalorder %s31_s16, %s31073_s26  ;;  %p31079_p5 = scmp.lt.s32.totalorder %s31073_s26, %s31073_s26 }
   0xc   :  { %p31080_p6 = por %p31079_p5, %p31078_p4 }
   0xe   :  { %p31081_p7 = pnand %p31080_p6, %p31074_p3 }
  0x10   :  { %31084 = shalt.err (!%p31081_p7)
}
  0x11   :  { %s31135_s27 = smov 128   ;;  %s31136_s28 = smov 8  }
  0x12   :  { %36 = dma.hbm_to_vmem [thread:$0]  %s34163_s2, 256, %s31_s16, [#allocation9], %s31135_s27, %s31135_s27, %s31136_s28  }
  0x13   :  { %s31085_s7 = scalar_lea.hbm %s34162_s1, 256 }
  0x14   :  { %p31086_p8 = scmp.ne.s32.totalorder %s34162_s1, %s31085_s7  ;;  %p31089_p9 = scmp.lt.u32.totalorder %s31085_s7, %s34162_s1 }
  0x16   :  { %p31091_p10 = pnand %p31089_p9, %p31086_p8 }
  0x18   :  { %31094 = shalt.err (!%p31091_p10)
}
  0x19   :  { %s31095_s12 = scalar_lea.vmem %s31171_s18, 256  ;;  %p31100_p12 = scmp.lt.s32.totalorder %s31171_s18, %s31171_s18 }
  0x1a   :  { %p31096_p11 = scmp.ne.s32.totalorder %s31171_s18, %s31095_s12  ;;  %p31101_p13 = scmp.lt.s32.totalorder %s31095_s12, %s31095_s12 }
  0x1c   :  { %p31102_p0 = por %p31101_p13, %p31100_p12 }
  0x1e   :  { %p31103_p1 = pnand %p31102_p0, %p31096_p11 }
  0x20   :  { %31106 = shalt.err (!%p31103_p1)
}
  0x21   :  { %24 = dma.hbm_to_vmem [thread:$0]  %s34162_s1, 256, %s31171_s18, [#allocation7], %s31135_s27, %s31135_s27, %s31136_s28  }
  0x22   :  { %s31137_s14 = smov [#allocation10]   ;;  %s31107_s19 = scalar_lea.hbm %s34164_s3, 10880 }
  0x23   :  { %s42_s15 = sshll.u32 %s31137_s14, 4  ;;  %p31108_p2 = scmp.ne.s32.totalorder %s34164_s3, %s31107_s19  ;;  %s43_s15 = int_to_ptr.vmem [resolvable:$true] %s42_s15 }
  0x24   :  { %p31111_p3 = scmp.lt.u32.totalorder %s31107_s19, %s34164_s3 }
  0x26   :  { %p31113_p4 = pnand %p31111_p3, %p31108_p2 }
  0x28   :  { %31116 = shalt.err (!%p31113_p4)
}
  0x29   :  { %s31117_s24 = scalar_lea.vmem %s43_s15, 10880  ;;  %p31122_p6 = scmp.lt.s32.totalorder %s43_s15, %s43_s15 }
  0x2a   :  { %p31118_p5 = scmp.ne.s32.totalorder %s43_s15, %s31117_s24  ;;  %p31123_p7 = scmp.lt.s32.totalorder %s31117_s24, %s31117_s24 }
  0x2c   :  { %p31124_p8 = por %p31123_p7, %p31122_p6 }
  0x2e   :  { %p31125_p9 = pnand %p31124_p8, %p31118_p5 }
  0x30   :  { %31128 = shalt.err (!%p31125_p9)
}
  0x31   :  { %48 = dma.hbm_to_vmem [thread:$0]  %s34164_s3, 10880, %s43_s15, [#allocation9], %s31135_s27, %s31135_s27, %s31136_s28  }
  0x32   :  { %31129 = dma.done.wait [#allocation7], 256  }
  0x33   :  { %31130 = vsyncadd [#allocation7], 4294967040 }
  0x34   :  { %31131 = dma.done.wait [#allocation9], 11136  }
  0x35   :  { %31132 = vsyncadd [#allocation9], 4294956160  ;;  %vm69_vm0 = vcmask 261120   ;;  %v60_v0 = vld [vmem:[#allocation10] sm:$0xff]  ;;  %v61_v1 = vld [vmem:[#allocation10 + $0x8] sm:$0xff]  ;;  %vm629_vm1 = vcmask 523264  }
  0x36   :  { %v62_v2 = vld [vmem:[#allocation10 + $0x10] sm:$0xff]  ;;  %v77_v3 = vand.u32 4294901760, %v60_v0  ;;  %v80_v4 = vand.u32 4294901760, %v61_v1  ;;  %v63_v5 = vld [vmem:[#allocation10 + $0x18] sm:$0xff]  ;;  %v58_v7 = vld [vmem:[%s34161_s0] sm:$0xff]  ;;  %vm1834_vm6 = vcmask 130048  }
  0x37   :  { %v83_v6 = vand.u32 4294901760, %v62_v2  ;;  %v59_v8 = vld [vmem:[%s34161_s0 + $0x8] sm:$0xff]  ;;  %v86_v9 = vand.u32 4294901760, %v63_v5  ;;  %v71_v10 = vsel %vm69_vm0, %v58_v7, 0  ;;  %v617_v47 = vld [vmem:[#allocation10 + $0x30] sm:$0xff]  ;;  %v618_v52 = vld [vmem:[#allocation10 + $0x38] sm:$0xff] }
  0x38   :  { %v74_v11 = vsel %vm69_vm0, %v59_v8, 0  ;;  %v31231_v12 = vpack.c.bf16 %v80_v4, %v77_v3  ;;  %v31233_v13 = vand.u32 4294901760, %v71_v10  ;;  %v167_v15 = vsub.f32 %v60_v0, %v77_v3  ;;  %v616_v46 = vld [vmem:[#allocation10 + $0x28] sm:$0xff]  ;;  %v619_v53 = vld [vmem:[#allocation10 + $0x40] sm:$0xff]  ;;  %v621_v60 = vld [vmem:[#allocation10 + $0x50] sm:$0xff]  ;;  %s31138_s0 = smov 16  }
  0x39   :  { %v31235_v14 = vand.u32 4294901760, %v74_v11  ;;  %v31237_v16 = vpack.c.bf16 %v86_v9, %v83_v6  ;;  %v174_v17 = vsub.f32 %v61_v1, %v80_v4  ;;  %v181_v18 = vsub.f32 %v62_v2, %v83_v6  ;;  %v620_v59 = vld [vmem:[#allocation10 + $0x48] sm:$0xff]  ;;  %v622_v3 = vld [vmem:[#allocation10 + $0x58] sm:$0xff]  ;;  %v623_v4 = vld [vmem:[#allocation10 + $0x60] sm:$0xff]  ;;  %s31139_s3 = smov 112   ;;  %s31140_s27 = smov 32  }
  0x3a   :  { %v188_v19 = vsub.f32 %v63_v5, %v86_v9  ;;  %28763 = vmatprep.subr.bf16.mxu0 %v31231_v12  ;;  %v146_v20 = vsub.f32 %v71_v10, %v31233_v13  ;;  %v168_v22 = vand.u32 4294901760, %v167_v15  ;;  %v637_v48 = vand.u32 4294901760, %v616_v46  ;;  %s31144_s28 = smov 48   ;;  %s31145_s5 = smov 64  }
  0x3b   :  { %v156_v21 = vsub.f32 %v74_v11, %v31235_v14  ;;  %28765 = vmatpush3.bf16.msra.mxu0 %v31231_v12  ;;  %v175_v23 = vand.u32 4294901760, %v174_v17  ;;  %v182_v24 = vand.u32 4294901760, %v181_v18  ;;  %v28778_v42 = vpack.c.bf16 %v174_v17, %v167_v15 }
  0x3c   :  { %v189_v25 = vand.u32 4294901760, %v188_v19  ;;  %28767 = vmatprep.subr.bf16.mxu0 %v31237_v16  ;;  %v147_v26 = vand.u32 4294901760, %v146_v20  ;;  %v169_v28 = vsub.f32 %v167_v15, %v168_v22  ;;  %v28782_v43 = vpack.c.bf16 %v188_v19, %v181_v18 }
  0x3d   :  { %v157_v27 = vand.u32 4294901760, %v156_v21  ;;  %v176_v29 = vsub.f32 %v174_v17, %v175_v23  ;;  %v183_v30 = vsub.f32 %v181_v18, %v182_v24  ;;  %v28794_v44 = vpack.c.bf16 %v175_v23, %v168_v22 }
  0x3e   :  { %v190_v31 = vsub.f32 %v188_v19, %v189_v25  ;;  %v148_v32 = vsub.f32 %v146_v20, %v147_v26  ;;  %v170_v34 = vand.u32 4294901760, %v169_v28  ;;  %v28798_v45 = vpack.c.bf16 %v189_v25, %v182_v24 }
  0x3f   :  { %v158_v33 = vsub.f32 %v156_v21, %v157_v27  ;;  %28769 = vmatpush3.bf16.msra.mxu0 %v31237_v16  ;;  %v177_v35 = vand.u32 4294901760, %v176_v29  ;;  %v184_v36 = vand.u32 4294901760, %v183_v30  ;;  %v640_v49 = vand.u32 4294901760, %v617_v47 }
  0x40   :  { %v191_v37 = vand.u32 4294901760, %v190_v31  ;;  %v149_v38 = vand.u32 4294901760, %v148_v32  ;;  %v31259_v50 = vsub.f32 %v616_v46, %v637_v48  ;;  %v643_v55 = vand.u32 4294901760, %v618_v52  ;;  %v23906_v46 = vld [vmem:[#allocation10 + $0x20] ss:$0 sm:$0xff] }
  0x41   :  { %v159_v39 = vand.u32 4294901760, %v158_v33  ;;  %v28770_v40 = vpack.c.bf16 %v177_v35, %v170_v34  ;;  %v31261_v51 = vsub.f32 %v617_v47, %v640_v49  ;;  %v646_v56 = vand.u32 4294901760, %v619_v53 }
  0x42   :  { %v28774_v41 = vpack.c.bf16 %v191_v37, %v184_v36  ;;  %25608 = vmatprep.mubr.f32.mxu0 %v149_v38  ;;  %v31265_v57 = vsub.f32 %v618_v52, %v643_v55  ;;  %v649_v62 = vand.u32 4294901760, %v620_v59  ;;  %v652_v63 = vand.u32 4294901760, %v621_v60 }
  0x43   :  { %25609 = vmatmul.mubr.f32.vlgmr.msra.gmra.mrb[0].mxu0 %v159_v39  ;;  %28771 = vmatprep.subr.bf16.mxu0 %v28770_v40  ;;  %v28842_v54 = vpack.c.bf16 %v31261_v51, %v31259_v50  ;;  %v31267_v58 = vsub.f32 %v619_v53, %v646_v56  ;;  %v31271_v0 = vpack.c.bf16 %v640_v49, %v637_v48  ;;  %v655_v6 = vand.u32 4294901760, %v622_v3 }
  0x44   :  { %28773 = vmatpush3.bf16.msra.mxu0 %v28770_v40  ;;  %25619 = vmatprep.mubr.f32.mxu0 %v31233_v13  ;;  %v759_v1 = vsub.f32 %v620_v59, %v649_v62  ;;  %v766_v2 = vsub.f32 %v621_v60, %v652_v63  ;;  %v658_v7 = vand.u32 4294901760, %v623_v4  ;;  %v31275_v8 = vpack.c.bf16 %v646_v56, %v643_v55 }
  0x45   :  { %28775 = vmatprep.subr.bf16.mxu0 %v28774_v41  ;;  %28843 = vmatprep.subr.bf16.mxu1 %v28842_v54  ;;  %v28846_v61 = vpack.c.bf16 %v31267_v58, %v31265_v57  ;;  %v773_v9 = vsub.f32 %v622_v3, %v655_v6  ;;  %v31277_v11 = vpack.c.bf16 %v652_v63, %v649_v62  ;;  %v739_v15 = vand.u32 4294901760, %v31261_v51 }
  0x46   :  { %28845 = vmatpush3.bf16.msra.mxu1 %v28842_v54  ;;  %v28850_v5 = vpack.c.bf16 %v766_v2, %v759_v1  ;;  %v780_v10 = vsub.f32 %v623_v4, %v658_v7  ;;  %v767_v28 = vand.u32 4294901760, %v766_v2  ;;  %vm3928_vm7 = vcmask 64512  }
  0x47   :  { %28847 = vmatprep.subr.bf16.mxu1 %v28846_v61  ;;  %v740_v17 = vsub.f32 %v31261_v51, %v739_v15  ;;  %v774_v34 = vand.u32 4294901760, %v773_v9  ;;  %vm31142_vm8 = vmmov 0  }
  0x48   :  { %28777 = vmatpush3.bf16.msra.mxu0 %v28774_v41  ;;  %v768_v31 = vsub.f32 %v766_v2, %v767_v28  ;;  %v781_v35 = vand.u32 4294901760, %v780_v10 }
  0x49   :  { %28779 = vmatprep.subr.bf16.mxu0 %v28778_v42  ;;  %v741_v19 = vand.u32 4294901760, %v740_v17  ;;  %v775_v37 = vsub.f32 %v773_v9, %v774_v34 }
  0x4a   :  { %28849 = vmatpush3.bf16.msra.mxu1 %v28846_v61  ;;  %v769_v33 = vand.u32 4294901760, %v768_v31  ;;  %v782_v38 = vsub.f32 %v780_v10, %v781_v35 }
  0x4b   :  { %25620 = vmatmul.mubr.f32.vlgmr.msra.gmra.mrb[0].mxu0 %v31235_v14  ;;  %28851 = vmatprep.subr.bf16.mxu1 %v28850_v5  ;;  %v776_v40 = vand.u32 4294901760, %v775_v37 }
  0x4c   :  { %28781 = vmatpush3.bf16.msra.mxu0 %v28778_v42  ;;  %25630 = vmatprep.mubr.f32.mxu0 %v146_v20  ;;  %v746_v20 = vand.u32 4294901760, %v31265_v57  ;;  %v783_v41 = vand.u32 4294901760, %v782_v38 }
  0x4d   :  { %28783 = vmatprep.subr.bf16.mxu0 %v28782_v43 }
  0x4e   :  { %28853 = vmatpush3.bf16.msra.mxu1 %v28850_v5  ;;  %v747_v23 = vsub.f32 %v31265_v57, %v746_v20  ;;  %v28838_v42 = vpack.c.bf16 %v783_v41, %v776_v40 }
  0x50   :  { %28785 = vmatpush3.bf16.msra.mxu0 %v28782_v43  ;;  %v748_v25 = vand.u32 4294901760, %v747_v23 }
  0x51   :  { %28787 = vmatprep.subr.bf16.mxu0 %v31231_v12 }
  0x53   :  { %25631 = vmatmul.mubr.f32.vlgmr.msra.gmra.mrb[0].mxu0 %v156_v21  ;;  %v753_v21 = vand.u32 4294901760, %v31267_v58 }
  0x54   :  { %28789 = vmatpush3.bf16.msra.mxu0 %v31231_v12  ;;  %25641 = vmatprep.mubr.f32.mxu0 %v147_v26 }
  0x55   :  { %28791 = vmatprep.subr.bf16.mxu0 %v31237_v16  ;;  %v754_v24 = vsub.f32 %v31267_v58, %v753_v21  ;;  %v28878_v43 = vpack.c.bf16 %v753_v21, %v746_v20  ;;  %v1232_v20 = vld [vmem:[#allocation10 + $0x90] sm:$0xff]  ;;  %v1233_v21 = vld [vmem:[#allocation10 + $0x98] sm:$0xff] }
  0x57   :  { %v755_v26 = vand.u32 4294901760, %v754_v24 }
  0x58   :  { %28793 = vmatpush3.bf16.msra.mxu0 %v31237_v16 }
  0x59   :  { %28795 = vmatprep.subr.bf16.mxu0 %v28794_v44  ;;  %v28830_v29 = vpack.c.bf16 %v755_v26, %v748_v25  ;;  %v1234_v26 = vld [vmem:[#allocation10 + $0xa0] sm:$0xff] }
  0x5b   :  { %25642 = vmatmul.mubr.f32.vlgmr.msra.gmra.mrb[0].mxu0 %v157_v27  ;;  %v760_v27 = vand.u32 4294901760, %v759_v1 }
  0x5c   :  { %28797 = vmatpush3.bf16.msra.mxu0 %v28794_v44  ;;  %25652 = vmatprep.mubr.f32.mxu0 %v31233_v13 }
  0x5d   :  { %28799 = vmatprep.subr.bf16.mxu0 %v28798_v45  ;;  %v761_v30 = vsub.f32 %v759_v1, %v760_v27  ;;  %v28882_v44 = vpack.c.bf16 %v767_v28, %v760_v27  ;;  %v1235_v27 = vld [vmem:[#allocation10 + $0xa8] sm:$0xff]  ;;  %v1266_v28 = vand.u32 4294901760, %v1234_v26 }
  0x5f   :  { %v762_v32 = vand.u32 4294901760, %v761_v30 }
  0x60   :  { %28801 = vmatpush3.bf16.msra.mxu0 %v28798_v45  ;;  %v28886_v45 = vpack.c.bf16 %v781_v35, %v774_v34 }
  0x61   :  { %28803 = vmatprep.subr.bf16.mxu0 %v31231_v12  ;;  %v28834_v36 = vpack.c.bf16 %v769_v33, %v762_v32 }
  0x63   :  { %25653 = vmatmul.mubr.f32.vlgmr.msra.gmra.mrb[0].mxu0 %v31235_v14 }
  0x64   :  { %28805 = vmatpush3.bf16.msra.mxu0 %v31231_v12  ;;  %25663 = vmatprep.mubr.f32.mxu0 %v31233_v13  ;;  %v28854_v12 = vpack.c.bf16 %v780_v10, %v773_v9  ;;  %v31281_v13 = vpack.c.bf16 %v658_v7, %v655_v6 }
  0x65   :  { %28807 = vmatprep.subr.bf16.mxu0 %v31237_v16 }
  0x66   :  { %28855 = vmatprep.subr.bf16.mxu1 %v28854_v12 }
  0x67   :  { %28857 = vmatpush3.bf16.msra.mxu1 %v28854_v12  ;;  %v1228_v12 = vld [vmem:[#allocation10 + $0x70] sm:$0xff] }
  0x68   :  { %28809 = vmatpush3.bf16.msra.mxu0 %v31237_v16  ;;  %28859 = vmatprep.subr.bf16.mxu1 %v31271_v0 }
  0x69   :  { %28811 = vmatprep.subr.bf16.mxu0 %v31271_v0 }
  0x6b   :  { %25664 = vmatmul.mubr.f32.vlgmr.msra.gmra.mrb[0].mxu0 %v31235_v14  ;;  %v732_v14 = vand.u32 4294901760, %v31259_v50 }
  0x6c   :  { %28813 = vmatpush3.bf16.msra.mxu0 %v31271_v0 }
  0x6d   :  { %28815 = vmatprep.subr.bf16.mxu0 %v31275_v8  ;;  %v733_v16 = vsub.f32 %v31259_v50, %v732_v14  ;;  %v28874_v39 = vpack.c.bf16 %v739_v15, %v732_v14  ;;  %v1229_v14 = vld [vmem:[#allocation10 + $0x78] sm:$0xff]  ;;  %v1248_v15 = vand.u32 4294901760, %v1228_v12 }
  0x6f   :  { %v734_v18 = vand.u32 4294901760, %v733_v16  ;;  %v1251_v16 = vand.u32 4294901760, %v1229_v14  ;;  %v1342_v24 = vsub.f32 %v1228_v12, %v1248_v15 }
  0x70   :  { %28817 = vmatpush3.bf16.msra.mxu0 %v31275_v8 }
  0x71   :  { %28819 = vmatprep.subr.bf16.mxu0 %v31277_v11  ;;  %v31294_v22 = vpack.c.bf16 %v741_v19, %v734_v18  ;;  %v31317_v17 = vpack.c.bf16 %v1251_v16, %v1248_v15  ;;  %v1231_v18 = vld [vmem:[#allocation10 + $0x88] sm:$0xff]  ;;  %v1349_v25 = vsub.f32 %v1229_v14, %v1251_v16  ;;  %v1343_v30 = vand.u32 4294901760, %v1342_v24 }
  0x72   :  { %v1257_v19 = vand.u32 4294901760, %v1231_v18  ;;  %v23909_v15 = vld [vmem:[#allocation10 + $0x68] ss:$0 sm:$0xff] }
  0x73   :  { %v1350_v31 = vand.u32 4294901760, %v1349_v25  ;;  %v1344_v33 = vsub.f32 %v1342_v24, %v1343_v30 }
  0x74   :  { %28821 = vmatpush3.bf16.msra.mxu0 %v31277_v11 }
  0x75   :  { %28823 = vmatprep.subr.bf16.mxu0 %v31281_v13  ;;  %v1351_v34 = vsub.f32 %v1349_v25, %v1350_v31  ;;  %v1345_v37 = vand.u32 4294901760, %v1344_v33 }
  0x77   :  { %v1352_v38 = vand.u32 4294901760, %v1351_v34 }
  0x78   :  { %28825 = vmatpush3.bf16.msra.mxu0 %v31281_v13 }
  0x79   :  { %28827 = vmatprep.subr.bf16.mxu0 %v31294_v22  ;;  %v31333_v41 = vpack.c.bf16 %v1352_v38, %v1345_v37 }
 0x13e   :  { %v25665_v47 = vpop.f32.mrb[0].mxu0 }
 0x13f   :  { %v30322_v48 = vadd.f32 %v25665_v47, %v23906_v46  ;;  %v594_v49 = vpop.f32.mrb[1].mxu0 }
 0x140   :  { %v30323_v50 = vadd.f32 %v23906_v46, %v594_v49 }
 0x141   :  { %v607_v51 = vmin.f32 %v30322_v48, 0.0  ;;  %vm605_vm2 = vcmp.gt.f32.partialorder %v30322_v48, 0.0 }
 0x142   :  { %v606_v52 = vmin.f32 %v30323_v50, 0.0  ;;  %vm604_vm3 = vcmp.gt.f32.partialorder %v30323_v50, 0.0 }
 0x143   :  { %v610_v53 = vmul.f32 1.442695, %v607_v51 }
 0x144   :  { %v608_v54 = vmul.f32 1.442695, %v606_v52 }
 0x145   :  { %30945 = vpow2.f32 %v610_v53  ;;  %v1384_v53 = vsub.f32 %v1234_v26, %v1266_v28 }
 0x146   :  { %30947 = vpow2.f32 %v608_v54 }
 0x14f   :  { %v30946_v55 = vpop.eup %30945 }
 0x150   :  { %v30948_v56 = vpop.eup %30947  ;;  %v23908_v57 = vadd.f32 -1.0, %v30946_v55 }
 0x151   :  { %v23907_v58 = vadd.f32 -1.0, %v30948_v56 }
 0x152   :  { %v615_v59 = vsel %vm605_vm2, %v30322_v48, %v23908_v57  ;;  %v1385_v57 = vand.u32 4294901760, %v1384_v53 }
 0x153   :  { %v614_v60 = vsel %vm604_vm3, %v30323_v50, %v23907_v58  ;;  %v634_v61 = vsel %vm629_vm1, %v615_v59, 0 }
 0x154   :  { %v631_v62 = vsel %vm629_vm1, %v614_v60, 0  ;;  %v719_v63 = vand.u32 4294901760, %v634_v61  ;;  %v1386_v60 = vsub.f32 %v1384_v53, %v1385_v57 }
 0x155   :  { %v709_v1 = vand.u32 4294901760, %v631_v62 }
 0x156   :  { %v720_v2 = vsub.f32 %v634_v61, %v719_v63 }
 0x157   :  { %v710_v3 = vsub.f32 %v631_v62, %v709_v1  ;;  %v1387_v62 = vand.u32 4294901760, %v1386_v60 }
 0x158   :  { %v721_v4 = vand.u32 4294901760, %v720_v2 }
 0x159   :  { %25720 = vmatprep.mubr.f32.mxu1 %v710_v3  ;;  %v711_v5 = vand.u32 4294901760, %v710_v3 }
 0x15a   :  { %25721 = vmatmul.mubr.f32.vlgmr.msra.gmra.mrb[0].mxu1 %v720_v2  ;;  %v722_v6 = vsub.f32 %v720_v2, %v721_v4  ;;  %v28938_v2 = vpack.c.bf16 %v1349_v25, %v1342_v24 }
 0x15b   :  { %28861 = vmatpush3.bf16.msra.mxu1 %v31271_v0  ;;  %25739 = vmatprep.mubr.f32.mxu1 %v711_v5  ;;  %v712_v7 = vsub.f32 %v710_v3, %v711_v5 }
 0x15c   :  { %28863 = vmatprep.subr.bf16.mxu1 %v31275_v8  ;;  %v723_v10 = vand.u32 4294901760, %v722_v6  ;;  %v31336_v6 = vpack.c.bf16 %v1350_v31, %v1343_v30 }
 0x15d   :  { %v713_v9 = vand.u32 4294901760, %v712_v7 }
 0x15f   :  { %28865 = vmatpush3.bf16.msra.mxu1 %v31275_v8  ;;  %25682 = vmatprep.mubr.f32.mxu0 %v713_v9 }
 0x160   :  { %25683 = vmatmul.mubr.f32.vlgmr.msra.gmra.mrb[2].mxu0 %v723_v10  ;;  %28867 = vmatprep.subr.bf16.mxu1 %v31277_v11 }
 0x161   :  { %28829 = vmatpush3.bf16.msra.mxu0 %v31294_v22  ;;  %25701 = vmatprep.mubr.f32.mxu0 %v709_v1  ;;  %v1263_v22 = vand.u32 4294901760, %v1233_v21 }
 0x162   :  { %28831 = vmatprep.subr.bf16.mxu0 %v28830_v29 }
 0x163   :  { %28869 = vmatpush3.bf16.msra.mxu1 %v31277_v11 }
 0x164   :  { %28871 = vmatprep.subr.bf16.mxu1 %v31281_v13 }
 0x165   :  { %28833 = vmatpush3.bf16.msra.mxu0 %v28830_v29  ;;  %v1269_v29 = vand.u32 4294901760, %v1235_v27 }
 0x166   :  { %28835 = vmatprep.subr.bf16.mxu0 %v28834_v36 }
 0x167   :  { %28873 = vmatpush3.bf16.msra.mxu1 %v31281_v13  ;;  %v31329_v32 = vpack.c.bf16 %v1269_v29, %v1266_v28  ;;  %v1391_v54 = vsub.f32 %v1235_v27, %v1269_v29 }
 0x168   :  { %28875 = vmatprep.subr.bf16.mxu1 %v28874_v39 }
 0x169   :  { %28837 = vmatpush3.bf16.msra.mxu0 %v28834_v36  ;;  %v1363_v36 = vsub.f32 %v1231_v18, %v1257_v19  ;;  %v1392_v58 = vand.u32 4294901760, %v1391_v54  ;;  %v28950_v5 = vpack.c.bf16 %v1391_v54, %v1384_v53 }
 0x16a   :  { %25740 = vmatmul.mubr.f32.vlgmr.msra.gmra.mrb[0].mxu1 %v721_v4  ;;  %28839 = vmatprep.subr.bf16.mxu0 %v28838_v42 }
 0x16b   :  { %28877 = vmatpush3.bf16.msra.mxu1 %v28874_v39  ;;  %25758 = vmatprep.mubr.f32.mxu1 %v709_v1  ;;  %v1364_v40 = vand.u32 4294901760, %v1363_v36  ;;  %v1393_v61 = vsub.f32 %v1391_v54, %v1392_v58  ;;  %v31342_v10 = vpack.c.bf16 %v1392_v58, %v1385_v57  ;;  %v3164_v57 = vld [vmem:[#allocation8 + $0x8] sm:$0xff] }
 0x16c   :  { %28879 = vmatprep.subr.bf16.mxu1 %v28878_v43 }
 0x16d   :  { %28841 = vmatpush3.bf16.msra.mxu0 %v28838_v42 }
 0x16e   :  { %28907 = vmatprep.subr.bf16.mxu0 %v31317_v17 }
 0x16f   :  { %28881 = vmatpush3.bf16.msra.mxu1 %v28878_v43  ;;  %v1365_v43 = vsub.f32 %v1363_v36, %v1364_v40 }
 0x170   :  { %25702 = vmatmul.mubr.f32.vlgmr.msra.gmra.mrb[2].mxu0 %v719_v63  ;;  %28883 = vmatprep.subr.bf16.mxu1 %v28882_v44 }
 0x171   :  { %28909 = vmatpush3.bf16.msra.mxu0 %v31317_v17  ;;  %v1366_v47 = vand.u32 4294901760, %v1365_v43 }
 0x173   :  { %28885 = vmatpush3.bf16.msra.mxu1 %v28882_v44 }
 0x174   :  { %28887 = vmatprep.subr.bf16.mxu1 %v28886_v45 }
 0x177   :  { %28889 = vmatpush3.bf16.msra.mxu1 %v28886_v45  ;;  %v1377_v45 = vsub.f32 %v1233_v21, %v1263_v22 }
 0x178   :  { %28891 = vmatprep.subr.bf16.mxu1 %v31271_v0 }
 0x179   :  { %v1378_v49 = vand.u32 4294901760, %v1377_v45 }
 0x17a   :  { %25759 = vmatmul.mubr.f32.vlgmr.msra.gmra.mrb[0].mxu1 %v719_v63 }
 0x17b   :  { %28893 = vmatpush3.bf16.msra.mxu1 %v31271_v0  ;;  %25777 = vmatprep.mubr.f32.mxu1 %v709_v1  ;;  %v1230_v0 = vld [vmem:[#allocation10 + $0x80] sm:$0xff]  ;;  %v1379_v52 = vsub.f32 %v1377_v45, %v1378_v49 }
 0x17c   :  { %28895 = vmatprep.subr.bf16.mxu1 %v31275_v8 }
 0x17d   :  { %v1380_v56 = vand.u32 4294901760, %v1379_v52 }
 0x17f   :  { %28897 = vmatpush3.bf16.msra.mxu1 %v31275_v8  ;;  %v1254_v8 = vand.u32 4294901760, %v1230_v0 }
 0x180   :  { %28899 = vmatprep.subr.bf16.mxu1 %v31277_v11 }
 0x181   :  { %v1356_v35 = vsub.f32 %v1230_v0, %v1254_v8 }
 0x183   :  { %28901 = vmatpush3.bf16.msra.mxu1 %v31277_v11  ;;  %v31321_v11 = vpack.c.bf16 %v1257_v19, %v1254_v8  ;;  %v1357_v39 = vand.u32 4294901760, %v1356_v35  ;;  %v28942_v3 = vpack.c.bf16 %v1363_v36, %v1356_v35 }
 0x184   :  { %28903 = vmatprep.subr.bf16.mxu1 %v31281_v13 }
 0x185   :  { %28911 = vmatprep.subr.bf16.mxu0 %v31321_v11  ;;  %v1358_v42 = vsub.f32 %v1356_v35, %v1357_v39  ;;  %v31338_v7 = vpack.c.bf16 %v1364_v40, %v1357_v39 }
 0x186   :  { %28913 = vmatpush3.bf16.msra.mxu0 %v31321_v11 }
 0x187   :  { %28905 = vmatpush3.bf16.msra.mxu1 %v31281_v13  ;;  %v1260_v13 = vand.u32 4294901760, %v1232_v20  ;;  %v1359_v46 = vand.u32 4294901760, %v1358_v42 }
 0x189   :  { %v31325_v23 = vpack.c.bf16 %v1263_v22, %v1260_v13  ;;  %v1370_v44 = vsub.f32 %v1232_v20, %v1260_v13  ;;  %v28926_v50 = vpack.c.bf16 %v1366_v47, %v1359_v46 }
 0x18a   :  { %25778 = vmatmul.mubr.f32.vlgmr.msra.gmra.mrb[0].mxu1 %v719_v63  ;;  %v1394_v63 = vand.u32 4294901760, %v1393_v61  ;;  %v2349_v61 = vld [vmem:[#allocation6] sm:$0xff] }
 0x18b   :  { %28915 = vmatprep.subr.bf16.mxu0 %v31325_v23  ;;  %v1371_v48 = vand.u32 4294901760, %v1370_v44  ;;  %v28946_v4 = vpack.c.bf16 %v1377_v45, %v1370_v44  ;;  %v1828_v45 = vld [vmem:[#allocation10 + $0xc0] sm:$0xff]  ;;  %2353 = vrot.lane.b32.xlu0 %v2349_v61, %s31138_s0 }
 0x18c   :  { %28917 = vmatpush3.bf16.msra.mxu0 %v31325_v23  ;;  %v28934_v1 = vpack.c.bf16 %v1394_v63, %v1387_v62  ;;  %v1845_v47 = vand.u32 4294901760, %v1828_v45  ;;  %v2350_v62 = vld [vmem:[#allocation6 + $0x8] sm:$0xff] }
 0x18d   :  { %28919 = vmatprep.subr.bf16.mxu0 %v31329_v32  ;;  %v1372_v51 = vsub.f32 %v1370_v44, %v1371_v48  ;;  %v31340_v9 = vpack.c.bf16 %v1378_v49, %v1371_v48 }
 0x18f   :  { %v1373_v55 = vand.u32 4294901760, %v1372_v51  ;;  %2355 = vrot.lane.b32.xlu0 %v2350_v62, %s31138_s0 }
 0x190   :  { %28921 = vmatpush3.bf16.msra.mxu0 %v31329_v32 }
 0x191   :  { %28923 = vmatprep.subr.bf16.mxu0 %v31333_v41  ;;  %v28930_v59 = vpack.c.bf16 %v1380_v56, %v1373_v55  ;;  %v3163_v56 = vld [vmem:[#allocation8] sm:$0xff] }
 0x192   :  { %v3166_v58 = vand.u32 4294901760, %v3163_v56 }
 0x194   :  { %v3314_v63 = vsub.f32 %v3163_v56, %v3166_v58 }
 0x243   :  { %v25703_v12 = vpop.f32.mrb[2].mxu0 }
 0x244   :  { %v836_v14 = vpop.f32.mrb[3].mxu0  ;;  %v30324_v16 = vadd.f32 %v25703_v12, %v23909_v15 }
 0x245   :  { %v30326_v0 = vadd.f32 %v23909_v15, %v836_v14  ;;  %v2371_v14 = vld [vmem:[#allocation10 + $0x258] sm:$0xff]  ;;  %v2372_v15 = vld [vmem:[#allocation10 + $0x260] sm:$0xff] }
 0x25d   :  { %v25779_v18 = vpop.f32.mrb[0].mxu1 }
 0x25e   :  { %v30325_v8 = vadd.f32 %v30324_v16, %v25779_v18  ;;  %v1206_v19 = vpop.f32.mrb[1].mxu1  ;;  %v2380_v16 = vsel %vm1834_vm6, %v2371_v14, 0  ;;  %v23912_v18 = vld [vmem:[#allocation10 + $0xb0] ss:$0 sm:$0xff] }
 0x25f   :  { %v30327_v20 = vadd.f32 %v30326_v0, %v1206_v19  ;;  %v2373_v0 = vld [vmem:[#allocation10 + $0x268] sm:$0xff]  ;;  %v31391_v19 = vand.u32 4294901760, %v2380_v16 }
 0x260   :  { %v1219_v21 = vmin.f32 %v30325_v8, 0.0  ;;  %vm1217_vm4 = vcmp.gt.f32.partialorder %v30325_v8, 0.0 }
 0x261   :  { %v1218_v13 = vmin.f32 %v30327_v20, 0.0  ;;  %vm1216_vm5 = vcmp.gt.f32.partialorder %v30327_v20, 0.0 }
 0x262   :  { %v1222_v22 = vmul.f32 1.442695, %v1219_v21  ;;  %v2374_v21 = vld [vmem:[#allocation10 + $0x270] sm:$0xff] }
 0x263   :  { %v1220_v24 = vmul.f32 1.442695, %v1218_v13 }
 0x264   :  { %30949 = vpow2.f32 %v1222_v22 }
 0x265   :  { %30951 = vpow2.f32 %v1220_v24 }
 0x26e   :  { %v30950_v25 = vpop.eup %30949 }
 0x26f   :  { %v30952_v26 = vpop.eup %30951  ;;  %v23911_v27 = vadd.f32 -1.0, %v30950_v25 }
 0x270   :  { %v23910_v28 = vadd.f32 -1.0, %v30952_v26  ;;  %v2375_v26 = vld [vmem:[#allocation10 + $0x278] sm:$0xff] }
 0x271   :  { %v1227_v29 = vsel %vm1217_vm4, %v30325_v8, %v23911_v27  ;;  %v2383_v8 = vsel %vm1834_vm6, %v2372_v15, 0 }
 0x272   :  { %v1245_v30 = vsel %vm629_vm1, %v1227_v29, 0  ;;  %v1226_v31 = vsel %vm1216_vm5, %v30327_v20, %v23910_v28  ;;  %v2386_v20 = vsel %vm1834_vm6, %v2373_v0, 0  ;;  %v31394_v25 = vand.u32 4294901760, %v2383_v8 }
 0x273   :  { %v1330_v33 = vand.u32 4294901760, %v1245_v30  ;;  %v1242_v34 = vsel %vm629_vm1, %v1226_v31, 0  ;;  %v31396_v28 = vand.u32 4294901760, %v2386_v20  ;;  %v2389_v29 = vsel %vm1834_vm6, %v2374_v21, 0 }
 0x274   :  { %v1320_v35 = vand.u32 4294901760, %v1242_v34  ;;  %v31401_v31 = vsub.f32 %v2380_v16, %v31391_v19  ;;  %vm23890_vm5 = vcmask 392192  }
 0x275   :  { %v1331_v36 = vsub.f32 %v1245_v30, %v1330_v33 }
 0x276   :  { %v1321_v37 = vsub.f32 %v1242_v34, %v1320_v35 }
 0x277   :  { %v1332_v38 = vand.u32 4294901760, %v1331_v36 }
 0x278   :  { %v1322_v39 = vand.u32 4294901760, %v1321_v37 }
 0x279   :  { %v1333_v40 = vsub.f32 %v1331_v36, %v1332_v38 }
 0x27a   :  { %v1323_v42 = vsub.f32 %v1321_v37, %v1322_v39 }
 0x27b   :  { %v1334_v44 = vand.u32 4294901760, %v1333_v40  ;;  %v31412_v40 = vand.u32 4294901760, %v2389_v29 }
 0x27c   :  { %v1324_v43 = vand.u32 4294901760, %v1323_v42 }
 0x27e   :  { %25796 = vmatprep.mubr.f32.mxu0 %v1324_v43  ;;  %v31416_v43 = vsub.f32 %v2386_v20, %v31396_v28 }
 0x27f   :  { %25797 = vmatmul.mubr.f32.vlgmr.msra.gmra.mrb[4].mxu0 %v1334_v44 }
 0x280   :  { %28925 = vmatpush3.bf16.msra.mxu0 %v31333_v41  ;;  %25815 = vmatprep.mubr.f32.mxu0 %v1320_v35  ;;  %v1827_v41 = vld [vmem:[#allocation10 + $0xb8] sm:$0xff] }
 0x281   :  { %28927 = vmatprep.subr.bf16.mxu0 %v28926_v50  ;;  %v1842_v46 = vand.u32 4294901760, %v1827_v41 }
 0x283   :  { %v1930_v48 = vsub.f32 %v1827_v41, %v1842_v46 }
 0x284   :  { %28929 = vmatpush3.bf16.msra.mxu0 %v28926_v50 }
 0x285   :  { %28931 = vmatprep.subr.bf16.mxu0 %v28930_v59  ;;  %v1931_v49 = vand.u32 4294901760, %v1930_v48 }
 0x287   :  { %v1932_v51 = vsub.f32 %v1930_v48, %v1931_v49 }
 0x288   :  { %28933 = vmatpush3.bf16.msra.mxu0 %v28930_v59  ;;  %v3169_v59 = vand.u32 4294901760, %v3164_v57 }
 0x289   :  { %28935 = vmatprep.subr.bf16.mxu0 %v28934_v1 }
 0x28a   :  { %v31380_v60 = vpack.c.bf16 %v3169_v59, %v3166_v58 }
 0x28c   :  { %28937 = vmatpush3.bf16.msra.mxu0 %v28934_v1  ;;  %v3321_v1 = vsub.f32 %v3164_v57, %v3169_v59 }
 0x28d   :  { %28939 = vmatprep.subr.bf16.mxu0 %v28938_v2 }
 0x28f   :  { %25816 = vmatmul.mubr.f32.vlgmr.msra.gmra.mrb[4].mxu0 %v1330_v33 }
 0x290   :  { %28941 = vmatpush3.bf16.msra.mxu0 %v28938_v2  ;;  %25834 = vmatprep.mubr.f32.mxu0 %v1321_v37  ;;  %v3315_v2 = vand.u32 4294901760, %v3314_v63  ;;  %v2377_v37 = vld [vmem:[#allocation10 + $0x288] sm:$0xff] }
 0x291   :  { %28943 = vmatprep.subr.bf16.mxu0 %v28942_v3 }
 0x294   :  { %28945 = vmatpush3.bf16.msra.mxu0 %v28942_v3  ;;  %v3322_v3 = vand.u32 4294901760, %v3321_v1 }
 0x295   :  { %28947 = vmatprep.subr.bf16.mxu0 %v28946_v4 }
 0x296   :  { %v31387_v12 = vpack.c.bf16 %v3322_v3, %v3315_v2 }
 0x298   :  { %28949 = vmatpush3.bf16.msra.mxu0 %v28946_v4  ;;  %v31383_v4 = vpack.c.bf16 %v3321_v1, %v3314_v63 }
 0x299   :  { %28951 = vmatprep.subr.bf16.mxu0 %v28950_v5 }
 0x29c   :  { %28953 = vmatpush3.bf16.msra.mxu0 %v28950_v5  ;;  %v3316_v5 = vsub.f32 %v3314_v63, %v3315_v2 }
 0x29d   :  { %28955 = vmatprep.subr.bf16.mxu0 %v31317_v17 }
 0x29f   :  { %25835 = vmatmul.mubr.f32.vlgmr.msra.gmra.mrb[4].mxu0 %v1331_v36  ;;  %v2392_v36 = vsel %vm1834_vm6, %v2375_v26, 0 }
 0x2a0   :  { %28957 = vmatpush3.bf16.msra.mxu0 %v31317_v17  ;;  %25853 = vmatprep.mubr.f32.mxu0 %v1322_v39  ;;  %v31410_v39 = vsub.f32 %v2383_v8, %v31394_v25 }
 0x2a1   :  { %28959 = vmatprep.subr.bf16.mxu0 %v31321_v11 }
 0x2a4   :  { %28961 = vmatpush3.bf16.msra.mxu0 %v31321_v11 }
 0x2a5   :  { %28963 = vmatprep.subr.bf16.mxu0 %v31325_v23 }
 0x2a8   :  { %28965 = vmatpush3.bf16.msra.mxu0 %v31325_v23 }
 0x2a9   :  { %28967 = vmatprep.subr.bf16.mxu0 %v31329_v32 }
 0x2ac   :  { %28969 = vmatpush3.bf16.msra.mxu0 %v31329_v32 }
 0x2ad   :  { %28971 = vmatprep.subr.bf16.mxu0 %v31336_v6 }
 0x2af   :  { %25854 = vmatmul.mubr.f32.vlgmr.msra.gmra.mrb[4].mxu0 %v1332_v38 }
 0x2b0   :  { %28973 = vmatpush3.bf16.msra.mxu0 %v31336_v6  ;;  %25872 = vmatprep.mubr.f32.mxu0 %v1320_v35  ;;  %v3323_v6 = vsub.f32 %v3321_v1, %v3322_v3 }
 0x2b1   :  { %28975 = vmatprep.subr.bf16.mxu0 %v31338_v7 }
 0x2b4   :  { %28977 = vmatpush3.bf16.msra.mxu0 %v31338_v7  ;;  %v3317_v7 = vand.u32 4294901760, %v3316_v5 }
 0x2b5   :  { %28979 = vmatprep.subr.bf16.mxu0 %v31340_v9 }
 0x2b8   :  { %28981 = vmatpush3.bf16.msra.mxu0 %v31340_v9  ;;  %v3324_v9 = vand.u32 4294901760, %v3323_v6 }
 0x2b9   :  { %28983 = vmatprep.subr.bf16.mxu0 %v31342_v10 }
 0x2bc   :  { %28985 = vmatpush3.bf16.msra.mxu0 %v31342_v10  ;;  %v31385_v10 = vpack.c.bf16 %v3324_v9, %v3317_v7 }
 0x2bd   :  { %28987 = vmatprep.subr.bf16.mxu0 %v31317_v17 }
 0x2bf   :  { %25873 = vmatmul.mubr.f32.vlgmr.msra.gmra.mrb[4].mxu0 %v1330_v33 }
 0x2c0   :  { %28989 = vmatpush3.bf16.msra.mxu0 %v31317_v17  ;;  %25891 = vmatprep.mubr.f32.mxu0 %v1320_v35  ;;  %v1937_v17 = vsub.f32 %v1828_v45, %v1845_v47  ;;  %v31422_v45 = vand.u32 4294901760, %v31401_v31 }
 0x2c1   :  { %28991 = vmatprep.subr.bf16.mxu0 %v31321_v11 }
 0x2c2   :  { %v1938_v50 = vand.u32 4294901760, %v1937_v17  ;;  %v31373_v55 = vpack.c.bf16 %v1937_v17, %v1930_v48 }
 0x2c4   :  { %28993 = vmatpush3.bf16.msra.mxu0 %v31321_v11  ;;  %v1939_v52 = vsub.f32 %v1937_v17, %v1938_v50  ;;  %v1933_v11 = vand.u32 4294901760, %v1932_v51  ;;  %v2378_v17 = vld [vmem:[#allocation10 + $0x290] sm:$0xff]  ;;  %v31433_v51 = vsub.f32 %v2389_v29, %v31412_v40 }
 0x2c5   :  { %28995 = vmatprep.subr.bf16.mxu0 %v31325_v23  ;;  %v2401_v58 = vsel %vm1834_vm6, %v2378_v17, 0 }
 0x2c6   :  { %v1940_v53 = vand.u32 4294901760, %v1939_v52  ;;  %v31452_v62 = vand.u32 4294901760, %v31433_v51  ;;  %v31459_v3 = vand.u32 4294901760, %v2401_v58 }
 0x2c8   :  { %28997 = vmatpush3.bf16.msra.mxu0 %v31325_v23  ;;  %v29006_v54 = vpack.c.bf16 %v1940_v53, %v1933_v11  ;;  %v31371_v23 = vpack.c.bf16 %v1845_v47, %v1842_v46  ;;  %v31424_v46 = vand.u32 4294901760, %v2392_v36  ;;  %v2398_v47 = vsel %vm1834_vm6, %v2377_v37, 0 }
 0x2c9   :  { %28999 = vmatprep.subr.bf16.mxu0 %v31329_v32  ;;  %v31437_v11 = vand.u32 4294901760, %v31416_v43  ;;  %v2503_v15 = vsub.f32 %v31433_v51, %v31452_v62  ;;  %v31480_v0 = vsub.f32 %v2401_v58, %v31459_v3 }
 0x2ca   :  { %29007 = vmatprep.subr.bf16.mxu1 %v29006_v54  ;;  %v31446_v57 = vsub.f32 %v2392_v36, %v31424_v46 }
 0x2cb   :  { %29009 = vmatpush3.bf16.msra.mxu1 %v29006_v54  ;;  %v31441_v54 = vand.u32 4294901760, %v2398_v47  ;;  %v2493_v1 = vsub.f32 %v31416_v43, %v31437_v11  ;;  %v31490_v20 = vand.u32 4294901760, %v2503_v15 }
 0x2cc   :  { %29001 = vmatpush3.bf16.msra.mxu0 %v31329_v32  ;;  %29011 = vmatprep.subr.bf16.mxu1 %v31373_v55  ;;  %v31378_v32 = vpack.c.bf16 %v1938_v50, %v1931_v49  ;;  %v31430_v50 = vand.u32 4294901760, %v31410_v39  ;;  %v31462_v6 = vand.u32 4294901760, %v31446_v57 }
 0x2cd   :  { %29003 = vmatprep.subr.bf16.mxu0 %v31371_v23  ;;  %v31465_v7 = vsub.f32 %v2398_v47, %v31441_v54  ;;  %v31472_v14 = vand.u32 4294901760, %v2493_v1 }
 0x2ce   :  { %v2483_v61 = vsub.f32 %v31410_v39, %v31430_v50 }
 0x2cf   :  { %25892 = vmatmul.mubr.f32.vlgmr.msra.gmra.mrb[4].mxu0 %v1330_v33  ;;  %v2376_v33 = vld [vmem:[#allocation10 + $0x280] sm:$0xff]  ;;  %v31485_v8 = vand.u32 4294901760, %v31465_v7 }
 0x2d0   :  { %29005 = vmatpush3.bf16.msra.mxu0 %v31371_v23  ;;  %v2395_v44 = vsel %vm1834_vm6, %v2376_v33, 0  ;;  %v31468_v9 = vand.u32 4294901760, %v2483_v61 }
 0x2d1   :  { %29051 = vmatprep.subr.bf16.mxu0 %v31380_v60  ;;  %v31439_v53 = vand.u32 4294901760, %v2395_v44  ;;  %34211 = vst [vmem:[#allocation14_spill] sm:$0xff] %v31485_v8 }
 0x2d3   :  { %v31457_v2 = vsub.f32 %v2395_v44, %v31439_v53  ;;  %v2354_v44 = vpop.permute.xlu0 %2353 }
 0x2d5   :  { %v31477_v16 = vand.u32 4294901760, %v31457_v2 }
 0x2d7   :  { %34210 = vst [vmem:[#allocation13_spill] sm:$0xff] %v31477_v16  ;;  %v2523_v21 = vsub.f32 %v31457_v2, %v31477_v16  ;;  %v2356_v17 = vpop.permute.xlu0 %2355 }
 0x2d9   :  { %v31507_v26 = vand.u32 4294901760, %v2523_v21 }
 0x3a2   :  { %v25893_v13 = vpop.f32.mrb[4].mxu0 }
 0x3a3   :  { %v30328_v22 = vadd.f32 %v25893_v13, %v23912_v18  ;;  %v1817_v24 = vpop.f32.mrb[5].mxu0  ;;  %v31495_v13 = vand.u32 4294901760, %v31480_v0 }
 0x3a4   :  { %v30329_v27 = vadd.f32 %v23912_v18, %v1817_v24  ;;  %v2513_v18 = vsub.f32 %v31446_v57, %v31462_v6  ;;  %v2533_v24 = vsub.f32 %v31465_v7, %v31485_v8 }
 0x3a5   :  { %v1839_v30 = vsel %vm1834_vm6, %v30328_v22, 0  ;;  %34212 = vst [vmem:[#allocation15_spill] sm:$0xff] %v31495_v13 }
 0x3a6   :  { %v31403_v34 = vand.u32 4294901760, %v1839_v30  ;;  %v1836_v35 = vsel %vm1834_vm6, %v30329_v27, 0  ;;  %v31498_v22 = vand.u32 4294901760, %v2513_v18  ;;  %v31512_v27 = vand.u32 4294901760, %v2533_v24 }
 0x3a7   :  { %v31407_v38 = vand.u32 4294901760, %v1836_v35 }
 0x3a8   :  { %v1919_v42 = vsub.f32 %v1839_v30, %v31403_v34 }
 0x3a9   :  { %v1909_v41 = vsub.f32 %v1836_v35, %v31407_v38  ;;  %25905 = vmatprep.mubr.f32.mxu1 %v31407_v38 }
 0x3aa   :  { %v1920_v48 = vand.u32 4294901760, %v1919_v42  ;;  %25906 = vmatmul.mubr.f32.vlgmr.msra.gmra.mrb[2].mxu1 %v31403_v34 }
 0x3ab   :  { %25912 = vmatprep.mubr.f32.mxu1 %v1909_v41  ;;  %29013 = vmatpush3.bf16.msra.mxu1 %v31373_v55  ;;  %v1910_v49 = vand.u32 4294901760, %v1909_v41  ;;  %v2473_v55 = vsub.f32 %v31401_v31, %v31422_v45 }
 0x3ac   :  { %v1921_v52 = vsub.f32 %v1919_v42, %v1920_v48  ;;  %29015 = vmatprep.subr.bf16.mxu1 %v31371_v23 }
 0x3ad   :  { %v1911_v56 = vsub.f32 %v1909_v41, %v1910_v49  ;;  %v2474_v5 = vand.u32 4294901760, %v2473_v55 }
 0x3ae   :  { %v1922_v63 = vand.u32 4294901760, %v1921_v52  ;;  %v5507_v52 = vld [vmem:[#allocation10 + $0x128] sm:$0xff] }
 0x3af   :  { %v1912_v59 = vand.u32 4294901760, %v1911_v56  ;;  %v31576_v56 = vand.u32 4294901760, %v5507_v52 }
 0x3b1   :  { %25898 = vmatprep.mubr.f32.mxu0 %v1912_v59 }
 0x3b2   :  { %25899 = vmatmul.mubr.f32.vlgmr.msra.gmra.mrb[6].mxu0 %v1922_v63  ;;  %25913 = vmatmul.mubr.f32.vlgmr.msra.gmra.mrb[2].mxu1 %v1919_v42 }
 0x3b3   :  { %25919 = vmatprep.mubr.f32.mxu1 %v1910_v49  ;;  %29017 = vmatpush3.bf16.msra.mxu1 %v31371_v23 }
 0x3b4   :  { %29019 = vmatprep.subr.bf16.mxu1 %v31378_v32  ;;  %29053 = vmatpush3.bf16.msra.mxu0 %v31380_v60 }
 0x3b5   :  { %26036 = vmatprep.mubr.f32.mxu0 %v2474_v5  ;;  %29055 = vmatprep.subr.bf16.mxu0 %v31385_v10 }
 0x3b7   :  { %26037 = vmatmul.mubr.f32.vlgmr.msra.gmra.mrb[8].mxu0 %v31468_v9 }
 0x3b8   :  { %26039 = vmatprep.mubr.f32.mxu0 %v31472_v14  ;;  %29057 = vmatpush3.bf16.msra.mxu0 %v31385_v10  ;;  %v2543_v10 = vsub.f32 %v31480_v0, %v31495_v13 }
 0x3b9   :  { %29059 = vmatprep.subr.bf16.mxu0 %v31383_v4 }
 0x3ba   :  { %25920 = vmatmul.mubr.f32.vlgmr.msra.gmra.mrb[2].mxu1 %v1920_v48  ;;  %v31515_v29 = vand.u32 4294901760, %v2543_v10 }
 0x3bb   :  { %25926 = vmatprep.mubr.f32.mxu1 %v31407_v38  ;;  %29021 = vmatpush3.bf16.msra.mxu1 %v31378_v32 }
 0x3bc   :  { %29023 = vmatprep.subr.bf16.mxu1 %v31371_v23  ;;  %26040 = vmatmul.mubr.f32.gmra.mrb[10].mxu0 %v31490_v20 }
 0x3bd   :  { %26042 = vmatprep.mubr.f32.mxu0 %v31498_v22 }
 0x3c0   :  { %26043 = vmatmul.mubr.f32.gmra.mrb[12].mxu0 %v31507_v26 }
 0x3c1   :  { %26045 = vmatprep.mubr.f32.mxu0 %v31512_v27 }
 0x3c2   :  { %25927 = vmatmul.mubr.f32.vlgmr.msra.gmra.mrb[2].mxu1 %v31403_v34 }
 0x3c3   :  { %25933 = vmatprep.mubr.f32.mxu1 %v31407_v38  ;;  %29025 = vmatpush3.bf16.msra.mxu1 %v31371_v23 }
 0x3c4   :  { %26046 = vmatmul.mubr.f32.gmra.mrb[14].mxu0 %v31515_v29 }
 0x3c5   :  { %26052 = vmatprep.mubr.f32.mxu0 %v31391_v19 }
 0x3c8   :  { %26053 = vmatmul.mubr.f32.vlgmr.msra.gmra.mrb[8].mxu0 %v31394_v25 }
 0x3c9   :  { %26055 = vmatprep.mubr.f32.mxu0 %v31396_v28  ;;  %29061 = vmatpush3.bf16.msra.mxu0 %v31383_v4 }
 0x3ca   :  { %25934 = vmatmul.mubr.f32.vlgmr.msra.gmra.mrb[2].mxu1 %v31403_v34  ;;  %29063 = vmatprep.subr.bf16.mxu0 %v31380_v60 }
 0x3cb   :  { %25940 = vmatprep.mubr.f32.mxu1 %v2474_v5 }
 0x3cc   :  { %26056 = vmatmul.mubr.f32.gmra.mrb[10].mxu0 %v31412_v40 }
 0x3cd   :  { %26058 = vmatprep.mubr.f32.mxu0 %v31424_v46 }
 0x3d0   :  { %26059 = vmatmul.mubr.f32.gmra.mrb[12].mxu0 %v31439_v53 }
 0x3d1   :  { %26061 = vmatprep.mubr.f32.mxu0 %v31441_v54 }
 0x3d4   :  { %26062 = vmatmul.mubr.f32.gmra.mrb[14].mxu0 %v31459_v3 }
 0x3d5   :  { %26068 = vmatprep.mubr.f32.mxu0 %v31401_v31 }
 0x3d8   :  { %26069 = vmatmul.mubr.f32.vlgmr.msra.gmra.mrb[8].mxu0 %v31410_v39 }
 0x3d9   :  { %26071 = vmatprep.mubr.f32.mxu0 %v31416_v43  ;;  %29065 = vmatpush3.bf16.msra.mxu0 %v31380_v60 }
 0x3da   :  { %29067 = vmatprep.subr.bf16.mxu0 %v31387_v12 }
 0x3dc   :  { %26072 = vmatmul.mubr.f32.gmra.mrb[10].mxu0 %v31433_v51 }
 0x3dd   :  { %26074 = vmatprep.mubr.f32.mxu0 %v31446_v57 }
 0x3e0   :  { %26075 = vmatmul.mubr.f32.gmra.mrb[12].mxu0 %v31457_v2 }
 0x3e1   :  { %26077 = vmatprep.mubr.f32.mxu0 %v31465_v7 }
 0x3e4   :  { %26078 = vmatmul.mubr.f32.gmra.mrb[14].mxu0 %v31480_v0 }
 0x3e5   :  { %26084 = vmatprep.mubr.f32.mxu0 %v31422_v45 }
 0x3e8   :  { %26085 = vmatmul.mubr.f32.vlgmr.msra.gmra.mrb[8].mxu0 %v31430_v50 }
 0x3e9   :  { %26087 = vmatprep.mubr.f32.mxu0 %v31437_v11  ;;  %29069 = vmatpush3.bf16.msra.mxu0 %v31387_v12 }
 0x3ea   :  { %29071 = vmatprep.subr.bf16.mxu0 %v31380_v60 }
 0x3ec   :  { %26088 = vmatmul.mubr.f32.gmra.mrb[10].mxu0 %v31452_v62 }
 0x3ed   :  { %26090 = vmatprep.mubr.f32.mxu0 %v31462_v6 }
 0x3f0   :  { %26091 = vmatmul.mubr.f32.gmra.mrb[12].mxu0 %v31477_v16 }
 0x3f1   :  { %26093 = vmatprep.mubr.f32.mxu0 %v31485_v8 }
 0x3f4   :  { %26094 = vmatmul.mubr.f32.gmra.mrb[14].mxu0 %v31495_v13 }
 0x3f5   :  { %26100 = vmatprep.mubr.f32.mxu0 %v31391_v19 }
 0x3f8   :  { %26101 = vmatmul.mubr.f32.vlgmr.msra.gmra.mrb[8].mxu0 %v31394_v25 }
 0x3f9   :  { %26103 = vmatprep.mubr.f32.mxu0 %v31396_v28  ;;  %29073 = vmatpush3.bf16.msra.mxu0 %v31380_v60  ;;  %v23913_v60 = vld [vmem:[#allocation10 + $0xc8] ss:$0 sm:$0xff] }
 0x3fa   :  { %26308 = vmatprep.subr.mxu0 %v31576_v56 }
 0x3fc   :  { %26104 = vmatmul.mubr.f32.gmra.mrb[10].mxu0 %v31412_v40 }
 0x3fd   :  { %26106 = vmatprep.mubr.f32.mxu0 %v31424_v46 }
 0x400   :  { %26107 = vmatmul.mubr.f32.gmra.mrb[12].mxu0 %v31439_v53 }
 0x401   :  { %26109 = vmatprep.mubr.f32.mxu0 %v31441_v54 }
 0x404   :  { %26110 = vmatmul.mubr.f32.gmra.mrb[14].mxu0 %v31459_v3 }
 0x405   :  { %26116 = vmatprep.mubr.f32.mxu0 %v31391_v19 }
 0x408   :  { %26117 = vmatmul.mubr.f32.vlgmr.msra.gmra.mrb[8].mxu0 %v31394_v25 }
 0x409   :  { %26119 = vmatprep.mubr.f32.mxu0 %v31396_v28  ;;  %26309 = vmatpush3.msra.mxu0 %v31576_v56 }
 0x40c   :  { %26120 = vmatmul.mubr.f32.gmra.mrb[10].mxu0 %v31412_v40 }
 0x40d   :  { %26122 = vmatprep.mubr.f32.mxu0 %v31424_v46 }
 0x410   :  { %26123 = vmatmul.mubr.f32.gmra.mrb[12].mxu0 %v31439_v53 }
 0x411   :  { %26125 = vmatprep.mubr.f32.mxu0 %v31441_v54 }
 0x414   :  { %26126 = vmatmul.mubr.f32.gmra.mrb[14].mxu0 %v31459_v3 }
 0x485   :  { %v25900_v23 = vpop.f32.mrb[6].mxu0 }
 0x486   :  { %v1914_v32 = vpop.f32.mrb[7].mxu0  ;;  %v1925_v4 = vadd.f32 %v25900_v23, %v23913_v60 }
 0x487   :  { %v1915_v12 = vadd.f32 %v23913_v60, %v1914_v32  ;;  %v5656_v60 = vsub.f32 %v5507_v52, %v31576_v56 }
 0x49d   :  { %v25935_v30 = vpop.f32.mrb[2].mxu1 }
 0x49e   :  { %v31570_v33 = vadd.f32 %v25935_v30, %v1925_v4  ;;  %v2333_v34 = vpop.f32.mrb[3].mxu1 }
 0x49f   :  { %v31572_v35 = vadd.f32 %v2333_v34, %v1915_v12 }
 0x4a0   :  { %34213 = vst [vmem:[#allocation16_spill] sm:$0xff] %v31570_v33  ;;  %v2344_v36 = vmul.f32 0.5, %v31570_v33 }
 0x4a1   :  { %34214 = vst [vmem:[#allocation17_spill] sm:$0xff] %v31572_v35  ;;  %v2343_v37 = vmul.f32 0.5, %v31572_v35 }
 0x4a2   :  { %v2347_v38 = vmul.f32 1.442695, %v2344_v36 }
 0x4a3   :  { %v2345_v42 = vmul.f32 1.442695, %v2343_v37  ;;  %v31610_v37 = vand.u32 4294901760, %v5656_v60 }
 0x4a5   :  { %30953 = vpow2.f32 %v2345_v42 }
 0x4a6   :  { %30955 = vpow2.f32 %v2347_v38 }
 0x4af   :  { %v30954_v41 = vpop.eup %30953 }
 0x4b0   :  { %v2359_v47 = vmul.f32 %v30954_v41, %v2354_v44  ;;  %v30956_v48 = vpop.eup %30955 }
 0x4b1   :  { %v2360_v49 = vmul.f32 %v30956_v48, %v2356_v17 }
 0x4b2   :  { %2363 = vrot.lane.b32.xlu1 %v2359_v47, %s31139_s3 }
 0x4b6   :  { %2365 = vrot.lane.b32.xlu1 %v2360_v49, %s31139_s3 }
 0x4db   :  { %v26118_v55 = vpop.f32.mrb[8].mxu0 }
 0x4dc   :  { %v3933_v58 = vsel %vm3928_vm7, %v26118_v55, 0  ;;  %v3879_v59 = vpop.f32.mrb[9].mxu0 }
 0x4dd   :  { %v31581_v61 = vand.u32 4294901760, %v3933_v58  ;;  %v3930_v63 = vsel %vm3928_vm7, %v3879_v59, 0  ;;  %v5658_v59 = vsub.f32 %v5656_v60, %v31610_v37 }
 0x4de   :  { %v31584_v1 = vand.u32 4294901760, %v3930_v63 }
 0x4df   :  { %v31587_v5 = vsub.f32 %v3933_v58, %v31581_v61  ;;  %v26121_v15 = vpop.f32.mrb[10].mxu0 }
 0x4e0   :  { %v31590_v18 = vsub.f32 %v3930_v63, %v31584_v1  ;;  %v3939_v21 = vsel %vm3928_vm7, %v26121_v15, 0  ;;  %v3891_v24 = vpop.f32.mrb[11].mxu0 }
 0x4e1   :  { %v31594_v10 = vand.u32 4294901760, %v31587_v5  ;;  %v31596_v23 = vand.u32 4294901760, %v3939_v21  ;;  %v3936_v32 = vsel %vm3928_vm7, %v3891_v24, 0 }
 0x4e2   :  { %v31600_v4 = vand.u32 4294901760, %v3936_v32  ;;  %v31603_v12 = vand.u32 4294901760, %v31590_v18 }
 0x4e3   :  { %v31606_v30 = vsub.f32 %v3939_v21, %v31596_v23  ;;  %v26124_v34 = vpop.f32.mrb[12].mxu0  ;;  %v4032_v36 = vsub.f32 %v31587_v5, %v31594_v10 }
 0x4e4   :  { %v31613_v38 = vsub.f32 %v3936_v32, %v31600_v4  ;;  %v3945_v42 = vsel %vm3928_vm7, %v26124_v34, 0  ;;  %v3903_v44 = vpop.f32.mrb[13].mxu0  ;;  %v4022_v41 = vsub.f32 %v31590_v18, %v31603_v12 }
 0x4e5   :  { %v31618_v47 = vand.u32 4294901760, %v3945_v42  ;;  %v3942_v48 = vsel %vm3928_vm7, %v3903_v44, 0  ;;  %v31621_v17 = vand.u32 4294901760, %v4032_v36  ;;  %v31624_v49 = vand.u32 4294901760, %v31606_v30 }
 0x4e6   :  { %v31626_v52 = vand.u32 4294901760, %v3942_v48  ;;  %v31628_v55 = vand.u32 4294901760, %v4022_v41  ;;  %v31631_v58 = vand.u32 4294901760, %v31613_v38  ;;  %v5659_v44 = vand.u32 4294901760, %v5658_v59 }
 0x4e7   :  { %34215 = vst [vmem:[#allocation18_spill] sm:$0xff] %v31621_v17  ;;  %34216 = vst [vmem:[#allocation19_spill] sm:$0xff] %v31624_v49  ;;  %v31635_v63 = vsub.f32 %v3945_v42, %v31618_v47  ;;  %v26127_v15 = vpop.f32.mrb[14].mxu0  ;;  %v4052_v21 = vsub.f32 %v31606_v30, %v31624_v49 }
 0x4e8   :  { %34217 = vst [vmem:[#allocation20_spill] sm:$0xff] %v31628_v55  ;;  %v31640_v24 = vsub.f32 %v3942_v48, %v31626_v52  ;;  %v3951_v32 = vsel %vm3928_vm7, %v26127_v15, 0  ;;  %v3915_v34 = vpop.f32.mrb[15].mxu0  ;;  %26310 = vmatprep.mubr.f32.mxu0 %v31628_v55  ;;  %v4042_v36 = vsub.f32 %v31613_v38, %v31631_v58  ;;  %26322 = vmatprep.subr.mxu0 %v5659_v44 }
 0x4e9   :  { %v31646_v41 = vand.u32 4294901760, %v3951_v32  ;;  %v3948_v42 = vsel %vm3928_vm7, %v3915_v34, 0  ;;  %26311 = vmatmul.mubr.f32.vlgmr.msra.gmra.mrb[16].mxu0 %v31621_v17  ;;  %v31650_v13 = vand.u32 4294901760, %v4052_v21  ;;  %v31653_v48 = vand.u32 4294901760, %v31635_v63 }
 0x4ea   :  { %v31655_v8 = vand.u32 4294901760, %v3948_v42  ;;  %v31657_v15 = vand.u32 4294901760, %v4042_v36  ;;  %v31660_v55 = vand.u32 4294901760, %v31640_v24  ;;  %26323 = vmatpush3.msra.mxu0 %v5659_v44 }
 0x4eb   :  { %34218 = vst [vmem:[#allocation21_spill] sm:$0xff] %v31650_v13  ;;  %34219 = vst [vmem:[#allocation22_spill] sm:$0xff] %v31653_v48  ;;  %v31663_v59 = vsub.f32 %v3951_v32, %v31646_v41  ;;  %v4072_v34 = vsub.f32 %v31635_v63, %v31653_v48  ;;  %26336 = vmatprep.subr.mxu0 %v5656_v60 }
 0x4ec   :  { %34220 = vst [vmem:[#allocation23_spill] sm:$0xff] %v31657_v15  ;;  %34221 = vst [vmem:[#allocation24_spill] sm:$0xff] %v31660_v55  ;;  %v31668_v21 = vsub.f32 %v3948_v42, %v31655_v8  ;;  %26313 = vmatprep.mubr.f32.mxu0 %v31657_v15  ;;  %v4062_v36 = vsub.f32 %v31640_v24, %v31660_v55 }
 0x4ed   :  { %26314 = vmatmul.mubr.f32.gmra.mrb[18].mxu0 %v31650_v13  ;;  %v31674_v17 = vand.u32 4294901760, %v4072_v34  ;;  %v31677_v32 = vand.u32 4294901760, %v31663_v59 }
 0x4ee   :  { %v31679_v16 = vand.u32 4294901760, %v4062_v36  ;;  %v31682_v44 = vand.u32 4294901760, %v31668_v21 }
 0x4ef   :  { %34222 = vst [vmem:[#allocation25_spill] sm:$0xff] %v31677_v32  ;;  %v4092_v42 = vsub.f32 %v31663_v59, %v31677_v32 }
 0x4f0   :  { %34223 = vst [vmem:[#allocation26_spill] sm:$0xff] %v31682_v44  ;;  %26316 = vmatprep.mubr.f32.mxu0 %v31679_v16  ;;  %v4082_v15 = vsub.f32 %v31668_v21, %v31682_v44 }
 0x4f1   :  { %26317 = vmatmul.mubr.f32.gmra.mrb[20].mxu0 %v31674_v17  ;;  %v31690_v34 = vand.u32 4294901760, %v4092_v42 }
 0x4f2   :  { %v31692_v13 = vand.u32 4294901760, %v4082_v15 }
 0x4f4   :  { %26319 = vmatprep.mubr.f32.mxu0 %v31692_v13 }
 0x4f5   :  { %26320 = vmatmul.mubr.f32.gmra.mrb[22].mxu0 %v31690_v34 }
 0x4f6   :  { %26324 = vmatprep.mubr.f32.mxu0 %v31584_v1 }
 0x4f9   :  { %26325 = vmatmul.mubr.f32.vlgmr.msra.gmra.mrb[16].mxu0 %v31581_v61 }
 0x4fa   :  { %26327 = vmatprep.mubr.f32.mxu0 %v31600_v4  ;;  %26337 = vmatpush3.msra.mxu0 %v5656_v60 }
 0x4fb   :  { %26350 = vmatprep.subr.mxu0 %v31576_v56 }
 0x4fd   :  { %26328 = vmatmul.mubr.f32.gmra.mrb[18].mxu0 %v31596_v23 }
 0x4fe   :  { %26330 = vmatprep.mubr.f32.mxu0 %v31626_v52 }
 0x501   :  { %26331 = vmatmul.mubr.f32.gmra.mrb[20].mxu0 %v31618_v47 }
 0x502   :  { %26333 = vmatprep.mubr.f32.mxu0 %v31655_v8 }
 0x505   :  { %26334 = vmatmul.mubr.f32.gmra.mrb[22].mxu0 %v31646_v41 }
 0x506   :  { %26338 = vmatprep.mubr.f32.mxu0 %v31590_v18 }
 0x509   :  { %26339 = vmatmul.mubr.f32.vlgmr.msra.gmra.mrb[16].mxu0 %v31587_v5 }
 0x50a   :  { %26341 = vmatprep.mubr.f32.mxu0 %v31613_v38  ;;  %26351 = vmatpush3.msra.mxu0 %v31576_v56 }
 0x50b   :  { %26364 = vmatprep.subr.mxu0 %v31610_v37 }
 0x50d   :  { %26342 = vmatmul.mubr.f32.gmra.mrb[18].mxu0 %v31606_v30 }
 0x50e   :  { %26344 = vmatprep.mubr.f32.mxu0 %v31640_v24 }
 0x511   :  { %26345 = vmatmul.mubr.f32.gmra.mrb[20].mxu0 %v31635_v63 }
 0x512   :  { %26347 = vmatprep.mubr.f32.mxu0 %v31668_v21 }
 0x515   :  { %26348 = vmatmul.mubr.f32.gmra.mrb[22].mxu0 %v31663_v59 }
 0x516   :  { %26352 = vmatprep.mubr.f32.mxu0 %v31603_v12 }
 0x519   :  { %26353 = vmatmul.mubr.f32.vlgmr.msra.gmra.mrb[16].mxu0 %v31594_v10 }
 0x51a   :  { %26355 = vmatprep.mubr.f32.mxu0 %v31631_v58  ;;  %26365 = vmatpush3.msra.mxu0 %v31610_v37 }
 0x51b   :  { %26378 = vmatprep.subr.mxu0 %v31576_v56 }
 0x51d   :  { %26356 = vmatmul.mubr.f32.gmra.mrb[18].mxu0 %v31624_v49 }
 0x51e   :  { %26358 = vmatprep.mubr.f32.mxu0 %v31660_v55 }
 0x521   :  { %26359 = vmatmul.mubr.f32.gmra.mrb[20].mxu0 %v31653_v48 }
 0x522   :  { %26361 = vmatprep.mubr.f32.mxu0 %v31682_v44 }
 0x524   :  { %v2364_v60 = vpop.permute.xlu1 %2363 }
 0x525   :  { %v31725_v15 = vadd.f32 %v31572_v35, %v2364_v60  ;;  %26362 = vmatmul.mubr.f32.gmra.mrb[22].mxu0 %v31677_v32 }
 0x526   :  { %26366 = vmatprep.mubr.f32.mxu0 %v31584_v1 }
 0x527   :  { %34224 = vst [vmem:[#allocation27_spill] sm:$0xff] %v31725_v15  ;;  %v2404_v37 = vand.u32 4294901760, %v31725_v15  ;;  %23866 = vrot.lane.b32.xlu0 %v31725_v15, %s31140_s27 }
 0x528   :  { %v2366_v36 = vpop.permute.xlu1 %2365 }
 0x529   :  { %v2552_v42 = vsub.f32 %v31725_v15, %v2404_v37  ;;  %v31733_v48 = vadd.f32 %v31570_v33, %v2366_v36  ;;  %26367 = vmatmul.mubr.f32.vlgmr.msra.gmra.mrb[16].mxu0 %v31581_v61 }
 0x52a   :  { %26369 = vmatprep.mubr.f32.mxu0 %v31600_v4  ;;  %26379 = vmatpush3.msra.mxu0 %v31576_v56 }
 0x52b   :  { %34225 = vst [vmem:[#allocation28_spill] sm:$0xff] %v31733_v48  ;;  %v2407_v60 = vand.u32 4294901760, %v31733_v48  ;;  %23868 = vrot.lane.b32.xlu1 %v31733_v48, %s31140_s27  ;;  %v2553_v35 = vand.u32 4294901760, %v2552_v42 }
 0x52d   :  { %v31740_v32 = vpack.c.bf16 %v2407_v60, %v2404_v37  ;;  %v2559_v44 = vsub.f32 %v31733_v48, %v2407_v60  ;;  %26370 = vmatmul.mubr.f32.gmra.mrb[18].mxu0 %v31596_v23  ;;  %v2554_v36 = vsub.f32 %v2552_v42, %v2553_v35 }
 0x52e   :  { %26372 = vmatprep.mubr.f32.mxu0 %v31626_v52 }
 0x52f   :  { %29027 = vmatprep.subr.bf16.mxu1 %v31740_v32  ;;  %v2560_v33 = vand.u32 4294901760, %v2559_v44  ;;  %v2555_v37 = vand.u32 4294901760, %v2554_v36  ;;  %v29034_v48 = vpack.c.bf16 %v2559_v44, %v2552_v42 }
 0x530   :  { %29029 = vmatpush3.bf16.msra.mxu1 %v31740_v32 }
 0x531   :  { %v2561_v56 = vsub.f32 %v2559_v44, %v2560_v33  ;;  %26373 = vmatmul.mubr.f32.gmra.mrb[20].mxu0 %v31618_v47 }
 0x532   :  { %26375 = vmatprep.mubr.f32.mxu0 %v31655_v8 }
 0x533   :  { %25941 = vmatmul.mubr.f32.vlgmr.msra.gmra.mrb[4].mxu1 %v31468_v9  ;;  %v2562_v15 = vand.u32 4294901760, %v2561_v56  ;;  %v29042_v9 = vpack.c.bf16 %v2560_v33, %v2553_v35 }
 0x534   :  { %25943 = vmatprep.mubr.f32.mxu1 %v31472_v14 }
 0x535   :  { %v29030_v60 = vpack.c.bf16 %v2562_v15, %v2555_v37  ;;  %26376 = vmatmul.mubr.f32.gmra.mrb[22].mxu0 %v31646_v41 }
 0x536   :  { %26380 = vmatprep.mubr.f32.mxu0 %v31584_v1 }
 0x537   :  { %25944 = vmatmul.mubr.f32.gmra.mrb[6].mxu1 %v31490_v20  ;;  %29031 = vmatprep.subr.bf16.mxu1 %v29030_v60 }
 0x538   :  { %29033 = vmatpush3.bf16.msra.mxu1 %v29030_v60  ;;  %25946 = vmatprep.mubr.f32.mxu1 %v31498_v22 }
 0x539   :  { %29035 = vmatprep.subr.bf16.mxu1 %v29034_v48  ;;  %26381 = vmatmul.mubr.f32.vlgmr.msra.gmra.mrb[16].mxu0 %v31581_v61 }
 0x53a   :  { %26383 = vmatprep.mubr.f32.mxu0 %v31600_v4 }
 0x53b   :  { %25947 = vmatmul.mubr.f32.gmra.mrb[8].mxu1 %v31507_v26 }
 0x53c   :  { %25949 = vmatprep.mubr.f32.mxu1 %v31512_v27 }
 0x53d   :  { %26384 = vmatmul.mubr.f32.gmra.mrb[18].mxu0 %v31596_v23 }
 0x53e   :  { %26386 = vmatprep.mubr.f32.mxu0 %v31626_v52 }
 0x53f   :  { %25950 = vmatmul.mubr.f32.gmra.mrb[10].mxu1 %v31515_v29 }
 0x540   :  { %25956 = vmatprep.mubr.f32.mxu1 %v31391_v19 }
 0x541   :  { %26387 = vmatmul.mubr.f32.gmra.mrb[20].mxu0 %v31618_v47 }
 0x542   :  { %26389 = vmatprep.mubr.f32.mxu0 %v31655_v8 }
 0x543   :  { %25957 = vmatmul.mubr.f32.vlgmr.msra.gmra.mrb[4].mxu1 %v31394_v25 }
 0x544   :  { %29037 = vmatpush3.bf16.msra.mxu1 %v29034_v48  ;;  %25959 = vmatprep.mubr.f32.mxu1 %v31396_v28 }
 0x545   :  { %29039 = vmatprep.subr.bf16.mxu1 %v31740_v32  ;;  %26390 = vmatmul.mubr.f32.gmra.mrb[22].mxu0 %v31646_v41 }
 0x547   :  { %25960 = vmatmul.mubr.f32.gmra.mrb[6].mxu1 %v31412_v40 }
 0x548   :  { %25962 = vmatprep.mubr.f32.mxu1 %v31424_v46 }
 0x54b   :  { %25963 = vmatmul.mubr.f32.gmra.mrb[8].mxu1 %v31439_v53 }
 0x54c   :  { %25965 = vmatprep.mubr.f32.mxu1 %v31441_v54 }
 0x54f   :  { %25966 = vmatmul.mubr.f32.gmra.mrb[10].mxu1 %v31459_v3 }
 0x550   :  { %25972 = vmatprep.mubr.f32.mxu1 %v31401_v31  ;;  %v34226_v31 = vld [vmem:[#allocation13_spill] sm:$0xff] }
 0x553   :  { %25973 = vmatmul.mubr.f32.vlgmr.msra.gmra.mrb[4].mxu1 %v31410_v39  ;;  %v34227_v39 = vld [vmem:[#allocation14_spill] sm:$0xff] }
 0x554   :  { %29041 = vmatpush3.bf16.msra.mxu1 %v31740_v32  ;;  %25975 = vmatprep.mubr.f32.mxu1 %v31416_v43  ;;  %v3927_v43 = vld [vmem:[#allocation10 + $0xe0] sm:$0xff] }
 0x555   :  { %29043 = vmatprep.subr.bf16.mxu1 %v29042_v9 }
 0x557   :  { %25976 = vmatmul.mubr.f32.gmra.mrb[6].mxu1 %v31433_v51  ;;  %v34228_v51 = vld [vmem:[#allocation15_spill] sm:$0xff] }
 0x558   :  { %25978 = vmatprep.mubr.f32.mxu1 %v31446_v57 }
 0x55b   :  { %25979 = vmatmul.mubr.f32.gmra.mrb[8].mxu1 %v31457_v2  ;;  %v34229_v2 = vld [vmem:[#allocation20_spill] sm:$0xff] }
 0x55c   :  { %25981 = vmatprep.mubr.f32.mxu1 %v31465_v7 }
 0x55f   :  { %25982 = vmatmul.mubr.f32.gmra.mrb[10].mxu1 %v31480_v0  ;;  %v5506_v0 = vld [vmem:[#allocation10 + $0x120] sm:$0xff] }
 0x560   :  { %25988 = vmatprep.mubr.f32.mxu1 %v31422_v45  ;;  %v31793_v45 = vand.u32 4294901760, %v3927_v43  ;;  %v6259_v22 = vand.u32 4294901760, %v5506_v0 }
 0x562   :  { %v6411_v48 = vsub.f32 %v5506_v0, %v6259_v22 }
 0x563   :  { %25989 = vmatmul.mubr.f32.vlgmr.msra.gmra.mrb[4].mxu1 %v31430_v50  ;;  %v4101_v50 = vsub.f32 %v3927_v43, %v31793_v45 }
 0x564   :  { %29045 = vmatpush3.bf16.msra.mxu1 %v29042_v9  ;;  %25991 = vmatprep.mubr.f32.mxu1 %v31437_v11  ;;  %v6412_v42 = vand.u32 4294901760, %v6411_v48 }
 0x565   :  { %29047 = vmatprep.subr.bf16.mxu1 %v31740_v32  ;;  %v4102_v11 = vand.u32 4294901760, %v4101_v50 }
 0x566   :  { %v6413_v60 = vsub.f32 %v6411_v48, %v6412_v42 }
 0x567   :  { %25992 = vmatmul.mubr.f32.gmra.mrb[6].mxu1 %v31452_v62  ;;  %v4103_v57 = vsub.f32 %v4101_v50, %v4102_v11 }
 0x568   :  { %25994 = vmatprep.mubr.f32.mxu1 %v31462_v6  ;;  %v5505_v6 = vld [vmem:[#allocation10 + $0x118] sm:$0xff]  ;;  %v6414_v43 = vand.u32 4294901760, %v6413_v60 }
 0x569   :  { %v4104_v62 = vand.u32 4294901760, %v4103_v57  ;;  %v6256_v20 = vand.u32 4294901760, %v5505_v6 }
 0x56b   :  { %25995 = vmatmul.mubr.f32.gmra.mrb[8].mxu1 %v34226_v31  ;;  %v31861_v27 = vpack.c.bf16 %v6259_v22, %v6256_v20  ;;  %v6404_v35 = vsub.f32 %v5505_v6, %v6256_v20 }
 0x56c   :  { %25997 = vmatprep.mubr.f32.mxu1 %v34227_v39 }
 0x56d   :  { %29099 = vmatprep.subr.bf16.mxu0 %v31861_v27  ;;  %v6405_v15 = vand.u32 4294901760, %v6404_v35 }
 0x56e   :  { %29101 = vmatpush3.bf16.msra.mxu0 %v31861_v27 }
 0x56f   :  { %25998 = vmatmul.mubr.f32.gmra.mrb[10].mxu1 %v34228_v51  ;;  %v6406_v37 = vsub.f32 %v6404_v35, %v6405_v15 }
 0x570   :  { %26004 = vmatprep.mubr.f32.mxu1 %v31391_v19 }
 0x571   :  { %v6407_v39 = vand.u32 4294901760, %v6406_v37 }
 0x573   :  { %26005 = vmatmul.mubr.f32.vlgmr.msra.gmra.mrb[4].mxu1 %v31394_v25 }
 0x574   :  { %29049 = vmatpush3.bf16.msra.mxu1 %v31740_v32  ;;  %26007 = vmatprep.mubr.f32.mxu1 %v31396_v28 }
 0x575   :  { %26128 = vmatprep.subr.mxu1 %v31793_v45 }
 0x577   :  { %26008 = vmatmul.mubr.f32.gmra.mrb[6].mxu1 %v31412_v40 }
 0x578   :  { %26010 = vmatprep.mubr.f32.mxu1 %v31424_v46 }
 0x57b   :  { %26011 = vmatmul.mubr.f32.gmra.mrb[8].mxu1 %v31439_v53 }
 0x57c   :  { %26013 = vmatprep.mubr.f32.mxu1 %v31441_v54 }
 0x57f   :  { %26014 = vmatmul.mubr.f32.gmra.mrb[10].mxu1 %v31459_v3 }
 0x580   :  { %26020 = vmatprep.mubr.f32.mxu1 %v31391_v19  ;;  %v34230_v19 = vld [vmem:[#allocation18_spill] sm:$0xff] }
 0x583   :  { %26021 = vmatmul.mubr.f32.vlgmr.msra.gmra.mrb[4].mxu1 %v31394_v25  ;;  %v34231_v25 = vld [vmem:[#allocation23_spill] sm:$0xff] }
 0x584   :  { %26023 = vmatprep.mubr.f32.mxu1 %v31396_v28  ;;  %26129 = vmatpush3.msra.mxu1 %v31793_v45  ;;  %v34232_v28 = vld [vmem:[#allocation21_spill] sm:$0xff] }
 0x585   :  { %26142 = vmatprep.subr.mxu1 %v4104_v62 }
 0x587   :  { %26024 = vmatmul.mubr.f32.gmra.mrb[6].mxu1 %v31412_v40  ;;  %v34233_v40 = vld [vmem:[#allocation22_spill] sm:$0xff] }
 0x588   :  { %26026 = vmatprep.mubr.f32.mxu1 %v31424_v46  ;;  %v34234_v46 = vld [vmem:[#allocation26_spill] sm:$0xff] }
 0x58b   :  { %26027 = vmatmul.mubr.f32.gmra.mrb[8].mxu1 %v31439_v53  ;;  %v34235_v53 = vld [vmem:[#allocation25_spill] sm:$0xff] }
 0x58c   :  { %26029 = vmatprep.mubr.f32.mxu1 %v31441_v54  ;;  %v3925_v54 = vld [vmem:[#allocation10 + $0xd0] sm:$0xff] }
 0x58d   :  { %v4725_v7 = vand.u32 4294901760, %v3925_v54 }
 0x58f   :  { %26030 = vmatmul.mubr.f32.gmra.mrb[10].mxu1 %v31459_v3  ;;  %v3926_v3 = vld [vmem:[#allocation10 + $0xd8] sm:$0xff]  ;;  %v4873_v29 = vsub.f32 %v3925_v54, %v4725_v7 }
 0x590   :  { %26130 = vmatprep.mubr.f32.mxu1 %v34229_v2  ;;  %v4728_v14 = vand.u32 4294901760, %v3926_v3 }
 0x591   :  { %v4874_v32 = vand.u32 4294901760, %v4873_v29 }
 0x592   :  { %v31858_v26 = vpack.c.bf16 %v4728_v14, %v4725_v7  ;;  %v4880_v33 = vsub.f32 %v3926_v3, %v4728_v14 }
 0x593   :  { %26131 = vmatmul.mubr.f32.vlgmr.msra.gmra.mrb[12].mxu1 %v34230_v19  ;;  %v4875_v36 = vsub.f32 %v4873_v29, %v4874_v32 }
 0x594   :  { %26133 = vmatprep.mubr.f32.mxu1 %v34231_v25  ;;  %26143 = vmatpush3.msra.mxu1 %v4104_v62  ;;  %v4881_v44 = vand.u32 4294901760, %v4880_v33  ;;  %v31880_v62 = vpack.c.bf16 %v6412_v42, %v6405_v15 }
 0x595   :  { %26156 = vmatprep.subr.mxu1 %v4101_v50  ;;  %v4876_v9 = vand.u32 4294901760, %v4875_v36 }
 0x596   :  { %v4882_v56 = vsub.f32 %v4880_v33, %v4881_v44  ;;  %v31878_v57 = vpack.c.bf16 %v4881_v44, %v4874_v32 }
 0x597   :  { %26134 = vmatmul.mubr.f32.gmra.mrb[14].mxu1 %v34232_v28 }
 0x598   :  { %26136 = vmatprep.mubr.f32.mxu1 %v31679_v16  ;;  %v4883_v31 = vand.u32 4294901760, %v4882_v56 }
 0x59a   :  { %v29078_v51 = vpack.c.bf16 %v4883_v31, %v4876_v9 }
 0x59b   :  { %26137 = vmatmul.mubr.f32.gmra.mrb[16].mxu1 %v31674_v17 }
 0x59c   :  { %26139 = vmatprep.mubr.f32.mxu1 %v31692_v13 }
 0x59f   :  { %26140 = vmatmul.mubr.f32.gmra.mrb[18].mxu1 %v31690_v34 }
 0x5a0   :  { %26144 = vmatprep.mubr.f32.mxu1 %v31584_v1 }
 0x5a3   :  { %26145 = vmatmul.mubr.f32.vlgmr.msra.gmra.mrb[12].mxu1 %v31581_v61 }
 0x5a4   :  { %26147 = vmatprep.mubr.f32.mxu1 %v31600_v4  ;;  %26157 = vmatpush3.msra.mxu1 %v4101_v50  ;;  %v31874_v50 = vpack.c.bf16 %v4880_v33, %v4873_v29 }
 0x5a5   :  { %26170 = vmatprep.subr.mxu1 %v31793_v45 }
 0x5a7   :  { %26148 = vmatmul.mubr.f32.gmra.mrb[14].mxu1 %v31596_v23 }
 0x5a8   :  { %26150 = vmatprep.mubr.f32.mxu1 %v31626_v52 }
 0x5ab   :  { %26151 = vmatmul.mubr.f32.gmra.mrb[16].mxu1 %v31618_v47 }
 0x5ac   :  { %26153 = vmatprep.mubr.f32.mxu1 %v31655_v8 }
 0x5af   :  { %26154 = vmatmul.mubr.f32.gmra.mrb[18].mxu1 %v31646_v41 }
 0x5b0   :  { %26158 = vmatprep.mubr.f32.mxu1 %v31590_v18 }
 0x5b3   :  { %26159 = vmatmul.mubr.f32.vlgmr.msra.gmra.mrb[12].mxu1 %v31587_v5 }
 0x5b4   :  { %26161 = vmatprep.mubr.f32.mxu1 %v31613_v38  ;;  %26171 = vmatpush3.msra.mxu1 %v31793_v45 }
 0x5b5   :  { %26184 = vmatprep.subr.mxu1 %v4102_v11 }
 0x5b7   :  { %26162 = vmatmul.mubr.f32.gmra.mrb[14].mxu1 %v31606_v30 }
 0x5b8   :  { %26164 = vmatprep.mubr.f32.mxu1 %v31640_v24 }
 0x5bb   :  { %26165 = vmatmul.mubr.f32.gmra.mrb[16].mxu1 %v31635_v63 }
 0x5bc   :  { %26167 = vmatprep.mubr.f32.mxu1 %v31668_v21 }
 0x5bf   :  { %26168 = vmatmul.mubr.f32.gmra.mrb[18].mxu1 %v31663_v59 }
 0x5c0   :  { %26172 = vmatprep.mubr.f32.mxu1 %v31603_v12 }
 0x5c3   :  { %26173 = vmatmul.mubr.f32.vlgmr.msra.gmra.mrb[12].mxu1 %v31594_v10 }
 0x5c4   :  { %26175 = vmatprep.mubr.f32.mxu1 %v31631_v58  ;;  %26185 = vmatpush3.msra.mxu1 %v4102_v11  ;;  %v31876_v11 = vpack.c.bf16 %v6411_v48, %v6404_v35 }
 0x5c5   :  { %26198 = vmatprep.subr.mxu1 %v31793_v45 }
 0x5c7   :  { %26176 = vmatmul.mubr.f32.gmra.mrb[14].mxu1 %v31624_v49 }
 0x5c8   :  { %26178 = vmatprep.mubr.f32.mxu1 %v31660_v55 }
 0x5cb   :  { %26179 = vmatmul.mubr.f32.gmra.mrb[16].mxu1 %v34233_v40 }
 0x5cc   :  { %26181 = vmatprep.mubr.f32.mxu1 %v34234_v46 }
 0x5cf   :  { %26182 = vmatmul.mubr.f32.gmra.mrb[18].mxu1 %v34235_v53 }
 0x5d0   :  { %26186 = vmatprep.mubr.f32.mxu1 %v31584_v1 }
 0x5d3   :  { %26187 = vmatmul.mubr.f32.vlgmr.msra.gmra.mrb[12].mxu1 %v31581_v61 }
 0x5d4   :  { %26189 = vmatprep.mubr.f32.mxu1 %v31600_v4  ;;  %26199 = vmatpush3.msra.mxu1 %v31793_v45  ;;  %v29102_v45 = vpack.c.bf16 %v6414_v43, %v6407_v39 }
 0x5d5   :  { %29075 = vmatprep.subr.bf16.mxu1 %v31858_v26 }
 0x5d6   :  { %29103 = vmatprep.subr.bf16.mxu0 %v29102_v45 }
 0x5d7   :  { %26190 = vmatmul.mubr.f32.gmra.mrb[14].mxu1 %v31596_v23 }
 0x5d8   :  { %26192 = vmatprep.mubr.f32.mxu1 %v31626_v52 }
 0x5db   :  { %26193 = vmatmul.mubr.f32.gmra.mrb[16].mxu1 %v31618_v47 }
 0x5dc   :  { %26195 = vmatprep.mubr.f32.mxu1 %v31655_v8 }
 0x5df   :  { %26196 = vmatmul.mubr.f32.gmra.mrb[18].mxu1 %v31646_v41 }
 0x5e0   :  { %26200 = vmatprep.mubr.f32.mxu1 %v31584_v1 }
 0x5e3   :  { %26201 = vmatmul.mubr.f32.vlgmr.msra.gmra.mrb[12].mxu1 %v31581_v61 }
 0x5e4   :  { %26203 = vmatprep.mubr.f32.mxu1 %v31600_v4  ;;  %29077 = vmatpush3.bf16.msra.mxu1 %v31858_v26 }
 0x5e5   :  { %29079 = vmatprep.subr.bf16.mxu1 %v29078_v51 }
 0x5e7   :  { %26204 = vmatmul.mubr.f32.gmra.mrb[14].mxu1 %v31596_v23 }
 0x5e8   :  { %26206 = vmatprep.mubr.f32.mxu1 %v31626_v52 }
 0x5eb   :  { %26207 = vmatmul.mubr.f32.gmra.mrb[16].mxu1 %v31618_v47 }
 0x5ec   :  { %26209 = vmatprep.mubr.f32.mxu1 %v31655_v8 }
 0x5ef   :  { %26210 = vmatmul.mubr.f32.gmra.mrb[18].mxu1 %v31646_v41 }
 0x656   :  { %v26022_v54 = vpop.f32.mrb[4].mxu1 }
 0x657   :  { %v4704_v3 = vsel %vm1834_vm6, %v26022_v54, 0  ;;  %v3117_v6 = vpop.f32.mrb[5].mxu1 }
 0x658   :  { %v31883_v7 = vand.u32 4294901760, %v4704_v3  ;;  %v4701_v14 = vsel %vm1834_vm6, %v3117_v6, 0 }
 0x659   :  { %v31886_v0 = vand.u32 4294901760, %v4701_v14 }
 0x65a   :  { %v31889_v20 = vsub.f32 %v4704_v3, %v31883_v7  ;;  %v26025_v22 = vpop.f32.mrb[6].mxu1 }
 0x65b   :  { %v31892_v29 = vsub.f32 %v4701_v14, %v31886_v0  ;;  %v4710_v33 = vsel %vm1834_vm6, %v26025_v22, 0  ;;  %v3129_v35 = vpop.f32.mrb[7].mxu1 }
 0x65c   :  { %v31896_v48 = vand.u32 4294901760, %v31889_v20  ;;  %v31898_v32 = vand.u32 4294901760, %v4710_v33  ;;  %v4707_v44 = vsel %vm1834_vm6, %v3129_v35, 0 }
 0x65d   :  { %v31901_v15 = vand.u32 4294901760, %v4707_v44  ;;  %v31904_v42 = vand.u32 4294901760, %v31892_v29 }
 0x65e   :  { %34236 = vst [vmem:[#allocation13_spill] sm:$0xff] %v31896_v48  ;;  %v31907_v36 = vsub.f32 %v4710_v33, %v31898_v32  ;;  %v26028_v56 = vpop.f32.mrb[8].mxu1  ;;  %v4804_v37 = vsub.f32 %v31889_v20, %v31896_v48 }
 0x65f   :  { %34237 = vst [vmem:[#allocation14_spill] sm:$0xff] %v31904_v42  ;;  %v31912_v60 = vsub.f32 %v4707_v44, %v31901_v15  ;;  %v4716_v9 = vsel %vm1834_vm6, %v26028_v56, 0  ;;  %v3141_v31 = vpop.f32.mrb[9].mxu1  ;;  %v4794_v39 = vsub.f32 %v31892_v29, %v31904_v42 }
 0x660   :  { %v31917_v43 = vand.u32 4294901760, %v4716_v9  ;;  %v4713_v54 = vsel %vm1834_vm6, %v3141_v31, 0  ;;  %v31921_v3 = vand.u32 4294901760, %v31907_v36  ;;  %v31933_v44 = vand.u32 4294901760, %v4804_v37 }
 0x661   :  { %v31923_v6 = vand.u32 4294901760, %v4713_v54  ;;  %v31925_v14 = vand.u32 4294901760, %v4794_v39  ;;  %v31928_v22 = vand.u32 4294901760, %v31912_v60 }
 0x662   :  { %34238 = vst [vmem:[#allocation15_spill] sm:$0xff] %v31921_v3  ;;  %v31931_v33 = vsub.f32 %v4716_v9, %v31917_v43  ;;  %v26031_v35 = vpop.f32.mrb[10].mxu1  ;;  %34242 = vst [vmem:[#allocation21_spill] sm:$0xff] %v31933_v44  ;;  %v4824_v56 = vsub.f32 %v31907_v36, %v31921_v3 }
 0x663   :  { %34239 = vst [vmem:[#allocation20_spill] sm:$0xff] %v31925_v14  ;;  %34240 = vst [vmem:[#allocation18_spill] sm:$0xff] %v31928_v22  ;;  %v31938_v31 = vsub.f32 %v4713_v54, %v31923_v6  ;;  %v4722_v53 = vsel %vm1834_vm6, %v26031_v35, 0  ;;  %v3153_v46 = vpop.f32.mrb[11].mxu1  ;;  %26216 = vmatprep.mubr.f32.mxu1 %v31925_v14  ;;  %26396 = vmatprep.mubr.f32.mxu0 %v31925_v14  ;;  %v4814_v9 = vsub.f32 %v31912_v60, %v31928_v22 }
 0x664   :  { %34241 = vst [vmem:[#allocation23_spill] sm:$0xff] %v31931_v33  ;;  %v31945_v39 = vand.u32 4294901760, %v4722_v53  ;;  %v4719_v37 = vsel %vm1834_vm6, %v3153_v46, 0  ;;  %26217 = vmatmul.mubr.f32.vlgmr.msra.gmra.mrb[12].mxu1 %v31933_v44  ;;  %26397 = vmatmul.mubr.f32.vlgmr.msra.gmra.mrb[16].mxu0 %v31933_v44  ;;  %v31951_v54 = vand.u32 4294901760, %v31931_v33  ;;  %v31963_v46 = vand.u32 4294901760, %v4824_v56 }
 0x665   :  { %34243 = vst [vmem:[#allocation29_spill] sm:$0xff] %v31938_v31  ;;  %v31953_v35 = vand.u32 4294901760, %v4719_v37  ;;  %v31955_v40 = vand.u32 4294901760, %v4814_v9  ;;  %29081 = vmatpush3.bf16.msra.mxu1 %v29078_v51  ;;  %v31958_v14 = vand.u32 4294901760, %v31938_v31  ;;  %29105 = vmatpush3.bf16.msra.mxu0 %v29102_v45 }
 0x666   :  { %34244 = vst [vmem:[#allocation30_spill] sm:$0xff] %v31951_v54  ;;  %v31961_v55 = vsub.f32 %v4722_v53, %v31945_v39  ;;  %34248 = vst [vmem:[#allocation34_spill] sm:$0xff] %v31963_v46  ;;  %v4844_v44 = vsub.f32 %v31931_v33, %v31951_v54  ;;  %29083 = vmatprep.subr.bf16.mxu1 %v31874_v50  ;;  %29107 = vmatprep.subr.bf16.mxu0 %v31876_v11 }
 0x667   :  { %34245 = vst [vmem:[#allocation31_spill] sm:$0xff] %v31955_v40  ;;  %34246 = vst [vmem:[#allocation32_spill] sm:$0xff] %v31958_v14  ;;  %v31970_v9 = vsub.f32 %v4719_v37, %v31953_v35  ;;  %26219 = vmatprep.mubr.f32.mxu1 %v31955_v40  ;;  %26399 = vmatprep.mubr.f32.mxu0 %v31955_v40  ;;  %v4834_v53 = vsub.f32 %v31938_v31, %v31958_v14 }
 0x668   :  { %34247 = vst [vmem:[#allocation33_spill] sm:$0xff] %v31961_v55  ;;  %26220 = vmatmul.mubr.f32.gmra.mrb[14].mxu1 %v31963_v46  ;;  %26400 = vmatmul.mubr.f32.gmra.mrb[18].mxu0 %v31963_v46  ;;  %v31979_v51 = vand.u32 4294901760, %v31961_v55  ;;  %v31986_v37 = vand.u32 4294901760, %v4844_v44 }
 0x669   :  { %34249 = vst [vmem:[#allocation35_spill] sm:$0xff] %v31970_v9  ;;  %v31981_v45 = vand.u32 4294901760, %v4834_v53  ;;  %v31984_v56 = vand.u32 4294901760, %v31970_v9 }
 0x66a   :  { %34250 = vst [vmem:[#allocation36_spill] sm:$0xff] %v31979_v51  ;;  %v4864_v40 = vsub.f32 %v31961_v55, %v31979_v51 }
 0x66b   :  { %34251 = vst [vmem:[#allocation37_spill] sm:$0xff] %v31984_v56  ;;  %26222 = vmatprep.mubr.f32.mxu1 %v31981_v45  ;;  %26402 = vmatprep.mubr.f32.mxu0 %v31981_v45  ;;  %v4854_v46 = vsub.f32 %v31970_v9, %v31984_v56 }
 0x66c   :  { %26223 = vmatmul.mubr.f32.gmra.mrb[16].mxu1 %v31986_v37  ;;  %26403 = vmatmul.mubr.f32.gmra.mrb[20].mxu0 %v31986_v37  ;;  %v31998_v49 = vand.u32 4294901760, %v4864_v40  ;;  %v7038_v40 = vld [vmem:[#allocation10 + $0x170] sm:$0xff] }
 0x66d   :  { %v31996_v53 = vand.u32 4294901760, %v4854_v46 }
 0x66f   :  { %26225 = vmatprep.mubr.f32.mxu1 %v31996_v53  ;;  %26405 = vmatprep.mubr.f32.mxu0 %v31996_v53 }
 0x670   :  { %26226 = vmatmul.mubr.f32.gmra.mrb[18].mxu1 %v31998_v49  ;;  %26406 = vmatmul.mubr.f32.gmra.mrb[22].mxu0 %v31998_v49 }
 0x671   :  { %26232 = vmatprep.mubr.f32.mxu1 %v31886_v0  ;;  %26412 = vmatprep.mubr.f32.mxu0 %v31886_v0 }
 0x674   :  { %26233 = vmatmul.mubr.f32.vlgmr.msra.gmra.mrb[12].mxu1 %v31883_v7  ;;  %26413 = vmatmul.mubr.f32.vlgmr.msra.gmra.mrb[16].mxu0 %v31883_v7 }
 0x675   :  { %26235 = vmatprep.mubr.f32.mxu1 %v31901_v15  ;;  %26415 = vmatprep.mubr.f32.mxu0 %v31901_v15 }
 0x676   :  { %29085 = vmatpush3.bf16.msra.mxu1 %v31874_v50  ;;  %29109 = vmatpush3.bf16.msra.mxu0 %v31876_v11  ;;  %v32066_v50 = vand.u32 4294901760, %v7038_v40  ;;  %v34193_v11 = vmov 0.0|0.0  }
 0x677   :  { %29087 = vmatprep.subr.bf16.mxu1 %v31858_v26  ;;  %29111 = vmatprep.subr.bf16.mxu0 %v31861_v27 }
 0x678   :  { %26236 = vmatmul.mubr.f32.gmra.mrb[14].mxu1 %v31898_v32  ;;  %26416 = vmatmul.mubr.f32.gmra.mrb[18].mxu0 %v31898_v32 }
 0x679   :  { %26238 = vmatprep.mubr.f32.mxu1 %v31923_v6  ;;  %26418 = vmatprep.mubr.f32.mxu0 %v31923_v6 }
 0x67c   :  { %26239 = vmatmul.mubr.f32.gmra.mrb[16].mxu1 %v31917_v43  ;;  %26419 = vmatmul.mubr.f32.gmra.mrb[20].mxu0 %v31917_v43 }
 0x67d   :  { %26241 = vmatprep.mubr.f32.mxu1 %v31953_v35  ;;  %26421 = vmatprep.mubr.f32.mxu0 %v31953_v35 }
 0x680   :  { %26242 = vmatmul.mubr.f32.gmra.mrb[18].mxu1 %v31945_v39  ;;  %26422 = vmatmul.mubr.f32.gmra.mrb[22].mxu0 %v31945_v39 }
 0x681   :  { %26248 = vmatprep.mubr.f32.mxu1 %v31892_v29  ;;  %26428 = vmatprep.mubr.f32.mxu0 %v31892_v29 }
 0x684   :  { %26249 = vmatmul.mubr.f32.vlgmr.msra.gmra.mrb[12].mxu1 %v31889_v20  ;;  %26429 = vmatmul.mubr.f32.vlgmr.msra.gmra.mrb[16].mxu0 %v31889_v20 }
 0x685   :  { %26251 = vmatprep.mubr.f32.mxu1 %v31912_v60  ;;  %26431 = vmatprep.mubr.f32.mxu0 %v31912_v60 }
 0x686   :  { %29089 = vmatpush3.bf16.msra.mxu1 %v31858_v26  ;;  %29113 = vmatpush3.bf16.msra.mxu0 %v31861_v27 }
 0x687   :  { %29091 = vmatprep.subr.bf16.mxu1 %v31878_v57  ;;  %29115 = vmatprep.subr.bf16.mxu0 %v31880_v62 }
 0x688   :  { %26252 = vmatmul.mubr.f32.gmra.mrb[14].mxu1 %v31907_v36  ;;  %26432 = vmatmul.mubr.f32.gmra.mrb[18].mxu0 %v31907_v36 }
 0x689   :  { %26254 = vmatprep.mubr.f32.mxu1 %v31938_v31  ;;  %26434 = vmatprep.mubr.f32.mxu0 %v31938_v31 }
 0x68c   :  { %26255 = vmatmul.mubr.f32.gmra.mrb[16].mxu1 %v31931_v33  ;;  %26435 = vmatmul.mubr.f32.gmra.mrb[20].mxu0 %v31931_v33  ;;  %v31143_v33 = vmov 0.0  }
 0x68d   :  { %26257 = vmatprep.mubr.f32.mxu1 %v31970_v9  ;;  %26437 = vmatprep.mubr.f32.mxu0 %v31970_v9 }
 0x690   :  { %26258 = vmatmul.mubr.f32.gmra.mrb[18].mxu1 %v31961_v55  ;;  %26438 = vmatmul.mubr.f32.gmra.mrb[22].mxu0 %v31961_v55 }
 0x691   :  { %26264 = vmatprep.mubr.f32.mxu1 %v31904_v42  ;;  %26444 = vmatprep.mubr.f32.mxu0 %v31904_v42 }
 0x694   :  { %26265 = vmatmul.mubr.f32.vlgmr.msra.gmra.mrb[12].mxu1 %v31896_v48  ;;  %26445 = vmatmul.mubr.f32.vlgmr.msra.gmra.mrb[16].mxu0 %v31896_v48 }
 0x695   :  { %26267 = vmatprep.mubr.f32.mxu1 %v31928_v22  ;;  %26447 = vmatprep.mubr.f32.mxu0 %v31928_v22 }
 0x696   :  { %29093 = vmatpush3.bf16.msra.mxu1 %v31878_v57  ;;  %29117 = vmatpush3.bf16.msra.mxu0 %v31880_v62  ;;  %v32077_v57 = vsub.f32 %v7038_v40, %v32066_v50  ;;  %v8567_v62 = vld [vmem:[#allocation10 + $0xf0] sm:$0xff]  ;;  %v8569_v40 = vld [vmem:[#allocation10 + $0x100] sm:$0xff] }
 0x697   :  { %29095 = vmatprep.subr.bf16.mxu1 %v31858_v26  ;;  %29119 = vmatprep.subr.bf16.mxu0 %v31861_v27  ;;  %v8598_v44 = vand.u32 4294901760, %v8567_v62 }
 0x698   :  { %26268 = vmatmul.mubr.f32.gmra.mrb[14].mxu1 %v31921_v3  ;;  %26448 = vmatmul.mubr.f32.gmra.mrb[18].mxu0 %v31921_v3 }
 0x699   :  { %26270 = vmatprep.mubr.f32.mxu1 %v31958_v14  ;;  %26450 = vmatprep.mubr.f32.mxu0 %v31958_v14  ;;  %v32096_v14 = vsub.f32 %v8567_v62, %v8598_v44 }
 0x69b   :  { %v34206_v42 = vand.u32 4294901760, %v32096_v14 }
 0x69c   :  { %26271 = vmatmul.mubr.f32.gmra.mrb[16].mxu1 %v31951_v54  ;;  %26451 = vmatmul.mubr.f32.gmra.mrb[20].mxu0 %v31951_v54 }
 0x69d   :  { %26273 = vmatprep.mubr.f32.mxu1 %v31984_v56  ;;  %26453 = vmatprep.mubr.f32.mxu0 %v31984_v56  ;;  %v8604_v56 = vand.u32 4294901760, %v8569_v40 }
 0x69f   :  { %v32108_v9 = vsub.f32 %v8569_v40, %v8604_v56 }
 0x6a0   :  { %26274 = vmatmul.mubr.f32.gmra.mrb[18].mxu1 %v31979_v51  ;;  %26454 = vmatmul.mubr.f32.gmra.mrb[22].mxu0 %v31979_v51 }
 0x6a1   :  { %26280 = vmatprep.mubr.f32.mxu1 %v31886_v0  ;;  %26460 = vmatprep.mubr.f32.mxu0 %v31886_v0 }
 0x6a4   :  { %26281 = vmatmul.mubr.f32.vlgmr.msra.gmra.mrb[12].mxu1 %v31883_v7  ;;  %26461 = vmatmul.mubr.f32.vlgmr.msra.gmra.mrb[16].mxu0 %v31883_v7 }
 0x6a5   :  { %26283 = vmatprep.mubr.f32.mxu1 %v31901_v15  ;;  %26463 = vmatprep.mubr.f32.mxu0 %v31901_v15 }
 0x6a6   :  { %29097 = vmatpush3.bf16.msra.mxu1 %v31858_v26  ;;  %29121 = vmatpush3.bf16.msra.mxu0 %v31861_v27  ;;  %v8568_v26 = vld [vmem:[#allocation10 + $0xf8] sm:$0xff]  ;;  %v32084_v27 = vand.u32 4294901760, %v32077_v57 }
 0x6a7   :  { %26488 = vmatprep.subr.mxu1 %v32066_v50  ;;  %29146 = vmatprep.subr.bf16.mxu0 %v34193_v11  ;;  %v8601_v46 = vand.u32 4294901760, %v8568_v26  ;;  %v8570_v11 = vld [vmem:[#allocation10 + $0x108] sm:$0xff] }
 0x6a8   :  { %26284 = vmatmul.mubr.f32.gmra.mrb[14].mxu1 %v31898_v32  ;;  %26464 = vmatmul.mubr.f32.gmra.mrb[18].mxu0 %v31898_v32  ;;  %v7189_v51 = vsub.f32 %v32077_v57, %v32084_v27  ;;  %v8607_v54 = vand.u32 4294901760, %v8570_v11 }
 0x6a9   :  { %26286 = vmatprep.mubr.f32.mxu1 %v31923_v6  ;;  %26466 = vmatprep.mubr.f32.mxu0 %v31923_v6  ;;  %v32098_v3 = vsub.f32 %v8568_v26, %v8601_v46  ;;  %v32100_v22 = vpack.c.bf16 %v8601_v46, %v8598_v44  ;;  %v34252_v26 = vmov 0.0|0.0  }
 0x6aa   :  { %v7190_v48 = vand.u32 4294901760, %v7189_v51  ;;  %v32110_v62 = vsub.f32 %v8570_v11, %v8607_v54  ;;  %v32114_v51 = vpack.c.bf16 %v8607_v54, %v8604_v56  ;;  %v8680_v11 = vsub.f32 %v32096_v14, %v34206_v42 }
 0x6ab   :  { %v34205_v55 = vand.u32 4294901760, %v32098_v3  ;;  %v8693_v56 = vand.u32 4294901760, %v32108_v9 }
 0x6ac   :  { %26287 = vmatmul.mubr.f32.gmra.mrb[16].mxu1 %v31917_v43  ;;  %26467 = vmatmul.mubr.f32.gmra.mrb[20].mxu0 %v31917_v43  ;;  %v34209_v44 = vand.u32 4294901760, %v32110_v62  ;;  %v8681_v46 = vand.u32 4294901760, %v8680_v11 }
 0x6ad   :  { %26289 = vmatprep.mubr.f32.mxu1 %v31953_v35  ;;  %26469 = vmatprep.mubr.f32.mxu0 %v31953_v35  ;;  %v8687_v54 = vsub.f32 %v32098_v3, %v34205_v55  ;;  %v8694_v55 = vsub.f32 %v32108_v9, %v8693_v56 }
 0x6ae   :  { %v8701_v42 = vsub.f32 %v32110_v62, %v34209_v44 }
 0x6af   :  { %v8688_v40 = vand.u32 4294901760, %v8687_v54  ;;  %v8695_v54 = vand.u32 4294901760, %v8694_v55  ;;  %v32163_v55 = vpack.c.bf16 %v32098_v3, %v32096_v14 }
 0x6b0   :  { %26290 = vmatmul.mubr.f32.gmra.mrb[18].mxu1 %v31945_v39  ;;  %26470 = vmatmul.mubr.f32.gmra.mrb[22].mxu0 %v31945_v39  ;;  %v8702_v31 = vand.u32 4294901760, %v8701_v42 }
 0x6b1   :  { %26296 = vmatprep.mubr.f32.mxu1 %v31886_v0  ;;  %26476 = vmatprep.mubr.f32.mxu0 %v31886_v0  ;;  %v32146_v11 = vpack.c.bf16 %v8688_v40, %v8681_v46 }
 0x6b2   :  { %v32152_v44 = vpack.c.bf16 %v8702_v31, %v8695_v54 }
 0x6b4   :  { %26297 = vmatmul.mubr.f32.vlgmr.msra.gmra.mrb[12].mxu1 %v31883_v7  ;;  %26477 = vmatmul.mubr.f32.vlgmr.msra.gmra.mrb[16].mxu0 %v31883_v7 }
 0x6b5   :  { %26299 = vmatprep.mubr.f32.mxu1 %v31901_v15  ;;  %26479 = vmatprep.mubr.f32.mxu0 %v31901_v15 }
 0x6b6   :  { %26489 = vmatpush3.msra.mxu1 %v32066_v50  ;;  %29148 = vmatpush3.bf16.msra.mxu0 %v32100_v22 }
 0x6b7   :  { %29149 = vmatprep.subr.bf16.mxu0 %v34252_v26  ;;  %26502 = vmatprep.subr.mxu1 %v7190_v48 }
 0x6b8   :  { %26300 = vmatmul.mubr.f32.gmra.mrb[14].mxu1 %v31898_v32  ;;  %26480 = vmatmul.mubr.f32.gmra.mrb[18].mxu0 %v31898_v32 }
 0x6b9   :  { %26302 = vmatprep.mubr.f32.mxu1 %v31923_v6  ;;  %26482 = vmatprep.mubr.f32.mxu0 %v31923_v6 }
 0x6ba   :  { %29151 = vmatpush3.bf16.msra.mxu0 %v32114_v51 }
 0x6bb   :  { %29152 = vmatprep.subr.bf16.mxu0 %v34252_v26 }
 0x6bc   :  { %26303 = vmatmul.mubr.f32.gmra.mrb[16].mxu1 %v31917_v43  ;;  %26483 = vmatmul.mubr.f32.gmra.mrb[20].mxu0 %v31917_v43 }
 0x6bd   :  { %26305 = vmatprep.mubr.f32.mxu1 %v31953_v35  ;;  %26485 = vmatprep.mubr.f32.mxu0 %v31953_v35 }
 0x6c0   :  { %26306 = vmatmul.mubr.f32.gmra.mrb[18].mxu1 %v31945_v39  ;;  %26486 = vmatmul.mubr.f32.gmra.mrb[22].mxu0 %v31945_v39 }
 0x6c1   :  { %26490 = vmatprep.mubr.f32.mxu1 %v34229_v2  ;;  %26676 = vmatprep.mubr.msk.f32.mxu0 %vm31142_vm8, %v31143_v33  ;;  %v32172_v2 = vpack.c.bf16 %v32110_v62, %v32108_v9 }
 0x6c4   :  { %26491 = vmatmul.mubr.f32.vlgmr.msra.gmra.mrb[20].mxu1 %v34230_v19  ;;  %26677 = vmatmul.mubr.f32.vlgmr.msra.gmra.mrb[24].mxu0 %v31143_v33  ;;  %v8572_v19 = vld [vmem:[#allocation10 + $0x140] sm:$0xff] }
 0x6c5   :  { %29154 = vmatpush3.bf16.msra.mxu0 %v32146_v11  ;;  %26493 = vmatprep.mubr.f32.mxu1 %v34231_v25  ;;  %v34255_v25 = vand.u32 4294901760, %v32110_v62  ;;  %v9086_v42 = vand.u32 4294901760, %v8572_v19 }
 0x6c6   :  { %29155 = vmatprep.subr.bf16.mxu0 %v34252_v26  ;;  %26503 = vmatpush3.msra.mxu1 %v7190_v48 }
 0x6c7   :  { %26687 = vmatprep.mubr.msk.f32.mxu0 %vm31142_vm8, %v31143_v33  ;;  %26516 = vmatprep.subr.mxu1 %v32077_v57  ;;  %v32218_v62 = vsub.f32 %v8572_v19, %v9086_v42 }
 0x6c8   :  { %26494 = vmatmul.mubr.f32.gmra.mrb[22].mxu1 %v34232_v28  ;;  %v32208_v28 = vpack.c.bf16 %v34255_v25, %v8693_v56 }
 0x6c9   :  { %29157 = vmatpush3.bf16.msra.mxu0 %v32152_v44  ;;  %26496 = vmatprep.mubr.f32.mxu1 %v31679_v16  ;;  %v34253_v16 = vand.u32 4294901760, %v32096_v14  ;;  %v8574_v14 = vld [vmem:[#allocation10 + $0x150] sm:$0xff] }
 0x6ca   :  { %29158 = vmatprep.subr.bf16.mxu0 %v34252_v26  ;;  %v9092_v9 = vand.u32 4294901760, %v8574_v14 }
 0x6cc   :  { %26497 = vmatmul.mubr.f32.gmra.mrb[24].mxu1 %v31674_v17  ;;  %26688 = vmatmul.mubr.f32.vlgmr.msra.gmra.mrb[26].mxu0 %v31143_v33  ;;  %v32229_v40 = vsub.f32 %v8574_v14, %v9092_v9  ;;  %v34259_v14 = vld [vmem:[#allocation26_spill] sm:$0xff] }
 0x6cd   :  { %29160 = vmatpush3.bf16.msra.mxu0 %v32163_v55  ;;  %26499 = vmatprep.mubr.f32.mxu1 %v31692_v13  ;;  %v34254_v13 = vand.u32 4294901760, %v32098_v3  ;;  %v8573_v3 = vld [vmem:[#allocation10 + $0x148] sm:$0xff] }
 0x6ce   :  { %29161 = vmatprep.subr.bf16.mxu0 %v34252_v26  ;;  %26698 = vmatprep.mubr.msk.f32.mxu0 %vm31142_vm8, %v31143_v33  ;;  %v9089_v31 = vand.u32 4294901760, %v8573_v3 }
 0x6cf   :  { %v32197_v17 = vpack.c.bf16 %v34254_v13, %v34253_v16  ;;  %v9185_v13 = vand.u32 4294901760, %v32229_v40 }
 0x6d0   :  { %26500 = vmatmul.mubr.f32.gmra.mrb[26].mxu1 %v31690_v34  ;;  %v8571_v34 = vld [vmem:[#allocation10 + $0x138] sm:$0xff]  ;;  %v32227_v46 = vsub.f32 %v8573_v3, %v9089_v31  ;;  %v7037_v3 = vld [vmem:[#allocation10 + $0x168] sm:$0xff] }
 0x6d1   :  { %29163 = vmatpush3.bf16.msra.mxu0 %v32172_v2  ;;  %26504 = vmatprep.mubr.f32.mxu1 %v31584_v1  ;;  %v9083_v48 = vand.u32 4294901760, %v8571_v34  ;;  %v9186_v25 = vsub.f32 %v32229_v40, %v9185_v13 }
 0x6d2   :  { %29164 = vmatprep.subr.bf16.mxu0 %v34252_v26  ;;  %v9178_v16 = vand.u32 4294901760, %v32227_v46 }
 0x6d4   :  { %26505 = vmatmul.mubr.f32.vlgmr.msra.gmra.mrb[20].mxu1 %v31581_v61  ;;  %26699 = vmatmul.mubr.f32.vlgmr.msra.gmra.mrb[28].mxu0 %v31143_v33  ;;  %v9179_v19 = vsub.f32 %v32227_v46, %v9178_v16 }
 0x6d5   :  { %29166 = vmatpush3.bf16.msra.mxu0 %v32100_v22  ;;  %26507 = vmatprep.mubr.f32.mxu1 %v31600_v4 }
 0x6d6   :  { %29167 = vmatprep.subr.bf16.mxu0 %v34252_v26  ;;  %26517 = vmatpush3.msra.mxu1 %v32077_v57  ;;  %v32216_v57 = vsub.f32 %v8571_v34, %v9083_v48 }
 0x6d7   :  { %26709 = vmatprep.mubr.msk.f32.mxu0 %vm31142_vm8, %v31143_v33  ;;  %26530 = vmatprep.subr.mxu1 %v32066_v50 }
 0x6d8   :  { %26508 = vmatmul.mubr.f32.gmra.mrb[22].mxu1 %v31596_v23  ;;  %v9164_v56 = vand.u32 4294901760, %v32216_v57 }
 0x6d9   :  { %29169 = vmatpush3.bf16.msra.mxu0 %v32114_v51  ;;  %26510 = vmatprep.mubr.f32.mxu1 %v31626_v52 }
 0x6da   :  { %29170 = vmatprep.subr.bf16.mxu0 %v34252_v26 }
 0x6dc   :  { %26511 = vmatmul.mubr.f32.gmra.mrb[24].mxu1 %v31618_v47  ;;  %26710 = vmatmul.mubr.f32.vlgmr.msra.gmra.mrb[30].mxu0 %v31143_v33 }
 0x6dd   :  { %29172 = vmatpush3.bf16.msra.mxu0 %v32197_v17  ;;  %26513 = vmatprep.mubr.f32.mxu1 %v31655_v8 }
 0x6de   :  { %29173 = vmatprep.subr.bf16.mxu0 %v34252_v26  ;;  %26720 = vmatprep.mubr.msk.f32.mxu0 %vm31142_vm8, %v31143_v33 }
 0x6e0   :  { %26514 = vmatmul.mubr.f32.gmra.mrb[26].mxu1 %v31646_v41 }
 0x6e1   :  { %29175 = vmatpush3.bf16.msra.mxu0 %v32208_v28  ;;  %26518 = vmatprep.mubr.f32.mxu1 %v31590_v18  ;;  %v9171_v18 = vand.u32 4294901760, %v32218_v62 }
 0x6e2   :  { %29176 = vmatprep.subr.bf16.mxu0 %v34252_v26 }
 0x6e3   :  { %v9172_v54 = vsub.f32 %v32218_v62, %v9171_v18 }
 0x6e4   :  { %26519 = vmatmul.mubr.f32.vlgmr.msra.gmra.mrb[20].mxu1 %v31587_v5  ;;  %26721 = vmatmul.mubr.f32.vlgmr.msra.gmra.mrb[32].mxu0 %v31143_v33  ;;  %v32237_v5 = vpack.c.bf16 %v9086_v42, %v9083_v48  ;;  %v9187_v48 = vand.u32 4294901760, %v9186_v25 }
 0x6e5   :  { %29178 = vmatpush3.bf16.msra.mxu0 %v32100_v22  ;;  %26521 = vmatprep.mubr.f32.mxu1 %v31613_v38  ;;  %v9165_v38 = vsub.f32 %v32216_v57, %v9164_v56  ;;  %v9173_v34 = vand.u32 4294901760, %v9172_v54  ;;  %v34260_v54 = vld [vmem:[#allocation25_spill] sm:$0xff] }
 0x6e6   :  { %29179 = vmatprep.subr.bf16.mxu0 %v34252_v26  ;;  %26531 = vmatpush3.msra.mxu1 %v32066_v50 }
 0x6e7   :  { %26731 = vmatprep.mubr.msk.f32.mxu0 %vm31142_vm8, %v31143_v33  ;;  %26544 = vmatprep.subr.mxu1 %v32084_v27 }
 0x6e8   :  { %26522 = vmatmul.mubr.f32.gmra.mrb[22].mxu1 %v31606_v30  ;;  %v32252_v30 = vpack.c.bf16 %v9092_v9, %v9089_v31  ;;  %v32296_v31 = vpack.c.bf16 %v32229_v40, %v32227_v46 }
 0x6e9   :  { %29181 = vmatpush3.bf16.msra.mxu0 %v32114_v51  ;;  %26524 = vmatprep.mubr.f32.mxu1 %v31640_v24  ;;  %v9166_v24 = vand.u32 4294901760, %v9165_v38  ;;  %v7790_v38 = vand.u32 4294901760, %v7037_v3 }
 0x6ea   :  { %29182 = vmatprep.subr.bf16.mxu0 %v34252_v26 }
 0x6ec   :  { %26732 = vmatmul.mubr.f32.vlgmr.msra.gmra.mrb[34].mxu0 %v31143_v33  ;;  %26525 = vmatmul.mubr.f32.gmra.mrb[24].mxu1 %v31635_v63  ;;  %v32268_v63 = vpack.c.bf16 %v9173_v34, %v9166_v24 }
 0x6ed   :  { %29184 = vmatpush3.bf16.msra.mxu0 %v32237_v5  ;;  %26527 = vmatprep.mubr.f32.mxu1 %v31668_v21  ;;  %v9180_v21 = vand.u32 4294901760, %v9179_v19  ;;  %v32309_v19 = vsub.f32 %v7037_v3, %v7790_v38 }
 0x6ee   :  { %29185 = vmatprep.subr.bf16.mxu0 %v34252_v26  ;;  %26742 = vmatprep.mubr.msk.f32.mxu0 %vm31142_vm8, %v31143_v33 }
 0x6ef   :  { %v32275_v42 = vpack.c.bf16 %v9187_v48, %v9180_v21  ;;  %v7943_v21 = vand.u32 4294901760, %v32309_v19  ;;  %v8575_v48 = vld [vmem:[#allocation10 + $0x180] sm:$0xff] }
 0x6f0   :  { %26528 = vmatmul.mubr.f32.gmra.mrb[26].mxu1 %v31663_v59  ;;  %v34258_v59 = vld [vmem:[#allocation22_spill] sm:$0xff] }
 0x6f1   :  { %29187 = vmatpush3.bf16.msra.mxu0 %v32252_v30  ;;  %26532 = vmatprep.mubr.f32.mxu1 %v31603_v12  ;;  %v34256_v12 = vld [vmem:[#allocation19_spill] sm:$0xff] }
 0x6f2   :  { %29188 = vmatprep.subr.bf16.mxu0 %v34252_v26 }
 0x6f4   :  { %26533 = vmatmul.mubr.f32.vlgmr.msra.gmra.mrb[20].mxu1 %v31594_v10  ;;  %26743 = vmatmul.mubr.f32.vlgmr.msra.gmra.mrb[36].mxu0 %v31143_v33  ;;  %v34257_v10 = vld [vmem:[#allocation24_spill] sm:$0xff] }
 0x6f5   :  { %29190 = vmatpush3.bf16.msra.mxu0 %v32268_v63  ;;  %26535 = vmatprep.mubr.f32.mxu1 %v31631_v58  ;;  %v32287_v58 = vpack.c.bf16 %v32218_v62, %v32216_v57  ;;  %v32346_v57 = vpack.c.bf16 %v9185_v13, %v9178_v16  ;;  %v9568_v62 = vand.u32 4294901760, %v8575_v48 }
 0x6f6   :  { %29191 = vmatprep.subr.bf16.mxu0 %v34252_v26  ;;  %26545 = vmatpush3.msra.mxu1 %v32084_v27  ;;  %v7036_v27 = vld [vmem:[#allocation10 + $0x160] sm:$0xff] }
 0x6f7   :  { %26753 = vmatprep.mubr.msk.f32.mxu0 %vm31142_vm8, %v31143_v33  ;;  %26558 = vmatprep.subr.mxu1 %v32066_v50  ;;  %v7787_v9 = vand.u32 4294901760, %v7036_v27  ;;  %v32354_v16 = vsub.f32 %v8575_v48, %v9568_v62 }
 0x6f8   :  { %26536 = vmatmul.mubr.f32.gmra.mrb[22].mxu1 %v34256_v12  ;;  %v8576_v12 = vld [vmem:[#allocation10 + $0x188] sm:$0xff] }
 0x6f9   :  { %29193 = vmatpush3.bf16.msra.mxu0 %v32275_v42  ;;  %26538 = vmatprep.mubr.f32.mxu1 %v34257_v10  ;;  %v32305_v24 = vpack.c.bf16 %v7790_v38, %v7787_v9  ;;  %v32307_v34 = vsub.f32 %v7036_v27, %v7787_v9  ;;  %v8578_v27 = vld [vmem:[#allocation10 + $0x198] sm:$0xff]  ;;  %v9649_v38 = vand.u32 4294901760, %v32354_v16 }
 0x6fa   :  { %29194 = vmatprep.subr.bf16.mxu0 %v34252_v26  ;;  %v9577_v40 = vand.u32 4294901760, %v8578_v27 }
 0x6fb   :  { %v7936_v25 = vand.u32 4294901760, %v32307_v34 }
 0x6fc   :  { %26539 = vmatmul.mubr.f32.gmra.mrb[24].mxu1 %v34258_v59  ;;  %26754 = vmatmul.mubr.f32.vlgmr.msra.gmra.mrb[38].mxu0 %v31143_v33  ;;  %v7944_v59 = vsub.f32 %v32309_v19, %v7943_v21  ;;  %v32367_v48 = vsub.f32 %v8578_v27, %v9577_v40 }
 0x6fd   :  { %29196 = vmatpush3.bf16.msra.mxu0 %v32287_v58  ;;  %26541 = vmatprep.mubr.f32.mxu1 %v34259_v14  ;;  %v7937_v10 = vsub.f32 %v32307_v34, %v7936_v25 }
 0x6fe   :  { %29197 = vmatprep.subr.bf16.mxu0 %v34252_v26  ;;  %26764 = vmatprep.mubr.msk.f32.mxu0 %vm31142_vm8, %v31143_v33  ;;  %v7945_v14 = vand.u32 4294901760, %v7944_v59  ;;  %v9670_v59 = vand.u32 4294901760, %v32367_v48 }
 0x6ff   :  { %v7938_v3 = vand.u32 4294901760, %v7937_v10 }
 0x700   :  { %26542 = vmatmul.mubr.f32.gmra.mrb[26].mxu1 %v34260_v54 }
 0x701   :  { %29199 = vmatpush3.bf16.msra.mxu0 %v32296_v31  ;;  %26546 = vmatprep.mubr.f32.mxu1 %v31584_v1  ;;  %v29126_v9 = vpack.c.bf16 %v7945_v14, %v7938_v3  ;;  %v29130_v14 = vpack.c.bf16 %v32309_v19, %v32307_v34  ;;  %v34270_v34 = vld [vmem:[#allocation13_spill] sm:$0xff]  ;;  %v34271_v19 = vld [vmem:[#allocation18_spill] sm:$0xff] }
 0x702   :  { %29200 = vmatprep.subr.bf16.mxu0 %v34252_v26 }
 0x704   :  { %26547 = vmatmul.mubr.f32.vlgmr.msra.gmra.mrb[20].mxu1 %v31581_v61  ;;  %26765 = vmatmul.mubr.f32.vlgmr.msra.gmra.mrb[40].mxu0 %v31143_v33 }
 0x705   :  { %29202 = vmatpush3.bf16.msra.mxu0 %v32237_v5  ;;  %26549 = vmatprep.mubr.f32.mxu1 %v31600_v4 }
 0x706   :  { %29203 = vmatprep.subr.bf16.mxu0 %v34252_v26  ;;  %26559 = vmatpush3.msra.mxu1 %v32066_v50  ;;  %v32329_v50 = vpack.c.bf16 %v9171_v18, %v9164_v56  ;;  %v9571_v56 = vand.u32 4294901760, %v8576_v12  ;;  %v8577_v18 = vld [vmem:[#allocation10 + $0x190] sm:$0xff] }
 0x707   :  { %26775 = vmatprep.mubr.msk.f32.mxu0 %vm31142_vm8, %v31143_v33  ;;  %29123 = vmatprep.subr.bf16.mxu1 %v32305_v24  ;;  %v9574_v46 = vand.u32 4294901760, %v8577_v18 }
 0x708   :  { %26550 = vmatmul.mubr.f32.gmra.mrb[22].mxu1 %v31596_v23  ;;  %v32356_v13 = vsub.f32 %v8576_v12, %v9571_v56 }
 0x709   :  { %29205 = vmatpush3.bf16.msra.mxu0 %v32252_v30  ;;  %26552 = vmatprep.mubr.f32.mxu1 %v31626_v52  ;;  %v32365_v54 = vsub.f32 %v8577_v18, %v9574_v46  ;;  %v9671_v18 = vsub.f32 %v32367_v48, %v9670_v59 }
 0x70a   :  { %29206 = vmatprep.subr.bf16.mxu0 %v34252_v26 }
 0x70b   :  { %v9663_v10 = vand.u32 4294901760, %v32365_v54  ;;  %v9672_v3 = vand.u32 4294901760, %v9671_v18 }
 0x70c   :  { %26553 = vmatmul.mubr.f32.gmra.mrb[24].mxu1 %v31618_v47  ;;  %26776 = vmatmul.mubr.f32.vlgmr.msra.gmra.mrb[42].mxu0 %v31143_v33 }
 0x70d   :  { %29208 = vmatpush3.bf16.msra.mxu0 %v32329_v50  ;;  %26555 = vmatprep.mubr.f32.mxu1 %v31655_v8 }
 0x70e   :  { %29209 = vmatprep.subr.bf16.mxu0 %v34252_v26  ;;  %26786 = vmatprep.mubr.msk.f32.mxu0 %vm31142_vm8, %v31143_v33 }
 0x710   :  { %26556 = vmatmul.mubr.f32.gmra.mrb[26].mxu1 %v31646_v41 }
 0x711   :  { %29211 = vmatpush3.bf16.msra.mxu0 %v32346_v57  ;;  %26560 = vmatprep.mubr.f32.mxu1 %v31584_v1  ;;  %v9656_v1 = vand.u32 4294901760, %v32356_v13 }
 0x712   :  { %29212 = vmatprep.subr.bf16.mxu0 %v34252_v26 }
 0x713   :  { %v9657_v12 = vsub.f32 %v32356_v13, %v9656_v1 }
 0x714   :  { %26561 = vmatmul.mubr.f32.vlgmr.msra.gmra.mrb[20].mxu1 %v31581_v61  ;;  %26787 = vmatmul.mubr.f32.vlgmr.msra.gmra.mrb[44].mxu0 %v31143_v33  ;;  %v32374_v61 = vpack.c.bf16 %v9571_v56, %v9568_v62  ;;  %v9664_v56 = vsub.f32 %v32365_v54, %v9663_v10 }
 0x715   :  { %29214 = vmatpush3.bf16.msra.mxu0 %v32237_v5  ;;  %26563 = vmatprep.mubr.f32.mxu1 %v31600_v4  ;;  %v9650_v4 = vsub.f32 %v32354_v16, %v9649_v38  ;;  %v9658_v62 = vand.u32 4294901760, %v9657_v12  ;;  %v32424_v12 = vpack.c.bf16 %v32356_v13, %v32354_v16  ;;  %v34274_v16 = vld [vmem:[#allocation30_spill] sm:$0xff]  ;;  %v34275_v13 = vld [vmem:[#allocation37_spill] sm:$0xff] }
 0x716   :  { %29215 = vmatprep.subr.bf16.mxu0 %v34252_v26  ;;  %29125 = vmatpush3.bf16.msra.mxu1 %v32305_v24  ;;  %v9665_v27 = vand.u32 4294901760, %v9664_v56 }
 0x717   :  { %26797 = vmatprep.mubr.msk.f32.mxu0 %vm31142_vm8, %v31143_v33  ;;  %29127 = vmatprep.subr.bf16.mxu1 %v29126_v9 }
 0x718   :  { %26564 = vmatmul.mubr.f32.gmra.mrb[22].mxu1 %v31596_v23  ;;  %v32389_v23 = vpack.c.bf16 %v9577_v40, %v9574_v46  ;;  %v34262_v46 = vld [vmem:[#allocation21_spill] sm:$0xff]  ;;  %v32414_v40 = vpack.c.bf16 %v9672_v3, %v9665_v27 }
 0x719   :  { %29217 = vmatpush3.bf16.msra.mxu0 %v32252_v30  ;;  %26566 = vmatprep.mubr.f32.mxu1 %v31626_v52  ;;  %v9651_v52 = vand.u32 4294901760, %v9650_v4  ;;  %v34264_v4 = vld [vmem:[#allocation34_spill] sm:$0xff] }
 0x71a   :  { %29218 = vmatprep.subr.bf16.mxu0 %v34252_v26 }
 0x71c   :  { %26798 = vmatmul.mubr.f32.vlgmr.msra.gmra.mrb[46].mxu0 %v31143_v33  ;;  %26567 = vmatmul.mubr.f32.gmra.mrb[24].mxu1 %v31618_v47  ;;  %v32405_v47 = vpack.c.bf16 %v9658_v62, %v9651_v52 }
 0x71d   :  { %29220 = vmatpush3.bf16.msra.mxu0 %v32374_v61  ;;  %26569 = vmatprep.mubr.f32.mxu1 %v31655_v8  ;;  %v34261_v8 = vld [vmem:[#allocation20_spill] sm:$0xff] }
 0x71e   :  { %29221 = vmatprep.subr.bf16.mxu0 %v34252_v26  ;;  %26808 = vmatprep.mubr.msk.f32.mxu0 %vm31142_vm8, %v31143_v33 }
 0x720   :  { %26570 = vmatmul.mubr.f32.gmra.mrb[26].mxu1 %v31646_v41  ;;  %v34263_v41 = vld [vmem:[#allocation31_spill] sm:$0xff] }
 0x721   :  { %29223 = vmatpush3.bf16.msra.mxu0 %v32389_v23  ;;  %26576 = vmatprep.mubr.f32.mxu1 %v34261_v8 }
 0x722   :  { %29224 = vmatprep.subr.bf16.mxu0 %v34252_v26 }
 0x724   :  { %26809 = vmatmul.mubr.f32.vlgmr.msra.gmra.mrb[48].mxu0 %v31143_v33  ;;  %26577 = vmatmul.mubr.f32.vlgmr.msra.gmra.mrb[20].mxu1 %v34262_v46 }
 0x725   :  { %29226 = vmatpush3.bf16.msra.mxu0 %v32405_v47  ;;  %26579 = vmatprep.mubr.f32.mxu1 %v34263_v41 }
 0x726   :  { %29227 = vmatprep.subr.bf16.mxu0 %v34252_v26  ;;  %29129 = vmatpush3.bf16.msra.mxu1 %v29126_v9  ;;  %v32433_v9 = vpack.c.bf16 %v32367_v48, %v32365_v54 }
 0x727   :  { %26819 = vmatprep.mubr.msk.f32.mxu0 %vm31142_vm8, %v31143_v33  ;;  %29131 = vmatprep.subr.bf16.mxu1 %v29130_v14 }
 0x728   :  { %26580 = vmatmul.mubr.f32.gmra.mrb[22].mxu1 %v34264_v4 }
 0x729   :  { %29229 = vmatpush3.bf16.msra.mxu0 %v32414_v40  ;;  %26582 = vmatprep.mubr.f32.mxu1 %v31981_v45  ;;  %v32468_v45 = vpack.c.bf16 %v9670_v59, %v9663_v10 }
 0x72a   :  { %29230 = vmatprep.subr.bf16.mxu0 %v34252_v26 }
 0x72c   :  { %26820 = vmatmul.mubr.f32.vlgmr.msra.gmra.mrb[48].mxu0 %v31143_v33  ;;  %26583 = vmatmul.mubr.f32.gmra.mrb[24].mxu1 %v31986_v37  ;;  %v29138_v37 = vpack.c.bf16 %v7943_v21, %v7936_v25  ;;  %v34272_v25 = vld [vmem:[#allocation15_spill] sm:$0xff]  ;;  %v34273_v21 = vld [vmem:[#allocation32_spill] sm:$0xff] }
 0x72d   :  { %29232 = vmatpush3.bf16.msra.mxu0 %v32424_v12  ;;  %26585 = vmatprep.mubr.f32.mxu1 %v31996_v53  ;;  %v34269_v53 = vld [vmem:[#allocation14_spill] sm:$0xff] }
 0x72e   :  { %29233 = vmatprep.subr.bf16.mxu0 %v34252_v26  ;;  %26830 = vmatprep.mubr.msk.f32.mxu0 %vm31142_vm8, %v31143_v33 }
 0x730   :  { %26586 = vmatmul.mubr.f32.gmra.mrb[26].mxu1 %v31998_v49  ;;  %v32457_v49 = vpack.c.bf16 %v9656_v1, %v9649_v38  ;;  %v34276_v38 = vld [vmem:[#allocation36_spill] sm:$0xff] }
 0x731   :  { %29235 = vmatpush3.bf16.msra.mxu0 %v32433_v9  ;;  %26592 = vmatprep.mubr.f32.mxu1 %v31886_v0 }
 0x732   :  { %29236 = vmatprep.subr.bf16.mxu0 %v34252_v26 }
 0x734   :  { %26831 = vmatmul.mubr.f32.vlgmr.msra.gmra.mrb[48].mxu0 %v31143_v33  ;;  %26593 = vmatmul.mubr.f32.vlgmr.msra.gmra.mrb[20].mxu1 %v31883_v7 }
 0x735   :  { %29238 = vmatpush3.bf16.msra.mxu0 %v32374_v61  ;;  %26595 = vmatprep.mubr.f32.mxu1 %v31901_v15 }
 0x736   :  { %29239 = vmatprep.subr.bf16.mxu0 %v34252_v26  ;;  %29133 = vmatpush3.bf16.msra.mxu1 %v29130_v14 }
 0x737   :  { %26841 = vmatprep.mubr.msk.f32.mxu0 %vm31142_vm8, %v31143_v33  ;;  %29135 = vmatprep.subr.bf16.mxu1 %v32305_v24 }
 0x738   :  { %26596 = vmatmul.mubr.f32.gmra.mrb[22].mxu1 %v31898_v32 }
 0x739   :  { %29241 = vmatpush3.bf16.msra.mxu0 %v32389_v23  ;;  %26598 = vmatprep.mubr.f32.mxu1 %v31923_v6 }
 0x73a   :  { %29242 = vmatprep.subr.bf16.mxu0 %v34252_v26 }
 0x73c   :  { %26842 = vmatmul.mubr.f32.vlgmr.msra.gmra.mrb[48].mxu0 %v31143_v33  ;;  %26599 = vmatmul.mubr.f32.gmra.mrb[24].mxu1 %v31917_v43 }
 0x73d   :  { %29244 = vmatpush3.bf16.msra.mxu0 %v32457_v49  ;;  %26601 = vmatprep.mubr.f32.mxu1 %v31953_v35 }
 0x73e   :  { %29245 = vmatprep.subr.bf16.mxu0 %v34252_v26  ;;  %26852 = vmatprep.mubr.msk.f32.mxu0 %vm31142_vm8, %v31143_v33 }
 0x740   :  { %26602 = vmatmul.mubr.f32.gmra.mrb[26].mxu1 %v31945_v39 }
 0x741   :  { %29247 = vmatpush3.bf16.msra.mxu0 %v32468_v45  ;;  %26608 = vmatprep.mubr.f32.mxu1 %v31892_v29  ;;  %v34265_v29 = vld [vmem:[#allocation29_spill] sm:$0xff] }
 0x742   :  { %29248 = vmatprep.subr.bf16.mxu0 %v34252_v26 }
 0x744   :  { %26853 = vmatmul.mubr.f32.vlgmr.msra.gmra.mrb[48].mxu0 %v31143_v33  ;;  %26609 = vmatmul.mubr.f32.vlgmr.msra.gmra.mrb[20].mxu1 %v31889_v20  ;;  %v34266_v20 = vld [vmem:[#allocation23_spill] sm:$0xff] }
 0x745   :  { %29250 = vmatpush3.bf16.msra.mxu0 %v32374_v61  ;;  %26611 = vmatprep.mubr.f32.mxu1 %v31912_v60  ;;  %v34267_v60 = vld [vmem:[#allocation35_spill] sm:$0xff] }
 0x746   :  { %29251 = vmatprep.subr.bf16.mxu0 %v34252_v26  ;;  %29137 = vmatpush3.bf16.msra.mxu1 %v32305_v24 }
 0x747   :  { %26863 = vmatprep.mubr.msk.f32.mxu0 %vm31142_vm8, %v31143_v33  ;;  %29139 = vmatprep.subr.bf16.mxu1 %v29138_v37 }
 0x748   :  { %26612 = vmatmul.mubr.f32.gmra.mrb[22].mxu1 %v31907_v36  ;;  %v34268_v36 = vld [vmem:[#allocation33_spill] sm:$0xff] }
 0x749   :  { %29253 = vmatpush3.bf16.msra.mxu0 %v32389_v23  ;;  %26614 = vmatprep.mubr.f32.mxu1 %v34265_v29 }
 0x74a   :  { %29254 = vmatprep.subr.bf16.mxu0 %v34252_v26 }
 0x74c   :  { %26864 = vmatmul.mubr.f32.vlgmr.msra.gmra.mrb[48].mxu0 %v31143_v33  ;;  %26615 = vmatmul.mubr.f32.gmra.mrb[24].mxu1 %v34266_v20 }
 0x74d   :  { %26617 = vmatprep.mubr.f32.mxu1 %v34267_v60  ;;  %29256 = vmatpush3.bf16.msra.mxu0 %v32100_v22 }
 0x74e   :  { %29257 = vmatprep.subr.bf16.mxu0 %v34252_v26  ;;  %26874 = vmatprep.mubr.msk.f32.mxu0 %vm31142_vm8, %v31143_v33 }
 0x750   :  { %26618 = vmatmul.mubr.f32.gmra.mrb[26].mxu1 %v34268_v36 }
 0x751   :  { %26624 = vmatprep.mubr.f32.mxu1 %v34269_v53  ;;  %29259 = vmatpush3.bf16.msra.mxu0 %v32114_v51 }
 0x752   :  { %29260 = vmatprep.subr.bf16.mxu0 %v34252_v26 }
 0x754   :  { %26625 = vmatmul.mubr.f32.vlgmr.msra.gmra.mrb[20].mxu1 %v34270_v34 }
 0x755   :  { %26627 = vmatprep.mubr.f32.mxu1 %v34271_v19  ;;  %29141 = vmatpush3.bf16.msra.mxu1 %v29138_v37 }
 0x756   :  { %29143 = vmatprep.subr.bf16.mxu1 %v32305_v24 }
 0x758   :  { %26628 = vmatmul.mubr.f32.gmra.mrb[22].mxu1 %v34272_v25 }
 0x759   :  { %26630 = vmatprep.mubr.f32.mxu1 %v34273_v21 }
 0x75c   :  { %26631 = vmatmul.mubr.f32.gmra.mrb[24].mxu1 %v34274_v16 }
 0x75d   :  { %26633 = vmatprep.mubr.f32.mxu1 %v34275_v13  ;;  %v32552_v13 = vld [vmem:[#allocation10 + $0x110] ss:$0 sm:$0xff] }
 0x760   :  { %26634 = vmatmul.mubr.f32.gmra.mrb[26].mxu1 %v34276_v38 }
 0x761   :  { %26640 = vmatprep.mubr.f32.mxu1 %v31886_v0 }
 0x764   :  { %26641 = vmatmul.mubr.f32.vlgmr.msra.gmra.mrb[20].mxu1 %v31883_v7 }
 0x765   :  { %26643 = vmatprep.mubr.f32.mxu1 %v31901_v15  ;;  %29145 = vmatpush3.bf16.msra.mxu1 %v32305_v24 }
 0x766   :  { %29278 = vmatprep.subr.bf16.mxu1 %v34252_v26 }
 0x768   :  { %26644 = vmatmul.mubr.f32.gmra.mrb[22].mxu1 %v31898_v32 }
 0x769   :  { %26646 = vmatprep.mubr.f32.mxu1 %v31923_v6 }
 0x76c   :  { %26647 = vmatmul.mubr.f32.gmra.mrb[24].mxu1 %v31917_v43 }
 0x76d   :  { %26649 = vmatprep.mubr.f32.mxu1 %v31953_v35 }
 0x770   :  { %26650 = vmatmul.mubr.f32.gmra.mrb[26].mxu1 %v31945_v39 }
 0x771   :  { %26656 = vmatprep.mubr.f32.mxu1 %v31886_v0  ;;  %v23915_v0 = vld [vmem:[#allocation10 + $0x130] ss:$0 sm:$0xff] }
 0x774   :  { %26657 = vmatmul.mubr.f32.vlgmr.msra.gmra.mrb[20].mxu1 %v31883_v7  ;;  %v23914_v7 = vld [vmem:[#allocation10 + $0xe8] ss:$0 sm:$0xff] }
 0x775   :  { %26659 = vmatprep.mubr.f32.mxu1 %v31901_v15  ;;  %29280 = vmatpush3.bf16.msra.mxu1 %v32197_v17 }
 0x776   :  { %29281 = vmatprep.subr.bf16.mxu1 %v34252_v26 }
 0x778   :  { %26660 = vmatmul.mubr.f32.gmra.mrb[22].mxu1 %v31898_v32 }
 0x779   :  { %26662 = vmatprep.mubr.f32.mxu1 %v31923_v6  ;;  %29283 = vmatpush3.bf16.msra.mxu1 %v32208_v28 }
 0x77a   :  { %29290 = vmatprep.subr.bf16.mxu1 %v34252_v26 }
 0x77c   :  { %26663 = vmatmul.mubr.f32.gmra.mrb[24].mxu1 %v31917_v43 }
 0x77d   :  { %26665 = vmatprep.mubr.f32.mxu1 %v31953_v35 }
 0x780   :  { %26666 = vmatmul.mubr.f32.gmra.mrb[26].mxu1 %v31945_v39 }
 0x781   :  { %26918 = vmatprep.mubr.msk.f32.mxu1 %vm31142_vm8, %v31143_v33 }
 0x787   :  { %v26298_v15 = vpop.f32.mrb[12].mxu1  ;;  %v26478_v24 = vpop.f32.mrb[16].mxu0 }
 0x788   :  { %v5490_v32 = vadd.f32 %v26298_v15, %v23914_v7  ;;  %v7021_v1 = vadd.f32 %v26478_v24, %v23915_v0  ;;  %v5438_v6 = vpop.f32.mrb[13].mxu1  ;;  %v6969_v54 = vpop.f32.mrb[17].mxu0 }
 0x789   :  { %v5489_v48 = vadd.f32 %v23914_v7, %v5438_v6  ;;  %v7020_v10 = vadd.f32 %v23915_v0, %v6969_v54 }
 0x78a   :  { %5498 = vst.msk [vmem:[#allocation2 + $0x8] sm:$0xff] %vm69_vm0, %v5490_v32  ;;  %7029 = vst.msk [vmem:[#allocation3 + $0x8] sm:$0xff] %vm69_vm0, %v7021_v1 }
 0x78b   :  { %5497 = vst.msk [vmem:[#allocation2] sm:$0xff] %vm69_vm0, %v5489_v48  ;;  %7028 = vst.msk [vmem:[#allocation3] sm:$0xff] %vm69_vm0, %v7020_v10  ;;  %v26301_v43 = vpop.f32.mrb[14].mxu1  ;;  %v26481_v39 = vpop.f32.mrb[18].mxu0 }
 0x78c   :  { %v5492_v35 = vadd.f32 %v26301_v43, %v23914_v7  ;;  %v7023_v59 = vadd.f32 %v26481_v39, %v23915_v0  ;;  %v5450_v52 = vpop.f32.mrb[15].mxu1  ;;  %v6981_v62 = vpop.f32.mrb[19].mxu0 }
 0x78d   :  { %v5491_v56 = vadd.f32 %v23914_v7, %v5450_v52  ;;  %v7022_v18 = vadd.f32 %v23915_v0, %v6981_v62 }
 0x78e   :  { %5500 = vst.msk [vmem:[#allocation2 + $0x18] sm:$0xff] %vm69_vm0, %v5492_v35  ;;  %7031 = vst.msk [vmem:[#allocation3 + $0x18] sm:$0xff] %vm69_vm0, %v7023_v59 }
 0x78f   :  { %5499 = vst.msk [vmem:[#allocation2 + $0x10] sm:$0xff] %vm69_vm0, %v5491_v56  ;;  %7030 = vst.msk [vmem:[#allocation3 + $0x10] sm:$0xff] %vm69_vm0, %v7022_v18  ;;  %v26304_v8 = vpop.f32.mrb[16].mxu1  ;;  %v26484_v27 = vpop.f32.mrb[20].mxu0  ;;  %v32555_v18 = vld [vmem:[#allocation10 + $0x158] ss:$0 sm:$0xff] }
 0x790   :  { %v5494_v3 = vadd.f32 %v26304_v8, %v23914_v7  ;;  %v7025_v14 = vadd.f32 %v26484_v27, %v23915_v0  ;;  %v5462_v46 = vpop.f32.mrb[17].mxu1  ;;  %v6993_v41 = vpop.f32.mrb[21].mxu0 }
 0x791   :  { %v5493_v4 = vadd.f32 %v23914_v7, %v5462_v46  ;;  %v7024_v37 = vadd.f32 %v23915_v0, %v6993_v41 }
 0x792   :  { %5502 = vst.msk [vmem:[#allocation2 + $0x28] sm:$0xff] %vm69_vm0, %v5494_v3  ;;  %7033 = vst.msk [vmem:[#allocation3 + $0x28] sm:$0xff] %vm69_vm0, %v7025_v14 }
 0x793   :  { %5501 = vst.msk [vmem:[#allocation2 + $0x20] sm:$0xff] %vm69_vm0, %v5493_v4  ;;  %7032 = vst.msk [vmem:[#allocation3 + $0x20] sm:$0xff] %vm69_vm0, %v7024_v37  ;;  %v26307_v29 = vpop.f32.mrb[18].mxu1  ;;  %v26487_v20 = vpop.f32.mrb[22].mxu0 }
 0x794   :  { %v5496_v60 = vadd.f32 %v26307_v29, %v23914_v7  ;;  %v7027_v36 = vadd.f32 %v26487_v20, %v23915_v0  ;;  %v5474_v53 = vpop.f32.mrb[19].mxu1  ;;  %v7005_v34 = vpop.f32.mrb[23].mxu0 }
 0x795   :  { %v5495_v19 = vadd.f32 %v23914_v7, %v5474_v53  ;;  %v7026_v25 = vadd.f32 %v23915_v0, %v7005_v34 }
 0x796   :  { %5504 = vst.msk [vmem:[#allocation2 + $0x38] sm:$0xff] %vm69_vm0, %v5496_v60  ;;  %7035 = vst.msk [vmem:[#allocation3 + $0x38] sm:$0xff] %vm69_vm0, %v7027_v36 }
 0x797   :  { %5503 = vst.msk [vmem:[#allocation2 + $0x30] sm:$0xff] %vm69_vm0, %v5495_v19  ;;  %7034 = vst.msk [vmem:[#allocation3 + $0x30] sm:$0xff] %vm69_vm0, %v7026_v25  ;;  %v8672_v21 = vpop.f32.mrb[24].mxu0 }
 0x798   :  { %v26678_v16 = vpop.f32.mrb[25].mxu0  ;;  %v8673_v38 = vadd.f32 %v32552_v13, %v8672_v21  ;;  %v10052_v21 = vld [vmem:[#allocation2] sm:$0xff] }
 0x79f   :  { %v8763_v15 = vpop.f32.mrb[26].mxu0 }
 0x7a0   :  { %v8764_v24 = vadd.f32 %v8763_v15, %v8673_v38  ;;  %v26689_v32 = vpop.f32.mrb[27].mxu0 }
 0x7a1   :  { %v32558_v32 = vld [vmem:[#allocation10 + $0x1a0] ss:$0 sm:$0xff] }
 0x7a7   :  { %v8843_v1 = vpop.f32.mrb[28].mxu0 }
 0x7a8   :  { %v8844_v7 = vadd.f32 %v8843_v1, %v8764_v24  ;;  %v26700_v0 = vpop.f32.mrb[29].mxu0 }
 0x7af   :  { %v8920_v6 = vpop.f32.mrb[30].mxu0 }
 0x7b0   :  { %v8921_v54 = vadd.f32 %v8920_v6, %v8844_v7  ;;  %v26711_v48 = vpop.f32.mrb[31].mxu0 }
 0x7b1   :  { %v10060_v48 = vld [vmem:[#allocation3] sm:$0xff] }
 0x7b7   :  { %v9003_v10 = vpop.f32.mrb[32].mxu0 }
 0x7b8   :  { %v9004_v43 = vadd.f32 %v9003_v10, %v8921_v54  ;;  %v26722_v39 = vpop.f32.mrb[33].mxu0 }
 0x7b9   :  { %v23916_v39 = vld [vmem:[#allocation10 + $0x178] ss:$0 sm:$0xff] }
 0x7bf   :  { %v9078_v35 = vpop.f32.mrb[34].mxu0 }
 0x7c0   :  { %v9079_v59 = vadd.f32 %v9078_v35, %v9004_v43  ;;  %v26733_v52 = vpop.f32.mrb[35].mxu0 }
 0x7c2   :  { %v10053_v16 = vadd.f32 %v10052_v21, %v9079_v59 }
 0x7c4   :  { %v23920_v38 = vmul.f32 -1.442695, %v10053_v16 }
 0x7c6   :  { %30957 = vpow2.f32 %v23920_v38 }
 0x7c7   :  { %v9157_v62 = vpop.f32.mrb[36].mxu0 }
 0x7c8   :  { %v26744_v56 = vpop.f32.mrb[37].mxu0  ;;  %v9158_v8 = vadd.f32 %v32555_v18, %v9157_v62 }
 0x7cf   :  { %v9248_v27 = vpop.f32.mrb[38].mxu0 }
 0x7d0   :  { %v9249_v3 = vadd.f32 %v9248_v27, %v9158_v8  ;;  %v26755_v14 = vpop.f32.mrb[39].mxu0  ;;  %v30958_v15 = vpop.eup %30957 }
 0x7d1   :  { %v10057_v24 = vadd.f32 1.0, %v30958_v15 }
 0x7d3   :  { %30959 = vrcp.f32 %v10057_v24 }
 0x7d7   :  { %v9328_v46 = vpop.f32.mrb[40].mxu0 }
 0x7d8   :  { %v9329_v41 = vadd.f32 %v9328_v46, %v9249_v3  ;;  %v26766_v4 = vpop.f32.mrb[41].mxu0 }
 0x7dd   :  { %v30960_v6 = vpop.eup %30959 }
 0x7df   :  { %v9405_v37 = vpop.f32.mrb[42].mxu0 }
 0x7e0   :  { %v9406_v29 = vadd.f32 %v9405_v37, %v9329_v41  ;;  %v26777_v20 = vpop.f32.mrb[43].mxu0 }
 0x7e7   :  { %v9488_v60 = vpop.f32.mrb[44].mxu0 }
 0x7e8   :  { %v9489_v36 = vadd.f32 %v9488_v60, %v9406_v29  ;;  %v26788_v53 = vpop.f32.mrb[45].mxu0 }
 0x7ef   :  { %v9563_v34 = vpop.f32.mrb[46].mxu0 }
 0x7f0   :  { %v9564_v19 = vadd.f32 %v9563_v34, %v9489_v36  ;;  %v26799_v25 = vpop.f32.mrb[47].mxu0 }
 0x7f2   :  { %v10061_v10 = vadd.f32 %v10060_v48, %v9564_v19 }
 0x7f4   :  { %v23921_v43 = vmul.f32 -1.442695, %v10061_v10 }
 0x7f6   :  { %30961 = vpow2.f32 %v23921_v43 }
 0x800   :  { %v30962_v56 = vpop.eup %30961 }
 0x801   :  { %v10065_v14 = vadd.f32 1.0, %v30962_v56 }
 0x803   :  { %30963 = vrcp.f32 %v10065_v14 }
 0x80d   :  { %v30964_v25 = vpop.eup %30963 }
 0x80e   :  { %v10072_v21 = vsub.f32 1.0, %v30964_v25  ;;  %v10074_v38 = vmul.f32 0.0, %v30964_v25 }
 0x81f   :  { %v10048_v1 = vpop.f32.mrb[48].mxu0 }
 0x820   :  { %v30334_v7 = vadd.f32 %v32558_v32, %v10048_v1  ;;  %v26865_v0 = vpop.f32.mrb[49].mxu0 }
 0x822   :  { %v10069_v54 = vmul.f32 %v30960_v6, %v30334_v7 }
 0x847   :  { %v26658_v35 = vpop.f32.mrb[20].mxu1 }
 0x848   :  { %v8552_v59 = vadd.f32 %v26658_v35, %v23916_v39  ;;  %v8500_v52 = vpop.f32.mrb[21].mxu1 }
 0x849   :  { %v8551_v62 = vadd.f32 %v23916_v39, %v8500_v52 }
 0x84a   :  { %8560 = vst.msk [vmem:[#allocation4 + $0x8] sm:$0xff] %vm69_vm0, %v8552_v59 }
 0x84b   :  { %8559 = vst.msk [vmem:[#allocation4] sm:$0xff] %vm69_vm0, %v8551_v62  ;;  %v26661_v8 = vpop.f32.mrb[22].mxu1 }
 0x84c   :  { %v8554_v27 = vadd.f32 %v26661_v8, %v23916_v39  ;;  %v8512_v3 = vpop.f32.mrb[23].mxu1 }
 0x84d   :  { %v8553_v46 = vadd.f32 %v23916_v39, %v8512_v3 }
 0x84e   :  { %8562 = vst.msk [vmem:[#allocation4 + $0x18] sm:$0xff] %vm69_vm0, %v8554_v27 }
 0x84f   :  { %8561 = vst.msk [vmem:[#allocation4 + $0x10] sm:$0xff] %vm69_vm0, %v8553_v46  ;;  %v26664_v41 = vpop.f32.mrb[24].mxu1 }
 0x850   :  { %v8556_v4 = vadd.f32 %v26664_v41, %v23916_v39  ;;  %v8524_v37 = vpop.f32.mrb[25].mxu1 }
 0x851   :  { %v8555_v29 = vadd.f32 %v23916_v39, %v8524_v37 }
 0x852   :  { %v10068_v20 = vld [vmem:[#allocation4] sm:$0xff]  ;;  %8564 = vst.msk [vmem:[#allocation4 + $0x28] sm:$0xff] %vm69_vm0, %v8556_v4 }
 0x853   :  { %v10070_v60 = vadd.f32 %v10069_v54, %v10068_v20  ;;  %8563 = vst.msk [vmem:[#allocation4 + $0x20] sm:$0xff] %vm69_vm0, %v8555_v29  ;;  %v26667_v36 = vpop.f32.mrb[26].mxu1 }
 0x854   :  { %v8558_v53 = vadd.f32 %v26667_v36, %v23916_v39  ;;  %v8536_v34 = vpop.f32.mrb[27].mxu1 }
 0x855   :  { %30965 = vtanh.f32 %v10070_v60  ;;  %v8557_v19 = vadd.f32 %v23916_v39, %v8536_v34 }
 0x856   :  { %8566 = vst.msk [vmem:[#allocation4 + $0x38] sm:$0xff] %vm69_vm0, %v8558_v53 }
 0x857   :  { %8565 = vst.msk [vmem:[#allocation4 + $0x30] sm:$0xff] %vm69_vm0, %v8557_v19 }
 0x85f   :  { %v30966_v16 = vpop.eup %30965 }
 0x860   :  { %v10073_v15 = vmul.f32 %v30966_v16, %v10072_v21  ;;  %v11535_v21 = vld [vmem:[#allocation2 + $0x8] sm:$0xff] }
 0x862   :  { %v32569_v24 = vadd.f32 %v10074_v38, %v10073_v15 }
 0x864   :  { %10076 = vst.msk [vmem:[#allocation5] sm:$0xff] %vm69_vm0, %v32569_v24  ;;  %v10078_v1 = vsel %vm69_vm0, %v32569_v24, 0 }
 0x865   :  { %v32575_v7 = vand.u32 4294901760, %v10078_v1 }
 0x867   :  { %26919 = vmatmul.mubr.f32.vlgmr.msra.gmra.mrb[28].mxu1 %v32575_v7  ;;  %v32579_v0 = vsub.f32 %v10078_v1, %v32575_v7 }
 0x868   :  { %29292 = vmatpush3.bf16.msra.mxu1 %v32237_v5  ;;  %26940 = vmatprep.mubr.msk.f32.mxu1 %vm31142_vm8, %v31143_v33 }
 0x869   :  { %29293 = vmatprep.subr.bf16.mxu1 %v34252_v26  ;;  %v32586_v6 = vand.u32 4294901760, %v32579_v0 }
 0x86b   :  { %v10152_v54 = vsub.f32 %v32579_v0, %v32586_v6 }
 0x86c   :  { %29295 = vmatpush3.bf16.msra.mxu1 %v32252_v30 }
 0x86d   :  { %29302 = vmatprep.subr.bf16.mxu1 %v34252_v26  ;;  %v10153_v48 = vand.u32 4294901760, %v10152_v54 }
 0x86f   :  { %26875 = vmatmul.mubr.f32.vlgmr.msra.gmra.mrb[50].mxu0 %v10153_v48  ;;  %26941 = vmatmul.mubr.f32.vlgmr.msra.gmra.mrb[30].mxu1 %v10153_v48 }
 0x870   :  { %29262 = vmatpush3.bf16.msra.mxu0 %v32146_v11  ;;  %29304 = vmatpush3.bf16.msra.mxu1 %v32287_v58 }
 0x871   :  { %29263 = vmatprep.subr.bf16.mxu0 %v34252_v26  ;;  %29305 = vmatprep.subr.bf16.mxu1 %v34252_v26 }
 0x872   :  { %26885 = vmatprep.mubr.msk.f32.mxu0 %vm31142_vm8, %v31143_v33  ;;  %26962 = vmatprep.mubr.msk.f32.mxu1 %vm31142_vm8, %v31143_v33 }
 0x874   :  { %29265 = vmatpush3.bf16.msra.mxu0 %v32152_v44  ;;  %29307 = vmatpush3.bf16.msra.mxu1 %v32296_v31 }
 0x875   :  { %29266 = vmatprep.subr.bf16.mxu0 %v34252_v26  ;;  %29314 = vmatprep.subr.bf16.mxu1 %v34252_v26 }
 0x877   :  { %26886 = vmatmul.mubr.f32.vlgmr.msra.gmra.mrb[52].mxu0 %v32575_v7  ;;  %26963 = vmatmul.mubr.f32.vlgmr.msra.gmra.mrb[32].mxu1 %v32579_v0 }
 0x878   :  { %29268 = vmatpush3.bf16.msra.mxu0 %v32163_v55  ;;  %29316 = vmatpush3.bf16.msra.mxu1 %v32329_v50 }
 0x879   :  { %29269 = vmatprep.subr.bf16.mxu0 %v34252_v26  ;;  %29317 = vmatprep.subr.bf16.mxu1 %v34252_v26 }
 0x87a   :  { %26896 = vmatprep.mubr.msk.f32.mxu0 %vm31142_vm8, %v31143_v33  ;;  %26984 = vmatprep.mubr.msk.f32.mxu1 %vm31142_vm8, %v31143_v33 }
 0x87c   :  { %29271 = vmatpush3.bf16.msra.mxu0 %v32172_v2  ;;  %29319 = vmatpush3.bf16.msra.mxu1 %v32346_v57 }
 0x87d   :  { %29272 = vmatprep.subr.bf16.mxu0 %v34252_v26  ;;  %29326 = vmatprep.subr.bf16.mxu1 %v34252_v26 }
 0x87f   :  { %26897 = vmatmul.mubr.f32.vlgmr.msra.gmra.mrb[54].mxu0 %v32579_v0  ;;  %26985 = vmatmul.mubr.f32.vlgmr.msra.gmra.mrb[34].mxu1 %v32575_v7 }
 0x880   :  { %29274 = vmatpush3.bf16.msra.mxu0 %v32100_v22  ;;  %29328 = vmatpush3.bf16.msra.mxu1 %v32374_v61 }
 0x881   :  { %29275 = vmatprep.subr.bf16.mxu0 %v34252_v26  ;;  %29329 = vmatprep.subr.bf16.mxu1 %v34252_v26 }
 0x882   :  { %26907 = vmatprep.mubr.msk.f32.mxu0 %vm31142_vm8, %v31143_v33  ;;  %27006 = vmatprep.mubr.msk.f32.mxu1 %vm31142_vm8, %v31143_v33 }
 0x884   :  { %29277 = vmatpush3.bf16.msra.mxu0 %v32114_v51  ;;  %29331 = vmatpush3.bf16.msra.mxu1 %v32389_v23 }
 0x885   :  { %29284 = vmatprep.subr.bf16.mxu0 %v34252_v26  ;;  %29332 = vmatprep.subr.bf16.mxu1 %v34252_v26 }
 0x887   :  { %26908 = vmatmul.mubr.f32.vlgmr.msra.gmra.mrb[56].mxu0 %v32586_v6  ;;  %27007 = vmatmul.mubr.f32.vlgmr.msra.gmra.mrb[36].mxu1 %v10153_v48 }
 0x888   :  { %29286 = vmatpush3.bf16.msra.mxu0 %v32100_v22  ;;  %29334 = vmatpush3.bf16.msra.mxu1 %v32405_v47 }
 0x889   :  { %29287 = vmatprep.subr.bf16.mxu0 %v34252_v26  ;;  %29335 = vmatprep.subr.bf16.mxu1 %v34252_v26 }
 0x88a   :  { %26929 = vmatprep.mubr.msk.f32.mxu0 %vm31142_vm8, %v31143_v33  ;;  %27017 = vmatprep.mubr.msk.f32.mxu1 %vm31142_vm8, %v31143_v33 }
 0x88c   :  { %29289 = vmatpush3.bf16.msra.mxu0 %v32114_v51  ;;  %29337 = vmatpush3.bf16.msra.mxu1 %v32414_v40 }
 0x88d   :  { %29296 = vmatprep.subr.bf16.mxu0 %v34252_v26  ;;  %29338 = vmatprep.subr.bf16.mxu1 %v34252_v26 }
 0x88f   :  { %26930 = vmatmul.mubr.f32.vlgmr.msra.gmra.mrb[58].mxu0 %v32575_v7  ;;  %27018 = vmatmul.mubr.f32.vlgmr.msra.gmra.mrb[36].mxu1 %v32575_v7 }
 0x890   :  { %29298 = vmatpush3.bf16.msra.mxu0 %v32268_v63  ;;  %29340 = vmatpush3.bf16.msra.mxu1 %v32424_v12 }
 0x891   :  { %29299 = vmatprep.subr.bf16.mxu0 %v34252_v26  ;;  %29341 = vmatprep.subr.bf16.mxu1 %v34252_v26 }
 0x892   :  { %26951 = vmatprep.mubr.msk.f32.mxu0 %vm31142_vm8, %v31143_v33  ;;  %27028 = vmatprep.mubr.msk.f32.mxu1 %vm31142_vm8, %v31143_v33 }
 0x894   :  { %29301 = vmatpush3.bf16.msra.mxu0 %v32275_v42  ;;  %29343 = vmatpush3.bf16.msra.mxu1 %v32433_v9 }
 0x895   :  { %29308 = vmatprep.subr.bf16.mxu0 %v34252_v26  ;;  %29344 = vmatprep.subr.bf16.mxu1 %v34252_v26 }
 0x897   :  { %26952 = vmatmul.mubr.f32.vlgmr.msra.gmra.mrb[60].mxu0 %v32575_v7  ;;  %27029 = vmatmul.mubr.f32.vlgmr.msra.gmra.mrb[36].mxu1 %v32579_v0 }
 0x898   :  { %29310 = vmatpush3.bf16.msra.mxu0 %v32237_v5  ;;  %29346 = vmatpush3.bf16.msra.mxu1 %v32374_v61 }
 0x899   :  { %29311 = vmatprep.subr.bf16.mxu0 %v34252_v26  ;;  %29347 = vmatprep.subr.bf16.mxu1 %v34252_v26 }
 0x89a   :  { %26973 = vmatprep.mubr.msk.f32.mxu0 %vm31142_vm8, %v31143_v33  ;;  %27039 = vmatprep.mubr.msk.f32.mxu1 %vm31142_vm8, %v31143_v33 }
 0x89c   :  { %29313 = vmatpush3.bf16.msra.mxu0 %v32252_v30  ;;  %29349 = vmatpush3.bf16.msra.mxu1 %v32389_v23 }
 0x89d   :  { %29320 = vmatprep.subr.bf16.mxu0 %v34252_v26  ;;  %29350 = vmatprep.subr.bf16.mxu1 %v34252_v26 }
 0x89f   :  { %26974 = vmatmul.mubr.f32.vlgmr.msra.gmra.mrb[62].mxu0 %v32586_v6  ;;  %27040 = vmatmul.mubr.f32.vlgmr.msra.gmra.mrb[36].mxu1 %v32586_v6 }
 0x8a0   :  { %29322 = vmatpush3.bf16.msra.mxu0 %v32237_v5  ;;  %29352 = vmatpush3.bf16.msra.mxu1 %v32457_v49 }
 0x8a1   :  { %29323 = vmatprep.subr.bf16.mxu0 %v34252_v26  ;;  %29353 = vmatprep.subr.bf16.mxu1 %v34252_v26 }
 0x8a2   :  { %26995 = vmatprep.mubr.msk.f32.mxu0 %vm31142_vm8, %v31143_v33  ;;  %27050 = vmatprep.mubr.msk.f32.mxu1 %vm31142_vm8, %v31143_v33 }
 0x8a4   :  { %29325 = vmatpush3.bf16.msra.mxu0 %v32252_v30  ;;  %29355 = vmatpush3.bf16.msra.mxu1 %v32468_v45 }
 0x8a5   :  { %29356 = vmatprep.subr.bf16.mxu1 %v34252_v26  ;;  %29362 = vmatprep.subr.bf16.mxu0 %v34252_v26 }
 0x8a7   :  { %26996 = vmatmul.mubr.f32.vlgmr.msra.gmra.mrb[64].mxu0 %v32575_v7  ;;  %27051 = vmatmul.mubr.f32.vlgmr.msra.gmra.mrb[36].mxu1 %v32575_v7 }
 0x8a8   :  { %29358 = vmatpush3.bf16.msra.mxu1 %v32374_v61  ;;  %27061 = vmatprep.mubr.msk.f32.mxu1 %vm31142_vm8, %v31143_v33 }
 0x8a9   :  { %29359 = vmatprep.subr.bf16.mxu1 %v34252_v26  ;;  %29364 = vmatpush3.bf16.msra.mxu0 %v32100_v22 }
 0x8aa   :  { %29365 = vmatprep.subr.bf16.mxu0 %v34252_v26  ;;  %27072 = vmatprep.mubr.msk.f32.mxu0 %vm31142_vm8, %v31143_v33 }
 0x8ac   :  { %29361 = vmatpush3.bf16.msra.mxu1 %v32389_v23 }
 0x8ad   :  { %29398 = vmatprep.subr.bf16.mxu1 %v34252_v26  ;;  %29367 = vmatpush3.bf16.msra.mxu0 %v32114_v51 }
 0x8ae   :  { %29368 = vmatprep.subr.bf16.mxu0 %v34252_v26 }
 0x8af   :  { %27062 = vmatmul.mubr.f32.vlgmr.msra.gmra.mrb[36].mxu1 %v32575_v7 }
 0x8b0   :  { %29400 = vmatpush3.bf16.msra.mxu1 %v32237_v5  ;;  %27138 = vmatprep.mubr.msk.f32.mxu1 %vm31142_vm8, %v31143_v33 }
 0x8b1   :  { %29401 = vmatprep.subr.bf16.mxu1 %v34252_v26 }
 0x8b4   :  { %29403 = vmatpush3.bf16.msra.mxu1 %v32252_v30 }
 0x8b5   :  { %29410 = vmatprep.subr.bf16.mxu1 %v34252_v26 }
 0x93a   :  { %v10486_v10 = vpop.f32.mrb[28].mxu1 }
 0x93b   :  { %v26920_v43 = vpop.f32.mrb[29].mxu1 }
 0x942   :  { %v10155_v39 = vpop.f32.mrb[50].mxu0  ;;  %v10640_v35 = vpop.f32.mrb[30].mxu1 }
 0x943   :  { %v26876_v59 = vpop.f32.mrb[51].mxu0  ;;  %v26942_v52 = vpop.f32.mrb[31].mxu1  ;;  %v10156_v62 = vadd.f32 %v32552_v13, %v10155_v39  ;;  %v10641_v15 = vadd.f32 %v32555_v18, %v10640_v35 }
 0x94a   :  { %v10246_v56 = vpop.f32.mrb[52].mxu0  ;;  %v10811_v8 = vpop.f32.mrb[32].mxu1 }
 0x94b   :  { %v10247_v27 = vadd.f32 %v10246_v56, %v10156_v62  ;;  %v26887_v3 = vpop.f32.mrb[53].mxu0  ;;  %v26964_v14 = vpop.f32.mrb[33].mxu1 }
 0x952   :  { %v10326_v46 = vpop.f32.mrb[54].mxu0  ;;  %v10971_v41 = vpop.f32.mrb[34].mxu1 }
 0x953   :  { %v10327_v4 = vadd.f32 %v10326_v46, %v10247_v27  ;;  %v26898_v37 = vpop.f32.mrb[55].mxu0  ;;  %v26986_v29 = vpop.f32.mrb[35].mxu1  ;;  %v11543_v27 = vld [vmem:[#allocation3 + $0x8] sm:$0xff] }
 0x95a   :  { %v10403_v20 = vpop.f32.mrb[56].mxu0 }
 0x95b   :  { %v10404_v60 = vadd.f32 %v10403_v20, %v10327_v4  ;;  %v26909_v36 = vpop.f32.mrb[57].mxu0  ;;  %v11551_v20 = vld [vmem:[#allocation4 + $0x8] sm:$0xff] }
 0x95d   :  { %v10487_v53 = vadd.f32 %v10486_v10, %v10404_v60 }
 0x962   :  { %v10561_v34 = vpop.f32.mrb[58].mxu0 }
 0x963   :  { %v10562_v19 = vadd.f32 %v10561_v34, %v10487_v53  ;;  %v26931_v25 = vpop.f32.mrb[59].mxu0 }
 0x965   :  { %v11536_v16 = vadd.f32 %v11535_v21, %v10562_v19 }
 0x967   :  { %v23922_v38 = vmul.f32 -1.442695, %v11536_v16 }
 0x969   :  { %30967 = vpow2.f32 %v23922_v38 }
 0x96a   :  { %v10731_v1 = vpop.f32.mrb[60].mxu0 }
 0x96b   :  { %v10732_v7 = vadd.f32 %v10731_v1, %v10641_v15  ;;  %v26953_v0 = vpop.f32.mrb[61].mxu0 }
 0x96d   :  { %v10812_v6 = vadd.f32 %v10811_v8, %v10732_v7 }
 0x972   :  { %v10888_v54 = vpop.f32.mrb[62].mxu0 }
 0x973   :  { %v30968_v48 = vpop.eup %30967  ;;  %v10889_v43 = vadd.f32 %v10888_v54, %v10812_v6  ;;  %v26975_v39 = vpop.f32.mrb[63].mxu0 }
 0x974   :  { %v11540_v52 = vadd.f32 1.0, %v30968_v48 }
 0x975   :  { %v10972_v59 = vadd.f32 %v10971_v41, %v10889_v43 }
 0x976   :  { %30969 = vrcp.f32 %v11540_v52 }
 0x97a   :  { %v11046_v10 = vpop.f32.mrb[64].mxu0 }
 0x97b   :  { %v11047_v62 = vadd.f32 %v11046_v10, %v10972_v59  ;;  %v26997_v56 = vpop.f32.mrb[65].mxu0 }
 0x97d   :  { %v11544_v3 = vadd.f32 %v11543_v27, %v11047_v62 }
 0x97f   :  { %v23923_v14 = vmul.f32 -1.442695, %v11544_v3 }
 0x980   :  { %v30970_v37 = vpop.eup %30969 }
 0x981   :  { %30971 = vpow2.f32 %v23923_v14 }
 0x982   :  { %v11531_v35 = vpop.f32.mrb[36].mxu1 }
 0x983   :  { %v30335_v46 = vadd.f32 %v32558_v32, %v11531_v35  ;;  %v27063_v4 = vpop.f32.mrb[37].mxu1 }
 0x985   :  { %v11552_v8 = vmul.f32 %v30970_v37, %v30335_v46 }
 0x987   :  { %v11553_v36 = vadd.f32 %v11552_v8, %v11551_v20 }
 0x98b   :  { %v30972_v29 = vpop.eup %30971 }
 0x98c   :  { %v11548_v60 = vadd.f32 1.0, %v30972_v29 }
 0x98e   :  { %30973 = vrcp.f32 %v11548_v60 }
 0x98f   :  { %30975 = vtanh.f32 %v11553_v36 }
 0x998   :  { %v30974_v41 = vpop.eup %30973 }
 0x999   :  { %v11555_v53 = vsub.f32 1.0, %v30974_v41  ;;  %v30976_v34 = vpop.eup %30975  ;;  %v11557_v19 = vmul.f32 %v30974_v41, %v32569_v24 }
 0x99b   :  { %v11556_v25 = vmul.f32 %v30976_v34, %v11555_v53 }
 0x99d   :  { %v32712_v21 = vadd.f32 %v11557_v19, %v11556_v25 }
 0x99f   :  { %11559 = vst.msk [vmem:[#allocation5 + $0x8] sm:$0xff] %vm69_vm0, %v32712_v21  ;;  %v11561_v16 = vsel %vm69_vm0, %v32712_v21, 0 }
 0x9a0   :  { %v32718_v38 = vand.u32 4294901760, %v11561_v16 }
 0x9a2   :  { %v32721_v15 = vsub.f32 %v11561_v16, %v32718_v38 }
 0x9a4   :  { %v32724_v1 = vand.u32 4294901760, %v32721_v15 }
 0x9a6   :  { %v11635_v24 = vsub.f32 %v32721_v15, %v32724_v1 }
 0x9a8   :  { %v11636_v7 = vand.u32 4294901760, %v11635_v24 }
 0x9aa   :  { %27073 = vmatmul.mubr.f32.vlgmr.msra.gmra.mrb[66].mxu0 %v11636_v7  ;;  %27139 = vmatmul.mubr.f32.vlgmr.msra.gmra.mrb[38].mxu1 %v11636_v7 }
 0x9ab   :  { %29370 = vmatpush3.bf16.msra.mxu0 %v32146_v11  ;;  %29412 = vmatpush3.bf16.msra.mxu1 %v32287_v58 }
 0x9ac   :  { %29371 = vmatprep.subr.bf16.mxu0 %v34252_v26  ;;  %29413 = vmatprep.subr.bf16.mxu1 %v34252_v26 }
 0x9ad   :  { %27083 = vmatprep.mubr.msk.f32.mxu0 %vm31142_vm8, %v31143_v33  ;;  %27160 = vmatprep.mubr.msk.f32.mxu1 %vm31142_vm8, %v31143_v33 }
 0x9af   :  { %29373 = vmatpush3.bf16.msra.mxu0 %v32152_v44  ;;  %29415 = vmatpush3.bf16.msra.mxu1 %v32296_v31 }
 0x9b0   :  { %29374 = vmatprep.subr.bf16.mxu0 %v34252_v26  ;;  %29422 = vmatprep.subr.bf16.mxu1 %v34252_v26 }
 0x9b2   :  { %27084 = vmatmul.mubr.f32.vlgmr.msra.gmra.mrb[68].mxu0 %v32718_v38  ;;  %27161 = vmatmul.mubr.f32.vlgmr.msra.gmra.mrb[40].mxu1 %v32721_v15 }
 0x9b3   :  { %29376 = vmatpush3.bf16.msra.mxu0 %v32163_v55  ;;  %29424 = vmatpush3.bf16.msra.mxu1 %v32329_v50 }
 0x9b4   :  { %29377 = vmatprep.subr.bf16.mxu0 %v34252_v26  ;;  %29425 = vmatprep.subr.bf16.mxu1 %v34252_v26 }
 0x9b5   :  { %27094 = vmatprep.mubr.msk.f32.mxu0 %vm31142_vm8, %v31143_v33  ;;  %27182 = vmatprep.mubr.msk.f32.mxu1 %vm31142_vm8, %v31143_v33 }
 0x9b7   :  { %29379 = vmatpush3.bf16.msra.mxu0 %v32172_v2  ;;  %29427 = vmatpush3.bf16.msra.mxu1 %v32346_v57 }
 0x9b8   :  { %29380 = vmatprep.subr.bf16.mxu0 %v34252_v26  ;;  %29434 = vmatprep.subr.bf16.mxu1 %v34252_v26 }
 0x9ba   :  { %27095 = vmatmul.mubr.f32.vlgmr.msra.gmra.mrb[70].mxu0 %v32721_v15  ;;  %27183 = vmatmul.mubr.f32.vlgmr.msra.gmra.mrb[42].mxu1 %v32718_v38 }
 0x9bb   :  { %29382 = vmatpush3.bf16.msra.mxu0 %v32100_v22  ;;  %29436 = vmatpush3.bf16.msra.mxu1 %v32374_v61 }
 0x9bc   :  { %29383 = vmatprep.subr.bf16.mxu0 %v34252_v26  ;;  %29437 = vmatprep.subr.bf16.mxu1 %v34252_v26 }
 0x9bd   :  { %27105 = vmatprep.mubr.msk.f32.mxu0 %vm31142_vm8, %v31143_v33  ;;  %27204 = vmatprep.mubr.msk.f32.mxu1 %vm31142_vm8, %v31143_v33 }
 0x9bf   :  { %29385 = vmatpush3.bf16.msra.mxu0 %v32114_v51  ;;  %29439 = vmatpush3.bf16.msra.mxu1 %v32389_v23 }
 0x9c0   :  { %29386 = vmatprep.subr.bf16.mxu0 %v34252_v26  ;;  %29440 = vmatprep.subr.bf16.mxu1 %v34252_v26 }
 0x9c2   :  { %27106 = vmatmul.mubr.f32.vlgmr.msra.gmra.mrb[72].mxu0 %v32724_v1  ;;  %27205 = vmatmul.mubr.f32.vlgmr.msra.gmra.mrb[44].mxu1 %v11636_v7 }
 0x9c3   :  { %29388 = vmatpush3.bf16.msra.mxu0 %v32197_v17  ;;  %29442 = vmatpush3.bf16.msra.mxu1 %v32405_v47 }
 0x9c4   :  { %29389 = vmatprep.subr.bf16.mxu0 %v34252_v26  ;;  %29443 = vmatprep.subr.bf16.mxu1 %v34252_v26 }
 0x9c5   :  { %27116 = vmatprep.mubr.msk.f32.mxu0 %vm31142_vm8, %v31143_v33  ;;  %27215 = vmatprep.mubr.msk.f32.mxu1 %vm31142_vm8, %v31143_v33 }
 0x9c7   :  { %29391 = vmatpush3.bf16.msra.mxu0 %v32208_v28  ;;  %29445 = vmatpush3.bf16.msra.mxu1 %v32414_v40 }
 0x9c8   :  { %29392 = vmatprep.subr.bf16.mxu0 %v34252_v26  ;;  %29446 = vmatprep.subr.bf16.mxu1 %v34252_v26 }
 0x9ca   :  { %27117 = vmatmul.mubr.f32.vlgmr.msra.gmra.mrb[74].mxu0 %v32718_v38  ;;  %27216 = vmatmul.mubr.f32.vlgmr.msra.gmra.mrb[44].mxu1 %v32718_v38 }
 0x9cb   :  { %29394 = vmatpush3.bf16.msra.mxu0 %v32100_v22  ;;  %29448 = vmatpush3.bf16.msra.mxu1 %v32424_v12 }
 0x9cc   :  { %29395 = vmatprep.subr.bf16.mxu0 %v34252_v26  ;;  %29449 = vmatprep.subr.bf16.mxu1 %v34252_v26 }
 0x9cd   :  { %27127 = vmatprep.mubr.msk.f32.mxu0 %vm31142_vm8, %v31143_v33  ;;  %27226 = vmatprep.mubr.msk.f32.mxu1 %vm31142_vm8, %v31143_v33 }
 0x9cf   :  { %29397 = vmatpush3.bf16.msra.mxu0 %v32114_v51  ;;  %29451 = vmatpush3.bf16.msra.mxu1 %v32433_v9 }
 0x9d0   :  { %29404 = vmatprep.subr.bf16.mxu0 %v34252_v26  ;;  %29452 = vmatprep.subr.bf16.mxu1 %v34252_v26 }
 0x9d2   :  { %27128 = vmatmul.mubr.f32.vlgmr.msra.gmra.mrb[76].mxu0 %v32718_v38  ;;  %27227 = vmatmul.mubr.f32.vlgmr.msra.gmra.mrb[44].mxu1 %v32721_v15 }
 0x9d3   :  { %29406 = vmatpush3.bf16.msra.mxu0 %v32268_v63  ;;  %29454 = vmatpush3.bf16.msra.mxu1 %v32374_v61 }
 0x9d4   :  { %29407 = vmatprep.subr.bf16.mxu0 %v34252_v26  ;;  %29455 = vmatprep.subr.bf16.mxu1 %v34252_v26 }
 0x9d5   :  { %27149 = vmatprep.mubr.msk.f32.mxu0 %vm31142_vm8, %v31143_v33  ;;  %27237 = vmatprep.mubr.msk.f32.mxu1 %vm31142_vm8, %v31143_v33 }
 0x9d7   :  { %29409 = vmatpush3.bf16.msra.mxu0 %v32275_v42  ;;  %29457 = vmatpush3.bf16.msra.mxu1 %v32389_v23 }
 0x9d8   :  { %29416 = vmatprep.subr.bf16.mxu0 %v34252_v26  ;;  %29458 = vmatprep.subr.bf16.mxu1 %v34252_v26 }
 0x9da   :  { %27150 = vmatmul.mubr.f32.vlgmr.msra.gmra.mrb[78].mxu0 %v32718_v38  ;;  %27238 = vmatmul.mubr.f32.vlgmr.msra.gmra.mrb[44].mxu1 %v32724_v1 }
 0x9db   :  { %29418 = vmatpush3.bf16.msra.mxu0 %v32237_v5  ;;  %29460 = vmatpush3.bf16.msra.mxu1 %v32457_v49 }
 0x9dc   :  { %29419 = vmatprep.subr.bf16.mxu0 %v34252_v26  ;;  %29461 = vmatprep.subr.bf16.mxu1 %v34252_v26 }
 0x9dd   :  { %27171 = vmatprep.mubr.msk.f32.mxu0 %vm31142_vm8, %v31143_v33  ;;  %27248 = vmatprep.mubr.msk.f32.mxu1 %vm31142_vm8, %v31143_v33 }
 0x9df   :  { %29421 = vmatpush3.bf16.msra.mxu0 %v32252_v30  ;;  %29463 = vmatpush3.bf16.msra.mxu1 %v32468_v45 }
 0x9e0   :  { %29428 = vmatprep.subr.bf16.mxu0 %v34252_v26  ;;  %29464 = vmatprep.subr.bf16.mxu1 %v34252_v26 }
 0x9e2   :  { %27172 = vmatmul.mubr.f32.vlgmr.msra.gmra.mrb[80].mxu0 %v32724_v1  ;;  %27249 = vmatmul.mubr.f32.vlgmr.msra.gmra.mrb[44].mxu1 %v32718_v38 }
 0x9e3   :  { %29430 = vmatpush3.bf16.msra.mxu0 %v32237_v5  ;;  %29466 = vmatpush3.bf16.msra.mxu1 %v32374_v61 }
 0x9e4   :  { %29431 = vmatprep.subr.bf16.mxu0 %v34252_v26  ;;  %29467 = vmatprep.subr.bf16.mxu1 %v34252_v26 }
 0x9e5   :  { %27193 = vmatprep.mubr.msk.f32.mxu0 %vm31142_vm8, %v31143_v33  ;;  %27259 = vmatprep.mubr.msk.f32.mxu1 %vm31142_vm8, %v31143_v33 }
 0x9e7   :  { %29433 = vmatpush3.bf16.msra.mxu0 %v32252_v30  ;;  %29469 = vmatpush3.bf16.msra.mxu1 %v32389_v23 }
 0x9e8   :  { %29470 = vmatprep.subr.bf16.mxu0 %v34252_v26  ;;  %29506 = vmatprep.subr.bf16.mxu1 %v34252_v26 }
 0x9ea   :  { %27194 = vmatmul.mubr.f32.vlgmr.msra.gmra.mrb[82].mxu0 %v32718_v38  ;;  %27260 = vmatmul.mubr.f32.vlgmr.msra.gmra.mrb[44].mxu1 %v32718_v38 }
 0x9eb   :  { %29472 = vmatpush3.bf16.msra.mxu0 %v32100_v22  ;;  %29508 = vmatpush3.bf16.msra.mxu1 %v32237_v5 }
 0x9ec   :  { %29473 = vmatprep.subr.bf16.mxu0 %v34252_v26  ;;  %29509 = vmatprep.subr.bf16.mxu1 %v34252_v26 }
 0x9ed   :  { %27270 = vmatprep.mubr.msk.f32.mxu0 %vm31142_vm8, %v31143_v33  ;;  %27336 = vmatprep.mubr.msk.f32.mxu1 %vm31142_vm8, %v31143_v33 }
 0x9ef   :  { %29475 = vmatpush3.bf16.msra.mxu0 %v32114_v51  ;;  %29511 = vmatpush3.bf16.msra.mxu1 %v32252_v30 }
 0x9f0   :  { %29476 = vmatprep.subr.bf16.mxu0 %v34252_v26  ;;  %29518 = vmatprep.subr.bf16.mxu1 %v34252_v26 }
 0xa7d   :  { %v11638_v0 = vpop.f32.mrb[66].mxu0  ;;  %v12123_v6 = vpop.f32.mrb[38].mxu1 }
 0xa7e   :  { %v27074_v54 = vpop.f32.mrb[67].mxu0  ;;  %v27140_v48 = vpop.f32.mrb[39].mxu1  ;;  %v11639_v43 = vadd.f32 %v32552_v13, %v11638_v0  ;;  %v13018_v13 = vld [vmem:[#allocation2 + $0x10] sm:$0xff]  ;;  %v12124_v19 = vadd.f32 %v32555_v18, %v12123_v6 }
 0xa85   :  { %v11729_v39 = vpop.f32.mrb[68].mxu0  ;;  %v12294_v59 = vpop.f32.mrb[40].mxu1 }
 0xa86   :  { %v11730_v52 = vadd.f32 %v11729_v39, %v11639_v43  ;;  %v27085_v10 = vpop.f32.mrb[69].mxu0  ;;  %v27162_v62 = vpop.f32.mrb[41].mxu1 }
 0xa8d   :  { %v11809_v56 = vpop.f32.mrb[70].mxu0  ;;  %v12454_v27 = vpop.f32.mrb[42].mxu1 }
 0xa8e   :  { %v11810_v3 = vadd.f32 %v11809_v56, %v11730_v52  ;;  %v27096_v14 = vpop.f32.mrb[71].mxu0  ;;  %v27184_v35 = vpop.f32.mrb[43].mxu1  ;;  %v13026_v56 = vld [vmem:[#allocation3 + $0x10] sm:$0xff] }
 0xa95   :  { %v11886_v46 = vpop.f32.mrb[72].mxu0 }
 0xa96   :  { %v11887_v4 = vadd.f32 %v11886_v46, %v11810_v3  ;;  %v27107_v37 = vpop.f32.mrb[73].mxu0  ;;  %v13034_v46 = vld [vmem:[#allocation4 + $0x10] sm:$0xff] }
 0xa9d   :  { %v11969_v8 = vpop.f32.mrb[74].mxu0 }
 0xa9e   :  { %v11970_v29 = vadd.f32 %v11969_v8, %v11887_v4  ;;  %v27118_v20 = vpop.f32.mrb[75].mxu0 }
 0xaa5   :  { %v12044_v60 = vpop.f32.mrb[76].mxu0 }
 0xaa6   :  { %v12045_v36 = vadd.f32 %v12044_v60, %v11970_v29  ;;  %v27129_v41 = vpop.f32.mrb[77].mxu0 }
 0xaa8   :  { %v13019_v53 = vadd.f32 %v13018_v13, %v12045_v36 }
 0xaaa   :  { %v23924_v34 = vmul.f32 -1.442695, %v13019_v53 }
 0xaac   :  { %30977 = vpow2.f32 %v23924_v34 }
 0xaad   :  { %v12214_v25 = vpop.f32.mrb[78].mxu0 }
 0xaae   :  { %v12215_v16 = vadd.f32 %v12214_v25, %v12124_v19  ;;  %v27151_v38 = vpop.f32.mrb[79].mxu0 }
 0xab0   :  { %v12295_v15 = vadd.f32 %v12294_v59, %v12215_v16 }
 0xab5   :  { %v12371_v1 = vpop.f32.mrb[80].mxu0 }
 0xab6   :  { %v30978_v24 = vpop.eup %30977  ;;  %v12372_v7 = vadd.f32 %v12371_v1, %v12295_v15  ;;  %v27173_v0 = vpop.f32.mrb[81].mxu0  ;;  %v32994_v15 = vld [vmem:[#allocation10 + $0x110] ss:$0 sm:$0xff] }
 0xab7   :  { %v13023_v54 = vadd.f32 1.0, %v30978_v24 }
 0xab8   :  { %v12455_v48 = vadd.f32 %v12454_v27, %v12372_v7 }
 0xab9   :  { %30979 = vrcp.f32 %v13023_v54 }
 0xabd   :  { %v12529_v43 = vpop.f32.mrb[82].mxu0  ;;  %v13014_v39 = vpop.f32.mrb[44].mxu1 }
 0xabe   :  { %v12530_v52 = vadd.f32 %v12529_v43, %v12455_v48  ;;  %v27195_v10 = vpop.f32.mrb[83].mxu0  ;;  %v27261_v62 = vpop.f32.mrb[45].mxu1  ;;  %v30336_v6 = vadd.f32 %v32558_v32, %v13014_v39 }
 0xac0   :  { %v13027_v3 = vadd.f32 %v13026_v56, %v12530_v52 }
 0xac2   :  { %v23925_v18 = vmul.f32 -1.442695, %v13027_v3 }
 0xac3   :  { %v30980_v14 = vpop.eup %30979 }
 0xac4   :  { %30981 = vpow2.f32 %v23925_v18  ;;  %v13035_v59 = vmul.f32 %v30980_v14, %v30336_v6 }
 0xac6   :  { %v13036_v37 = vadd.f32 %v13035_v59, %v13034_v46 }
 0xace   :  { %v30982_v35 = vpop.eup %30981 }
 0xacf   :  { %v13031_v4 = vadd.f32 1.0, %v30982_v35 }
 0xad1   :  { %30983 = vrcp.f32 %v13031_v4 }
 0xad2   :  { %30985 = vtanh.f32 %v13036_v37  ;;  %v14501_v37 = vld [vmem:[#allocation2 + $0x18] sm:$0xff] }
 0xadb   :  { %v30984_v27 = vpop.eup %30983 }
 0xadc   :  { %v13038_v8 = vsub.f32 1.0, %v30984_v27  ;;  %v30986_v29 = vpop.eup %30985  ;;  %v13040_v20 = vmul.f32 %v30984_v27, %v32712_v21 }
 0xade   :  { %v13039_v60 = vmul.f32 %v30986_v29, %v13038_v8  ;;  %v32997_v29 = vld [vmem:[#allocation10 + $0x158] ss:$0 sm:$0xff] }
 0xae0   :  { %v32855_v36 = vadd.f32 %v13040_v20, %v13039_v60 }
 0xae2   :  { %13042 = vst.msk [vmem:[#allocation5 + $0x10] sm:$0xff] %vm69_vm0, %v32855_v36  ;;  %v13044_v32 = vsel %vm69_vm0, %v32855_v36, 0 }
 0xae3   :  { %v32861_v41 = vand.u32 4294901760, %v13044_v32 }
 0xae5   :  { %v32864_v13 = vsub.f32 %v13044_v32, %v32861_v41 }
 0xae7   :  { %v32867_v53 = vand.u32 4294901760, %v32864_v13 }
 0xae9   :  { %v13118_v21 = vsub.f32 %v32864_v13, %v32867_v53 }
 0xaeb   :  { %v13119_v34 = vand.u32 4294901760, %v13118_v21 }
 0xaed   :  { %27271 = vmatmul.mubr.f32.vlgmr.msra.gmra.mrb[84].mxu0 %v13119_v34  ;;  %27337 = vmatmul.mubr.f32.vlgmr.msra.gmra.mrb[46].mxu1 %v13119_v34 }
 0xaee   :  { %29478 = vmatpush3.bf16.msra.mxu0 %v32146_v11  ;;  %29520 = vmatpush3.bf16.msra.mxu1 %v32287_v58 }
 0xaef   :  { %29479 = vmatprep.subr.bf16.mxu0 %v34252_v26  ;;  %29521 = vmatprep.subr.bf16.mxu1 %v34252_v26 }
 0xaf0   :  { %27281 = vmatprep.mubr.msk.f32.mxu0 %vm31142_vm8, %v31143_v33  ;;  %27358 = vmatprep.mubr.msk.f32.mxu1 %vm31142_vm8, %v31143_v33 }
 0xaf2   :  { %29481 = vmatpush3.bf16.msra.mxu0 %v32152_v44  ;;  %29523 = vmatpush3.bf16.msra.mxu1 %v32296_v31 }
 0xaf3   :  { %29482 = vmatprep.subr.bf16.mxu0 %v34252_v26  ;;  %29530 = vmatprep.subr.bf16.mxu1 %v34252_v26 }
 0xaf5   :  { %27282 = vmatmul.mubr.f32.vlgmr.msra.gmra.mrb[86].mxu0 %v32861_v41  ;;  %27359 = vmatmul.mubr.f32.vlgmr.msra.gmra.mrb[48].mxu1 %v32864_v13 }
 0xaf6   :  { %29484 = vmatpush3.bf16.msra.mxu0 %v32163_v55  ;;  %29532 = vmatpush3.bf16.msra.mxu1 %v32329_v50 }
 0xaf7   :  { %29485 = vmatprep.subr.bf16.mxu0 %v34252_v26  ;;  %29533 = vmatprep.subr.bf16.mxu1 %v34252_v26 }
 0xaf8   :  { %27292 = vmatprep.mubr.msk.f32.mxu0 %vm31142_vm8, %v31143_v33  ;;  %27380 = vmatprep.mubr.msk.f32.mxu1 %vm31142_vm8, %v31143_v33 }
 0xafa   :  { %29487 = vmatpush3.bf16.msra.mxu0 %v32172_v2  ;;  %29535 = vmatpush3.bf16.msra.mxu1 %v32346_v57 }
 0xafb   :  { %29488 = vmatprep.subr.bf16.mxu0 %v34252_v26  ;;  %29542 = vmatprep.subr.bf16.mxu1 %v34252_v26 }
 0xafd   :  { %27293 = vmatmul.mubr.f32.vlgmr.msra.gmra.mrb[88].mxu0 %v32864_v13  ;;  %27381 = vmatmul.mubr.f32.vlgmr.msra.gmra.mrb[50].mxu1 %v32861_v41 }
 0xafe   :  { %29490 = vmatpush3.bf16.msra.mxu0 %v32100_v22  ;;  %29544 = vmatpush3.bf16.msra.mxu1 %v32374_v61 }
 0xaff   :  { %29491 = vmatprep.subr.bf16.mxu0 %v34252_v26  ;;  %29545 = vmatprep.subr.bf16.mxu1 %v34252_v26 }
 0xb00   :  { %27303 = vmatprep.mubr.msk.f32.mxu0 %vm31142_vm8, %v31143_v33  ;;  %27402 = vmatprep.mubr.msk.f32.mxu1 %vm31142_vm8, %v31143_v33 }
 0xb02   :  { %29493 = vmatpush3.bf16.msra.mxu0 %v32114_v51  ;;  %29547 = vmatpush3.bf16.msra.mxu1 %v32389_v23 }
 0xb03   :  { %29494 = vmatprep.subr.bf16.mxu0 %v34252_v26  ;;  %29548 = vmatprep.subr.bf16.mxu1 %v34252_v26 }
 0xb05   :  { %27304 = vmatmul.mubr.f32.vlgmr.msra.gmra.mrb[90].mxu0 %v32867_v53  ;;  %27403 = vmatmul.mubr.f32.vlgmr.msra.gmra.mrb[52].mxu1 %v13119_v34 }
 0xb06   :  { %29496 = vmatpush3.bf16.msra.mxu0 %v32197_v17  ;;  %29550 = vmatpush3.bf16.msra.mxu1 %v32405_v47 }
 0xb07   :  { %29497 = vmatprep.subr.bf16.mxu0 %v34252_v26  ;;  %29551 = vmatprep.subr.bf16.mxu1 %v34252_v26 }
 0xb08   :  { %27314 = vmatprep.mubr.msk.f32.mxu0 %vm31142_vm8, %v31143_v33  ;;  %27413 = vmatprep.mubr.msk.f32.mxu1 %vm31142_vm8, %v31143_v33 }
 0xb0a   :  { %29499 = vmatpush3.bf16.msra.mxu0 %v32208_v28  ;;  %29553 = vmatpush3.bf16.msra.mxu1 %v32414_v40 }
 0xb0b   :  { %29500 = vmatprep.subr.bf16.mxu0 %v34252_v26  ;;  %29554 = vmatprep.subr.bf16.mxu1 %v34252_v26 }
 0xb0d   :  { %27315 = vmatmul.mubr.f32.vlgmr.msra.gmra.mrb[92].mxu0 %v32861_v41  ;;  %27414 = vmatmul.mubr.f32.vlgmr.msra.gmra.mrb[52].mxu1 %v32861_v41 }
 0xb0e   :  { %29502 = vmatpush3.bf16.msra.mxu0 %v32100_v22  ;;  %29556 = vmatpush3.bf16.msra.mxu1 %v32424_v12 }
 0xb0f   :  { %29503 = vmatprep.subr.bf16.mxu0 %v34252_v26  ;;  %29557 = vmatprep.subr.bf16.mxu1 %v34252_v26 }
 0xb10   :  { %27325 = vmatprep.mubr.msk.f32.mxu0 %vm31142_vm8, %v31143_v33  ;;  %27424 = vmatprep.mubr.msk.f32.mxu1 %vm31142_vm8, %v31143_v33 }
 0xb12   :  { %29505 = vmatpush3.bf16.msra.mxu0 %v32114_v51  ;;  %29559 = vmatpush3.bf16.msra.mxu1 %v32433_v9 }
 0xb13   :  { %29512 = vmatprep.subr.bf16.mxu0 %v34252_v26  ;;  %29560 = vmatprep.subr.bf16.mxu1 %v34252_v26 }
 0xb15   :  { %27326 = vmatmul.mubr.f32.vlgmr.msra.gmra.mrb[94].mxu0 %v32861_v41  ;;  %27425 = vmatmul.mubr.f32.vlgmr.msra.gmra.mrb[52].mxu1 %v32864_v13 }
 0xb16   :  { %29514 = vmatpush3.bf16.msra.mxu0 %v32268_v63  ;;  %29562 = vmatpush3.bf16.msra.mxu1 %v32374_v61 }
 0xb17   :  { %29515 = vmatprep.subr.bf16.mxu0 %v34252_v26  ;;  %29563 = vmatprep.subr.bf16.mxu1 %v34252_v26 }
 0xb18   :  { %27347 = vmatprep.mubr.msk.f32.mxu0 %vm31142_vm8, %v31143_v33  ;;  %27435 = vmatprep.mubr.msk.f32.mxu1 %vm31142_vm8, %v31143_v33 }
 0xb1a   :  { %29517 = vmatpush3.bf16.msra.mxu0 %v32275_v42  ;;  %29565 = vmatpush3.bf16.msra.mxu1 %v32389_v23 }
 0xb1b   :  { %29524 = vmatprep.subr.bf16.mxu0 %v34252_v26  ;;  %29566 = vmatprep.subr.bf16.mxu1 %v34252_v26 }
 0xb1d   :  { %27348 = vmatmul.mubr.f32.vlgmr.msra.gmra.mrb[96].mxu0 %v32861_v41  ;;  %27436 = vmatmul.mubr.f32.vlgmr.msra.gmra.mrb[52].mxu1 %v32867_v53 }
 0xb1e   :  { %29526 = vmatpush3.bf16.msra.mxu0 %v32237_v5  ;;  %29568 = vmatpush3.bf16.msra.mxu1 %v32457_v49 }
 0xb1f   :  { %29527 = vmatprep.subr.bf16.mxu0 %v34252_v26  ;;  %29569 = vmatprep.subr.bf16.mxu1 %v34252_v26 }
 0xb20   :  { %27369 = vmatprep.mubr.msk.f32.mxu0 %vm31142_vm8, %v31143_v33  ;;  %27446 = vmatprep.mubr.msk.f32.mxu1 %vm31142_vm8, %v31143_v33 }
 0xb22   :  { %29529 = vmatpush3.bf16.msra.mxu0 %v32252_v30  ;;  %29571 = vmatpush3.bf16.msra.mxu1 %v32468_v45 }
 0xb23   :  { %29536 = vmatprep.subr.bf16.mxu0 %v34252_v26  ;;  %29572 = vmatprep.subr.bf16.mxu1 %v34252_v26 }
 0xb25   :  { %27370 = vmatmul.mubr.f32.vlgmr.msra.gmra.mrb[98].mxu0 %v32867_v53  ;;  %27447 = vmatmul.mubr.f32.vlgmr.msra.gmra.mrb[52].mxu1 %v32861_v41 }
 0xb26   :  { %29538 = vmatpush3.bf16.msra.mxu0 %v32237_v5  ;;  %29574 = vmatpush3.bf16.msra.mxu1 %v32374_v61 }
 0xb27   :  { %29539 = vmatprep.subr.bf16.mxu0 %v34252_v26  ;;  %29575 = vmatprep.subr.bf16.mxu1 %v34252_v26 }
 0xb28   :  { %27391 = vmatprep.mubr.msk.f32.mxu0 %vm31142_vm8, %v31143_v33  ;;  %27457 = vmatprep.mubr.msk.f32.mxu1 %vm31142_vm8, %v31143_v33 }
 0xb2a   :  { %29541 = vmatpush3.bf16.msra.mxu0 %v32252_v30  ;;  %29577 = vmatpush3.bf16.msra.mxu1 %v32389_v23 }
 0xb2b   :  { %29578 = vmatprep.subr.bf16.mxu0 %v34252_v26  ;;  %29614 = vmatprep.subr.bf16.mxu1 %v34252_v26 }
 0xb2d   :  { %27392 = vmatmul.mubr.f32.vlgmr.msra.gmra.mrb[100].mxu0 %v32861_v41  ;;  %27458 = vmatmul.mubr.f32.vlgmr.msra.gmra.mrb[52].mxu1 %v32861_v41 }
 0xb2e   :  { %29580 = vmatpush3.bf16.msra.mxu0 %v32100_v22  ;;  %29616 = vmatpush3.bf16.msra.mxu1 %v32237_v5 }
 0xb2f   :  { %29581 = vmatprep.subr.bf16.mxu0 %v34252_v26  ;;  %29617 = vmatprep.subr.bf16.mxu1 %v34252_v26 }
 0xb30   :  { %27468 = vmatprep.mubr.msk.f32.mxu0 %vm31142_vm8, %v31143_v33  ;;  %27534 = vmatprep.mubr.msk.f32.mxu1 %vm31142_vm8, %v31143_v33 }
 0xb32   :  { %29583 = vmatpush3.bf16.msra.mxu0 %v32114_v51  ;;  %29619 = vmatpush3.bf16.msra.mxu1 %v32252_v30 }
 0xb33   :  { %29584 = vmatprep.subr.bf16.mxu0 %v34252_v26  ;;  %29626 = vmatprep.subr.bf16.mxu1 %v34252_v26 }
 0xbc0   :  { %v13121_v19 = vpop.f32.mrb[84].mxu0  ;;  %v13606_v25 = vpop.f32.mrb[46].mxu1 }
 0xbc1   :  { %v27272_v16 = vpop.f32.mrb[85].mxu0  ;;  %v27338_v38 = vpop.f32.mrb[47].mxu1  ;;  %v13122_v1 = vadd.f32 %v32994_v15, %v13121_v19  ;;  %v13607_v20 = vadd.f32 %v32997_v29, %v13606_v25 }
 0xbc8   :  { %v13212_v24 = vpop.f32.mrb[86].mxu0  ;;  %v13777_v7 = vpop.f32.mrb[48].mxu1 }
 0xbc9   :  { %v13213_v0 = vadd.f32 %v13212_v24, %v13122_v1  ;;  %v27283_v54 = vpop.f32.mrb[87].mxu0  ;;  %v27360_v48 = vpop.f32.mrb[49].mxu1 }
 0xbd0   :  { %v13292_v43 = vpop.f32.mrb[88].mxu0  ;;  %v13937_v39 = vpop.f32.mrb[50].mxu1 }
 0xbd1   :  { %v13293_v52 = vadd.f32 %v13292_v43, %v13213_v0  ;;  %v27294_v10 = vpop.f32.mrb[89].mxu0  ;;  %v27382_v62 = vpop.f32.mrb[51].mxu1  ;;  %v14509_v43 = vld [vmem:[#allocation3 + $0x18] sm:$0xff] }
 0xbd2   :  { %v33000_v10 = vld [vmem:[#allocation10 + $0x1a0] ss:$0 sm:$0xff] }
 0xbd8   :  { %v13369_v56 = vpop.f32.mrb[90].mxu0 }
 0xbd9   :  { %v13370_v3 = vadd.f32 %v13369_v56, %v13293_v52  ;;  %v27305_v18 = vpop.f32.mrb[91].mxu0 }
 0xbda   :  { %v14517_v18 = vld [vmem:[#allocation4 + $0x18] sm:$0xff] }
 0xbe0   :  { %v13452_v6 = vpop.f32.mrb[92].mxu0 }
 0xbe1   :  { %v13453_v14 = vadd.f32 %v13452_v6, %v13370_v3  ;;  %v27316_v59 = vpop.f32.mrb[93].mxu0 }
 0xbe8   :  { %v13527_v35 = vpop.f32.mrb[94].mxu0 }
 0xbe9   :  { %v13528_v46 = vadd.f32 %v13527_v35, %v13453_v14  ;;  %v27327_v4 = vpop.f32.mrb[95].mxu0 }
 0xbeb   :  { %v14502_v27 = vadd.f32 %v14501_v37, %v13528_v46 }
 0xbed   :  { %v23926_v8 = vmul.f32 -1.442695, %v14502_v27 }
 0xbef   :  { %30987 = vpow2.f32 %v23926_v8 }
 0xbf0   :  { %v13697_v60 = vpop.f32.mrb[96].mxu0 }
 0xbf1   :  { %v13698_v32 = vadd.f32 %v13697_v60, %v13607_v20  ;;  %v27349_v41 = vpop.f32.mrb[97].mxu0 }
 0xbf3   :  { %v13778_v13 = vadd.f32 %v13777_v7, %v13698_v32 }
 0xbf8   :  { %v13854_v53 = vpop.f32.mrb[98].mxu0 }
 0xbf9   :  { %v30988_v21 = vpop.eup %30987  ;;  %v13855_v34 = vadd.f32 %v13854_v53, %v13778_v13  ;;  %v27371_v19 = vpop.f32.mrb[99].mxu0 }
 0xbfa   :  { %v14506_v16 = vadd.f32 1.0, %v30988_v21 }
 0xbfb   :  { %v13938_v38 = vadd.f32 %v13937_v39, %v13855_v34 }
 0xbfc   :  { %30989 = vrcp.f32 %v14506_v16 }
 0xc00   :  { %v14012_v1 = vpop.f32.mrb[100].mxu0  ;;  %v14497_v24 = vpop.f32.mrb[52].mxu1 }
 0xc01   :  { %v14013_v0 = vadd.f32 %v14012_v1, %v13938_v38  ;;  %v27393_v54 = vpop.f32.mrb[101].mxu0  ;;  %v27459_v48 = vpop.f32.mrb[53].mxu1  ;;  %v30337_v62 = vadd.f32 %v33000_v10, %v14497_v24 }
 0xc03   :  { %v14510_v52 = vadd.f32 %v14509_v43, %v14013_v0 }
 0xc05   :  { %v23927_v25 = vmul.f32 -1.442695, %v14510_v52 }
 0xc06   :  { %v30990_v7 = vpop.eup %30989 }
 0xc07   :  { %30991 = vpow2.f32 %v23927_v25  ;;  %v14518_v56 = vmul.f32 %v30990_v7, %v30337_v62 }
 0xc09   :  { %v14519_v39 = vadd.f32 %v14518_v56, %v14517_v18 }
 0xc11   :  { %v30992_v3 = vpop.eup %30991 }
 0xc12   :  { %v14514_v6 = vadd.f32 1.0, %v30992_v3 }
 0xc14   :  { %30993 = vrcp.f32 %v14514_v6 }
 0xc15   :  { %30995 = vtanh.f32 %v14519_v39 }
 0xc1e   :  { %v30994_v14 = vpop.eup %30993 }
 0xc1f   :  { %v14521_v59 = vsub.f32 1.0, %v30994_v14  ;;  %v30996_v35 = vpop.eup %30995  ;;  %v14523_v46 = vmul.f32 %v30994_v14, %v32855_v36 }
 0xc21   :  { %v14522_v4 = vmul.f32 %v30996_v35, %v14521_v59  ;;  %v15984_v59 = vld [vmem:[#allocation2 + $0x20] sm:$0xff] }
 0xc23   :  { %v33004_v37 = vadd.f32 %v14523_v46, %v14522_v4 }
 0xc25   :  { %14525 = vst.msk [vmem:[#allocation5 + $0x18] sm:$0xff] %vm69_vm0, %v33004_v37  ;;  %v14527_v27 = vsel %vm69_vm0, %v33004_v37, 0 }
 0xc26   :  { %v33010_v8 = vand.u32 4294901760, %v14527_v27 }
 0xc28   :  { %v33013_v20 = vsub.f32 %v14527_v27, %v33010_v8 }
 0xc2a   :  { %v33016_v60 = vand.u32 4294901760, %v33013_v20 }
 0xc2c   :  { %v14601_v36 = vsub.f32 %v33013_v20, %v33016_v60 }
 0xc2e   :  { %v14602_v32 = vand.u32 4294901760, %v14601_v36 }
 0xc30   :  { %27469 = vmatmul.mubr.f32.vlgmr.msra.gmra.mrb[102].mxu0 %v14602_v32  ;;  %27535 = vmatmul.mubr.f32.vlgmr.msra.gmra.mrb[54].mxu1 %v14602_v32 }
 0xc31   :  { %29586 = vmatpush3.bf16.msra.mxu0 %v32146_v11  ;;  %29628 = vmatpush3.bf16.msra.mxu1 %v32287_v58 }
 0xc32   :  { %29587 = vmatprep.subr.bf16.mxu0 %v34252_v26  ;;  %29629 = vmatprep.subr.bf16.mxu1 %v34252_v26 }
 0xc33   :  { %27479 = vmatprep.mubr.msk.f32.mxu0 %vm31142_vm8, %v31143_v33  ;;  %27556 = vmatprep.mubr.msk.f32.mxu1 %vm31142_vm8, %v31143_v33 }
 0xc35   :  { %29589 = vmatpush3.bf16.msra.mxu0 %v32152_v44  ;;  %29631 = vmatpush3.bf16.msra.mxu1 %v32296_v31 }
 0xc36   :  { %29590 = vmatprep.subr.bf16.mxu0 %v34252_v26  ;;  %29638 = vmatprep.subr.bf16.mxu1 %v34252_v26 }
 0xc38   :  { %27480 = vmatmul.mubr.f32.vlgmr.msra.gmra.mrb[104].mxu0 %v33010_v8  ;;  %27557 = vmatmul.mubr.f32.vlgmr.msra.gmra.mrb[56].mxu1 %v33013_v20 }
 0xc39   :  { %29592 = vmatpush3.bf16.msra.mxu0 %v32163_v55  ;;  %29640 = vmatpush3.bf16.msra.mxu1 %v32329_v50 }
 0xc3a   :  { %29593 = vmatprep.subr.bf16.mxu0 %v34252_v26  ;;  %29641 = vmatprep.subr.bf16.mxu1 %v34252_v26 }
 0xc3b   :  { %27490 = vmatprep.mubr.msk.f32.mxu0 %vm31142_vm8, %v31143_v33  ;;  %27578 = vmatprep.mubr.msk.f32.mxu1 %vm31142_vm8, %v31143_v33 }
 0xc3d   :  { %29595 = vmatpush3.bf16.msra.mxu0 %v32172_v2  ;;  %29643 = vmatpush3.bf16.msra.mxu1 %v32346_v57 }
 0xc3e   :  { %29596 = vmatprep.subr.bf16.mxu0 %v34252_v26  ;;  %29650 = vmatprep.subr.bf16.mxu1 %v34252_v26 }
 0xc40   :  { %27491 = vmatmul.mubr.f32.vlgmr.msra.gmra.mrb[106].mxu0 %v33013_v20  ;;  %27579 = vmatmul.mubr.f32.vlgmr.msra.gmra.mrb[58].mxu1 %v33010_v8 }
 0xc41   :  { %29598 = vmatpush3.bf16.msra.mxu0 %v32100_v22  ;;  %29652 = vmatpush3.bf16.msra.mxu1 %v32374_v61 }
 0xc42   :  { %29599 = vmatprep.subr.bf16.mxu0 %v34252_v26  ;;  %29653 = vmatprep.subr.bf16.mxu1 %v34252_v26 }
 0xc43   :  { %27501 = vmatprep.mubr.msk.f32.mxu0 %vm31142_vm8, %v31143_v33  ;;  %27600 = vmatprep.mubr.msk.f32.mxu1 %vm31142_vm8, %v31143_v33 }
 0xc45   :  { %29601 = vmatpush3.bf16.msra.mxu0 %v32114_v51  ;;  %29655 = vmatpush3.bf16.msra.mxu1 %v32389_v23 }
 0xc46   :  { %29602 = vmatprep.subr.bf16.mxu0 %v34252_v26  ;;  %29656 = vmatprep.subr.bf16.mxu1 %v34252_v26 }
 0xc48   :  { %27502 = vmatmul.mubr.f32.vlgmr.msra.gmra.mrb[108].mxu0 %v33016_v60  ;;  %27601 = vmatmul.mubr.f32.vlgmr.msra.gmra.mrb[60].mxu1 %v14602_v32 }
 0xc49   :  { %29604 = vmatpush3.bf16.msra.mxu0 %v32197_v17  ;;  %29658 = vmatpush3.bf16.msra.mxu1 %v32405_v47 }
 0xc4a   :  { %29605 = vmatprep.subr.bf16.mxu0 %v34252_v26  ;;  %29659 = vmatprep.subr.bf16.mxu1 %v34252_v26 }
 0xc4b   :  { %27512 = vmatprep.mubr.msk.f32.mxu0 %vm31142_vm8, %v31143_v33  ;;  %27611 = vmatprep.mubr.msk.f32.mxu1 %vm31142_vm8, %v31143_v33 }
 0xc4d   :  { %29607 = vmatpush3.bf16.msra.mxu0 %v32208_v28  ;;  %29661 = vmatpush3.bf16.msra.mxu1 %v32414_v40 }
 0xc4e   :  { %29608 = vmatprep.subr.bf16.mxu0 %v34252_v26  ;;  %29662 = vmatprep.subr.bf16.mxu1 %v34252_v26 }
 0xc50   :  { %27513 = vmatmul.mubr.f32.vlgmr.msra.gmra.mrb[110].mxu0 %v33010_v8  ;;  %27612 = vmatmul.mubr.f32.vlgmr.msra.gmra.mrb[60].mxu1 %v33010_v8 }
 0xc51   :  { %29610 = vmatpush3.bf16.msra.mxu0 %v32100_v22  ;;  %29664 = vmatpush3.bf16.msra.mxu1 %v32424_v12 }
 0xc52   :  { %29611 = vmatprep.subr.bf16.mxu0 %v34252_v26  ;;  %29665 = vmatprep.subr.bf16.mxu1 %v34252_v26 }
 0xc53   :  { %27523 = vmatprep.mubr.msk.f32.mxu0 %vm31142_vm8, %v31143_v33  ;;  %27622 = vmatprep.mubr.msk.f32.mxu1 %vm31142_vm8, %v31143_v33 }
 0xc55   :  { %29613 = vmatpush3.bf16.msra.mxu0 %v32114_v51  ;;  %29667 = vmatpush3.bf16.msra.mxu1 %v32433_v9 }
 0xc56   :  { %29620 = vmatprep.subr.bf16.mxu0 %v34252_v26  ;;  %29668 = vmatprep.subr.bf16.mxu1 %v34252_v26 }
 0xc58   :  { %27524 = vmatmul.mubr.f32.vlgmr.msra.gmra.mrb[112].mxu0 %v33010_v8  ;;  %27623 = vmatmul.mubr.f32.vlgmr.msra.gmra.mrb[60].mxu1 %v33013_v20 }
 0xc59   :  { %29622 = vmatpush3.bf16.msra.mxu0 %v32268_v63  ;;  %29670 = vmatpush3.bf16.msra.mxu1 %v32374_v61 }
 0xc5a   :  { %29623 = vmatprep.subr.bf16.mxu0 %v34252_v26  ;;  %29671 = vmatprep.subr.bf16.mxu1 %v34252_v26 }
 0xc5b   :  { %27545 = vmatprep.mubr.msk.f32.mxu0 %vm31142_vm8, %v31143_v33  ;;  %27633 = vmatprep.mubr.msk.f32.mxu1 %vm31142_vm8, %v31143_v33 }
 0xc5d   :  { %29625 = vmatpush3.bf16.msra.mxu0 %v32275_v42  ;;  %29673 = vmatpush3.bf16.msra.mxu1 %v32389_v23 }
 0xc5e   :  { %29632 = vmatprep.subr.bf16.mxu0 %v34252_v26  ;;  %29674 = vmatprep.subr.bf16.mxu1 %v34252_v26 }
 0xc60   :  { %27546 = vmatmul.mubr.f32.vlgmr.msra.gmra.mrb[114].mxu0 %v33010_v8  ;;  %27634 = vmatmul.mubr.f32.vlgmr.msra.gmra.mrb[60].mxu1 %v33016_v60 }
 0xc61   :  { %29634 = vmatpush3.bf16.msra.mxu0 %v32237_v5  ;;  %29676 = vmatpush3.bf16.msra.mxu1 %v32457_v49 }
 0xc62   :  { %29635 = vmatprep.subr.bf16.mxu0 %v34252_v26  ;;  %29677 = vmatprep.subr.bf16.mxu1 %v34252_v26 }
 0xc63   :  { %27567 = vmatprep.mubr.msk.f32.mxu0 %vm31142_vm8, %v31143_v33  ;;  %27644 = vmatprep.mubr.msk.f32.mxu1 %vm31142_vm8, %v31143_v33 }
 0xc65   :  { %29637 = vmatpush3.bf16.msra.mxu0 %v32252_v30  ;;  %29679 = vmatpush3.bf16.msra.mxu1 %v32468_v45 }
 0xc66   :  { %29644 = vmatprep.subr.bf16.mxu0 %v34252_v26  ;;  %29680 = vmatprep.subr.bf16.mxu1 %v34252_v26 }
 0xc68   :  { %27568 = vmatmul.mubr.f32.vlgmr.msra.gmra.mrb[116].mxu0 %v33016_v60  ;;  %27645 = vmatmul.mubr.f32.vlgmr.msra.gmra.mrb[60].mxu1 %v33010_v8 }
 0xc69   :  { %29646 = vmatpush3.bf16.msra.mxu0 %v32237_v5  ;;  %29682 = vmatpush3.bf16.msra.mxu1 %v32374_v61 }
 0xc6a   :  { %29647 = vmatprep.subr.bf16.mxu0 %v34252_v26  ;;  %29683 = vmatprep.subr.bf16.mxu1 %v34252_v26 }
 0xc6b   :  { %27589 = vmatprep.mubr.msk.f32.mxu0 %vm31142_vm8, %v31143_v33  ;;  %27655 = vmatprep.mubr.msk.f32.mxu1 %vm31142_vm8, %v31143_v33 }
 0xc6d   :  { %29649 = vmatpush3.bf16.msra.mxu0 %v32252_v30  ;;  %29685 = vmatpush3.bf16.msra.mxu1 %v32389_v23 }
 0xc6e   :  { %29686 = vmatprep.subr.bf16.mxu0 %v34252_v26  ;;  %29722 = vmatprep.subr.bf16.mxu1 %v34252_v26 }
 0xc70   :  { %27590 = vmatmul.mubr.f32.vlgmr.msra.gmra.mrb[118].mxu0 %v33010_v8  ;;  %27656 = vmatmul.mubr.f32.vlgmr.msra.gmra.mrb[60].mxu1 %v33010_v8 }
 0xc71   :  { %29688 = vmatpush3.bf16.msra.mxu0 %v32100_v22  ;;  %29724 = vmatpush3.bf16.msra.mxu1 %v32237_v5 }
 0xc72   :  { %29689 = vmatprep.subr.bf16.mxu0 %v34252_v26  ;;  %29725 = vmatprep.subr.bf16.mxu1 %v34252_v26 }
 0xc73   :  { %27666 = vmatprep.mubr.msk.f32.mxu0 %vm31142_vm8, %v31143_v33  ;;  %27732 = vmatprep.mubr.msk.f32.mxu1 %vm31142_vm8, %v31143_v33 }
 0xc75   :  { %29691 = vmatpush3.bf16.msra.mxu0 %v32114_v51  ;;  %29727 = vmatpush3.bf16.msra.mxu1 %v32252_v30 }
 0xc76   :  { %29692 = vmatprep.subr.bf16.mxu0 %v34252_v26  ;;  %29734 = vmatprep.subr.bf16.mxu1 %v34252_v26 }
 0xd03   :  { %v14604_v41 = vpop.f32.mrb[102].mxu0  ;;  %v15089_v13 = vpop.f32.mrb[54].mxu1 }
 0xd04   :  { %v27470_v53 = vpop.f32.mrb[103].mxu0  ;;  %v27536_v21 = vpop.f32.mrb[55].mxu1  ;;  %v14605_v34 = vadd.f32 %v32994_v15, %v14604_v41  ;;  %v15090_v4 = vadd.f32 %v32997_v29, %v15089_v13 }
 0xd0b   :  { %v14695_v19 = vpop.f32.mrb[104].mxu0  ;;  %v15260_v16 = vpop.f32.mrb[56].mxu1 }
 0xd0c   :  { %v14696_v38 = vadd.f32 %v14695_v19, %v14605_v34  ;;  %v27481_v1 = vpop.f32.mrb[105].mxu0  ;;  %v27558_v24 = vpop.f32.mrb[57].mxu1 }
 0xd13   :  { %v14775_v0 = vpop.f32.mrb[106].mxu0  ;;  %v15420_v54 = vpop.f32.mrb[58].mxu1 }
 0xd14   :  { %v14776_v48 = vadd.f32 %v14775_v0, %v14696_v38  ;;  %v27492_v43 = vpop.f32.mrb[107].mxu0  ;;  %v27580_v52 = vpop.f32.mrb[59].mxu1 }
 0xd1b   :  { %v14852_v25 = vpop.f32.mrb[108].mxu0 }
 0xd1c   :  { %v14853_v62 = vadd.f32 %v14852_v25, %v14776_v48  ;;  %v27503_v7 = vpop.f32.mrb[109].mxu0  ;;  %v15992_v48 = vld [vmem:[#allocation3 + $0x20] sm:$0xff] }
 0xd1d   :  { %v16000_v7 = vld [vmem:[#allocation4 + $0x20] sm:$0xff] }
 0xd23   :  { %v14935_v56 = vpop.f32.mrb[110].mxu0 }
 0xd24   :  { %v14936_v3 = vadd.f32 %v14935_v56, %v14853_v62  ;;  %v27514_v18 = vpop.f32.mrb[111].mxu0 }
 0xd2b   :  { %v15010_v6 = vpop.f32.mrb[112].mxu0 }
 0xd2c   :  { %v15011_v39 = vadd.f32 %v15010_v6, %v14936_v3  ;;  %v27525_v14 = vpop.f32.mrb[113].mxu0 }
 0xd2e   :  { %v15985_v35 = vadd.f32 %v15984_v59, %v15011_v39 }
 0xd30   :  { %v23928_v46 = vmul.f32 -1.442695, %v15985_v35 }
 0xd32   :  { %30997 = vpow2.f32 %v23928_v46 }
 0xd33   :  { %v15180_v27 = vpop.f32.mrb[114].mxu0 }
 0xd34   :  { %v15181_v8 = vadd.f32 %v15180_v27, %v15090_v4  ;;  %v27547_v20 = vpop.f32.mrb[115].mxu0 }
 0xd36   :  { %v15261_v60 = vadd.f32 %v15260_v16, %v15181_v8 }
 0xd3b   :  { %v15337_v36 = vpop.f32.mrb[116].mxu0 }
 0xd3c   :  { %v30998_v32 = vpop.eup %30997  ;;  %v15338_v41 = vadd.f32 %v15337_v36, %v15261_v60  ;;  %v27569_v53 = vpop.f32.mrb[117].mxu0 }
 0xd3d   :  { %v15989_v21 = vadd.f32 1.0, %v30998_v32 }
 0xd3e   :  { %v15421_v34 = vadd.f32 %v15420_v54, %v15338_v41 }
 0xd3f   :  { %30999 = vrcp.f32 %v15989_v21 }
 0xd43   :  { %v15495_v19 = vpop.f32.mrb[118].mxu0  ;;  %v15980_v38 = vpop.f32.mrb[60].mxu1 }
 0xd44   :  { %v15496_v1 = vadd.f32 %v15495_v19, %v15421_v34  ;;  %v27591_v24 = vpop.f32.mrb[119].mxu0  ;;  %v27657_v0 = vpop.f32.mrb[61].mxu1  ;;  %v30338_v52 = vadd.f32 %v33000_v10, %v15980_v38 }
 0xd46   :  { %v15993_v43 = vadd.f32 %v15992_v48, %v15496_v1 }
 0xd48   :  { %v23929_v13 = vmul.f32 -1.442695, %v15993_v43 }
 0xd49   :  { %v31000_v25 = vpop.eup %30999 }
 0xd4a   :  { %31001 = vpow2.f32 %v23929_v13  ;;  %v16001_v16 = vmul.f32 %v31000_v25, %v30338_v52 }
 0xd4c   :  { %v16002_v3 = vadd.f32 %v16001_v16, %v16000_v7 }
 0xd54   :  { %v31002_v62 = vpop.eup %31001 }
 0xd55   :  { %v15997_v56 = vadd.f32 1.0, %v31002_v62 }
 0xd57   :  { %31003 = vrcp.f32 %v15997_v56 }
 0xd58   :  { %31005 = vtanh.f32 %v16002_v3 }
 0xd61   :  { %v31004_v54 = vpop.eup %31003 }
 0xd62   :  { %v16004_v18 = vsub.f32 1.0, %v31004_v54  ;;  %v31006_v6 = vpop.eup %31005  ;;  %v16006_v39 = vmul.f32 %v31004_v54, %v33004_v37 }
 0xd64   :  { %v16005_v14 = vmul.f32 %v31006_v6, %v16004_v18 }
 0xd66   :  { %v33147_v59 = vadd.f32 %v16006_v39, %v16005_v14 }
 0xd68   :  { %16008 = vst.msk [vmem:[#allocation5 + $0x20] sm:$0xff] %vm69_vm0, %v33147_v59  ;;  %v16010_v35 = vsel %vm69_vm0, %v33147_v59, 0 }
 0xd69   :  { %v33153_v46 = vand.u32 4294901760, %v16010_v35 }
 0xd6b   :  { %v33156_v4 = vsub.f32 %v16010_v35, %v33153_v46 }
 0xd6d   :  { %v33159_v27 = vand.u32 4294901760, %v33156_v4 }
 0xd6f   :  { %v16084_v37 = vsub.f32 %v33156_v4, %v33159_v27 }
 0xd71   :  { %v16085_v8 = vand.u32 4294901760, %v16084_v37 }
 0xd73   :  { %27667 = vmatmul.mubr.f32.vlgmr.msra.gmra.mrb[120].mxu0 %v16085_v8  ;;  %27733 = vmatmul.mubr.f32.vlgmr.msra.gmra.mrb[62].mxu1 %v16085_v8 }
 0xd74   :  { %29694 = vmatpush3.bf16.msra.mxu0 %v32146_v11  ;;  %29736 = vmatpush3.bf16.msra.mxu1 %v32287_v58 }
 0xd75   :  { %29695 = vmatprep.subr.bf16.mxu0 %v34252_v26  ;;  %29737 = vmatprep.subr.bf16.mxu1 %v34252_v26 }
 0xd76   :  { %27677 = vmatprep.mubr.msk.f32.mxu0 %vm31142_vm8, %v31143_v33  ;;  %27754 = vmatprep.mubr.msk.f32.mxu1 %vm31142_vm8, %v31143_v33 }
 0xd78   :  { %29697 = vmatpush3.bf16.msra.mxu0 %v32152_v44  ;;  %29739 = vmatpush3.bf16.msra.mxu1 %v32296_v31 }
 0xd79   :  { %29698 = vmatprep.subr.bf16.mxu0 %v34252_v26  ;;  %29746 = vmatprep.subr.bf16.mxu1 %v34252_v26 }
 0xd7b   :  { %27678 = vmatmul.mubr.f32.vlgmr.msra.gmra.mrb[122].mxu0 %v33153_v46  ;;  %27755 = vmatmul.mubr.f32.vlgmr.msra.gmra.mrb[64].mxu1 %v33156_v4 }
 0xd7c   :  { %29700 = vmatpush3.bf16.msra.mxu0 %v32163_v55  ;;  %29748 = vmatpush3.bf16.msra.mxu1 %v32329_v50 }
 0xd7d   :  { %29701 = vmatprep.subr.bf16.mxu0 %v34252_v26  ;;  %29749 = vmatprep.subr.bf16.mxu1 %v34252_v26 }
 0xd7e   :  { %27688 = vmatprep.mubr.msk.f32.mxu0 %vm31142_vm8, %v31143_v33  ;;  %27776 = vmatprep.mubr.msk.f32.mxu1 %vm31142_vm8, %v31143_v33 }
 0xd80   :  { %29703 = vmatpush3.bf16.msra.mxu0 %v32172_v2  ;;  %29751 = vmatpush3.bf16.msra.mxu1 %v32346_v57 }
 0xd81   :  { %29704 = vmatprep.subr.bf16.mxu0 %v34252_v26  ;;  %29758 = vmatprep.subr.bf16.mxu1 %v34252_v26 }
 0xd83   :  { %27689 = vmatmul.mubr.f32.vlgmr.msra.gmra.mrb[124].mxu0 %v33156_v4  ;;  %27777 = vmatmul.mubr.f32.vlgmr.msra.gmra.mrb[66].mxu1 %v33153_v46 }
 0xd84   :  { %29706 = vmatpush3.bf16.msra.mxu0 %v32100_v22  ;;  %29760 = vmatpush3.bf16.msra.mxu1 %v32374_v61 }
 0xd85   :  { %29707 = vmatprep.subr.bf16.mxu0 %v34252_v26  ;;  %29761 = vmatprep.subr.bf16.mxu1 %v34252_v26 }
 0xd86   :  { %27699 = vmatprep.mubr.msk.f32.mxu0 %vm31142_vm8, %v31143_v33  ;;  %27798 = vmatprep.mubr.msk.f32.mxu1 %vm31142_vm8, %v31143_v33 }
 0xd88   :  { %29709 = vmatpush3.bf16.msra.mxu0 %v32114_v51  ;;  %29763 = vmatpush3.bf16.msra.mxu1 %v32389_v23 }
 0xd89   :  { %29710 = vmatprep.subr.bf16.mxu0 %v34252_v26  ;;  %29764 = vmatprep.subr.bf16.mxu1 %v34252_v26 }
 0xd8b   :  { %27700 = vmatmul.mubr.f32.vlgmr.msra.gmra.mrb[126].mxu0 %v33159_v27  ;;  %27799 = vmatmul.mubr.f32.vlgmr.msra.gmra.mrb[68].mxu1 %v16085_v8 }
 0xd8c   :  { %29712 = vmatpush3.bf16.msra.mxu0 %v32197_v17  ;;  %29766 = vmatpush3.bf16.msra.mxu1 %v32405_v47 }
 0xd8d   :  { %29713 = vmatprep.subr.bf16.mxu0 %v34252_v26  ;;  %29767 = vmatprep.subr.bf16.mxu1 %v34252_v26 }
 0xd8e   :  { %27710 = vmatprep.mubr.msk.f32.mxu0 %vm31142_vm8, %v31143_v33  ;;  %27809 = vmatprep.mubr.msk.f32.mxu1 %vm31142_vm8, %v31143_v33 }
 0xd90   :  { %29715 = vmatpush3.bf16.msra.mxu0 %v32208_v28  ;;  %29769 = vmatpush3.bf16.msra.mxu1 %v32414_v40 }
 0xd91   :  { %29716 = vmatprep.subr.bf16.mxu0 %v34252_v26  ;;  %29770 = vmatprep.subr.bf16.mxu1 %v34252_v26 }
 0xd93   :  { %27711 = vmatmul.mubr.f32.vlgmr.msra.gmra.mrb[128].mxu0 %v33153_v46  ;;  %27810 = vmatmul.mubr.f32.vlgmr.msra.gmra.mrb[68].mxu1 %v33153_v46 }
 0xd94   :  { %29718 = vmatpush3.bf16.msra.mxu0 %v32100_v22  ;;  %29772 = vmatpush3.bf16.msra.mxu1 %v32424_v12 }
 0xd95   :  { %29719 = vmatprep.subr.bf16.mxu0 %v34252_v26  ;;  %29773 = vmatprep.subr.bf16.mxu1 %v34252_v26 }
 0xd96   :  { %27721 = vmatprep.mubr.msk.f32.mxu0 %vm31142_vm8, %v31143_v33  ;;  %27820 = vmatprep.mubr.msk.f32.mxu1 %vm31142_vm8, %v31143_v33 }
 0xd98   :  { %29721 = vmatpush3.bf16.msra.mxu0 %v32114_v51  ;;  %29775 = vmatpush3.bf16.msra.mxu1 %v32433_v9 }
 0xd99   :  { %29728 = vmatprep.subr.bf16.mxu0 %v34252_v26  ;;  %29776 = vmatprep.subr.bf16.mxu1 %v34252_v26 }
 0xd9b   :  { %27722 = vmatmul.mubr.f32.vlgmr.msra.gmra.mrb[130].mxu0 %v33153_v46  ;;  %27821 = vmatmul.mubr.f32.vlgmr.msra.gmra.mrb[68].mxu1 %v33156_v4 }
 0xd9c   :  { %29730 = vmatpush3.bf16.msra.mxu0 %v32268_v63  ;;  %29778 = vmatpush3.bf16.msra.mxu1 %v32374_v61 }
 0xd9d   :  { %29731 = vmatprep.subr.bf16.mxu0 %v34252_v26  ;;  %29779 = vmatprep.subr.bf16.mxu1 %v34252_v26 }
 0xd9e   :  { %27743 = vmatprep.mubr.msk.f32.mxu0 %vm31142_vm8, %v31143_v33  ;;  %27831 = vmatprep.mubr.msk.f32.mxu1 %vm31142_vm8, %v31143_v33 }
 0xda0   :  { %29733 = vmatpush3.bf16.msra.mxu0 %v32275_v42  ;;  %29781 = vmatpush3.bf16.msra.mxu1 %v32389_v23 }
 0xda1   :  { %29740 = vmatprep.subr.bf16.mxu0 %v34252_v26  ;;  %29782 = vmatprep.subr.bf16.mxu1 %v34252_v26 }
 0xda3   :  { %27744 = vmatmul.mubr.f32.vlgmr.msra.gmra.mrb[132].mxu0 %v33153_v46  ;;  %27832 = vmatmul.mubr.f32.vlgmr.msra.gmra.mrb[68].mxu1 %v33159_v27 }
 0xda4   :  { %29742 = vmatpush3.bf16.msra.mxu0 %v32237_v5  ;;  %29784 = vmatpush3.bf16.msra.mxu1 %v32457_v49 }
 0xda5   :  { %29743 = vmatprep.subr.bf16.mxu0 %v34252_v26  ;;  %29785 = vmatprep.subr.bf16.mxu1 %v34252_v26 }
 0xda6   :  { %27765 = vmatprep.mubr.msk.f32.mxu0 %vm31142_vm8, %v31143_v33  ;;  %27842 = vmatprep.mubr.msk.f32.mxu1 %vm31142_vm8, %v31143_v33 }
 0xda8   :  { %29745 = vmatpush3.bf16.msra.mxu0 %v32252_v30  ;;  %29787 = vmatpush3.bf16.msra.mxu1 %v32468_v45 }
 0xda9   :  { %29752 = vmatprep.subr.bf16.mxu0 %v34252_v26  ;;  %29788 = vmatprep.subr.bf16.mxu1 %v34252_v26 }
 0xdab   :  { %27766 = vmatmul.mubr.f32.vlgmr.msra.gmra.mrb[134].mxu0 %v33159_v27  ;;  %27843 = vmatmul.mubr.f32.vlgmr.msra.gmra.mrb[68].mxu1 %v33153_v46 }
 0xdac   :  { %29754 = vmatpush3.bf16.msra.mxu0 %v32237_v5  ;;  %29790 = vmatpush3.bf16.msra.mxu1 %v32374_v61 }
 0xdad   :  { %29755 = vmatprep.subr.bf16.mxu0 %v34252_v26  ;;  %29791 = vmatprep.subr.bf16.mxu1 %v34252_v26 }
 0xdae   :  { %27787 = vmatprep.mubr.msk.f32.mxu0 %vm31142_vm8, %v31143_v33  ;;  %27853 = vmatprep.mubr.msk.f32.mxu1 %vm31142_vm8, %v31143_v33 }
 0xdb0   :  { %29757 = vmatpush3.bf16.msra.mxu0 %v32252_v30  ;;  %29793 = vmatpush3.bf16.msra.mxu1 %v32389_v23 }
 0xdb1   :  { %29794 = vmatprep.subr.bf16.mxu0 %v34252_v26  ;;  %29830 = vmatprep.subr.bf16.mxu1 %v34252_v26 }
 0xdb3   :  { %27788 = vmatmul.mubr.f32.vlgmr.msra.gmra.mrb[136].mxu0 %v33153_v46  ;;  %27854 = vmatmul.mubr.f32.vlgmr.msra.gmra.mrb[68].mxu1 %v33153_v46 }
 0xdb4   :  { %29796 = vmatpush3.bf16.msra.mxu0 %v32100_v22  ;;  %29832 = vmatpush3.bf16.msra.mxu1 %v32237_v5 }
 0xdb5   :  { %29797 = vmatprep.subr.bf16.mxu0 %v34252_v26  ;;  %29833 = vmatprep.subr.bf16.mxu1 %v34252_v26 }
 0xdb6   :  { %27864 = vmatprep.mubr.msk.f32.mxu0 %vm31142_vm8, %v31143_v33  ;;  %27930 = vmatprep.mubr.msk.f32.mxu1 %vm31142_vm8, %v31143_v33 }
 0xdb8   :  { %29799 = vmatpush3.bf16.msra.mxu0 %v32114_v51  ;;  %29835 = vmatpush3.bf16.msra.mxu1 %v32252_v30 }
 0xdb9   :  { %29800 = vmatprep.subr.bf16.mxu0 %v34252_v26  ;;  %29842 = vmatprep.subr.bf16.mxu1 %v34252_v26 }
 0xe46   :  { %v16087_v20 = vpop.f32.mrb[120].mxu0  ;;  %v16572_v60 = vpop.f32.mrb[62].mxu1 }
 0xe47   :  { %v27668_v36 = vpop.f32.mrb[121].mxu0  ;;  %v27734_v32 = vpop.f32.mrb[63].mxu1  ;;  %v16088_v41 = vadd.f32 %v32994_v15, %v16087_v20  ;;  %v17467_v15 = vld [vmem:[#allocation2 + $0x28] sm:$0xff]  ;;  %v16573_v39 = vadd.f32 %v32997_v29, %v16572_v60 }
 0xe4e   :  { %v16178_v53 = vpop.f32.mrb[122].mxu0  ;;  %v16743_v21 = vpop.f32.mrb[64].mxu1 }
 0xe4f   :  { %v16179_v34 = vadd.f32 %v16178_v53, %v16088_v41  ;;  %v27679_v19 = vpop.f32.mrb[123].mxu0  ;;  %v27756_v38 = vpop.f32.mrb[65].mxu1 }
 0xe56   :  { %v16258_v1 = vpop.f32.mrb[124].mxu0  ;;  %v16903_v24 = vpop.f32.mrb[66].mxu1 }
 0xe57   :  { %v16259_v0 = vadd.f32 %v16258_v1, %v16179_v34  ;;  %v27690_v48 = vpop.f32.mrb[125].mxu0  ;;  %v27778_v43 = vpop.f32.mrb[67].mxu1  ;;  %v17475_v1 = vld [vmem:[#allocation3 + $0x28] sm:$0xff] }
 0xe5e   :  { %v16335_v13 = vpop.f32.mrb[126].mxu0 }
 0xe5f   :  { %v16336_v52 = vadd.f32 %v16335_v13, %v16259_v0  ;;  %v27701_v25 = vpop.f32.mrb[127].mxu0  ;;  %v17483_v13 = vld [vmem:[#allocation4 + $0x28] sm:$0xff] }
 0xe66   :  { %v16418_v16 = vpop.f32.mrb[128].mxu0 }
 0xe67   :  { %v16419_v62 = vadd.f32 %v16418_v16, %v16336_v52  ;;  %v27712_v7 = vpop.f32.mrb[129].mxu0 }
 0xe6e   :  { %v16493_v56 = vpop.f32.mrb[130].mxu0 }
 0xe6f   :  { %v16494_v3 = vadd.f32 %v16493_v56, %v16419_v62  ;;  %v27723_v54 = vpop.f32.mrb[131].mxu0 }
 0xe71   :  { %v17468_v18 = vadd.f32 %v17467_v15, %v16494_v3 }
 0xe73   :  { %v23930_v6 = vmul.f32 -1.442695, %v17468_v18 }
 0xe75   :  { %31007 = vpow2.f32 %v23930_v6 }
 0xe76   :  { %v16663_v14 = vpop.f32.mrb[132].mxu0 }
 0xe77   :  { %v16664_v35 = vadd.f32 %v16663_v14, %v16573_v39  ;;  %v27745_v46 = vpop.f32.mrb[133].mxu0 }
 0xe79   :  { %v16744_v4 = vadd.f32 %v16743_v21, %v16664_v35 }
 0xe7e   :  { %v16820_v27 = vpop.f32.mrb[134].mxu0 }
 0xe7f   :  { %v31008_v37 = vpop.eup %31007  ;;  %v16821_v8 = vadd.f32 %v16820_v27, %v16744_v4  ;;  %v27767_v20 = vpop.f32.mrb[135].mxu0  ;;  %v33429_v4 = vld [vmem:[#allocation10 + $0x110] ss:$0 sm:$0xff] }
 0xe80   :  { %v17472_v36 = vadd.f32 1.0, %v31008_v37 }
 0xe81   :  { %v16904_v32 = vadd.f32 %v16903_v24, %v16821_v8 }
 0xe82   :  { %31009 = vrcp.f32 %v17472_v36 }
 0xe86   :  { %v16978_v41 = vpop.f32.mrb[136].mxu0  ;;  %v17463_v53 = vpop.f32.mrb[68].mxu1 }
 0xe87   :  { %v16979_v34 = vadd.f32 %v16978_v41, %v16904_v32  ;;  %v27789_v19 = vpop.f32.mrb[137].mxu0  ;;  %v27855_v38 = vpop.f32.mrb[69].mxu1  ;;  %v30339_v60 = vadd.f32 %v33000_v10, %v17463_v53 }
 0xe89   :  { %v17476_v0 = vadd.f32 %v17475_v1, %v16979_v34 }
 0xe8b   :  { %v23931_v29 = vmul.f32 -1.442695, %v17476_v0 }
 0xe8c   :  { %v31010_v48 = vpop.eup %31009 }
 0xe8d   :  { %31011 = vpow2.f32 %v23931_v29  ;;  %v17484_v21 = vmul.f32 %v31010_v48, %v30339_v60 }
 0xe8f   :  { %v17485_v25 = vadd.f32 %v17484_v21, %v17483_v13 }
 0xe97   :  { %v31012_v43 = vpop.eup %31011 }
 0xe98   :  { %v17480_v52 = vadd.f32 1.0, %v31012_v43 }
 0xe9a   :  { %31013 = vrcp.f32 %v17480_v52 }
 0xe9b   :  { %31015 = vtanh.f32 %v17485_v25  ;;  %v18950_v25 = vld [vmem:[#allocation2 + $0x30] sm:$0xff] }
 0xea4   :  { %v31014_v24 = vpop.eup %31013 }
 0xea5   :  { %v17487_v16 = vsub.f32 1.0, %v31014_v24  ;;  %v31016_v62 = vpop.eup %31015  ;;  %v17489_v7 = vmul.f32 %v31014_v24, %v33147_v59 }
 0xea7   :  { %v17488_v56 = vmul.f32 %v31016_v62, %v17487_v16  ;;  %v33432_v62 = vld [vmem:[#allocation10 + $0x158] ss:$0 sm:$0xff] }
 0xea9   :  { %v33290_v3 = vadd.f32 %v17489_v7, %v17488_v56 }
 0xeab   :  { %17491 = vst.msk [vmem:[#allocation5 + $0x28] sm:$0xff] %vm69_vm0, %v33290_v3  ;;  %v17493_v10 = vsel %vm69_vm0, %v33290_v3, 0 }
 0xeac   :  { %v33296_v54 = vand.u32 4294901760, %v17493_v10 }
 0xeae   :  { %v33299_v15 = vsub.f32 %v17493_v10, %v33296_v54 }
 0xeb0   :  { %v33302_v18 = vand.u32 4294901760, %v33299_v15 }
 0xeb2   :  { %v17567_v59 = vsub.f32 %v33299_v15, %v33302_v18 }
 0xeb4   :  { %v17568_v6 = vand.u32 4294901760, %v17567_v59 }
 0xeb6   :  { %27865 = vmatmul.mubr.f32.vlgmr.msra.gmra.mrb[138].mxu0 %v17568_v6  ;;  %27931 = vmatmul.mubr.f32.vlgmr.msra.gmra.mrb[70].mxu1 %v17568_v6 }
 0xeb7   :  { %29802 = vmatpush3.bf16.msra.mxu0 %v32146_v11  ;;  %29844 = vmatpush3.bf16.msra.mxu1 %v32287_v58 }
 0xeb8   :  { %29803 = vmatprep.subr.bf16.mxu0 %v34252_v26  ;;  %29845 = vmatprep.subr.bf16.mxu1 %v34252_v26 }
 0xeb9   :  { %27875 = vmatprep.mubr.msk.f32.mxu0 %vm31142_vm8, %v31143_v33  ;;  %27952 = vmatprep.mubr.msk.f32.mxu1 %vm31142_vm8, %v31143_v33 }
 0xebb   :  { %29805 = vmatpush3.bf16.msra.mxu0 %v32152_v44  ;;  %29847 = vmatpush3.bf16.msra.mxu1 %v32296_v31 }
 0xebc   :  { %29806 = vmatprep.subr.bf16.mxu0 %v34252_v26  ;;  %29854 = vmatprep.subr.bf16.mxu1 %v34252_v26 }
 0xebe   :  { %27876 = vmatmul.mubr.f32.vlgmr.msra.gmra.mrb[140].mxu0 %v33296_v54  ;;  %27953 = vmatmul.mubr.f32.vlgmr.msra.gmra.mrb[72].mxu1 %v33299_v15 }
 0xebf   :  { %29808 = vmatpush3.bf16.msra.mxu0 %v32163_v55  ;;  %29856 = vmatpush3.bf16.msra.mxu1 %v32329_v50 }
 0xec0   :  { %29809 = vmatprep.subr.bf16.mxu0 %v34252_v26  ;;  %29857 = vmatprep.subr.bf16.mxu1 %v34252_v26 }
 0xec1   :  { %27886 = vmatprep.mubr.msk.f32.mxu0 %vm31142_vm8, %v31143_v33  ;;  %27974 = vmatprep.mubr.msk.f32.mxu1 %vm31142_vm8, %v31143_v33 }
 0xec3   :  { %29811 = vmatpush3.bf16.msra.mxu0 %v32172_v2  ;;  %29859 = vmatpush3.bf16.msra.mxu1 %v32346_v57 }
 0xec4   :  { %29812 = vmatprep.subr.bf16.mxu0 %v34252_v26  ;;  %29866 = vmatprep.subr.bf16.mxu1 %v34252_v26 }
 0xec6   :  { %27887 = vmatmul.mubr.f32.vlgmr.msra.gmra.mrb[142].mxu0 %v33299_v15  ;;  %27975 = vmatmul.mubr.f32.vlgmr.msra.gmra.mrb[74].mxu1 %v33296_v54 }
 0xec7   :  { %29814 = vmatpush3.bf16.msra.mxu0 %v32100_v22  ;;  %29868 = vmatpush3.bf16.msra.mxu1 %v32374_v61 }
 0xec8   :  { %29815 = vmatprep.subr.bf16.mxu0 %v34252_v26  ;;  %29869 = vmatprep.subr.bf16.mxu1 %v34252_v26 }
 0xec9   :  { %27897 = vmatprep.mubr.msk.f32.mxu0 %vm31142_vm8, %v31143_v33  ;;  %27996 = vmatprep.mubr.msk.f32.mxu1 %vm31142_vm8, %v31143_v33 }
 0xecb   :  { %29817 = vmatpush3.bf16.msra.mxu0 %v32114_v51  ;;  %29871 = vmatpush3.bf16.msra.mxu1 %v32389_v23 }
 0xecc   :  { %29818 = vmatprep.subr.bf16.mxu0 %v34252_v26  ;;  %29872 = vmatprep.subr.bf16.mxu1 %v34252_v26 }
 0xece   :  { %27898 = vmatmul.mubr.f32.vlgmr.msra.gmra.mrb[144].mxu0 %v33302_v18  ;;  %27997 = vmatmul.mubr.f32.vlgmr.msra.gmra.mrb[76].mxu1 %v17568_v6 }
 0xecf   :  { %29820 = vmatpush3.bf16.msra.mxu0 %v32197_v17  ;;  %29874 = vmatpush3.bf16.msra.mxu1 %v32405_v47 }
 0xed0   :  { %29821 = vmatprep.subr.bf16.mxu0 %v34252_v26  ;;  %29875 = vmatprep.subr.bf16.mxu1 %v34252_v26 }
 0xed1   :  { %27908 = vmatprep.mubr.msk.f32.mxu0 %vm31142_vm8, %v31143_v33  ;;  %28007 = vmatprep.mubr.msk.f32.mxu1 %vm31142_vm8, %v31143_v33 }
 0xed3   :  { %29823 = vmatpush3.bf16.msra.mxu0 %v32208_v28  ;;  %29877 = vmatpush3.bf16.msra.mxu1 %v32414_v40 }
 0xed4   :  { %29824 = vmatprep.subr.bf16.mxu0 %v34252_v26  ;;  %29878 = vmatprep.subr.bf16.mxu1 %v34252_v26 }
 0xed6   :  { %27909 = vmatmul.mubr.f32.vlgmr.msra.gmra.mrb[146].mxu0 %v33296_v54  ;;  %28008 = vmatmul.mubr.f32.vlgmr.msra.gmra.mrb[76].mxu1 %v33296_v54 }
 0xed7   :  { %29826 = vmatpush3.bf16.msra.mxu0 %v32100_v22  ;;  %29880 = vmatpush3.bf16.msra.mxu1 %v32424_v12 }
 0xed8   :  { %29827 = vmatprep.subr.bf16.mxu0 %v34252_v26  ;;  %29881 = vmatprep.subr.bf16.mxu1 %v34252_v26 }
 0xed9   :  { %27919 = vmatprep.mubr.msk.f32.mxu0 %vm31142_vm8, %v31143_v33  ;;  %28018 = vmatprep.mubr.msk.f32.mxu1 %vm31142_vm8, %v31143_v33 }
 0xedb   :  { %29829 = vmatpush3.bf16.msra.mxu0 %v32114_v51  ;;  %29883 = vmatpush3.bf16.msra.mxu1 %v32433_v9 }
 0xedc   :  { %29836 = vmatprep.subr.bf16.mxu0 %v34252_v26  ;;  %29884 = vmatprep.subr.bf16.mxu1 %v34252_v26 }
 0xede   :  { %27920 = vmatmul.mubr.f32.vlgmr.msra.gmra.mrb[148].mxu0 %v33296_v54  ;;  %28019 = vmatmul.mubr.f32.vlgmr.msra.gmra.mrb[76].mxu1 %v33299_v15 }
 0xedf   :  { %29838 = vmatpush3.bf16.msra.mxu0 %v32268_v63  ;;  %29886 = vmatpush3.bf16.msra.mxu1 %v32374_v61 }
 0xee0   :  { %29839 = vmatprep.subr.bf16.mxu0 %v34252_v26  ;;  %29887 = vmatprep.subr.bf16.mxu1 %v34252_v26 }
 0xee1   :  { %27941 = vmatprep.mubr.msk.f32.mxu0 %vm31142_vm8, %v31143_v33  ;;  %28029 = vmatprep.mubr.msk.f32.mxu1 %vm31142_vm8, %v31143_v33 }
 0xee3   :  { %29841 = vmatpush3.bf16.msra.mxu0 %v32275_v42  ;;  %29889 = vmatpush3.bf16.msra.mxu1 %v32389_v23 }
 0xee4   :  { %29848 = vmatprep.subr.bf16.mxu0 %v34252_v26  ;;  %29890 = vmatprep.subr.bf16.mxu1 %v34252_v26 }
 0xee6   :  { %27942 = vmatmul.mubr.f32.vlgmr.msra.gmra.mrb[150].mxu0 %v33296_v54  ;;  %28030 = vmatmul.mubr.f32.vlgmr.msra.gmra.mrb[76].mxu1 %v33302_v18 }
 0xee7   :  { %29850 = vmatpush3.bf16.msra.mxu0 %v32237_v5  ;;  %29892 = vmatpush3.bf16.msra.mxu1 %v32457_v49 }
 0xee8   :  { %29851 = vmatprep.subr.bf16.mxu0 %v34252_v26  ;;  %29893 = vmatprep.subr.bf16.mxu1 %v34252_v26 }
 0xee9   :  { %27963 = vmatprep.mubr.msk.f32.mxu0 %vm31142_vm8, %v31143_v33  ;;  %28040 = vmatprep.mubr.msk.f32.mxu1 %vm31142_vm8, %v31143_v33 }
 0xeeb   :  { %29853 = vmatpush3.bf16.msra.mxu0 %v32252_v30  ;;  %29895 = vmatpush3.bf16.msra.mxu1 %v32468_v45 }
 0xeec   :  { %29860 = vmatprep.subr.bf16.mxu0 %v34252_v26  ;;  %29896 = vmatprep.subr.bf16.mxu1 %v34252_v26 }
 0xeee   :  { %27964 = vmatmul.mubr.f32.vlgmr.msra.gmra.mrb[152].mxu0 %v33302_v18  ;;  %28041 = vmatmul.mubr.f32.vlgmr.msra.gmra.mrb[76].mxu1 %v33296_v54 }
 0xeef   :  { %29862 = vmatpush3.bf16.msra.mxu0 %v32237_v5  ;;  %29898 = vmatpush3.bf16.msra.mxu1 %v32374_v61 }
 0xef0   :  { %29863 = vmatprep.subr.bf16.mxu0 %v34252_v26  ;;  %29899 = vmatprep.subr.bf16.mxu1 %v34252_v26 }
 0xef1   :  { %27985 = vmatprep.mubr.msk.f32.mxu0 %vm31142_vm8, %v31143_v33  ;;  %28051 = vmatprep.mubr.msk.f32.mxu1 %vm31142_vm8, %v31143_v33 }
 0xef3   :  { %29865 = vmatpush3.bf16.msra.mxu0 %v32252_v30  ;;  %29901 = vmatpush3.bf16.msra.mxu1 %v32389_v23 }
 0xef4   :  { %29902 = vmatprep.subr.bf16.mxu0 %v34252_v26  ;;  %29938 = vmatprep.subr.bf16.mxu1 %v34252_v26 }
 0xef6   :  { %27986 = vmatmul.mubr.f32.vlgmr.msra.gmra.mrb[154].mxu0 %v33296_v54  ;;  %28052 = vmatmul.mubr.f32.vlgmr.msra.gmra.mrb[76].mxu1 %v33296_v54 }
 0xef7   :  { %29904 = vmatpush3.bf16.msra.mxu0 %v32100_v22  ;;  %29940 = vmatpush3.bf16.msra.mxu1 %v32237_v5 }
 0xef8   :  { %29905 = vmatprep.subr.bf16.mxu0 %v34252_v26  ;;  %29941 = vmatprep.subr.bf16.mxu1 %v34252_v26 }
 0xef9   :  { %28062 = vmatprep.mubr.msk.f32.mxu0 %vm31142_vm8, %v31143_v33  ;;  %28128 = vmatprep.mubr.msk.f32.mxu1 %vm31142_vm8, %v31143_v33 }
 0xefb   :  { %29907 = vmatpush3.bf16.msra.mxu0 %v32114_v51  ;;  %29943 = vmatpush3.bf16.msra.mxu1 %v32252_v30 }
 0xefc   :  { %29908 = vmatprep.subr.bf16.mxu0 %v34252_v26  ;;  %29950 = vmatprep.subr.bf16.mxu1 %v34252_v26 }
 0xf89   :  { %v17570_v39 = vpop.f32.mrb[138].mxu0  ;;  %v18055_v14 = vpop.f32.mrb[70].mxu1 }
 0xf8a   :  { %v27866_v35 = vpop.f32.mrb[139].mxu0  ;;  %v27932_v46 = vpop.f32.mrb[71].mxu1  ;;  %v17571_v27 = vadd.f32 %v33429_v4, %v17570_v39  ;;  %v18056_v7 = vadd.f32 %v33432_v62, %v18055_v14 }
 0xf91   :  { %v17661_v37 = vpop.f32.mrb[140].mxu0  ;;  %v18226_v8 = vpop.f32.mrb[72].mxu1 }
 0xf92   :  { %v17662_v20 = vadd.f32 %v17661_v37, %v17571_v27  ;;  %v27877_v36 = vpop.f32.mrb[141].mxu0  ;;  %v27954_v32 = vpop.f32.mrb[73].mxu1 }
 0xf99   :  { %v17741_v41 = vpop.f32.mrb[142].mxu0  ;;  %v18386_v53 = vpop.f32.mrb[74].mxu1 }
 0xf9a   :  { %v17742_v34 = vadd.f32 %v17741_v41, %v17662_v20  ;;  %v27888_v19 = vpop.f32.mrb[143].mxu0  ;;  %v27976_v38 = vpop.f32.mrb[75].mxu1  ;;  %v18958_v41 = vld [vmem:[#allocation3 + $0x30] sm:$0xff] }
 0xf9b   :  { %v33435_v19 = vld [vmem:[#allocation10 + $0x1a0] ss:$0 sm:$0xff] }
 0xfa1   :  { %v17818_v1 = vpop.f32.mrb[144].mxu0 }
 0xfa2   :  { %v17819_v0 = vadd.f32 %v17818_v1, %v17742_v34  ;;  %v27899_v29 = vpop.f32.mrb[145].mxu0 }
 0xfa3   :  { %v18966_v29 = vld [vmem:[#allocation4 + $0x30] sm:$0xff] }
 0xfa9   :  { %v17901_v60 = vpop.f32.mrb[146].mxu0 }
 0xfaa   :  { %v17902_v48 = vadd.f32 %v17901_v60, %v17819_v0  ;;  %v27910_v21 = vpop.f32.mrb[147].mxu0 }
 0xfb1   :  { %v17976_v43 = vpop.f32.mrb[148].mxu0 }
 0xfb2   :  { %v17977_v13 = vadd.f32 %v17976_v43, %v17902_v48  ;;  %v27921_v52 = vpop.f32.mrb[149].mxu0 }
 0xfb4   :  { %v18951_v24 = vadd.f32 %v18950_v25, %v17977_v13 }
 0xfb6   :  { %v23932_v16 = vmul.f32 -1.442695, %v18951_v24 }
 0xfb8   :  { %31017 = vpow2.f32 %v23932_v16 }
 0xfb9   :  { %v18146_v56 = vpop.f32.mrb[150].mxu0 }
 0xfba   :  { %v18147_v10 = vadd.f32 %v18146_v56, %v18056_v7  ;;  %v27943_v54 = vpop.f32.mrb[151].mxu0 }
 0xfbc   :  { %v18227_v15 = vadd.f32 %v18226_v8, %v18147_v10 }
 0xfc1   :  { %v18303_v18 = vpop.f32.mrb[152].mxu0 }
 0xfc2   :  { %v31018_v59 = vpop.eup %31017  ;;  %v18304_v6 = vadd.f32 %v18303_v18, %v18227_v15  ;;  %v27965_v39 = vpop.f32.mrb[153].mxu0  ;;  %v20463_v15 = vld [vmem:[#allocation5 + $0x28] sm:$0xff] }
 0xfc3   :  { %v18955_v35 = vadd.f32 1.0, %v31018_v59 }
 0xfc4   :  { %v18387_v46 = vadd.f32 %v18386_v53, %v18304_v6 }
 0xfc5   :  { %31019 = vrcp.f32 %v18955_v35 }
 0xfc9   :  { %v18461_v27 = vpop.f32.mrb[154].mxu0  ;;  %v18946_v37 = vpop.f32.mrb[76].mxu1 }
 0xfca   :  { %v18462_v20 = vadd.f32 %v18461_v27, %v18387_v46  ;;  %v27987_v36 = vpop.f32.mrb[155].mxu0  ;;  %v28053_v32 = vpop.f32.mrb[77].mxu1  ;;  %v30340_v38 = vadd.f32 %v33435_v19, %v18946_v37  ;;  %v20491_v27 = vsel %vm69_vm0, %v20463_v15, 0 }
 0xfcb   :  { %v33617_v32 = vand.u32 4294901760, %v20491_v27 }
 0xfcc   :  { %v18959_v34 = vadd.f32 %v18958_v41, %v18462_v20 }
 0xfce   :  { %v23933_v14 = vmul.f32 -1.442695, %v18959_v34 }
 0xfcf   :  { %v31020_v8 = vpop.eup %31019 }
 0xfd0   :  { %31021 = vpow2.f32 %v23933_v14  ;;  %v18967_v1 = vmul.f32 %v31020_v8, %v30340_v38  ;;  %v33634_v8 = vsub.f32 %v20491_v27, %v33617_v32 }
 0xfd2   :  { %v18968_v53 = vadd.f32 %v18967_v1, %v18966_v29 }
 0xfda   :  { %v31022_v0 = vpop.eup %31021 }
 0xfdb   :  { %v18963_v60 = vadd.f32 1.0, %v31022_v0 }
 0xfdd   :  { %31023 = vrcp.f32 %v18963_v60 }
 0xfde   :  { %31025 = vtanh.f32 %v18968_v53 }
 0xfe7   :  { %v31024_v48 = vpop.eup %31023 }
 0xfe8   :  { %v18970_v21 = vsub.f32 1.0, %v31024_v48  ;;  %v31026_v43 = vpop.eup %31025  ;;  %v18972_v13 = vmul.f32 %v31024_v48, %v33290_v3  ;;  %v20620_v48 = vand.u32 4294901760, %v33634_v8 }
 0xfea   :  { %v18971_v52 = vmul.f32 %v31026_v43, %v18970_v21 }
 0xfec   :  { %v33439_v25 = vadd.f32 %v18972_v13, %v18971_v52 }
 0xfee   :  { %18974 = vst.msk [vmem:[#allocation5 + $0x30] sm:$0xff] %vm69_vm0, %v33439_v25  ;;  %v18976_v24 = vsel %vm69_vm0, %v33439_v25, 0 }
 0xfef   :  { %v33445_v16 = vand.u32 4294901760, %v18976_v24 }
 0xff1   :  { %v33448_v7 = vsub.f32 %v18976_v24, %v33445_v16  ;;  %v20621_v24 = vsub.f32 %v33634_v8, %v20620_v48 }
 0xff3   :  { %v33451_v56 = vand.u32 4294901760, %v33448_v7 }
 0xff5   :  { %v19050_v3 = vsub.f32 %v33448_v7, %v33451_v56  ;;  %v20464_v59 = vld [vmem:[#allocation5 + $0x30] sm:$0xff] }
 0xff6   :  { %v20494_v37 = vsel %vm69_vm0, %v20464_v59, 0 }
 0xff7   :  { %v19051_v10 = vand.u32 4294901760, %v19050_v3 }
 0xff9   :  { %28063 = vmatmul.mubr.f32.vlgmr.msra.gmra.mrb[156].mxu0 %v19051_v10  ;;  %28129 = vmatmul.mubr.f32.vlgmr.msra.gmra.mrb[78].mxu1 %v19051_v10 }
 0xffa   :  { %29910 = vmatpush3.bf16.msra.mxu0 %v32146_v11  ;;  %29952 = vmatpush3.bf16.msra.mxu1 %v32287_v58  ;;  %v20459_v11 = vld [vmem:[#allocation5 + $0x8] sm:$0xff]  ;;  %v20461_v58 = vld [vmem:[#allocation5 + $0x18] sm:$0xff] }
 0xffb   :  { %29911 = vmatprep.subr.bf16.mxu0 %v34252_v26  ;;  %29953 = vmatprep.subr.bf16.mxu1 %v34252_v26 }
 0xffc   :  { %28073 = vmatprep.mubr.msk.f32.mxu0 %vm31142_vm8, %v31143_v33  ;;  %28150 = vmatprep.mubr.msk.f32.mxu1 %vm31142_vm8, %v31143_v33 }
 0xffe   :  { %29913 = vmatpush3.bf16.msra.mxu0 %v32152_v44  ;;  %29955 = vmatpush3.bf16.msra.mxu1 %v32296_v31 }
 0xfff   :  { %29914 = vmatprep.subr.bf16.mxu0 %v34252_v26  ;;  %29962 = vmatprep.subr.bf16.mxu1 %v34252_v26 }
0x1001   :  { %28074 = vmatmul.mubr.f32.vlgmr.msra.gmra.mrb[158].mxu0 %v33445_v16  ;;  %28151 = vmatmul.mubr.f32.vlgmr.msra.gmra.mrb[80].mxu1 %v33448_v7 }
0x1002   :  { %29916 = vmatpush3.bf16.msra.mxu0 %v32163_v55  ;;  %29964 = vmatpush3.bf16.msra.mxu1 %v32329_v50  ;;  %v20460_v55 = vld [vmem:[#allocation5 + $0x10] sm:$0xff]  ;;  %v20462_v50 = vld [vmem:[#allocation5 + $0x20] sm:$0xff] }
0x1003   :  { %29917 = vmatprep.subr.bf16.mxu0 %v34252_v26  ;;  %29965 = vmatprep.subr.bf16.mxu1 %v34252_v26  ;;  %v20488_v54 = vsel %vm69_vm0, %v20462_v50, 0 }
0x1004   :  { %28084 = vmatprep.mubr.msk.f32.mxu0 %vm31142_vm8, %v31143_v33  ;;  %28172 = vmatprep.mubr.msk.f32.mxu1 %vm31142_vm8, %v31143_v33  ;;  %v33604_v46 = vand.u32 4294901760, %v20488_v54 }
0x1006   :  { %29919 = vmatpush3.bf16.msra.mxu0 %v32172_v2  ;;  %29967 = vmatpush3.bf16.msra.mxu1 %v32346_v57  ;;  %v20479_v2 = vsel %vm69_vm0, %v20459_v11, 0  ;;  %v33621_v14 = vsub.f32 %v20488_v54, %v33604_v46 }
0x1007   :  { %29920 = vmatprep.subr.bf16.mxu0 %v34252_v26  ;;  %29974 = vmatprep.subr.bf16.mxu1 %v34252_v26  ;;  %v33560_v31 = vand.u32 4294901760, %v20479_v2 }
0x1008   :  { %v20610_v0 = vand.u32 4294901760, %v33621_v14 }
0x1009   :  { %28085 = vmatmul.mubr.f32.vlgmr.msra.gmra.mrb[160].mxu0 %v33448_v7  ;;  %28173 = vmatmul.mubr.f32.vlgmr.msra.gmra.mrb[82].mxu1 %v33445_v16  ;;  %v33580_v18 = vsub.f32 %v20479_v2, %v33560_v31 }
0x100a   :  { %29922 = vmatpush3.bf16.msra.mxu0 %v32100_v22  ;;  %29976 = vmatpush3.bf16.msra.mxu1 %v32374_v61  ;;  %v20611_v43 = vsub.f32 %v33621_v14, %v20610_v0 }
0x100b   :  { %29923 = vmatprep.subr.bf16.mxu0 %v34252_v26  ;;  %29977 = vmatprep.subr.bf16.mxu1 %v34252_v26  ;;  %v20580_v20 = vand.u32 4294901760, %v33580_v18 }
0x100c   :  { %28095 = vmatprep.mubr.msk.f32.mxu0 %vm31142_vm8, %v31143_v33  ;;  %28194 = vmatprep.mubr.msk.f32.mxu1 %vm31142_vm8, %v31143_v33 }
0x100e   :  { %29925 = vmatpush3.bf16.msra.mxu0 %v32114_v51  ;;  %29979 = vmatpush3.bf16.msra.mxu1 %v32389_v23 }
0x100f   :  { %29926 = vmatprep.subr.bf16.mxu0 %v34252_v26  ;;  %29980 = vmatprep.subr.bf16.mxu1 %v34252_v26 }
0x1011   :  { %28096 = vmatmul.mubr.f32.vlgmr.msra.gmra.mrb[162].mxu0 %v33451_v56  ;;  %28195 = vmatmul.mubr.f32.vlgmr.msra.gmra.mrb[84].mxu1 %v19051_v10 }
0x1012   :  { %29928 = vmatpush3.bf16.msra.mxu0 %v32197_v17  ;;  %29982 = vmatpush3.bf16.msra.mxu1 %v32405_v47  ;;  %v33550_v17 = vld [vmem:[#allocation10 + $0x1a8] sm:$0xff] }
0x1013   :  { %29929 = vmatprep.subr.bf16.mxu0 %v34252_v26  ;;  %29983 = vmatprep.subr.bf16.mxu1 %v34252_v26  ;;  %v20500_v57 = vand.u32 4294901760, %v33550_v17 }
0x1014   :  { %28106 = vmatprep.mubr.msk.f32.mxu0 %vm31142_vm8, %v31143_v33  ;;  %28205 = vmatprep.mubr.msk.f32.mxu1 %vm31142_vm8, %v31143_v33 }
0x1015   :  { %v20650_v10 = vsub.f32 %v33550_v17, %v20500_v57 }
0x1016   :  { %29931 = vmatpush3.bf16.msra.mxu0 %v32208_v28  ;;  %29985 = vmatpush3.bf16.msra.mxu1 %v32414_v40  ;;  %v33552_v28 = vld [vmem:[#allocation10 + $0x1b0] sm:$0xff] }
0x1017   :  { %29932 = vmatprep.subr.bf16.mxu0 %v34252_v26  ;;  %29986 = vmatprep.subr.bf16.mxu1 %v34252_v26  ;;  %v20503_v47 = vand.u32 4294901760, %v33552_v28 }
0x1019   :  { %28107 = vmatmul.mubr.f32.vlgmr.msra.gmra.mrb[164].mxu0 %v33445_v16  ;;  %28206 = vmatmul.mubr.f32.vlgmr.msra.gmra.mrb[84].mxu1 %v33445_v16  ;;  %v33588_v6 = vpack.c.bf16 %v20503_v47, %v20500_v57 }
0x101a   :  { %29934 = vmatpush3.bf16.msra.mxu0 %v32100_v22  ;;  %29988 = vmatpush3.bf16.msra.mxu1 %v32424_v12  ;;  %v20458_v22 = vld [vmem:[#allocation5] sm:$0xff]  ;;  %v33567_v12 = vld [vmem:[#allocation10 + $0x1b8] sm:$0xff] }
0x101b   :  { %29935 = vmatprep.subr.bf16.mxu0 %v34252_v26  ;;  %29989 = vmatprep.subr.bf16.mxu1 %v34252_v26  ;;  %v20506_v39 = vand.u32 4294901760, %v33567_v12 }
0x101c   :  { %28117 = vmatprep.mubr.msk.f32.mxu0 %vm31142_vm8, %v31143_v33  ;;  %28216 = vmatprep.mubr.msk.f32.mxu1 %vm31142_vm8, %v31143_v33 }
0x101e   :  { %29937 = vmatpush3.bf16.msra.mxu0 %v32114_v51  ;;  %29991 = vmatpush3.bf16.msra.mxu1 %v32433_v9  ;;  %v20476_v51 = vsel %vm69_vm0, %v20458_v22, 0  ;;  %v33569_v9 = vld [vmem:[#allocation10 + $0x1c0] sm:$0xff]  ;;  %v20657_v22 = vsub.f32 %v33552_v28, %v20503_v47 }
0x101f   :  { %29944 = vmatprep.subr.bf16.mxu0 %v34252_v26  ;;  %29992 = vmatprep.subr.bf16.mxu1 %v34252_v26  ;;  %v33537_v44 = vand.u32 4294901760, %v20476_v51 }
0x1020   :  { %v20658_v11 = vand.u32 4294901760, %v20657_v22 }
0x1021   :  { %28118 = vmatmul.mubr.f32.vlgmr.msra.gmra.mrb[166].mxu0 %v33445_v16  ;;  %28217 = vmatmul.mubr.f32.vlgmr.msra.gmra.mrb[84].mxu1 %v33448_v7 }
0x1022   :  { %29946 = vmatpush3.bf16.msra.mxu0 %v32268_v63  ;;  %29994 = vmatpush3.bf16.msra.mxu1 %v32374_v61  ;;  %v33555_v63 = vsub.f32 %v20476_v51, %v33537_v44  ;;  %v20651_v51 = vand.u32 4294901760, %v20650_v10  ;;  %v20659_v2 = vsub.f32 %v20657_v22, %v20658_v11 }
0x1023   :  { %29947 = vmatprep.subr.bf16.mxu0 %v34252_v26  ;;  %29995 = vmatprep.subr.bf16.mxu1 %v34252_v26 }
0x1024   :  { %28139 = vmatprep.mubr.msk.f32.mxu0 %vm31142_vm8, %v31143_v33  ;;  %28227 = vmatprep.mubr.msk.f32.mxu1 %vm31142_vm8, %v31143_v33  ;;  %v20570_v40 = vand.u32 4294901760, %v33555_v63 }
0x1026   :  { %29949 = vmatpush3.bf16.msra.mxu0 %v32275_v42  ;;  %29997 = vmatpush3.bf16.msra.mxu1 %v32389_v23  ;;  %v20482_v42 = vsel %vm69_vm0, %v20460_v55, 0  ;;  %v20652_v55 = vsub.f32 %v20650_v10, %v20651_v51 }
0x1027   :  { %29956 = vmatprep.subr.bf16.mxu0 %v34252_v26  ;;  %29998 = vmatprep.subr.bf16.mxu1 %v34252_v26 }
0x1029   :  { %28140 = vmatmul.mubr.f32.vlgmr.msra.gmra.mrb[168].mxu0 %v33445_v16  ;;  %28228 = vmatmul.mubr.f32.vlgmr.msra.gmra.mrb[84].mxu1 %v33451_v56 }
0x102a   :  { %29958 = vmatpush3.bf16.msra.mxu0 %v32237_v5  ;;  %30000 = vmatpush3.bf16.msra.mxu1 %v32457_v49  ;;  %v33571_v49 = vand.u32 4294901760, %v20482_v42 }
0x102b   :  { %29959 = vmatprep.subr.bf16.mxu0 %v34252_v26  ;;  %30001 = vmatprep.subr.bf16.mxu1 %v34252_v26 }
0x102c   :  { %28161 = vmatprep.mubr.msk.f32.mxu0 %vm31142_vm8, %v31143_v33  ;;  %28238 = vmatprep.mubr.msk.f32.mxu1 %vm31142_vm8, %v31143_v33 }
0x102e   :  { %29961 = vmatpush3.bf16.msra.mxu0 %v32252_v30  ;;  %30003 = vmatpush3.bf16.msra.mxu1 %v32468_v45  ;;  %v20485_v45 = vsel %vm69_vm0, %v20461_v58, 0  ;;  %v20660_v58 = vand.u32 4294901760, %v20659_v2 }
0x102f   :  { %29968 = vmatprep.subr.bf16.mxu0 %v34252_v26  ;;  %30004 = vmatprep.subr.bf16.mxu1 %v34252_v26  ;;  %v33592_v35 = vand.u32 4294901760, %v20485_v45 }
0x1031   :  { %28162 = vmatmul.mubr.f32.vlgmr.msra.gmra.mrb[170].mxu0 %v33451_v56  ;;  %28239 = vmatmul.mubr.f32.vlgmr.msra.gmra.mrb[84].mxu1 %v33445_v16  ;;  %v33615_v36 = vsub.f32 %v20485_v45, %v33592_v35  ;;  %v20622_v56 = vand.u32 4294901760, %v20621_v24  ;;  %v20664_v45 = vsub.f32 %v33567_v12, %v20506_v39 }
0x1032   :  { %29970 = vmatpush3.bf16.msra.mxu0 %v32237_v5  ;;  %30006 = vmatpush3.bf16.msra.mxu1 %v32374_v61  ;;  %v20509_v5 = vand.u32 4294901760, %v33569_v9  ;;  %v33602_v61 = vsub.f32 %v20482_v42, %v33571_v49  ;;  %v20653_v42 = vand.u32 4294901760, %v20652_v55  ;;  %v33672_v55 = vpack.c.bf16 %v20658_v11, %v20651_v51 }
0x1033   :  { %29971 = vmatprep.subr.bf16.mxu0 %v34252_v26  ;;  %30007 = vmatprep.subr.bf16.mxu1 %v34252_v26  ;;  %v20571_v26 = vsub.f32 %v33555_v63, %v20570_v40  ;;  %v20600_v38 = vand.u32 4294901760, %v33615_v36  ;;  %v20665_v15 = vand.u32 4294901760, %v20664_v45 }
0x1034   :  { %28183 = vmatprep.mubr.msk.f32.mxu0 %vm31142_vm8, %v31143_v33  ;;  %28249 = vmatprep.mubr.msk.f32.mxu1 %vm31142_vm8, %v31143_v33  ;;  %v33611_v33 = vpack.c.bf16 %v20509_v5, %v20506_v39  ;;  %v20590_v34 = vand.u32 4294901760, %v33602_v61  ;;  %v30018_v50 = vpack.c.bf16 %v20660_v58, %v20653_v42  ;;  %v20671_v54 = vsub.f32 %v33569_v9, %v20509_v5 }
0x1035   :  { %v20572_v41 = vand.u32 4294901760, %v20571_v26  ;;  %v20601_v53 = vsub.f32 %v33615_v36, %v20600_v38  ;;  %v20666_v17 = vsub.f32 %v20664_v45, %v20665_v15 }
0x1036   :  { %29973 = vmatpush3.bf16.msra.mxu0 %v32252_v30  ;;  %30009 = vmatpush3.bf16.msra.mxu1 %v32389_v23  ;;  %v33623_v30 = vand.u32 4294901760, %v20494_v37  ;;  %v20581_v23 = vsub.f32 %v33580_v18, %v20580_v20  ;;  %v20591_v1 = vsub.f32 %v33602_v61, %v20590_v34  ;;  %v20672_v59 = vand.u32 4294901760, %v20671_v54 }
0x1037   :  { %30011 = vmatprep.subr.bf16.mxu0 %v33588_v6  ;;  %v20602_v52 = vand.u32 4294901760, %v20601_v53  ;;  %v20667_v26 = vand.u32 4294901760, %v20666_v17  ;;  %v33669_v12 = vpack.c.bf16 %v20671_v54, %v20664_v45 }
0x1038   :  { %v33641_v29 = vsub.f32 %v20494_v37, %v33623_v30  ;;  %v20582_v60 = vand.u32 4294901760, %v20581_v23  ;;  %v20592_v21 = vand.u32 4294901760, %v20591_v1  ;;  %v20673_v57 = vsub.f32 %v20671_v54, %v20672_v59  ;;  %v20433_v54 = vld [vmem:[#allocation2 + $0x38] sm:$0xff] }
0x1039   :  { %28184 = vmatmul.mubr.f32.vlgmr.msra.gmra.mrb[172].mxu0 %v33445_v16  ;;  %28250 = vmatmul.mubr.f32.vlgmr.msra.gmra.mrb[84].mxu1 %v33445_v16  ;;  %v20612_v16 = vand.u32 4294901760, %v20611_v43  ;;  %v33674_v58 = vpack.c.bf16 %v20672_v59, %v20665_v15 }
0x103a   :  { %30013 = vmatpush3.bf16.msra.mxu0 %v33588_v6  ;;  %28260 = vmatprep.mubr.f32.mxu0 %v20572_v41  ;;  %v20630_v13 = vand.u32 4294901760, %v33641_v29  ;;  %v20674_v27 = vand.u32 4294901760, %v20673_v57  ;;  %v33666_v41 = vpack.c.bf16 %v20657_v22, %v20650_v10 }
0x103b   :  { %30015 = vmatprep.subr.bf16.mxu0 %v33611_v33 }
0x103c   :  { %v20631_v7 = vsub.f32 %v33641_v29, %v20630_v13  ;;  %v30022_v28 = vpack.c.bf16 %v20674_v27, %v20667_v26 }
0x103e   :  { %30017 = vmatpush3.bf16.msra.mxu0 %v33611_v33  ;;  %v20632_v3 = vand.u32 4294901760, %v20631_v7 }
0x103f   :  { %30019 = vmatprep.subr.bf16.mxu0 %v30018_v50 }
0x1041   :  { %28261 = vmatmul.mubr.f32.vlgmr.msra.gmra.mrb[174].mxu0 %v20582_v60 }
0x1042   :  { %28263 = vmatprep.mubr.f32.mxu0 %v20592_v21  ;;  %30021 = vmatpush3.bf16.msra.mxu0 %v30018_v50 }
0x1043   :  { %30023 = vmatprep.subr.bf16.mxu0 %v30022_v28 }
0x1045   :  { %28264 = vmatmul.mubr.f32.gmra.mrb[176].mxu0 %v20602_v52 }
0x1046   :  { %28266 = vmatprep.mubr.f32.mxu0 %v20612_v16  ;;  %30025 = vmatpush3.bf16.msra.mxu0 %v30022_v28 }
0x1047   :  { %30027 = vmatprep.subr.bf16.mxu0 %v33666_v41 }
0x1049   :  { %28267 = vmatmul.mubr.f32.gmra.mrb[178].mxu0 %v20622_v56 }
0x104a   :  { %28269 = vmatprep.mubr.f32.mxu0 %v20632_v3 }
0x10cc   :  { %v19053_v47 = vpop.f32.mrb[156].mxu0  ;;  %v19538_v37 = vpop.f32.mrb[78].mxu1 }
0x10cd   :  { %v28064_v23 = vpop.f32.mrb[157].mxu0  ;;  %v28130_v1 = vpop.f32.mrb[79].mxu1  ;;  %v19054_v9 = vadd.f32 %v33429_v4, %v19053_v47  ;;  %v19539_v26 = vadd.f32 %v33432_v62, %v19538_v37 }
0x10d4   :  { %v19144_v39 = vpop.f32.mrb[158].mxu0  ;;  %v19709_v5 = vpop.f32.mrb[80].mxu1 }
0x10d5   :  { %v19145_v60 = vadd.f32 %v19144_v39, %v19054_v9  ;;  %v28075_v53 = vpop.f32.mrb[159].mxu0  ;;  %v28152_v21 = vpop.f32.mrb[81].mxu1 }
0x10dc   :  { %v19224_v43 = vpop.f32.mrb[160].mxu0  ;;  %v19869_v52 = vpop.f32.mrb[82].mxu1 }
0x10dd   :  { %v19225_v24 = vadd.f32 %v19224_v43, %v19145_v60  ;;  %v28086_v16 = vpop.f32.mrb[161].mxu0  ;;  %v28174_v7 = vpop.f32.mrb[83].mxu1 }
0x10e4   :  { %v19301_v56 = vpop.f32.mrb[162].mxu0 }
0x10e5   :  { %v19302_v3 = vadd.f32 %v19301_v56, %v19225_v24  ;;  %v28097_v10 = vpop.f32.mrb[163].mxu0  ;;  %v20441_v24 = vld [vmem:[#allocation3 + $0x38] sm:$0xff] }
0x10ec   :  { %v19384_v22 = vpop.f32.mrb[164].mxu0 }
0x10ed   :  { %v19385_v2 = vadd.f32 %v19384_v22, %v19302_v3  ;;  %v28108_v42 = vpop.f32.mrb[165].mxu0  ;;  %v20449_v3 = vld [vmem:[#allocation4 + $0x38] sm:$0xff] }
0x10f4   :  { %v19459_v4 = vpop.f32.mrb[166].mxu0 }
0x10f5   :  { %v19460_v50 = vadd.f32 %v19459_v4, %v19385_v2  ;;  %v28119_v45 = vpop.f32.mrb[167].mxu0 }
0x10f7   :  { %v20434_v17 = vadd.f32 %v20433_v54, %v19460_v50 }
0x10f9   :  { %v23934_v57 = vmul.f32 -1.442695, %v20434_v17 }
0x10fb   :  { %31027 = vpow2.f32 %v23934_v57 }
0x10fc   :  { %v19629_v27 = vpop.f32.mrb[168].mxu0 }
0x10fd   :  { %v19630_v28 = vadd.f32 %v19629_v27, %v19539_v26  ;;  %v28141_v47 = vpop.f32.mrb[169].mxu0 }
0x10ff   :  { %v19710_v23 = vadd.f32 %v19709_v5, %v19630_v28 }
0x1104   :  { %v19786_v1 = vpop.f32.mrb[170].mxu0 }
0x1105   :  { %v31028_v51 = vpop.eup %31027  ;;  %v19787_v11 = vadd.f32 %v19786_v1, %v19710_v23  ;;  %v28163_v9 = vpop.f32.mrb[171].mxu0 }
0x1106   :  { %v20438_v39 = vadd.f32 1.0, %v31028_v51 }
0x1107   :  { %v19870_v15 = vadd.f32 %v19869_v52, %v19787_v11  ;;  %v23936_v11 = vld [vmem:[#allocation10 + $0x1c8] ss:$0 sm:$0xff] }
0x1108   :  { %31029 = vrcp.f32 %v20438_v39 }
0x110c   :  { %v19944_v59 = vpop.f32.mrb[172].mxu0  ;;  %v20429_v60 = vpop.f32.mrb[84].mxu1 }
0x110d   :  { %v19945_v53 = vadd.f32 %v19944_v59, %v19870_v15  ;;  %v28185_v21 = vpop.f32.mrb[173].mxu0  ;;  %v28251_v43 = vpop.f32.mrb[85].mxu1  ;;  %v30341_v37 = vadd.f32 %v33435_v19, %v20429_v60 }
0x110f   :  { %v20442_v16 = vadd.f32 %v20441_v24, %v19945_v53 }
0x1111   :  { %v23935_v62 = vmul.f32 -1.442695, %v20442_v16 }
0x1112   :  { %v31030_v7 = vpop.eup %31029 }
0x1113   :  { %31031 = vpow2.f32 %v23935_v62  ;;  %v20450_v5 = vmul.f32 %v31030_v7, %v30341_v37 }
0x1115   :  { %v20451_v22 = vadd.f32 %v20450_v5, %v20449_v3 }
0x111d   :  { %v31032_v56 = vpop.eup %31031 }
0x111e   :  { %v20446_v10 = vadd.f32 1.0, %v31032_v56 }
0x1120   :  { %31033 = vrcp.f32 %v20446_v10 }
0x1121   :  { %31035 = vtanh.f32 %v20451_v22 }
0x112a   :  { %v31034_v52 = vpop.eup %31033 }
0x112b   :  { %v20453_v2 = vsub.f32 1.0, %v31034_v52  ;;  %v31036_v42 = vpop.eup %31035  ;;  %v20455_v4 = vmul.f32 %v31034_v52, %v33439_v25  ;;  %v21333_v25 = vld [vmem:[#allocation10 + $0x1d0] sm:$0xff] }
0x112d   :  { %v20454_v50 = vmul.f32 %v31036_v42, %v20453_v2 }
0x112f   :  { %v20456_v45 = vadd.f32 %v20455_v4, %v20454_v50 }
0x1131   :  { %20457 = vst.msk [vmem:[#allocation5 + $0x38] sm:$0xff] %vm69_vm0, %v20456_v45 }
0x1138   :  { %v20465_v54 = vld [vmem:[#allocation5 + $0x38] sm:$0xff] }
0x1139   :  { %v20497_v19 = vsel %vm69_vm0, %v20465_v54, 0 }
0x113a   :  { %v20638_v17 = vand.u32 4294901760, %v20497_v19 }
0x113c   :  { %v20639_v57 = vsub.f32 %v20497_v19, %v20638_v17 }
0x113e   :  { %v20640_v26 = vand.u32 4294901760, %v20639_v57 }
0x1140   :  { %v20641_v27 = vsub.f32 %v20639_v57, %v20640_v26 }
0x1142   :  { %v20642_v28 = vand.u32 4294901760, %v20641_v27 }
0x1144   :  { %28270 = vmatmul.mubr.f32.gmra.mrb[180].mxu0 %v20642_v28 }
0x1145   :  { %28280 = vmatprep.mubr.f32.mxu0 %v33537_v44 }
0x1148   :  { %28281 = vmatmul.mubr.f32.vlgmr.msra.gmra.mrb[174].mxu0 %v33560_v31 }
0x1149   :  { %28283 = vmatprep.mubr.f32.mxu0 %v33571_v49  ;;  %30029 = vmatpush3.bf16.msra.mxu0 %v33666_v41 }
0x114a   :  { %30031 = vmatprep.subr.bf16.mxu0 %v33669_v12 }
0x114c   :  { %28284 = vmatmul.mubr.f32.gmra.mrb[176].mxu0 %v33592_v35 }
0x114d   :  { %28286 = vmatprep.mubr.f32.mxu0 %v33604_v46  ;;  %30033 = vmatpush3.bf16.msra.mxu0 %v33669_v12 }
0x114e   :  { %30035 = vmatprep.subr.bf16.mxu0 %v33588_v6 }
0x1150   :  { %28287 = vmatmul.mubr.f32.gmra.mrb[178].mxu0 %v33617_v32 }
0x1151   :  { %28289 = vmatprep.mubr.f32.mxu0 %v33623_v30 }
0x1154   :  { %28290 = vmatmul.mubr.f32.gmra.mrb[180].mxu0 %v20638_v17 }
0x1155   :  { %28300 = vmatprep.mubr.f32.mxu0 %v33555_v63  ;;  %v21334_v63 = vld [vmem:[#allocation10 + $0x1d8] sm:$0xff] }
0x1158   :  { %28301 = vmatmul.mubr.f32.vlgmr.msra.gmra.mrb[174].mxu0 %v33580_v18  ;;  %v21370_v18 = vand.u32 4294901760, %v21334_v63 }
0x1159   :  { %28303 = vmatprep.mubr.f32.mxu0 %v33602_v61  ;;  %30037 = vmatpush3.bf16.msra.mxu0 %v33588_v6  ;;  %v21336_v61 = vld [vmem:[#allocation10 + $0x1e8] sm:$0xff] }
0x115a   :  { %30039 = vmatprep.subr.bf16.mxu0 %v33611_v33 }
0x115c   :  { %28304 = vmatmul.mubr.f32.gmra.mrb[176].mxu0 %v33615_v36 }
0x115d   :  { %28306 = vmatprep.mubr.f32.mxu0 %v33621_v14  ;;  %30041 = vmatpush3.bf16.msra.mxu0 %v33611_v33 }
0x115e   :  { %30043 = vmatprep.subr.bf16.mxu0 %v33672_v55 }
0x1160   :  { %28307 = vmatmul.mubr.f32.gmra.mrb[178].mxu0 %v33634_v8 }
0x1161   :  { %28309 = vmatprep.mubr.f32.mxu0 %v33641_v29 }
0x1164   :  { %28310 = vmatmul.mubr.f32.gmra.mrb[180].mxu0 %v20639_v57 }
0x1165   :  { %28320 = vmatprep.mubr.f32.mxu0 %v20570_v40  ;;  %v21367_v40 = vand.u32 4294901760, %v21333_v25 }
0x1168   :  { %28321 = vmatmul.mubr.f32.vlgmr.msra.gmra.mrb[174].mxu0 %v20580_v20 }
0x1169   :  { %28323 = vmatprep.mubr.f32.mxu0 %v20590_v34  ;;  %30045 = vmatpush3.bf16.msra.mxu0 %v33672_v55 }
0x116a   :  { %30047 = vmatprep.subr.bf16.mxu0 %v33674_v58 }
0x116c   :  { %28324 = vmatmul.mubr.f32.gmra.mrb[176].mxu0 %v20600_v38 }
0x116d   :  { %28326 = vmatprep.mubr.f32.mxu0 %v20610_v0  ;;  %30049 = vmatpush3.bf16.msra.mxu0 %v33674_v58 }
0x116e   :  { %30051 = vmatprep.subr.bf16.mxu0 %v33588_v6 }
0x1170   :  { %28327 = vmatmul.mubr.f32.gmra.mrb[178].mxu0 %v20620_v48 }
0x1171   :  { %28329 = vmatprep.mubr.f32.mxu0 %v20630_v13 }
0x1174   :  { %28330 = vmatmul.mubr.f32.gmra.mrb[180].mxu0 %v20640_v26 }
0x1175   :  { %28340 = vmatprep.mubr.f32.mxu0 %v33537_v44 }
0x1178   :  { %28341 = vmatmul.mubr.f32.vlgmr.msra.gmra.mrb[174].mxu0 %v33560_v31 }
0x1179   :  { %28343 = vmatprep.mubr.f32.mxu0 %v33571_v49  ;;  %30053 = vmatpush3.bf16.msra.mxu0 %v33588_v6  ;;  %v33738_v6 = vpack.c.bf16 %v21370_v18, %v21367_v40 }
0x117a   :  { %30055 = vmatprep.subr.bf16.mxu0 %v33611_v33 }
0x117b   :  { %30059 = vmatprep.subr.bf16.mxu1 %v33738_v6 }
0x117c   :  { %28344 = vmatmul.mubr.f32.gmra.mrb[176].mxu0 %v33592_v35  ;;  %30061 = vmatpush3.bf16.msra.mxu1 %v33738_v6 }
0x117d   :  { %28346 = vmatprep.mubr.f32.mxu0 %v33604_v46  ;;  %30057 = vmatpush3.bf16.msra.mxu0 %v33611_v33  ;;  %v21524_v33 = vsub.f32 %v21334_v63, %v21370_v18 }
0x117f   :  { %v21525_v36 = vand.u32 4294901760, %v21524_v33 }
0x1180   :  { %28347 = vmatmul.mubr.f32.gmra.mrb[178].mxu0 %v33617_v32 }
0x1181   :  { %28349 = vmatprep.mubr.f32.mxu0 %v33623_v30  ;;  %v21526_v34 = vsub.f32 %v21524_v33, %v21525_v36 }
0x1183   :  { %v21527_v8 = vand.u32 4294901760, %v21526_v34 }
0x1184   :  { %28350 = vmatmul.mubr.f32.gmra.mrb[180].mxu0 %v20638_v17 }
0x1185   :  { %28360 = vmatprep.mubr.f32.mxu0 %v33537_v44  ;;  %v21335_v44 = vld [vmem:[#allocation10 + $0x1e0] sm:$0xff] }
0x1188   :  { %28361 = vmatmul.mubr.f32.vlgmr.msra.gmra.mrb[174].mxu0 %v33560_v31  ;;  %v21373_v31 = vand.u32 4294901760, %v21335_v44 }
0x1189   :  { %28363 = vmatprep.mubr.f32.mxu0 %v33571_v49  ;;  %v21376_v49 = vand.u32 4294901760, %v21336_v61 }
0x118a   :  { %v21531_v14 = vsub.f32 %v21335_v44, %v21373_v31 }
0x118c   :  { %28364 = vmatmul.mubr.f32.gmra.mrb[176].mxu0 %v33592_v35  ;;  %v33742_v35 = vpack.c.bf16 %v21376_v49, %v21373_v31  ;;  %v21532_v0 = vand.u32 4294901760, %v21531_v14 }
0x118d   :  { %28366 = vmatprep.mubr.f32.mxu0 %v33604_v46  ;;  %v21517_v46 = vsub.f32 %v21333_v25, %v21367_v40 }
0x118e   :  { %30063 = vmatprep.subr.bf16.mxu1 %v33742_v35  ;;  %v21533_v13 = vsub.f32 %v21531_v14, %v21532_v0 }
0x118f   :  { %30065 = vmatpush3.bf16.msra.mxu1 %v33742_v35  ;;  %v21518_v20 = vand.u32 4294901760, %v21517_v46  ;;  %v33751_v47 = vpack.c.bf16 %v21524_v33, %v21517_v46 }
0x1190   :  { %28367 = vmatmul.mubr.f32.gmra.mrb[178].mxu0 %v33617_v32  ;;  %v21534_v12 = vand.u32 4294901760, %v21533_v13 }
0x1191   :  { %28369 = vmatprep.mubr.f32.mxu0 %v33623_v30  ;;  %v21519_v32 = vsub.f32 %v21517_v46, %v21518_v20  ;;  %v21538_v30 = vsub.f32 %v21336_v61, %v21376_v49  ;;  %v33755_v1 = vpack.c.bf16 %v21525_v36, %v21518_v20 }
0x1193   :  { %v21520_v38 = vand.u32 4294901760, %v21519_v32  ;;  %v21539_v29 = vand.u32 4294901760, %v21538_v30  ;;  %v33753_v23 = vpack.c.bf16 %v21538_v30, %v21531_v14 }
0x1194   :  { %28370 = vmatmul.mubr.f32.gmra.mrb[180].mxu0 %v20638_v17 }
0x1195   :  { %v33746_v48 = vpack.c.bf16 %v21527_v8, %v21520_v38  ;;  %v21540_v41 = vsub.f32 %v21538_v30, %v21539_v29  ;;  %v33757_v51 = vpack.c.bf16 %v21539_v29, %v21532_v0 }
0x1197   :  { %30067 = vmatprep.subr.bf16.mxu1 %v33746_v48  ;;  %v21541_v55 = vand.u32 4294901760, %v21540_v41 }
0x1199   :  { %v33749_v58 = vpack.c.bf16 %v21541_v55, %v21534_v12 }
0x125b   :  { %v28362_v9 = vpop.f32.mrb[174].mxu0 }
0x125c   :  { %v30342_v39 = vadd.f32 %v28362_v9, %v23936_v11  ;;  %v21239_v15 = vpop.f32.mrb[175].mxu0 }
0x125d   :  { %v30343_v59 = vadd.f32 %v23936_v11, %v21239_v15 }
0x125e   :  { %v21294_v60 = vmin.f32 %v30342_v39, 0.0  ;;  %vm21286_vm9 = vcmp.gt.f32.partialorder %v30342_v39, 0.0 }
0x125f   :  { %v21293_v53 = vmin.f32 %v30343_v59, 0.0  ;;  %v28365_v21 = vpop.f32.mrb[176].mxu0  ;;  %vm21285_vm10 = vcmp.gt.f32.partialorder %v30343_v59, 0.0 }
0x1260   :  { %v21303_v43 = vmul.f32 1.442695, %v21294_v60  ;;  %v30344_v24 = vadd.f32 %v28365_v21, %v23936_v11  ;;  %v21251_v16 = vpop.f32.mrb[177].mxu0 }
0x1261   :  { %v21301_v62 = vmul.f32 1.442695, %v21293_v53  ;;  %v30345_v37 = vadd.f32 %v23936_v11, %v21251_v16 }
0x1262   :  { %31037 = vpow2.f32 %v21303_v43  ;;  %v21296_v7 = vmin.f32 %v30344_v24, 0.0  ;;  %vm21288_vm11 = vcmp.gt.f32.partialorder %v30344_v24, 0.0 }
0x1263   :  { %31039 = vpow2.f32 %v21301_v62  ;;  %v21295_v5 = vmin.f32 %v30345_v37, 0.0  ;;  %v28368_v56 = vpop.f32.mrb[178].mxu0  ;;  %vm21287_vm12 = vcmp.gt.f32.partialorder %v30345_v37, 0.0 }
0x1264   :  { %v21307_v3 = vmul.f32 1.442695, %v21296_v7  ;;  %v30346_v10 = vadd.f32 %v28368_v56, %v23936_v11  ;;  %v21263_v22 = vpop.f32.mrb[179].mxu0 }
0x1265   :  { %v21305_v52 = vmul.f32 1.442695, %v21295_v5  ;;  %v30347_v2 = vadd.f32 %v23936_v11, %v21263_v22 }
0x1266   :  { %31041 = vpow2.f32 %v21307_v3  ;;  %v21298_v42 = vmin.f32 %v30346_v10, 0.0  ;;  %vm21290_vm13 = vcmp.gt.f32.partialorder %v30346_v10, 0.0 }
0x1267   :  { %31043 = vpow2.f32 %v21305_v52  ;;  %v21297_v4 = vmin.f32 %v30347_v2, 0.0  ;;  %v28371_v50 = vpop.f32.mrb[180].mxu0  ;;  %vm21289_vm14 = vcmp.gt.f32.partialorder %v30347_v2, 0.0 }
0x1268   :  { %v21311_v45 = vmul.f32 1.442695, %v21298_v42  ;;  %v33759_v54 = vadd.f32 %v28371_v50, %v23936_v11  ;;  %v21275_v19 = vpop.f32.mrb[181].mxu0 }
0x1269   :  { %v21309_v17 = vmul.f32 1.442695, %v21297_v4  ;;  %v33761_v57 = vadd.f32 %v23936_v11, %v21275_v19 }
0x126a   :  { %31045 = vpow2.f32 %v21311_v45  ;;  %v21300_v26 = vmin.f32 %v33759_v54, 0.0  ;;  %vm21292_vm15 = vcmp.gt.f32.partialorder %v33759_v54, 0.0 }
0x126b   :  { %31047 = vpow2.f32 %v21309_v17  ;;  %v21299_v27 = vmin.f32 %v33761_v57, 0.0  ;;  %vm21291_vm2 = vcmp.gt.f32.partialorder %v33761_v57, 0.0 }
0x126c   :  { %v31038_v28 = vpop.eup %31037  ;;  %v21315_v25 = vmul.f32 1.442695, %v21300_v26 }
0x126d   :  { %v31040_v63 = vpop.eup %31039  ;;  %v23938_v40 = vadd.f32 -1.0, %v31038_v28  ;;  %v21313_v18 = vmul.f32 1.442695, %v21299_v27 }
0x126e   :  { %v23937_v44 = vadd.f32 -1.0, %v31040_v63  ;;  %31049 = vpow2.f32 %v21315_v25 }
0x126f   :  { %v21326_v61 = vsel %vm21286_vm9, %v30342_v39, %v23938_v40  ;;  %31051 = vpow2.f32 %v21313_v18 }
0x1270   :  { %v31042_v31 = vpop.eup %31041  ;;  %v21346_v49 = vsel %vm69_vm0, %v21326_v61, 0  ;;  %v21325_v46 = vsel %vm21285_vm10, %v30343_v59, %v23937_v44 }
0x1271   :  { %v31044_v33 = vpop.eup %31043  ;;  %v33766_v20 = vand.u32 4294901760, %v21346_v49  ;;  %v21343_v36 = vsel %vm69_vm0, %v21325_v46, 0  ;;  %v23940_v32 = vadd.f32 -1.0, %v31042_v31 }
0x1272   :  { %v33769_v34 = vand.u32 4294901760, %v21343_v36  ;;  %v23939_v14 = vadd.f32 -1.0, %v31044_v33 }
0x1273   :  { %v33772_v30 = vsub.f32 %v21346_v49, %v33766_v20  ;;  %v21328_v38 = vsel %vm21288_vm11, %v30344_v24, %v23940_v32 }
0x1274   :  { %v31046_v8 = vpop.eup %31045  ;;  %v33775_v0 = vsub.f32 %v21343_v36, %v33769_v34  ;;  %v21352_v29 = vsel %vm69_vm0, %v21328_v38, 0  ;;  %v21327_v13 = vsel %vm21287_vm12, %v30345_v37, %v23939_v14 }
0x1275   :  { %v31048_v41 = vpop.eup %31047  ;;  %v33778_v12 = vand.u32 4294901760, %v21352_v29  ;;  %v21349_v55 = vsel %vm69_vm0, %v21327_v13, 0  ;;  %v23942_v11 = vadd.f32 -1.0, %v31046_v8  ;;  %v21447_v9 = vand.u32 4294901760, %v33772_v30 }
0x1276   :  { %v33782_v39 = vand.u32 4294901760, %v21349_v55  ;;  %v23941_v15 = vadd.f32 -1.0, %v31048_v41  ;;  %v21437_v59 = vand.u32 4294901760, %v33775_v0 }
0x1277   :  { %v33786_v60 = vsub.f32 %v21352_v29, %v33778_v12  ;;  %v21330_v53 = vsel %vm21290_vm13, %v30346_v10, %v23942_v11  ;;  %v21448_v21 = vsub.f32 %v33772_v30, %v21447_v9 }
0x1278   :  { %v31050_v43 = vpop.eup %31049  ;;  %v33793_v24 = vsub.f32 %v21349_v55, %v33782_v39  ;;  %v21358_v16 = vsel %vm69_vm0, %v21330_v53, 0  ;;  %v21329_v62 = vsel %vm21289_vm14, %v30347_v2, %v23941_v15  ;;  %v21438_v37 = vsub.f32 %v33775_v0, %v21437_v59  ;;  %v34278_v53 = vld [vmem:[#allocation28_spill] sm:$0xff] }
0x1279   :  { %v31052_v7 = vpop.eup %31051  ;;  %v33799_v5 = vand.u32 4294901760, %v21358_v16  ;;  %v21355_v56 = vsel %vm69_vm0, %v21329_v62, 0  ;;  %v23944_v3 = vadd.f32 -1.0, %v31050_v43  ;;  %v21449_v50 = vand.u32 4294901760, %v21448_v21 }
0x127a   :  { %v33803_v10 = vand.u32 4294901760, %v21355_v56  ;;  %v23943_v22 = vadd.f32 -1.0, %v31052_v7  ;;  %v21439_v52 = vand.u32 4294901760, %v21438_v37  ;;  %v21457_v42 = vand.u32 4294901760, %v33793_v24 }
0x127b   :  { %v33807_v2 = vsub.f32 %v21358_v16, %v33799_v5  ;;  %v21332_v4 = vsel %vm21292_vm15, %v33759_v54, %v23944_v3  ;;  %v21467_v45 = vand.u32 4294901760, %v33786_v60  ;;  %v22751_v21 = vsel %vm1834_vm6, %v34278_v53, 0 }
0x127c   :  { %v33814_v19 = vsub.f32 %v21355_v56, %v33803_v10  ;;  %v21364_v17 = vsel %vm69_vm0, %v21332_v4, 0  ;;  %v21331_v26 = vsel %vm21291_vm2, %v33761_v57, %v23943_v22  ;;  %28380 = vmatprep.mubr.f32.mxu1 %v21439_v52  ;;  %v21458_v27 = vsub.f32 %v33793_v24, %v21457_v42  ;;  %v23267_v4 = vld [vmem:[#allocation10 + $0x210] sm:$0xff] }
0x127d   :  { %v33821_v28 = vand.u32 4294901760, %v21364_v17  ;;  %v21361_v25 = vsel %vm69_vm0, %v21331_v26, 0  ;;  %28381 = vmatmul.mubr.f32.vlgmr.msra.gmra.mrb[86].mxu1 %v21449_v50  ;;  %v21468_v54 = vsub.f32 %v33786_v60, %v21467_v45  ;;  %v21487_v63 = vand.u32 4294901760, %v33807_v2  ;;  %v23268_v50 = vld [vmem:[#allocation10 + $0x218] sm:$0xff]  ;;  %v23269_v26 = vld [vmem:[#allocation10 + $0x220] sm:$0xff] }
0x127e   :  { %v33828_v40 = vand.u32 4294901760, %v21361_v25  ;;  %v21459_v18 = vand.u32 4294901760, %v21458_v27  ;;  %30069 = vmatpush3.bf16.msra.mxu1 %v33746_v48  ;;  %v21477_v57 = vand.u32 4294901760, %v33814_v19  ;;  %v23270_v27 = vld [vmem:[#allocation10 + $0x228] sm:$0xff] }
0x127f   :  { %v21506_v44 = vsub.f32 %v21364_v17, %v33821_v28  ;;  %v21469_v61 = vand.u32 4294901760, %v21468_v54  ;;  %v21488_v31 = vsub.f32 %v33807_v2, %v21487_v63  ;;  %30071 = vmatprep.subr.bf16.mxu1 %v33749_v58 }
0x1280   :  { %v21496_v49 = vsub.f32 %v21361_v25, %v33828_v40  ;;  %28383 = vmatprep.mubr.f32.mxu1 %v21459_v18  ;;  %v21478_v46 = vsub.f32 %v33814_v19, %v21477_v57  ;;  %v23296_v25 = vand.u32 4294901760, %v23270_v27 }
0x1281   :  { %28384 = vmatmul.mubr.f32.gmra.mrb[88].mxu1 %v21469_v61  ;;  %v21507_v33 = vand.u32 4294901760, %v21506_v44  ;;  %v21489_v48 = vand.u32 4294901760, %v21488_v31 }
0x1282   :  { %v21479_v36 = vand.u32 4294901760, %v21478_v46  ;;  %v21497_v32 = vand.u32 4294901760, %v21496_v49  ;;  %30073 = vmatpush3.bf16.msra.mxu1 %v33749_v58  ;;  %v22740_v58 = vld [vmem:[#allocation10 + $0x1f8] sm:$0xff]  ;;  %v23274_v46 = vld [vmem:[#allocation10 + $0x248] sm:$0xff] }
0x1283   :  { %v21508_v14 = vsub.f32 %v21506_v44, %v21507_v33  ;;  %30075 = vmatprep.subr.bf16.mxu1 %v33751_v47 }
0x1284   :  { %28386 = vmatprep.mubr.f32.mxu1 %v21479_v36  ;;  %v21498_v38 = vsub.f32 %v21496_v49, %v21497_v32  ;;  %v23308_v36 = vand.u32 4294901760, %v23274_v46 }
0x1285   :  { %28387 = vmatmul.mubr.f32.gmra.mrb[90].mxu1 %v21489_v48  ;;  %v21509_v29 = vand.u32 4294901760, %v21508_v14 }
0x1286   :  { %v21499_v8 = vand.u32 4294901760, %v21498_v38 }
0x1288   :  { %28389 = vmatprep.mubr.f32.mxu1 %v21499_v8 }
0x1289   :  { %28390 = vmatmul.mubr.f32.gmra.mrb[92].mxu1 %v21509_v29 }
0x128a   :  { %28400 = vmatprep.mubr.f32.mxu1 %v33769_v34 }
0x128d   :  { %28401 = vmatmul.mubr.f32.vlgmr.msra.gmra.mrb[86].mxu1 %v33766_v20 }
0x128e   :  { %28403 = vmatprep.mubr.f32.mxu1 %v33782_v39  ;;  %30077 = vmatpush3.bf16.msra.mxu1 %v33751_v47  ;;  %v22741_v47 = vld [vmem:[#allocation10 + $0x200] sm:$0xff] }
0x128f   :  { %30079 = vmatprep.subr.bf16.mxu1 %v33753_v23 }
0x1291   :  { %28404 = vmatmul.mubr.f32.gmra.mrb[88].mxu1 %v33778_v12 }
0x1292   :  { %28406 = vmatprep.mubr.f32.mxu1 %v33803_v10  ;;  %30081 = vmatpush3.bf16.msra.mxu1 %v33753_v23  ;;  %v22754_v23 = vand.u32 4294901760, %v22740_v58 }
0x1293   :  { %30083 = vmatprep.subr.bf16.mxu1 %v33738_v6 }
0x1295   :  { %28407 = vmatmul.mubr.f32.gmra.mrb[90].mxu1 %v33799_v5 }
0x1296   :  { %28409 = vmatprep.mubr.f32.mxu1 %v33828_v40 }
0x1299   :  { %28410 = vmatmul.mubr.f32.gmra.mrb[92].mxu1 %v33821_v28 }
0x129a   :  { %28420 = vmatprep.mubr.f32.mxu1 %v33775_v0 }
0x129d   :  { %28421 = vmatmul.mubr.f32.vlgmr.msra.gmra.mrb[86].mxu1 %v33772_v30  ;;  %v22757_v30 = vand.u32 4294901760, %v22741_v47 }
0x129e   :  { %28423 = vmatprep.mubr.f32.mxu1 %v33793_v24  ;;  %30085 = vmatpush3.bf16.msra.mxu1 %v33738_v6 }
0x129f   :  { %30087 = vmatprep.subr.bf16.mxu1 %v33742_v35  ;;  %v22849_v0 = vsub.f32 %v22741_v47, %v22757_v30 }
0x12a1   :  { %28424 = vmatmul.mubr.f32.gmra.mrb[88].mxu1 %v33786_v60  ;;  %v22850_v41 = vand.u32 4294901760, %v22849_v0 }
0x12a2   :  { %28426 = vmatprep.mubr.f32.mxu1 %v33814_v19  ;;  %30089 = vmatpush3.bf16.msra.mxu1 %v33742_v35  ;;  %v23290_v19 = vand.u32 4294901760, %v23268_v50 }
0x12a3   :  { %30091 = vmatprep.subr.bf16.mxu1 %v33755_v1  ;;  %v22851_v11 = vsub.f32 %v22849_v0, %v22850_v41 }
0x12a4   :  { %v33918_v31 = vsub.f32 %v23268_v50, %v23290_v19 }
0x12a5   :  { %28427 = vmatmul.mubr.f32.gmra.mrb[90].mxu1 %v33807_v2 }
0x12a6   :  { %28429 = vmatprep.mubr.f32.mxu1 %v21496_v49  ;;  %v23273_v49 = vld [vmem:[#allocation10 + $0x240] sm:$0xff]  ;;  %v23389_v48 = vand.u32 4294901760, %v33918_v31 }
0x12a8   :  { %v23390_v8 = vsub.f32 %v33918_v31, %v23389_v48 }
0x12a9   :  { %28430 = vmatmul.mubr.f32.gmra.mrb[92].mxu1 %v21506_v44 }
0x12aa   :  { %28440 = vmatprep.mubr.f32.mxu1 %v21437_v59  ;;  %v22852_v59 = vand.u32 4294901760, %v22851_v11 }
0x12ad   :  { %28441 = vmatmul.mubr.f32.vlgmr.msra.gmra.mrb[86].mxu1 %v21447_v9  ;;  %v34277_v9 = vld [vmem:[#allocation27_spill] sm:$0xff] }
0x12ae   :  { %28443 = vmatprep.mubr.f32.mxu1 %v21457_v42  ;;  %30093 = vmatpush3.bf16.msra.mxu1 %v33755_v1  ;;  %v22842_v1 = vsub.f32 %v22740_v58, %v22754_v23  ;;  %v22748_v15 = vsel %vm1834_vm6, %v34277_v9, 0  ;;  %v33934_v58 = vsub.f32 %v23270_v27, %v23296_v25  ;;  %vm23895_vm6 = vcmask 785408  }
0x12af   :  { %30095 = vmatprep.subr.bf16.mxu1 %v33757_v51  ;;  %v22820_v60 = vand.u32 4294901760, %v22748_v15 }
0x12b0   :  { %v22843_v13 = vand.u32 4294901760, %v22842_v1 }
0x12b1   :  { %28444 = vmatmul.mubr.f32.gmra.mrb[88].mxu1 %v21467_v45  ;;  %v22821_v24 = vsub.f32 %v22748_v15, %v22820_v60  ;;  %v23287_v45 = vand.u32 4294901760, %v23267_v4 }
0x12b2   :  { %28446 = vmatprep.mubr.f32.mxu1 %v21477_v57  ;;  %30097 = vmatpush3.bf16.msra.mxu1 %v33757_v51  ;;  %v30202_v51 = vpack.c.bf16 %v22757_v30, %v22754_v23  ;;  %v22844_v55 = vsub.f32 %v22842_v1, %v22843_v13  ;;  %v23391_v23 = vand.u32 4294901760, %v23390_v8 }
0x12b3   :  { %30099 = vmatprep.subr.bf16.mxu1 %v33738_v6  ;;  %v22822_v62 = vand.u32 4294901760, %v22821_v24  ;;  %v33906_v17 = vpack.c.bf16 %v23290_v19, %v23287_v45  ;;  %v33916_v61 = vsub.f32 %v23267_v4, %v23287_v45  ;;  %v23945_v45 = vld [vmem:[#allocation10 + $0x1f0] ss:$0 sm:$0xff] }
0x12b5   :  { %28447 = vmatmul.mubr.f32.gmra.mrb[90].mxu1 %v21487_v63  ;;  %v22823_v7 = vsub.f32 %v22821_v24, %v22822_v62  ;;  %v23271_v63 = vld [vmem:[#allocation10 + $0x230] sm:$0xff] }
0x12b6   :  { %28449 = vmatprep.mubr.f32.mxu1 %v21497_v32  ;;  %v23299_v18 = vand.u32 4294901760, %v23271_v63  ;;  %v23382_v32 = vand.u32 4294901760, %v33916_v61 }
0x12b7   :  { %v22824_v56 = vand.u32 4294901760, %v22823_v7 }
0x12b8   :  { %v23383_v38 = vsub.f32 %v33916_v61, %v23382_v32 }
0x12b9   :  { %28450 = vmatmul.mubr.f32.gmra.mrb[92].mxu1 %v21507_v33  ;;  %v23305_v33 = vand.u32 4294901760, %v23273_v49 }
0x12ba   :  { %28460 = vmatprep.mubr.f32.mxu1 %v33769_v34  ;;  %v23384_v47 = vand.u32 4294901760, %v23383_v38 }
0x12bb   :  { %v33924_v14 = vpack.c.bf16 %v23308_v36, %v23305_v33  ;;  %v33961_v53 = vsub.f32 %v23273_v49, %v23305_v33 }
0x12bd   :  { %28461 = vmatmul.mubr.f32.vlgmr.msra.gmra.mrb[86].mxu1 %v33766_v20 }
0x12be   :  { %28463 = vmatprep.mubr.f32.mxu1 %v33782_v39  ;;  %30101 = vmatpush3.bf16.msra.mxu1 %v33738_v6  ;;  %v22845_v6 = vand.u32 4294901760, %v22844_v55 }
0x12bf   :  { %30103 = vmatprep.subr.bf16.mxu1 %v33742_v35 }
0x12c0   :  { %v30206_v43 = vpack.c.bf16 %v22852_v59, %v22845_v6 }
0x12c1   :  { %28464 = vmatmul.mubr.f32.gmra.mrb[88].mxu1 %v33778_v12 }
0x12c2   :  { %28466 = vmatprep.mubr.f32.mxu1 %v33803_v10  ;;  %30105 = vmatpush3.bf16.msra.mxu1 %v33742_v35  ;;  %v22830_v35 = vand.u32 4294901760, %v22751_v21 }
0x12c3   :  { %30203 = vmatprep.subr.bf16.mxu1 %v30202_v51 }
0x12c4   :  { %v22831_v16 = vsub.f32 %v22751_v21, %v22830_v35  ;;  %v33963_v21 = vsub.f32 %v23274_v46, %v23308_v36 }
0x12c5   :  { %28467 = vmatmul.mubr.f32.gmra.mrb[90].mxu1 %v33799_v5 }
0x12c6   :  { %28469 = vmatprep.mubr.f32.mxu1 %v33828_v40  ;;  %v22832_v37 = vand.u32 4294901760, %v22831_v16 }
0x12c9   :  { %28470 = vmatmul.mubr.f32.gmra.mrb[92].mxu1 %v33821_v28 }
0x12ca   :  { %28480 = vmatprep.mubr.f32.mxu1 %v33769_v34  ;;  %v22833_v34 = vsub.f32 %v22831_v16, %v22832_v37 }
0x12cd   :  { %28481 = vmatmul.mubr.f32.vlgmr.msra.gmra.mrb[86].mxu1 %v33766_v20  ;;  %v22834_v20 = vand.u32 4294901760, %v22833_v34 }
0x12ce   :  { %28483 = vmatprep.mubr.f32.mxu1 %v33782_v39  ;;  %30205 = vmatpush3.bf16.msra.mxu1 %v30202_v51  ;;  %v30210_v39 = vpack.c.bf16 %v22849_v0, %v22842_v1  ;;  %v23403_v1 = vand.u32 4294901760, %v33934_v58  ;;  %v33940_v0 = vpack.c.bf16 %v23391_v23, %v23384_v47 }
0x12cf   :  { %30207 = vmatprep.subr.bf16.mxu1 %v30206_v43 }
0x12d0   :  { %v23404_v55 = vsub.f32 %v33934_v58, %v23403_v1 }
0x12d1   :  { %28484 = vmatmul.mubr.f32.gmra.mrb[88].mxu1 %v33778_v12  ;;  %v30218_v12 = vpack.c.bf16 %v22850_v41, %v22843_v13  ;;  %v33945_v13 = vsub.f32 %v23271_v63, %v23299_v18 }
0x12d2   :  { %28486 = vmatprep.mubr.f32.mxu1 %v33803_v10  ;;  %v23405_v6 = vand.u32 4294901760, %v23404_v55 }
0x12d3   :  { %v23410_v9 = vand.u32 4294901760, %v33945_v13 }
0x12d5   :  { %28487 = vmatmul.mubr.f32.gmra.mrb[90].mxu1 %v33799_v5  ;;  %v22152_v5 = vld [vmem:[#allocation10 + $0x298] sm:$0xff]  ;;  %v23411_v59 = vsub.f32 %v33945_v13, %v23410_v9 }
0x12d6   :  { %28489 = vmatprep.mubr.f32.mxu1 %v33828_v40  ;;  %v22155_v3 = vsel %vm629_vm1, %v22152_v5, 0  ;;  %v23272_v40 = vld [vmem:[#allocation10 + $0x238] sm:$0xff] }
0x12d7   :  { %v33897_v10 = vand.u32 4294901760, %v22155_v3  ;;  %v23302_v57 = vand.u32 4294901760, %v23272_v40 }
0x12d9   :  { %28490 = vmatmul.mubr.f32.gmra.mrb[92].mxu1 %v33821_v28  ;;  %v33900_v22 = vsub.f32 %v22155_v3, %v33897_v10  ;;  %v23293_v28 = vand.u32 4294901760, %v23269_v26  ;;  %v33914_v44 = vpack.c.bf16 %v23302_v57, %v23299_v18  ;;  %v33947_v41 = vsub.f32 %v23272_v40, %v23302_v57 }
0x12da   :  { %28610 = vmatprep.mubr.f32.mxu1 %v22824_v56 }
0x12db   :  { %v22235_v52 = vand.u32 4294901760, %v33900_v22  ;;  %v33910_v54 = vpack.c.bf16 %v23296_v25, %v23293_v28  ;;  %v33932_v29 = vsub.f32 %v23269_v26, %v23293_v28  ;;  %v23417_v15 = vand.u32 4294901760, %v33947_v41 }
0x12dc   :  { %v33989_v3 = vpack.c.bf16 %v33947_v41, %v33945_v13 }
0x12dd   :  { %28611 = vmatmul.mubr.f32.vlgmr.msra.gmra.mrb[94].mxu1 %v22834_v20  ;;  %v22236_v42 = vsub.f32 %v33900_v22, %v22235_v52  ;;  %v23396_v30 = vand.u32 4294901760, %v33932_v29  ;;  %v33985_v5 = vpack.c.bf16 %v33934_v58, %v33932_v29 }
0x12de   :  { %28617 = vmatprep.mubr.f32.mxu1 %v22820_v60  ;;  %30209 = vmatpush3.bf16.msra.mxu1 %v30206_v43  ;;  %v23412_v43 = vand.u32 4294901760, %v23411_v59 }
0x12df   :  { %30211 = vmatprep.subr.bf16.mxu1 %v30210_v39  ;;  %v22237_v2 = vand.u32 4294901760, %v22236_v42  ;;  %v33993_v42 = vpack.c.bf16 %v33963_v21, %v33961_v53 }
0x12e1   :  { %28508 = vmatprep.mubr.f32.mxu0 %v22237_v2  ;;  %v22153_v2 = vld [vmem:[#allocation10 + $0x2a0] sm:$0xff] }
0x12e2   :  { %v22158_v4 = vsel %vm629_vm1, %v22153_v2, 0 }
0x12e3   :  { %v33996_v50 = vand.u32 4294901760, %v22158_v4 }
0x12e5   :  { %28618 = vmatmul.mubr.f32.vlgmr.msra.gmra.mrb[94].mxu1 %v22830_v35  ;;  %v33999_v26 = vsub.f32 %v22158_v4, %v33996_v50 }
0x12e6   :  { %28624 = vmatprep.mubr.f32.mxu1 %v22821_v24  ;;  %30213 = vmatpush3.bf16.msra.mxu1 %v30210_v39 }
0x12e7   :  { %30215 = vmatprep.subr.bf16.mxu1 %v30202_v51  ;;  %v22245_v57 = vand.u32 4294901760, %v33999_v26 }
0x12ed   :  { %28625 = vmatmul.mubr.f32.vlgmr.msra.gmra.mrb[94].mxu1 %v22831_v16  ;;  %v23424_v16 = vand.u32 4294901760, %v33961_v53 }
0x12ee   :  { %28631 = vmatprep.mubr.f32.mxu1 %v22822_v62  ;;  %30217 = vmatpush3.bf16.msra.mxu1 %v30202_v51  ;;  %v23431_v62 = vand.u32 4294901760, %v33963_v21 }
0x12ef   :  { %30219 = vmatprep.subr.bf16.mxu1 %v30218_v12  ;;  %v23425_v7 = vsub.f32 %v33961_v53, %v23424_v16 }
0x12f0   :  { %v23432_v34 = vsub.f32 %v33963_v21, %v23431_v62 }
0x12f1   :  { %v23426_v56 = vand.u32 4294901760, %v23425_v7 }
0x12f2   :  { %v23433_v20 = vand.u32 4294901760, %v23432_v34  ;;  %v34017_v34 = vpack.c.bf16 %v23389_v48, %v23382_v32 }
0x12f4   :  { %v33977_v39 = vpack.c.bf16 %v23433_v20, %v23426_v56 }
0x12f5   :  { %28632 = vmatmul.mubr.f32.vlgmr.msra.gmra.mrb[94].mxu1 %v22832_v37 }
0x12f6   :  { %28638 = vmatprep.mubr.f32.mxu1 %v22820_v60  ;;  %30221 = vmatpush3.bf16.msra.mxu1 %v30218_v12  ;;  %v33981_v12 = vpack.c.bf16 %v33918_v31, %v33916_v61 }
0x12f7   :  { %30223 = vmatprep.subr.bf16.mxu1 %v30202_v51 }
0x12fd   :  { %28639 = vmatmul.mubr.f32.vlgmr.msra.gmra.mrb[94].mxu1 %v22830_v35 }
0x12fe   :  { %28645 = vmatprep.mubr.f32.mxu1 %v22820_v60  ;;  %30225 = vmatpush3.bf16.msra.mxu1 %v30202_v51  ;;  %v23397_v51 = vsub.f32 %v33932_v29, %v23396_v30  ;;  %v23418_v60 = vsub.f32 %v33947_v41, %v23417_v15 }
0x12ff   :  { %30227 = vmatprep.subr.bf16.mxu1 %v33906_v17 }
0x1300   :  { %v23398_v11 = vand.u32 4294901760, %v23397_v51  ;;  %v23419_v24 = vand.u32 4294901760, %v23418_v60 }
0x1302   :  { %v33969_v37 = vpack.c.bf16 %v23419_v24, %v23412_v43 }
0x1305   :  { %28646 = vmatmul.mubr.f32.vlgmr.msra.gmra.mrb[94].mxu1 %v22830_v35  ;;  %v33965_v35 = vpack.c.bf16 %v23405_v6, %v23398_v11  ;;  %v34008_v6 = vsub.f32 %v33999_v26, %v22245_v57 }
0x1306   :  { %30229 = vmatpush3.bf16.msra.mxu1 %v33906_v17 }
0x1307   :  { %30231 = vmatprep.subr.bf16.mxu1 %v33910_v54  ;;  %v22247_v41 = vand.u32 4294901760, %v34008_v6 }
0x130a   :  { %30233 = vmatpush3.bf16.msra.mxu1 %v33910_v54 }
0x130b   :  { %30235 = vmatprep.subr.bf16.mxu1 %v33914_v44 }
0x130e   :  { %30237 = vmatpush3.bf16.msra.mxu1 %v33914_v44 }
0x130f   :  { %30239 = vmatprep.subr.bf16.mxu1 %v33924_v14 }
0x1312   :  { %30241 = vmatpush3.bf16.msra.mxu1 %v33924_v14 }
0x1313   :  { %30243 = vmatprep.subr.bf16.mxu1 %v33940_v0 }
0x13a0   :  { %v28482_v19 = vpop.f32.mrb[86].mxu1 }
0x13a1   :  { %v30350_v27 = vadd.f32 %v28482_v19, %v23945_v45  ;;  %v22106_v28 = vpop.f32.mrb[87].mxu1 }
0x13a2   :  { %v30351_v25 = vadd.f32 %v23945_v45, %v22106_v28 }
0x13a3   :  { %v22164_v63 = vand.u32 4294901760, %v30350_v27 }
0x13a4   :  { %v22161_v40 = vand.u32 4294901760, %v30351_v25  ;;  %v28485_v18 = vpop.f32.mrb[88].mxu1 }
0x13a5   :  { %v22262_v49 = vsub.f32 %v30350_v27, %v22164_v63  ;;  %v30352_v46 = vadd.f32 %v28485_v18, %v23945_v45  ;;  %v22118_v33 = vpop.f32.mrb[89].mxu1 }
0x13a6   :  { %v34002_v36 = vpack.c.bf16 %v22164_v63, %v22161_v40  ;;  %v22255_v38 = vsub.f32 %v30351_v25, %v22161_v40  ;;  %v30353_v8 = vadd.f32 %v23945_v45, %v22118_v33  ;;  %v34029_v33 = vpack.c.bf16 %v23403_v1, %v23396_v30 }
0x13a7   :  { %v22263_v47 = vand.u32 4294901760, %v22262_v49  ;;  %v22170_v23 = vand.u32 4294901760, %v30352_v46  ;;  %v34041_v1 = vpack.c.bf16 %v23417_v15, %v23410_v9 }
0x13a8   :  { %v22256_v51 = vand.u32 4294901760, %v22255_v38  ;;  %v22167_v55 = vand.u32 4294901760, %v30353_v8  ;;  %v28488_v11 = vpop.f32.mrb[90].mxu1  ;;  %30107 = vmatprep.subr.bf16.mxu0 %v34002_v36  ;;  %v34010_v59 = vpack.c.bf16 %v22262_v49, %v22255_v38 }
0x13a9   :  { %v22276_v60 = vsub.f32 %v30352_v46, %v22170_v23  ;;  %v30354_v43 = vadd.f32 %v28488_v11, %v23945_v45  ;;  %v22130_v24 = vpop.f32.mrb[91].mxu1  ;;  %30109 = vmatpush3.bf16.msra.mxu0 %v34002_v36  ;;  %v22264_v7 = vsub.f32 %v22262_v49, %v22263_v47 }
0x13aa   :  { %v34019_v56 = vpack.c.bf16 %v22170_v23, %v22167_v55  ;;  %v22269_v20 = vsub.f32 %v30353_v8, %v22167_v55  ;;  %v30355_v2 = vadd.f32 %v23945_v45, %v22130_v24  ;;  %v22257_v4 = vsub.f32 %v22255_v38, %v22256_v51 }
0x13ab   :  { %v22277_v19 = vand.u32 4294901760, %v22276_v60  ;;  %v22176_v27 = vand.u32 4294901760, %v30354_v43  ;;  %v22265_v28 = vand.u32 4294901760, %v22264_v7  ;;  %v34021_v25 = vpack.c.bf16 %v22263_v47, %v22256_v51 }
0x13ac   :  { %v22270_v63 = vand.u32 4294901760, %v22269_v20  ;;  %v22173_v40 = vand.u32 4294901760, %v30355_v2  ;;  %v28491_v18 = vpop.f32.mrb[92].mxu1  ;;  %30111 = vmatprep.subr.bf16.mxu0 %v34019_v56  ;;  %v22258_v61 = vand.u32 4294901760, %v22257_v4  ;;  %v30142_v49 = vpack.c.bf16 %v22276_v60, %v22269_v20 }
0x13ad   :  { %v22290_v31 = vsub.f32 %v30354_v43, %v22176_v27  ;;  %v30356_v32 = vadd.f32 %v28491_v18, %v23945_v45  ;;  %v22142_v48 = vpop.f32.mrb[93].mxu1  ;;  %30113 = vmatpush3.bf16.msra.mxu0 %v34019_v56  ;;  %v22278_v46 = vsub.f32 %v22276_v60, %v22277_v19 }
0x13ae   :  { %v34031_v38 = vpack.c.bf16 %v22176_v27, %v22173_v40  ;;  %v22283_v8 = vsub.f32 %v30355_v2, %v22173_v40  ;;  %v30357_v47 = vadd.f32 %v23945_v45, %v22142_v48  ;;  %v30122_v23 = vpack.c.bf16 %v22265_v28, %v22258_v61 }
0x13af   :  { %v22291_v51 = vand.u32 4294901760, %v22290_v31  ;;  %v22182_v55 = vand.u32 4294901760, %v30356_v32  ;;  %v22271_v11 = vsub.f32 %v22269_v20, %v22270_v63  ;;  %v22279_v43 = vand.u32 4294901760, %v22278_v46 }
0x13b0   :  { %v22284_v24 = vand.u32 4294901760, %v22283_v8  ;;  %v22179_v7 = vand.u32 4294901760, %v30357_v47  ;;  %30115 = vmatprep.subr.bf16.mxu0 %v34031_v38  ;;  %v30146_v60 = vpack.c.bf16 %v22290_v31, %v22283_v8  ;;  %v34034_v4 = vpack.c.bf16 %v22277_v19, %v22270_v63 }
0x13b1   :  { %v22304_v29 = vsub.f32 %v30356_v32, %v22182_v55  ;;  %30117 = vmatpush3.bf16.msra.mxu0 %v34031_v38  ;;  %v22272_v58 = vand.u32 4294901760, %v22271_v11  ;;  %v22292_v30 = vsub.f32 %v22290_v31, %v22291_v51  ;;  %v34051_v40 = vpack.c.bf16 %v23431_v62, %v23424_v16  ;;  %v23946_v62 = vld [vmem:[#allocation10 + $0x208] ss:$0 sm:$0xff] }
0x13b2   :  { %v34043_v45 = vpack.c.bf16 %v22182_v55, %v22179_v7  ;;  %v22297_v20 = vsub.f32 %v30357_v47, %v22179_v7  ;;  %v22285_v2 = vsub.f32 %v22283_v8, %v22284_v24  ;;  %v34045_v27 = vpack.c.bf16 %v22291_v51, %v22284_v24 }
0x13b3   :  { %v22305_v28 = vand.u32 4294901760, %v22304_v29  ;;  %v30126_v19 = vpack.c.bf16 %v22279_v43, %v22272_v58  ;;  %v22293_v63 = vand.u32 4294901760, %v22292_v30 }
0x13b4   :  { %v22298_v13 = vand.u32 4294901760, %v22297_v20  ;;  %30119 = vmatprep.subr.bf16.mxu0 %v34043_v45  ;;  %v22286_v9 = vand.u32 4294901760, %v22285_v2  ;;  %v30150_v15 = vpack.c.bf16 %v22304_v29, %v22297_v20 }
0x13b5   :  { %30121 = vmatpush3.bf16.msra.mxu0 %v34043_v45  ;;  %v22306_v18 = vsub.f32 %v22304_v29, %v22305_v28 }
0x13b6   :  { %30123 = vmatprep.subr.bf16.mxu0 %v30122_v23  ;;  %v30130_v61 = vpack.c.bf16 %v22293_v63, %v22286_v9  ;;  %v22299_v31 = vsub.f32 %v22297_v20, %v22298_v13  ;;  %v34056_v32 = vpack.c.bf16 %v22305_v28, %v22298_v13 }
0x13b7   :  { %v22307_v53 = vand.u32 4294901760, %v22306_v18 }
0x13b8   :  { %28509 = vmatmul.mubr.f32.vlgmr.msra.gmra.mrb[182].mxu0 %v22247_v41  ;;  %v22300_v21 = vand.u32 4294901760, %v22299_v31 }
0x13b9   :  { %30125 = vmatpush3.bf16.msra.mxu0 %v30122_v23  ;;  %28527 = vmatprep.mubr.f32.mxu0 %v33897_v10 }
0x13ba   :  { %30127 = vmatprep.subr.bf16.mxu0 %v30126_v19  ;;  %v30134_v16 = vpack.c.bf16 %v22307_v53, %v22300_v21 }
0x13bd   :  { %30129 = vmatpush3.bf16.msra.mxu0 %v30126_v19 }
0x13be   :  { %30131 = vmatprep.subr.bf16.mxu0 %v30130_v61 }
0x13c1   :  { %30133 = vmatpush3.bf16.msra.mxu0 %v30130_v61 }
0x13c2   :  { %30135 = vmatprep.subr.bf16.mxu0 %v30134_v16 }
0x13c5   :  { %30137 = vmatpush3.bf16.msra.mxu0 %v30134_v16 }
0x13c6   :  { %30139 = vmatprep.subr.bf16.mxu0 %v34010_v59 }
0x13c8   :  { %28528 = vmatmul.mubr.f32.vlgmr.msra.gmra.mrb[182].mxu0 %v33996_v50 }
0x13c9   :  { %30141 = vmatpush3.bf16.msra.mxu0 %v34010_v59  ;;  %28546 = vmatprep.mubr.f32.mxu0 %v33900_v22 }
0x13ca   :  { %30143 = vmatprep.subr.bf16.mxu0 %v30142_v49 }
0x13cd   :  { %30145 = vmatpush3.bf16.msra.mxu0 %v30142_v49 }
0x13ce   :  { %30147 = vmatprep.subr.bf16.mxu0 %v30146_v60 }
0x13d1   :  { %30149 = vmatpush3.bf16.msra.mxu0 %v30146_v60 }
0x13d2   :  { %30151 = vmatprep.subr.bf16.mxu0 %v30150_v15 }
0x13d5   :  { %30153 = vmatpush3.bf16.msra.mxu0 %v30150_v15 }
0x13d6   :  { %30155 = vmatprep.subr.bf16.mxu0 %v34002_v36 }
0x13d8   :  { %v28647_v6 = vpop.f32.mrb[94].mxu1  ;;  %28547 = vmatmul.mubr.f32.vlgmr.msra.gmra.mrb[182].mxu0 %v33999_v26 }
0x13d9   :  { %v30358_v48 = vadd.f32 %v28647_v6, %v23946_v62  ;;  %30157 = vmatpush3.bf16.msra.mxu0 %v34002_v36  ;;  %v23245_v46 = vpop.f32.mrb[95].mxu1  ;;  %28565 = vmatprep.mubr.f32.mxu0 %v22235_v52 }
0x13da   :  { %v30359_v59 = vadd.f32 %v23946_v62, %v23245_v46  ;;  %30159 = vmatprep.subr.bf16.mxu0 %v34019_v56 }
0x13db   :  { %v23258_v49 = vmin.f32 %v30358_v48, 0.0  ;;  %vm23256_vm3 = vcmp.gt.f32.partialorder %v30358_v48, 0.0 }
0x13dc   :  { %v23257_v8 = vmin.f32 %v30359_v59, 0.0  ;;  %vm23255_vm4 = vcmp.gt.f32.partialorder %v30359_v59, 0.0 }
0x13dd   :  { %v23261_v47 = vmul.f32 1.442695, %v23258_v49  ;;  %30161 = vmatpush3.bf16.msra.mxu0 %v34019_v56 }
0x13de   :  { %v23259_v23 = vmul.f32 1.442695, %v23257_v8  ;;  %30163 = vmatprep.subr.bf16.mxu0 %v34031_v38 }
0x13df   :  { %31053 = vpow2.f32 %v23261_v47 }
0x13e0   :  { %31055 = vpow2.f32 %v23259_v23 }
0x13e1   :  { %30165 = vmatpush3.bf16.msra.mxu0 %v34031_v38 }
0x13e2   :  { %30167 = vmatprep.subr.bf16.mxu0 %v34043_v45 }
0x13e5   :  { %30169 = vmatpush3.bf16.msra.mxu0 %v34043_v45 }
0x13e6   :  { %30171 = vmatprep.subr.bf16.mxu0 %v34021_v25 }
0x13e8   :  { %28566 = vmatmul.mubr.f32.vlgmr.msra.gmra.mrb[182].mxu0 %v22245_v57 }
0x13e9   :  { %v31054_v22 = vpop.eup %31053  ;;  %30173 = vmatpush3.bf16.msra.mxu0 %v34021_v25  ;;  %28584 = vmatprep.mubr.f32.mxu0 %v33897_v10 }
0x13ea   :  { %v31056_v52 = vpop.eup %31055  ;;  %v23948_v51 = vadd.f32 -1.0, %v31054_v22  ;;  %30175 = vmatprep.subr.bf16.mxu0 %v34034_v4 }
0x13eb   :  { %v23947_v55 = vadd.f32 -1.0, %v31056_v52 }
0x13ec   :  { %v23266_v11 = vsel %vm23256_vm3, %v30358_v48, %v23948_v51 }
0x13ed   :  { %v23284_v43 = vsel %vm629_vm1, %v23266_v11, 0  ;;  %v23265_v24 = vsel %vm23255_vm4, %v30359_v59, %v23947_v55  ;;  %30177 = vmatpush3.bf16.msra.mxu0 %v34034_v4 }
0x13ee   :  { %v34082_v26 = vand.u32 4294901760, %v23284_v43  ;;  %v23281_v57 = vsel %vm629_vm1, %v23265_v24, 0  ;;  %30179 = vmatprep.subr.bf16.mxu0 %v34045_v27 }
0x13ef   :  { %v34086_v25 = vand.u32 4294901760, %v23281_v57 }
0x13f0   :  { %v23370_v7 = vsub.f32 %v23284_v43, %v34082_v26 }
0x13f1   :  { %v23360_v60 = vsub.f32 %v23281_v57, %v34086_v25  ;;  %30181 = vmatpush3.bf16.msra.mxu0 %v34045_v27 }
0x13f2   :  { %30183 = vmatprep.subr.bf16.mxu0 %v34056_v32  ;;  %v23371_v29 = vand.u32 4294901760, %v23370_v7 }
0x13f3   :  { %v23361_v58 = vand.u32 4294901760, %v23360_v60 }
0x13f4   :  { %v23372_v30 = vsub.f32 %v23370_v7, %v23371_v29 }
0x13f5   :  { %30185 = vmatpush3.bf16.msra.mxu0 %v34056_v32  ;;  %v23362_v4 = vsub.f32 %v23360_v60, %v23361_v58 }
0x13f6   :  { %30187 = vmatprep.subr.bf16.mxu0 %v34002_v36  ;;  %v23373_v2 = vand.u32 4294901760, %v23372_v30 }
0x13f7   :  { %v23363_v20 = vand.u32 4294901760, %v23362_v4 }
0x13f8   :  { %28585 = vmatmul.mubr.f32.vlgmr.msra.gmra.mrb[182].mxu0 %v33996_v50 }
0x13f9   :  { %30189 = vmatpush3.bf16.msra.mxu0 %v34002_v36  ;;  %28664 = vmatprep.mubr.f32.mxu1 %v23363_v20 }
0x13fa   :  { %30191 = vmatprep.subr.bf16.mxu0 %v34019_v56  ;;  %28665 = vmatmul.mubr.f32.vlgmr.msra.gmra.mrb[96].mxu1 %v23373_v2 }
0x13fb   :  { %30245 = vmatpush3.bf16.msra.mxu1 %v33940_v0  ;;  %28683 = vmatprep.mubr.f32.mxu1 %v34086_v25  ;;  %v23949_v0 = vld [vmem:[#allocation10 + $0x250] ss:$0 sm:$0xff] }
0x13fc   :  { %30247 = vmatprep.subr.bf16.mxu1 %v33965_v35  ;;  %28603 = vmatprep.mubr.f32.mxu0 %v33897_v10 }
0x13fd   :  { %30193 = vmatpush3.bf16.msra.mxu0 %v34019_v56 }
0x13fe   :  { %30195 = vmatprep.subr.bf16.mxu0 %v34031_v38 }
0x13ff   :  { %30249 = vmatpush3.bf16.msra.mxu1 %v33965_v35 }
0x1400   :  { %30251 = vmatprep.subr.bf16.mxu1 %v33969_v37 }
0x1401   :  { %30197 = vmatpush3.bf16.msra.mxu0 %v34031_v38 }
0x1402   :  { %30199 = vmatprep.subr.bf16.mxu0 %v34043_v45 }
0x1403   :  { %30253 = vmatpush3.bf16.msra.mxu1 %v33969_v37 }
0x1404   :  { %30255 = vmatprep.subr.bf16.mxu1 %v33977_v39 }
0x1405   :  { %30201 = vmatpush3.bf16.msra.mxu0 %v34043_v45 }
0x1407   :  { %30257 = vmatpush3.bf16.msra.mxu1 %v33977_v39 }
0x1408   :  { %28604 = vmatmul.mubr.f32.vlgmr.msra.gmra.mrb[182].mxu0 %v33996_v50  ;;  %30259 = vmatprep.subr.bf16.mxu1 %v33981_v12  ;;  %v34280_v50 = vld [vmem:[#allocation17_spill] sm:$0xff] }
0x140a   :  { %28684 = vmatmul.mubr.f32.vlgmr.msra.gmra.mrb[96].mxu1 %v34082_v26 }
0x140b   :  { %30261 = vmatpush3.bf16.msra.mxu1 %v33981_v12  ;;  %28702 = vmatprep.mubr.f32.mxu1 %v23360_v60  ;;  %v23867_v12 = vpop.permute.xlu0 %23866 }
0x140c   :  { %30263 = vmatprep.subr.bf16.mxu1 %v33985_v5  ;;  %v23888_v36 = vsel %vm69_vm0, %v34280_v50, %v23867_v12 }
0x140f   :  { %30265 = vmatpush3.bf16.msra.mxu1 %v33985_v5 }
0x1410   :  { %30267 = vmatprep.subr.bf16.mxu1 %v33989_v3 }
0x1413   :  { %30269 = vmatpush3.bf16.msra.mxu1 %v33989_v3  ;;  %v34279_v3 = vld [vmem:[#allocation16_spill] sm:$0xff] }
0x1414   :  { %30271 = vmatprep.subr.bf16.mxu1 %v33993_v42 }
0x1417   :  { %30273 = vmatpush3.bf16.msra.mxu1 %v33993_v42 }
0x1418   :  { %30275 = vmatprep.subr.bf16.mxu1 %v33906_v17 }
0x141a   :  { %28703 = vmatmul.mubr.f32.vlgmr.msra.gmra.mrb[96].mxu1 %v23370_v7 }
0x141b   :  { %30277 = vmatpush3.bf16.msra.mxu1 %v33906_v17  ;;  %28721 = vmatprep.mubr.f32.mxu1 %v23361_v58 }
0x141c   :  { %30279 = vmatprep.subr.bf16.mxu1 %v33910_v54 }
0x141f   :  { %30281 = vmatpush3.bf16.msra.mxu1 %v33910_v54 }
0x1420   :  { %30283 = vmatprep.subr.bf16.mxu1 %v33914_v44 }
0x1423   :  { %30285 = vmatpush3.bf16.msra.mxu1 %v33914_v44 }
0x1424   :  { %30287 = vmatprep.subr.bf16.mxu1 %v33924_v14 }
0x1427   :  { %30289 = vmatpush3.bf16.msra.mxu1 %v33924_v14 }
0x1428   :  { %30291 = vmatprep.subr.bf16.mxu1 %v34017_v34 }
0x142a   :  { %28722 = vmatmul.mubr.f32.vlgmr.msra.gmra.mrb[96].mxu1 %v23371_v29 }
0x142b   :  { %30293 = vmatpush3.bf16.msra.mxu1 %v34017_v34  ;;  %28740 = vmatprep.mubr.f32.mxu1 %v34086_v25 }
0x142c   :  { %30295 = vmatprep.subr.bf16.mxu1 %v34029_v33 }
0x142f   :  { %30297 = vmatpush3.bf16.msra.mxu1 %v34029_v33 }
0x1430   :  { %30299 = vmatprep.subr.bf16.mxu1 %v34041_v1 }
0x1433   :  { %30301 = vmatpush3.bf16.msra.mxu1 %v34041_v1 }
0x1434   :  { %30303 = vmatprep.subr.bf16.mxu1 %v34051_v40 }
0x1437   :  { %30305 = vmatpush3.bf16.msra.mxu1 %v34051_v40 }
0x1438   :  { %30307 = vmatprep.subr.bf16.mxu1 %v33906_v17 }
0x143a   :  { %28741 = vmatmul.mubr.f32.vlgmr.msra.gmra.mrb[96].mxu1 %v34082_v26 }
0x143b   :  { %30309 = vmatpush3.bf16.msra.mxu1 %v33906_v17  ;;  %28759 = vmatprep.mubr.f32.mxu1 %v34086_v25 }
0x143c   :  { %30311 = vmatprep.subr.bf16.mxu1 %v33910_v54 }
0x143f   :  { %30313 = vmatpush3.bf16.msra.mxu1 %v33910_v54 }
0x1440   :  { %30315 = vmatprep.subr.bf16.mxu1 %v33914_v44 }
0x1443   :  { %30317 = vmatpush3.bf16.msra.mxu1 %v33914_v44  ;;  %v23869_v44 = vpop.permute.xlu1 %23868 }
0x1444   :  { %30319 = vmatprep.subr.bf16.mxu1 %v33924_v14  ;;  %v23889_v42 = vsel %vm69_vm0, %v34279_v3, %v23869_v44 }
0x1447   :  { %30321 = vmatpush3.bf16.msra.mxu1 %v33924_v14 }
0x144a   :  { %28760 = vmatmul.mubr.f32.vlgmr.msra.gmra.mrb[96].mxu1 %v34082_v26 }
0x14db   :  { %v28605_v10 = vpop.f32.mrb[182].mxu0 }
0x14dc   :  { %23876 = vrot.lane.b32.xlu1 %v28605_v10, %s31144_s28  ;;  %v22730_v17 = vpop.f32.mrb[183].mxu0 }
0x14dd   :  { %23874 = vrot.lane.b32.xlu0 %v22730_v17, %s31144_s28 }
0x151d   :  { %v28761_v35 = vpop.f32.mrb[96].mxu1 }
0x151e   :  { %v30360_v37 = vadd.f32 %v28761_v35, %v23949_v0  ;;  %v23856_v39 = vpop.f32.mrb[97].mxu1 }
0x151f   :  { %v30361_v54 = vadd.f32 %v23949_v0, %v23856_v39 }
0x1520   :  { %23884 = vrot.lane.b32.xlu1 %v30360_v37, %s31145_s5 }
0x1521   :  { %23882 = vrot.lane.b32.xlu0 %v30361_v54, %s31145_s5 }
0x154e   :  { %v23877_v5 = vpop.permute.xlu1 %23876 }
0x154f   :  { %v23875_v14 = vpop.permute.xlu0 %23874  ;;  %v23892_v34 = vsel %vm23890_vm5, %v23889_v42, %v23877_v5 }
0x1550   :  { %v23891_v33 = vsel %vm23890_vm5, %v23888_v36, %v23875_v14 }
0x1592   :  { %v23885_v56 = vpop.permute.xlu1 %23884 }
0x1593   :  { %v23894_v38 = vsel %vm629_vm1, %v23892_v34, %v23885_v56  ;;  %v23883_v1 = vpop.permute.xlu0 %23882 }
0x1594   :  { %v23897_v45 = vsel %vm23895_vm6, %v23894_v38, 0.0  ;;  %v23893_v27 = vsel %vm629_vm1, %v23891_v33, %v23883_v1 }
0x1595   :  { %23899 = vst [vmem:[%s34165_s4 + $0x8] sm:$0xff] %v23897_v45  ;;  %v23896_v28 = vsel %vm23895_vm6, %v23893_v27, 0.0 }
0x1596   :  { %23898 = vst [vmem:[%s34165_s4] sm:$0xff] %v23896_v28 }
0x1597   :  { %23904 = vsyncpa [#allocation7], 1 }
0x1598   :  { %23905 = vsyncpa [#allocation9], 1 }

</bundles_post_ra>
